<compile_context>
chip_gen: v6e
topology: v6e:2x2x1
jax: 0.10.0
libtpu: 0.0.40
codegen_flags: <defaults>
</compile_context>

<pallas_src>
import functools

import numpy as np
import jax
import jax.numpy as jnp
from jax.experimental import pallas as pl
from jax.experimental.pallas import tpu as pltpu


# ----------------------------------------------------------------------------
# Host-side construction of the deterministic pooling / upsampling matrices.
# ----------------------------------------------------------------------------
def _adaptive_avg_pool_matrix(in_size: int, out_size: int) -> np.ndarray:
    """P[i, h] = 1/|bin_i| if h in bin_i (PyTorch AdaptiveAvgPool bins)."""
    P = np.zeros((out_size, in_size), dtype=np.float32)
    for i in range(out_size):
        start = (i * in_size) // out_size
        end = -((-(i + 1) * in_size) // out_size)  # ceil((i+1)*in/out)
        P[i, start:end] = 1.0 / (end - start)
    return P


def _bilinear_upsample_matrix(in_size: int, out_size: int) -> np.ndarray:
    """U[h, i]: bilinear interpolation weights, align_corners=True."""
    U = np.zeros((out_size, in_size), dtype=np.float32)
    if in_size == 1:
        U[:, 0] = 1.0
        return U
    scale = (in_size - 1) / (out_size - 1) if out_size > 1 else 0.0
    for h in range(out_size):
        src = h * scale
        i0 = min(int(np.floor(src)), in_size - 1)
        i1 = min(i0 + 1, in_size - 1)
        w1 = src - i0
        U[h, i0] += 1.0 - w1
        U[h, i1] += w1
    return U


# ----------------------------------------------------------------------------
# The single fused kernel.
#
# Layout: the input is zero-padded (1 top, 2 bottom, 1 left, 1 right) and
# flattened row-major over the padded grid of width Wp = W + 2, so every 3x3
# tap shift becomes a *contiguous* slice of the flat array ("band" trick).
# The conv output is produced for band rows r = y*Wp + x; the wrapper drops
# the two padding columns afterwards.
#
# Refs (per grid step (n, j)):
#   xpad_ref:  (1, L, C)             padded+flattened input, bf16
#   p2_ref:    (S2p, L)              stacked padded pooling matrices (S2p=56)
#   w1_ref:    (C, n_stages*F)       stacked 1x1 stage conv weights
#   mask_ref:  (S2p, n_stages*F)     block-diagonal stage-selection mask (f32)
#   a_ref:     (band, 9*S2p)         shifted padded bilinear-upsample matrices,
#                                    columns ordered (tap, stacked-bin)
#   wt_ref:    (9, n_stages*F, FT)   bottleneck weight rows for stage channels,
#                                    per tap, BN-scale pre-folded
#   wx_ref:    (9, C, FT)            bottleneck weight rows for input channels,
#                                    per tap, BN-scale pre-folded
#   shift_ref: (1, FT)               folded BN shift (f32)
#   o_ref:     (1, band, FT)         conv+BN output over band rows (f32)
# ----------------------------------------------------------------------------
def _psp_fused_kernel(xpad_ref, p2_ref, w1_ref, mask_ref, a_ref, wt_ref,
                      wx_ref, shift_ref, o_ref, *, H, W):
    Wp = W + 2
    band = H * Wp
    q0 = Wp + 1

    x_flat = xpad_ref[0]                                   # (L, C) bf16

    # --- pyramid pooling: all stages in ONE matmul --------------------------
    pooled = jnp.dot(p2_ref[...], x_flat,
                     preferred_element_type=jnp.float32)   # (S2p, C) f32

    # --- all 1x1 stage convs in ONE stacked matmul; block-diag selection ----
    proj = jnp.dot(pooled.astype(w1_ref.dtype), w1_ref[...],
                   preferred_element_type=jnp.float32)     # (S2p, n_stages*F)
    proj_m = (proj * mask_ref[...]).astype(wt_ref.dtype)   # bf16

    # --- fold pyramid branch of the 3x3 conv: one matmul per tap (9 total) --
    b_parts = [jnp.dot(proj_m, wt_ref[t], preferred_element_type=jnp.float32)
               for t in range(9)]
    b_all = jnp.concatenate(b_parts, axis=0).astype(a_ref.dtype)  # (9*S2p, FT)

    # --- pyramid contribution: ONE band matmul with K = 9*S2p ---------------
    acc = jnp.dot(a_ref[...], b_all,
                  preferred_element_type=jnp.float32)      # (band, FT) f32

    # --- identity (input) branch: 9 contiguous band slices, no relayouts ----
    for dy in range(3):
        for dx in range(3):
            off = q0 + (dy - 1) * Wp + (dx - 1)
            acc += jnp.dot(x_flat[off:off + band, :], wx_ref[dy * 3 + dx],
                           preferred_element_type=jnp.float32)

    # --- folded BN (eval): scale is pre-folded into weights; add shift ------
    # Dropout2d(0.1) is identity in eval mode.
    o_ref[0] = (acc + shift_ref[0]).astype(o_ref.dtype)


# ----------------------------------------------------------------------------
# Host-side parameter preparation (layout + stacking + BN fold + bf16 cast).
# ----------------------------------------------------------------------------
def prepare_psp_params(H, W, sizes, stage_weights, w_bottleneck_hwio,
                       bn_scale, bn_shift, compute_dtype=jnp.bfloat16):
    C, F = stage_weights[0].shape
    n_stages = len(sizes)
    K_stage = n_stages * F
    Wp = W + 2
    L = (H + 3) * Wp           # 1 top + 2 bottom pad rows (slack for band slices)
    band = H * Wp
    q0 = Wp + 1
    S2 = sum(s * s for s in sizes)
    S2p = ((S2 + 7) // 8) * 8  # pad stacked bins to a sublane multiple

    p2 = np.zeros((S2p, L), np.float32)          # stacked pooling matrices
    u_all = np.zeros((L, S2p), np.float32)       # stacked padded upsample mats
    mask = np.zeros((S2p, K_stage), np.float32)  # stage-selection mask

    row = 0
    for si, s in enumerate(sizes):
        ssq = s * s
        P2 = np.kron(_adaptive_avg_pool_matrix(H, s),
                     _adaptive_avg_pool_matrix(W, s))          # (s^2, H*W)
        P2e = np.zeros((ssq, H + 3, Wp), np.float32)
        P2e[:, 1:H + 1, 1:W + 1] = P2.reshape(ssq, H, W)
        p2[row:row + ssq] = P2e.reshape(ssq, L)

        U2 = np.kron(_bilinear_upsample_matrix(s, H),
                     _bilinear_upsample_matrix(s, W))          # (H*W, s^2)
        Ue = np.zeros((H + 3, Wp, ssq), np.float32)
        Ue[1:H + 1, 1:W + 1, :] = U2.reshape(H, W, ssq)
        u_all[:, row:row + ssq] = Ue.reshape(L, ssq)

        mask[row:row + ssq, si * F:(si + 1) * F] = 1.0
        row += ssq

    # a_band columns ordered (tap, stacked-bin): per tap, a shifted band slice.
    a_cols = []
    for t in range(9):
        dy, dx = t // 3, t % 3
        off = q0 + (dy - 1) * Wp + (dx - 1)
        a_cols.append(u_all[off:off + band, :])
    a_band = np.concatenate(a_cols, axis=1)                    # (band, 9*S2p)

    # Bottleneck 3x3 weights, split into stage-channel rows / input-channel
    # rows per tap, with the folded BatchNorm scale pre-multiplied in f32.
    w_np = np.asarray(w_bottleneck_hwio, np.float32)           # (3,3,Cin,Fout)
    scale_np = np.asarray(bn_scale, np.float32).reshape(1, -1)
    w_taps = np.stack([w_np[t // 3, t % 3, :K_stage, :] * scale_np
                       for t in range(9)], axis=0)             # (9,K_stage,Fout)
    wx = np.stack([w_np[t // 3, t % 3, K_stage:, :] * scale_np
                   for t in range(9)], axis=0)                 # (9, C, Fout)

    return dict(
        p2=jnp.asarray(p2, compute_dtype),
        a_band=jnp.asarray(a_band, compute_dtype),
        w1=jnp.concatenate(
            [jnp.asarray(w, compute_dtype) for w in stage_weights], axis=1),
        mask=jnp.asarray(mask, jnp.float32),
        w_taps=jnp.asarray(w_taps, compute_dtype),
        wx=jnp.asarray(wx, compute_dtype),
        bn_shift=jnp.asarray(bn_shift, jnp.float32).reshape(1, -1),
        sizes=tuple(sizes), H=H, W=W, F=F, S2p=S2p,
        compute_dtype=compute_dtype)


# ----------------------------------------------------------------------------
# Full PSPModule forward (wrapper: one transpose in, one transpose out).
# ----------------------------------------------------------------------------
def psp_module_forward(x_nchw, params):
    H, W, F, sizes = params["H"], params["W"], params["F"], params["sizes"]
    S2p = params["S2p"]
    cdt = params["compute_dtype"]
    N, C = x_nchw.shape[0], x_nchw.shape[1]
    n_stages = len(sizes)
    F_out = params["bn_shift"].shape[-1]
    FT = 128 if F_out % 128 == 0 else F_out     # lane-dense output tiles
    Wp = W + 2
    L = (H + 3) * Wp
    band = H * Wp

    x = jnp.transpose(x_nchw, (0, 2, 3, 1)).astype(cdt)          # NCHW -> NHWC
    xpad = jnp.pad(x, ((0, 0), (1, 2), (1, 1), (0, 0))).reshape(N, L, C)

    kernel = functools.partial(_psp_fused_kernel, H=H, W=W)
    out_band = pl.pallas_call(
        kernel,
        out_shape=jax.ShapeDtypeStruct((N, band, F_out), jnp.float32),
        grid=(N, F_out // FT),
        in_specs=[
            pl.BlockSpec((1, L, C), lambda n, j: (n, 0, 0)),
            pl.BlockSpec((S2p, L), lambda n, j: (0, 0)),
            pl.BlockSpec((C, n_stages * F), lambda n, j: (0, 0)),
            pl.BlockSpec((S2p, n_stages * F), lambda n, j: (0, 0)),
            pl.BlockSpec((band, 9 * S2p), lambda n, j: (0, 0)),
            pl.BlockSpec((9, n_stages * F, FT), lambda n, j: (0, 0, j)),
            pl.BlockSpec((9, C, FT), lambda n, j: (0, 0, j)),
            pl.BlockSpec((1, FT), lambda n, j: (0, j)),
        ],
        out_specs=pl.BlockSpec((1, band, FT), lambda n, j: (n, 0, j)),
        compiler_params=pltpu.CompilerParams(
            dimension_semantics=("parallel", "parallel")),
    )(xpad, params["p2"], params["w1"], params["mask"], params["a_band"],
      params["w_taps"], params["wx"], params["bn_shift"])

    out = out_band.reshape(N, H, Wp, F_out)[:, :, :W, :]         # drop pad cols
    return jnp.transpose(out, (0, 3, 1, 2))                      # back to NCHW


# ----------------------------------------------------------------------------
# Pure-JAX f32 reference (XLA conv) used only for an in-script sanity check.
# ----------------------------------------------------------------------------
def psp_reference(x_nchw, stage_weights, w_bottleneck_hwio, bn_scale, bn_shift,
                  sizes):
    N, C, H, W = x_nchw.shape
    x = jnp.transpose(x_nchw, (0, 2, 3, 1)).astype(jnp.float32)
    x_flat = x.reshape(N, H * W, C)
    hi = jax.lax.Precision.HIGHEST
    priors = []
    for s, w1 in zip(sizes, stage_weights):
        P2 = jnp.asarray(np.kron(_adaptive_avg_pool_matrix(H, s),
                                 _adaptive_avg_pool_matrix(W, s)))
        U2 = jnp.asarray(np.kron(_bilinear_upsample_matrix(s, H),
                                 _bilinear_upsample_matrix(s, W)))
        pooled = jnp.einsum("sp,npc->nsc", P2, x_flat, precision=hi)
        proj = jnp.einsum("nsc,cf->nsf", pooled, w1, precision=hi)
        up = jnp.einsum("ps,nsf->npf", U2, proj, precision=hi)
        priors.append(up.reshape(N, H, W, -1))
    priors.append(x)
    cat = jnp.concatenate(priors, axis=-1)
    conv = jax.lax.conv_general_dilated(
        cat, w_bottleneck_hwio, window_strides=(1, 1), padding="SAME",
        dimension_numbers=("NHWC", "HWIO", "NHWC"), precision=hi)
    out = conv * bn_scale.reshape(1, 1, 1, -1) + bn_shift.reshape(1, 1, 1, -1)
    return jnp.transpose(out, (0, 3, 1, 2))


if __name__ == "__main__":
    # Small shapes consistent with the module's forward (F_out kept a multiple
    # of 128 so output stores are lane-dense; the real module uses 512).
    N, C, H, W = 2, 4, 16, 16
    F_out = 128
    sizes = (1, 2, 3, 6)
    Cin = C + len(sizes) * F_out

    key = jax.random.PRNGKey(0)
    k_x, k_w, k_b, k_g, k_be, k_m, k_v = jax.random.split(key, 7)

    x = jax.random.normal(k_x, (N, C, H, W), dtype=jnp.float32)

    # Stage 1x1 conv weights: PyTorch (F, C, 1, 1) -> stored as (C, F).
    stage_keys = jax.random.split(k_w, len(sizes))
    stage_weights = [jax.random.normal(sk, (C, F_out), jnp.float32) / np.sqrt(C)
                     for sk in stage_keys]
    # Bottleneck 3x3 conv: PyTorch (F, Cin, 3, 3) -> HWIO (3, 3, Cin, F).
    w_bottleneck = (jax.random.normal(k_b, (3, 3, Cin, F_out), jnp.float32)
                    / np.sqrt(9 * Cin))

    # BatchNorm2d(F_out) running stats (eval-mode, folded into scale/shift).
    eps = 1e-5
    gamma = 1.0 + 0.1 * jax.random.normal(k_g, (F_out,), jnp.float32)
    beta = 0.1 * jax.random.normal(k_be, (F_out,), jnp.float32)
    running_mean = 0.1 * jax.random.normal(k_m, (F_out,), jnp.float32)
    running_var = jax.random.uniform(k_v, (F_out,), jnp.float32, 0.5, 1.5)
    bn_scale = gamma / jnp.sqrt(running_var + eps)
    bn_shift = beta - running_mean * bn_scale

    params = prepare_psp_params(H, W, sizes, stage_weights, w_bottleneck,
                                bn_scale, bn_shift)

    out = jax.block_until_ready(psp_module_forward(x, params))
    assert out.shape == (N, F_out, H, W), out.shape

    ref = jax.block_until_ready(
        psp_reference(x, stage_weights, w_bottleneck, bn_scale, bn_shift, sizes))
    out_np, ref_np = np.asarray(out), np.asarray(ref)
    if not np.allclose(out_np, ref_np, rtol=5e-2, atol=5e-2):
        max_err = float(np.max(np.abs(out_np - ref_np)))
        raise AssertionError(f"Pallas output mismatch vs reference, max_err={max_err}")

    print("KERNEL_OK")
</pallas_src>

<mosaic_0001>
module attributes {stable_mosaic.version = 11 : i64} {
  func.func @_psp_fused_kernel(%arg0: i32, %arg1: i32, %arg2: memref<1x342x4xbf16, #tpu.memory_space<vmem>>, %arg3: memref<56x342xbf16, #tpu.memory_space<vmem>>, %arg4: memref<4x512xbf16, #tpu.memory_space<vmem>>, %arg5: memref<56x512xf32, #tpu.memory_space<vmem>>, %arg6: memref<288x504xbf16, #tpu.memory_space<vmem>>, %arg7: memref<9x512x128xbf16, #tpu.memory_space<vmem>>, %arg8: memref<9x4x128xbf16, #tpu.memory_space<vmem>>, %arg9: memref<1x128xf32, #tpu.memory_space<vmem>>, %arg10: memref<1x288x128xf32, #tpu.memory_space<vmem>>) attributes {dimension_semantics = [#tpu.dimension_semantics<parallel>, #tpu.dimension_semantics<parallel>], iteration_bounds = array<i64: 2, 1>, scalar_prefetch = 0 : i64, scratch_operands = 0 : i64, tpu.core_type = #tpu.core_type<tc>, window_params = [{transform_indices = @transform_0, window_bounds = array<i64: 1, 342, 4>}, {pipeline_mode = #tpu.pipeline_mode<synchronous>, transform_indices = @transform_1, window_bounds = array<i64: 56, 342>}, {pipeline_mode = #tpu.pipeline_mode<synchronous>, transform_indices = @transform_2, window_bounds = array<i64: 4, 512>}, {pipeline_mode = #tpu.pipeline_mode<synchronous>, transform_indices = @transform_3, window_bounds = array<i64: 56, 512>}, {pipeline_mode = #tpu.pipeline_mode<synchronous>, transform_indices = @transform_4, window_bounds = array<i64: 288, 504>}, {transform_indices = @transform_5, window_bounds = array<i64: 9, 512, 128>}, {transform_indices = @transform_6, window_bounds = array<i64: 9, 4, 128>}, {transform_indices = @transform_7, window_bounds = array<i64: 1, 128>}, {transform_indices = @transform_8, window_bounds = array<i64: 1, 288, 128>}]} {
    %c0 = arith.constant 0 : index
    %c0_0 = arith.constant 0 : index
    %c0_1 = arith.constant 0 : index
    %0 = vector.load %arg2[%c0, %c0_0, %c0_1] : memref<1x342x4xbf16, #tpu.memory_space<vmem>>, vector<1x342x4xbf16>
    %1 = vector.shape_cast %0 : vector<1x342x4xbf16> to vector<342x4xbf16>
    %c0_2 = arith.constant 0 : index
    %c0_3 = arith.constant 0 : index
    %2 = vector.load %arg3[%c0_2, %c0_3] : memref<56x342xbf16, #tpu.memory_space<vmem>>, vector<56x342xbf16>
    %cst = arith.constant dense<0.000000e+00> : vector<56x4xf32>
    %3 = tpu.matmul %2, %1, %cst {dimension_numbers = #tpu.dot_dimension_numbers<[1], [0], [0], [1], [0, 0, 1, 1], [], []>} : vector<56x342xbf16>, vector<342x4xbf16>, vector<56x4xf32> -> vector<56x4xf32>
    %4 = arith.truncf %3 : vector<56x4xf32> to vector<56x4xbf16>
    %c0_4 = arith.constant 0 : index
    %c0_5 = arith.constant 0 : index
    %5 = vector.load %arg4[%c0_4, %c0_5] : memref<4x512xbf16, #tpu.memory_space<vmem>>, vector<4x512xbf16>
    %cst_6 = arith.constant dense<0.000000e+00> : vector<56x512xf32>
    %6 = tpu.matmul %4, %5, %cst_6 {dimension_numbers = #tpu.dot_dimension_numbers<[1], [0], [0], [1], [0, 0, 1, 1], [], []>} : vector<56x4xbf16>, vector<4x512xbf16>, vector<56x512xf32> -> vector<56x512xf32>
    %c0_7 = arith.constant 0 : index
    %c0_8 = arith.constant 0 : index
    %7 = vector.load %arg5[%c0_7, %c0_8] : memref<56x512xf32, #tpu.memory_space<vmem>>, vector<56x512xf32>
    %8 = arith.mulf %6, %7 : vector<56x512xf32>
    %9 = arith.truncf %8 : vector<56x512xf32> to vector<56x512xbf16>
    %c0_9 = arith.constant 0 : index
    %c0_10 = arith.constant 0 : index
    %c0_11 = arith.constant 0 : index
    %10 = vector.load %arg7[%c0_9, %c0_10, %c0_11] : memref<9x512x128xbf16, #tpu.memory_space<vmem>>, vector<1x512x128xbf16>
    %11 = vector.shape_cast %10 : vector<1x512x128xbf16> to vector<512x128xbf16>
    %cst_12 = arith.constant dense<0.000000e+00> : vector<56x128xf32>
    %12 = tpu.matmul %9, %11, %cst_12 {dimension_numbers = #tpu.dot_dimension_numbers<[1], [0], [0], [1], [0, 0, 1, 1], [], []>} : vector<56x512xbf16>, vector<512x128xbf16>, vector<56x128xf32> -> vector<56x128xf32>
    %c1 = arith.constant 1 : index
    %c0_13 = arith.constant 0 : index
    %c0_14 = arith.constant 0 : index
    %13 = vector.load %arg7[%c1, %c0_13, %c0_14] : memref<9x512x128xbf16, #tpu.memory_space<vmem>>, vector<1x512x128xbf16>
    %14 = vector.shape_cast %13 : vector<1x512x128xbf16> to vector<512x128xbf16>
    %cst_15 = arith.constant dense<0.000000e+00> : vector<56x128xf32>
    %15 = tpu.matmul %9, %14, %cst_15 {dimension_numbers = #tpu.dot_dimension_numbers<[1], [0], [0], [1], [0, 0, 1, 1], [], []>} : vector<56x512xbf16>, vector<512x128xbf16>, vector<56x128xf32> -> vector<56x128xf32>
    %c2 = arith.constant 2 : index
    %c0_16 = arith.constant 0 : index
    %c0_17 = arith.constant 0 : index
    %16 = vector.load %arg7[%c2, %c0_16, %c0_17] : memref<9x512x128xbf16, #tpu.memory_space<vmem>>, vector<1x512x128xbf16>
    %17 = vector.shape_cast %16 : vector<1x512x128xbf16> to vector<512x128xbf16>
    %cst_18 = arith.constant dense<0.000000e+00> : vector<56x128xf32>
    %18 = tpu.matmul %9, %17, %cst_18 {dimension_numbers = #tpu.dot_dimension_numbers<[1], [0], [0], [1], [0, 0, 1, 1], [], []>} : vector<56x512xbf16>, vector<512x128xbf16>, vector<56x128xf32> -> vector<56x128xf32>
    %c3 = arith.constant 3 : index
    %c0_19 = arith.constant 0 : index
    %c0_20 = arith.constant 0 : index
    %19 = vector.load %arg7[%c3, %c0_19, %c0_20] : memref<9x512x128xbf16, #tpu.memory_space<vmem>>, vector<1x512x128xbf16>
    %20 = vector.shape_cast %19 : vector<1x512x128xbf16> to vector<512x128xbf16>
    %cst_21 = arith.constant dense<0.000000e+00> : vector<56x128xf32>
    %21 = tpu.matmul %9, %20, %cst_21 {dimension_numbers = #tpu.dot_dimension_numbers<[1], [0], [0], [1], [0, 0, 1, 1], [], []>} : vector<56x512xbf16>, vector<512x128xbf16>, vector<56x128xf32> -> vector<56x128xf32>
    %c4 = arith.constant 4 : index
    %c0_22 = arith.constant 0 : index
    %c0_23 = arith.constant 0 : index
    %22 = vector.load %arg7[%c4, %c0_22, %c0_23] : memref<9x512x128xbf16, #tpu.memory_space<vmem>>, vector<1x512x128xbf16>
    %23 = vector.shape_cast %22 : vector<1x512x128xbf16> to vector<512x128xbf16>
    %cst_24 = arith.constant dense<0.000000e+00> : vector<56x128xf32>
    %24 = tpu.matmul %9, %23, %cst_24 {dimension_numbers = #tpu.dot_dimension_numbers<[1], [0], [0], [1], [0, 0, 1, 1], [], []>} : vector<56x512xbf16>, vector<512x128xbf16>, vector<56x128xf32> -> vector<56x128xf32>
    %c5 = arith.constant 5 : index
    %c0_25 = arith.constant 0 : index
    %c0_26 = arith.constant 0 : index
    %25 = vector.load %arg7[%c5, %c0_25, %c0_26] : memref<9x512x128xbf16, #tpu.memory_space<vmem>>, vector<1x512x128xbf16>
    %26 = vector.shape_cast %25 : vector<1x512x128xbf16> to vector<512x128xbf16>
    %cst_27 = arith.constant dense<0.000000e+00> : vector<56x128xf32>
    %27 = tpu.matmul %9, %26, %cst_27 {dimension_numbers = #tpu.dot_dimension_numbers<[1], [0], [0], [1], [0, 0, 1, 1], [], []>} : vector<56x512xbf16>, vector<512x128xbf16>, vector<56x128xf32> -> vector<56x128xf32>
    %c6 = arith.constant 6 : index
    %c0_28 = arith.constant 0 : index
    %c0_29 = arith.constant 0 : index
    %28 = vector.load %arg7[%c6, %c0_28, %c0_29] : memref<9x512x128xbf16, #tpu.memory_space<vmem>>, vector<1x512x128xbf16>
    %29 = vector.shape_cast %28 : vector<1x512x128xbf16> to vector<512x128xbf16>
    %cst_30 = arith.constant dense<0.000000e+00> : vector<56x128xf32>
    %30 = tpu.matmul %9, %29, %cst_30 {dimension_numbers = #tpu.dot_dimension_numbers<[1], [0], [0], [1], [0, 0, 1, 1], [], []>} : vector<56x512xbf16>, vector<512x128xbf16>, vector<56x128xf32> -> vector<56x128xf32>
    %c7 = arith.constant 7 : index
    %c0_31 = arith.constant 0 : index
    %c0_32 = arith.constant 0 : index
    %31 = vector.load %arg7[%c7, %c0_31, %c0_32] : memref<9x512x128xbf16, #tpu.memory_space<vmem>>, vector<1x512x128xbf16>
    %32 = vector.shape_cast %31 : vector<1x512x128xbf16> to vector<512x128xbf16>
    %cst_33 = arith.constant dense<0.000000e+00> : vector<56x128xf32>
    %33 = tpu.matmul %9, %32, %cst_33 {dimension_numbers = #tpu.dot_dimension_numbers<[1], [0], [0], [1], [0, 0, 1, 1], [], []>} : vector<56x512xbf16>, vector<512x128xbf16>, vector<56x128xf32> -> vector<56x128xf32>
    %c8 = arith.constant 8 : index
    %c0_34 = arith.constant 0 : index
    %c0_35 = arith.constant 0 : index
    %34 = vector.load %arg7[%c8, %c0_34, %c0_35] : memref<9x512x128xbf16, #tpu.memory_space<vmem>>, vector<1x512x128xbf16>
    %35 = vector.shape_cast %34 : vector<1x512x128xbf16> to vector<512x128xbf16>
    %cst_36 = arith.constant dense<0.000000e+00> : vector<56x128xf32>
    %36 = tpu.matmul %9, %35, %cst_36 {dimension_numbers = #tpu.dot_dimension_numbers<[1], [0], [0], [1], [0, 0, 1, 1], [], []>} : vector<56x512xbf16>, vector<512x128xbf16>, vector<56x128xf32> -> vector<56x128xf32>
    %37 = tpu.concatenate %12, %15, %18, %21, %24, %27, %30, %33, %36 in 0 : vector<56x128xf32>, vector<56x128xf32>, vector<56x128xf32>, vector<56x128xf32>, vector<56x128xf32>, vector<56x128xf32>, vector<56x128xf32>, vector<56x128xf32>, vector<56x128xf32> -> vector<504x128xf32>
    %38 = arith.truncf %37 : vector<504x128xf32> to vector<504x128xbf16>
    %c0_37 = arith.constant 0 : index
    %c0_38 = arith.constant 0 : index
    %39 = vector.load %arg6[%c0_37, %c0_38] : memref<288x504xbf16, #tpu.memory_space<vmem>>, vector<288x504xbf16>
    %cst_39 = arith.constant dense<0.000000e+00> : vector<288x128xf32>
    %40 = tpu.matmul %39, %38, %cst_39 {dimension_numbers = #tpu.dot_dimension_numbers<[1], [0], [0], [1], [0, 0, 1, 1], [], []>} : vector<288x504xbf16>, vector<504x128xbf16>, vector<288x128xf32> -> vector<288x128xf32>
    %41 = vector.extract_strided_slice %1 {offsets = [0, 0], sizes = [288, 4], strides = [1, 1]} : vector<342x4xbf16> to vector<288x4xbf16>
    %c0_40 = arith.constant 0 : index
    %c0_41 = arith.constant 0 : index
    %c0_42 = arith.constant 0 : index
    %42 = vector.load %arg8[%c0_40, %c0_41, %c0_42] : memref<9x4x128xbf16, #tpu.memory_space<vmem>>, vector<1x4x128xbf16>
    %43 = vector.shape_cast %42 : vector<1x4x128xbf16> to vector<4x128xbf16>
    %cst_43 = arith.constant dense<0.000000e+00> : vector<288x128xf32>
    %44 = tpu.matmul %41, %43, %cst_43 {dimension_numbers = #tpu.dot_dimension_numbers<[1], [0], [0], [1], [0, 0, 1, 1], [], []>} : vector<288x4xbf16>, vector<4x128xbf16>, vector<288x128xf32> -> vector<288x128xf32>
    %45 = arith.addf %40, %44 : vector<288x128xf32>
    %46 = vector.extract_strided_slice %1 {offsets = [1, 0], sizes = [288, 4], strides = [1, 1]} : vector<342x4xbf16> to vector<288x4xbf16>
    %c1_44 = arith.constant 1 : index
    %c0_45 = arith.constant 0 : index
    %c0_46 = arith.constant 0 : index
    %47 = vector.load %arg8[%c1_44, %c0_45, %c0_46] : memref<9x4x128xbf16, #tpu.memory_space<vmem>>, vector<1x4x128xbf16>
    %48 = vector.shape_cast %47 : vector<1x4x128xbf16> to vector<4x128xbf16>
    %cst_47 = arith.constant dense<0.000000e+00> : vector<288x128xf32>
    %49 = tpu.matmul %46, %48, %cst_47 {dimension_numbers = #tpu.dot_dimension_numbers<[1], [0], [0], [1], [0, 0, 1, 1], [], []>} : vector<288x4xbf16>, vector<4x128xbf16>, vector<288x128xf32> -> vector<288x128xf32>
    %50 = arith.addf %45, %49 : vector<288x128xf32>
    %51 = vector.extract_strided_slice %1 {offsets = [2, 0], sizes = [288, 4], strides = [1, 1]} : vector<342x4xbf16> to vector<288x4xbf16>
    %c2_48 = arith.constant 2 : index
    %c0_49 = arith.constant 0 : index
    %c0_50 = arith.constant 0 : index
    %52 = vector.load %arg8[%c2_48, %c0_49, %c0_50] : memref<9x4x128xbf16, #tpu.memory_space<vmem>>, vector<1x4x128xbf16>
    %53 = vector.shape_cast %52 : vector<1x4x128xbf16> to vector<4x128xbf16>
    %cst_51 = arith.constant dense<0.000000e+00> : vector<288x128xf32>
    %54 = tpu.matmul %51, %53, %cst_51 {dimension_numbers = #tpu.dot_dimension_numbers<[1], [0], [0], [1], [0, 0, 1, 1], [], []>} : vector<288x4xbf16>, vector<4x128xbf16>, vector<288x128xf32> -> vector<288x128xf32>
    %55 = arith.addf %50, %54 : vector<288x128xf32>
    %56 = vector.extract_strided_slice %1 {offsets = [18, 0], sizes = [288, 4], strides = [1, 1]} : vector<342x4xbf16> to vector<288x4xbf16>
    %c3_52 = arith.constant 3 : index
    %c0_53 = arith.constant 0 : index
    %c0_54 = arith.constant 0 : index
    %57 = vector.load %arg8[%c3_52, %c0_53, %c0_54] : memref<9x4x128xbf16, #tpu.memory_space<vmem>>, vector<1x4x128xbf16>
    %58 = vector.shape_cast %57 : vector<1x4x128xbf16> to vector<4x128xbf16>
    %cst_55 = arith.constant dense<0.000000e+00> : vector<288x128xf32>
    %59 = tpu.matmul %56, %58, %cst_55 {dimension_numbers = #tpu.dot_dimension_numbers<[1], [0], [0], [1], [0, 0, 1, 1], [], []>} : vector<288x4xbf16>, vector<4x128xbf16>, vector<288x128xf32> -> vector<288x128xf32>
    %60 = arith.addf %55, %59 : vector<288x128xf32>
    %61 = vector.extract_strided_slice %1 {offsets = [19, 0], sizes = [288, 4], strides = [1, 1]} : vector<342x4xbf16> to vector<288x4xbf16>
    %c4_56 = arith.constant 4 : index
    %c0_57 = arith.constant 0 : index
    %c0_58 = arith.constant 0 : index
    %62 = vector.load %arg8[%c4_56, %c0_57, %c0_58] : memref<9x4x128xbf16, #tpu.memory_space<vmem>>, vector<1x4x128xbf16>
    %63 = vector.shape_cast %62 : vector<1x4x128xbf16> to vector<4x128xbf16>
    %cst_59 = arith.constant dense<0.000000e+00> : vector<288x128xf32>
    %64 = tpu.matmul %61, %63, %cst_59 {dimension_numbers = #tpu.dot_dimension_numbers<[1], [0], [0], [1], [0, 0, 1, 1], [], []>} : vector<288x4xbf16>, vector<4x128xbf16>, vector<288x128xf32> -> vector<288x128xf32>
    %65 = arith.addf %60, %64 : vector<288x128xf32>
    %66 = vector.extract_strided_slice %1 {offsets = [20, 0], sizes = [288, 4], strides = [1, 1]} : vector<342x4xbf16> to vector<288x4xbf16>
    %c5_60 = arith.constant 5 : index
    %c0_61 = arith.constant 0 : index
    %c0_62 = arith.constant 0 : index
    %67 = vector.load %arg8[%c5_60, %c0_61, %c0_62] : memref<9x4x128xbf16, #tpu.memory_space<vmem>>, vector<1x4x128xbf16>
    %68 = vector.shape_cast %67 : vector<1x4x128xbf16> to vector<4x128xbf16>
    %cst_63 = arith.constant dense<0.000000e+00> : vector<288x128xf32>
    %69 = tpu.matmul %66, %68, %cst_63 {dimension_numbers = #tpu.dot_dimension_numbers<[1], [0], [0], [1], [0, 0, 1, 1], [], []>} : vector<288x4xbf16>, vector<4x128xbf16>, vector<288x128xf32> -> vector<288x128xf32>
    %70 = arith.addf %65, %69 : vector<288x128xf32>
    %71 = vector.extract_strided_slice %1 {offsets = [36, 0], sizes = [288, 4], strides = [1, 1]} : vector<342x4xbf16> to vector<288x4xbf16>
    %c6_64 = arith.constant 6 : index
    %c0_65 = arith.constant 0 : index
    %c0_66 = arith.constant 0 : index
    %72 = vector.load %arg8[%c6_64, %c0_65, %c0_66] : memref<9x4x128xbf16, #tpu.memory_space<vmem>>, vector<1x4x128xbf16>
    %73 = vector.shape_cast %72 : vector<1x4x128xbf16> to vector<4x128xbf16>
    %cst_67 = arith.constant dense<0.000000e+00> : vector<288x128xf32>
    %74 = tpu.matmul %71, %73, %cst_67 {dimension_numbers = #tpu.dot_dimension_numbers<[1], [0], [0], [1], [0, 0, 1, 1], [], []>} : vector<288x4xbf16>, vector<4x128xbf16>, vector<288x128xf32> -> vector<288x128xf32>
    %75 = arith.addf %70, %74 : vector<288x128xf32>
    %76 = vector.extract_strided_slice %1 {offsets = [37, 0], sizes = [288, 4], strides = [1, 1]} : vector<342x4xbf16> to vector<288x4xbf16>
    %c7_68 = arith.constant 7 : index
    %c0_69 = arith.constant 0 : index
    %c0_70 = arith.constant 0 : index
    %77 = vector.load %arg8[%c7_68, %c0_69, %c0_70] : memref<9x4x128xbf16, #tpu.memory_space<vmem>>, vector<1x4x128xbf16>
    %78 = vector.shape_cast %77 : vector<1x4x128xbf16> to vector<4x128xbf16>
    %cst_71 = arith.constant dense<0.000000e+00> : vector<288x128xf32>
    %79 = tpu.matmul %76, %78, %cst_71 {dimension_numbers = #tpu.dot_dimension_numbers<[1], [0], [0], [1], [0, 0, 1, 1], [], []>} : vector<288x4xbf16>, vector<4x128xbf16>, vector<288x128xf32> -> vector<288x128xf32>
    %80 = arith.addf %75, %79 : vector<288x128xf32>
    %81 = vector.extract_strided_slice %1 {offsets = [38, 0], sizes = [288, 4], strides = [1, 1]} : vector<342x4xbf16> to vector<288x4xbf16>
    %c8_72 = arith.constant 8 : index
    %c0_73 = arith.constant 0 : index
    %c0_74 = arith.constant 0 : index
    %82 = vector.load %arg8[%c8_72, %c0_73, %c0_74] : memref<9x4x128xbf16, #tpu.memory_space<vmem>>, vector<1x4x128xbf16>
    %83 = vector.shape_cast %82 : vector<1x4x128xbf16> to vector<4x128xbf16>
    %cst_75 = arith.constant dense<0.000000e+00> : vector<288x128xf32>
    %84 = tpu.matmul %81, %83, %cst_75 {dimension_numbers = #tpu.dot_dimension_numbers<[1], [0], [0], [1], [0, 0, 1, 1], [], []>} : vector<288x4xbf16>, vector<4x128xbf16>, vector<288x128xf32> -> vector<288x128xf32>
    %85 = arith.addf %80, %84 : vector<288x128xf32>
    %c0_76 = arith.constant 0 : index
    %c0_77 = arith.constant 0 : index
    %86 = vector.load %arg9[%c0_76, %c0_77] : memref<1x128xf32, #tpu.memory_space<vmem>>, vector<1x128xf32>
    %87 = vector.shape_cast %86 : vector<1x128xf32> to vector<128xf32>
    %88 = vector.shape_cast %87 : vector<128xf32> to vector<1x128xf32>
    %89 = vector.broadcast %88 : vector<1x128xf32> to vector<288x128xf32>
    %90 = arith.addf %85, %89 : vector<288x128xf32>
    %c0_78 = arith.constant 0 : index
    %c0_79 = arith.constant 0 : index
    %c0_80 = arith.constant 0 : index
    %91 = vector.load %arg10[%c0_78, %c0_79, %c0_80] : memref<1x288x128xf32, #tpu.memory_space<vmem>>, vector<1x288x128xf32>
    %92 = vector.shape_cast %91 : vector<1x288x128xf32> to vector<288x128xf32>
    %93 = vector.shape_cast %90 : vector<288x128xf32> to vector<1x288x128xf32>
    tpu.vector_store %arg10[%c0_78, %c0_79, %c0_80], %93 {strides = array<i32>} : memref<1x288x128xf32, #tpu.memory_space<vmem>>, vector<1x288x128xf32>,
    return
  }
  func.func @transform_0(%arg0: i32, %arg1: i32) -> (i32, i32, i32) {
    %c0_i32 = arith.constant 0 : i32
    %c0_i32_0 = arith.constant 0 : i32
    %c0_i32_1 = arith.constant 0 : i32
    return %arg0, %c0_i32, %c0_i32_0 : i32, i32, i32
  }
  func.func @transform_1(%arg0: i32, %arg1: i32) -> (i32, i32) {
    %c0_i32 = arith.constant 0 : i32
    %c0_i32_0 = arith.constant 0 : i32
    %c0_i32_1 = arith.constant 0 : i32
    return %c0_i32, %c0_i32_0 : i32, i32
  }
  func.func @transform_2(%arg0: i32, %arg1: i32) -> (i32, i32) {
    %c0_i32 = arith.constant 0 : i32
    %c0_i32_0 = arith.constant 0 : i32
    %c0_i32_1 = arith.constant 0 : i32
    return %c0_i32, %c0_i32_0 : i32, i32
  }
  func.func @transform_3(%arg0: i32, %arg1: i32) -> (i32, i32) {
    %c0_i32 = arith.constant 0 : i32
    %c0_i32_0 = arith.constant 0 : i32
    %c0_i32_1 = arith.constant 0 : i32
    return %c0_i32, %c0_i32_0 : i32, i32
  }
  func.func @transform_4(%arg0: i32, %arg1: i32) -> (i32, i32) {
    %c0_i32 = arith.constant 0 : i32
    %c0_i32_0 = arith.constant 0 : i32
    %c0_i32_1 = arith.constant 0 : i32
    return %c0_i32, %c0_i32_0 : i32, i32
  }
  func.func @transform_5(%arg0: i32, %arg1: i32) -> (i32, i32, i32) {
    %c0_i32 = arith.constant 0 : i32
    %c0_i32_0 = arith.constant 0 : i32
    %c0_i32_1 = arith.constant 0 : i32
    return %c0_i32, %c0_i32_0, %arg1 : i32, i32, i32
  }
  func.func @transform_6(%arg0: i32, %arg1: i32) -> (i32, i32, i32) {
    %c0_i32 = arith.constant 0 : i32
    %c0_i32_0 = arith.constant 0 : i32
    %c0_i32_1 = arith.constant 0 : i32
    return %c0_i32, %c0_i32_0, %arg1 : i32, i32, i32
  }
  func.func @transform_7(%arg0: i32, %arg1: i32) -> (i32, i32) {
    %c0_i32 = arith.constant 0 : i32
    %c0_i32_0 = arith.constant 0 : i32
    return %c0_i32, %arg1 : i32, i32
  }
  func.func @transform_8(%arg0: i32, %arg1: i32) -> (i32, i32, i32) {
    %c0_i32 = arith.constant 0 : i32
    %c0_i32_0 = arith.constant 0 : i32
    return %arg0, %c0_i32, %arg1 : i32, i32, i32
  }
}

</mosaic_0001>

<bundles_post_ra>
// kernel: tpu_custom_call.1
= control target key start
LH: loop header
LB: loop body
LE: loop exit
PB: predicated region body
PF: predicated region fallthrough
CT: control target
= control target key end

     0   :  { %s14104_s0 = inlined_call_operand.vmem [shape: bf16[2,342,4], index: 0, kind: input, shape index: {}]   ;;  %s14105_s1 = inlined_call_operand.hbm [shape: bf16[56,342], index: 1, kind: input, shape index: {}]   ;;  %s14106_s2 = inlined_call_operand.hbm [shape: bf16[4,512], index: 2, kind: input, shape index: {}]   ;;  %s14107_s3 = inlined_call_operand.hbm [shape: f32[56,512], index: 3, kind: input, shape index: {}]   ;;  %s14108_s4 = inlined_call_operand.hbm [shape: bf16[288,504], index: 4, kind: input, shape index: {}]   ;;  %s14109_s5 = inlined_call_operand.hbm [shape: bf16[9,512,128], index: 5, kind: input, shape index: {}]   ;;  %s14110_s6 = inlined_call_operand.hbm [shape: bf16[9,4,128], index: 6, kind: input, shape index: {}]   ;;  %s14111_s7 = inlined_call_operand.hbm [shape: f32[1,128], index: 7, kind: input, shape index: {}]   ;;  %s14112_s8 = inlined_call_operand.hbm [shape: f32[2,288,128], index: 8, kind: output, shape index: {}]  }
   0x1   :  { %14237 = sst [smem:[#allocation117_spill]] %s14106_s2 }
   0x2   :  { %14238 = sst [smem:[#allocation118_spill]] %s14108_s4 }
   0x3   :  { %13 = vsyncpa [#allocation3], 0 }
   0x4   :  { %14 = vsyncpa [#allocation6], 0 }
   0x5   :  { %15 = vsyncpa [#allocation9], 0 }
   0x6   :  { %16 = vsyncpa [#allocation12], 0 }
   0x7   :  { %17 = vsyncpa [#allocation4], 0 }
   0x8   :  { %19 = vsyncpa [#allocation4 + $0x1], 0  ;;  %s11311_s27 = smov 0   ;;  %s11313_s28 = smov 0  }
   0x9   :  { %s11315_s29 = smov 0   ;;  %s11317_s30 = smov 0  }
   0xa   :  { %s11319_s9 = smov 0   ;;  %s11321_s10 = smov 0  }
   0xb LB: > { %s8394_s11 = sadd.s32 4294967295, %s11243_s10   ;;  %s8395_s12 = sadd.s32 4294967294, %s11243_s10   ;;  %s11243_s10 = sphi %s11321_s10, %s25_s10   ;;  %s11239_s9 = sphi %s11319_s9, %s14664_s9   ;;  %s11235_s30 = sphi %s11317_s30, %s14663_s30   ;;  %s11231_s29 = sphi %s11315_s29, %s14662_s29   ;;  %s11227_s28 = sphi %s11313_s28, %s14661_s28   ;;  %s11223_s27 = sphi %s11311_s27, %s14660_s27  }
   0xc   : > { %s37_s13 = sadd.s32 1, %s11239_s9  ;;  %s234_s14 = sadd.s32 1, %s11231_s29 }
   0xd   : > { %p39_p0 = scmp.ge.s32.totalorder %s37_s13, 2  ;;  %p244_p1 = scmp.ne.s32.totalorder %s11231_s29, %s11227_s28 }
   0xe   : > { %p245_p2 = scmp.eq.s32.totalorder %s8394_s11, 1  ;;  %p250_p3 = scmp.ne.s32.totalorder %s11227_s28, %s11223_s27 }
   0xf   : > { %s14666_s13 = smov (%p39_p0, %s37_s13), 0  ;;  %p251_p5 = scmp.eq.s32.totalorder %s8395_s12, 1 }
  0x10   : > { %14239 = sst [smem:[#allocation20_spill]] %s14666_s13  ;;  %p11351_p4 = por %p245_p2, %p244_p1 }
  0x11   : > { %s229_s16 = ssub.s32 %s11239_s9, %s14666_s13  ;;  %p8396_p6 = scmp.ge.s32.totalorder %s11243_s10, 1 }
  0x12   : > { %s14240_s15 = scalar_select %p11351_p4, 1, 0 }
  0x13   : > { %p232_p7 = scmp.eq.s32.totalorder %s229_s16, 0  ;;  %p11358_p8 = por %p251_p5, %p250_p3 }
  0x14   : > { %p258_p9 = scmp.lt.s32.totalorder %s11243_s10, 3  ;;  %p11370_p11 = scmp.eq.s32.totalorder %s8394_s11, 0 }
  0x15   : > { %s14241_s17 = scalar_select %p11358_p8, 1, 0 }
  0x16   : > { %s11364_s18 = scalar_select %p232_p7, %s11231_s29, %s234_s14  }
  0x17   : > { %p11366_p10 = pnand %p8396_p6, %p258_p9  ;;  %s11245_s21 = smov [#allocation5]  }
  0x18   : > { %s14243_s20 = scalar_select %p11370_p11, 1, 0 }
  0x19   : > { %s14242_s19 = scalar_select %p11366_p10, 1, 0 }
  0x1a   : > { %p10368_p12 = pneg %p11366_p10  ;;  %s284_s22 = sshll.u32 %s11245_s21, 4  ;;  %s285_s22 = int_to_ptr.vmem [resolvable:$true] %s284_s22 }
  0x1b   : > { %s11246_s23 = smov [#allocation8]   ;;  %s10980_s11 = scalar_lea.vmem %s285_s22, 128 }
  0x1c   : > { %s307_s24 = sshll.u32 %s11246_s23, 4  ;;  %p11378_p13 = pnand %p11370_p11, %p10368_p12  ;;  %s308_s24 = int_to_ptr.vmem [resolvable:$true] %s307_s24 }
  0x1d   : > { %p10981_p1 = scmp.ne.s32.totalorder %s285_s22, %s10980_s11  ;;  %p10988_p5 = scmp.lt.s32.totalorder %s285_s22, %s285_s22 }
  0x1e   : > { %p11384_p0 = pneg %p11378_p13  ;;  %p10989_p6 = scmp.lt.s32.totalorder %s10980_s11, %s10980_s11 }
  0x20   : > { %p10983_p2 = pnand %p10981_p1, %p11384_p0  ;;  %p10990_p7 = por %p10989_p6, %p10988_p5 }
  0x22   : > { %p10984_p3 = pneg %p10983_p2 }
  0x24   : > { %p10991_p9 = pnand %p10990_p7, %p10984_p3 }
  0x26   : > { %10994 = shalt.err (!%p10991_p9)
}
  0x27   : > { %s14246_s2 = sld [smem:[#allocation117_spill]]  ;;  %s11006_s16 = scalar_lea.vmem %s308_s24, 9216 }
  0x28   : > { %p11007_p12 = scmp.ne.s32.totalorder %s308_s24, %s11006_s16  ;;  %p11014_p11 = scmp.lt.s32.totalorder %s308_s24, %s308_s24 }
  0x29   : > { %p11015_p1 = scmp.lt.s32.totalorder %s11006_s16, %s11006_s16 }
  0x2a   : > { %p11009_p8 = pnand %p11007_p12, %p11384_p0 }
  0x2b   : > { %p11016_p2 = por %p11015_p1, %p11014_p11 }
  0x2c   : > { %p11010_p4 = pneg %p11009_p8 }
  0x2d   : > { %10374 = dma.hbm_to_vmem [thread:$0]  (!%p11378_p13), %s14246_s2, 128, %s285_s22, [#allocation6]  }
  0x2e   : > { %p11017_p10 = pnand %p11016_p2, %p11010_p4 }
  0x30   : > { %11020 = shalt.err (!%p11017_p10)
}
  0x31   : > { %s11247_s21 = smov 256   ;;  %s11248_s23 = smov 16  }
  0x32   : > { %s14247_s4 = sld [smem:[#allocation118_spill]]  ;;  %s11249_s22 = smov [#allocation11]  }
  0x33   : > { %s337_s12 = sshll.u32 %s11249_s22, 4  ;;  %s338_s12 = int_to_ptr.vmem [resolvable:$true] %s337_s12 }
  0x34   : > { %s11032_s14 = scalar_lea.vmem %s338_s12, 288  ;;  %p11040_p11 = scmp.lt.s32.totalorder %s338_s12, %s338_s12 }
  0x35   : > { %p11033_p3 = scmp.ne.s32.totalorder %s338_s12, %s11032_s14  ;;  %p11041_p4 = scmp.lt.s32.totalorder %s11032_s14, %s11032_s14 }
  0x37   : > { %p11035_p8 = pnand %p11033_p3, %p11384_p0  ;;  %p11042_p10 = por %p11041_p4, %p11040_p11 }
  0x38   : > { %10380 = dma.hbm_to_vmem [thread:$0]  (!%p11378_p13), %s14247_s4, 9216, %s308_s24, [#allocation9], %s11247_s21, %s11247_s21, %s11248_s23  }
  0x39   : > { %p11036_p5 = pneg %p11035_p8 }
  0x3b   : > { %p11043_p6 = pnand %p11042_p10, %p11036_p5 }
  0x3d   : > { %11046 = shalt.err (!%p11043_p6)
}
  0x3e   : > { %s11250_s16 = smov 32   ;;  %s11251_s2 = smov 2  }
  0x3f   : > { %10386 = dma.hbm_to_vmem [thread:$0]  (!%p11378_p13), %s14110_s6, 288, %s338_s12, [#allocation12], %s11250_s16, %s11250_s16, %s11251_s2  }
  0x40   : > { %s11252_s21 = smov [#allocation2]  }
  0x41   : > { %s270_s23 = sshll.u32 %s11252_s21, 4  ;;  %s271_s23 = int_to_ptr.vmem [resolvable:$true] %s270_s23 }
  0x42   : > { %s11058_s11 = scalar_lea.vmem %s271_s23, 1344  ;;  %p11066_p1 = scmp.lt.s32.totalorder %s271_s23, %s271_s23 }
  0x43   : > { %p11059_p7 = scmp.ne.s32.totalorder %s271_s23, %s11058_s11  ;;  %p11067_p2 = scmp.lt.s32.totalorder %s11058_s11, %s11058_s11 }
  0x45   : > { %p11061_p9 = pnand %p11059_p7, %p11384_p0  ;;  %p11068_p3 = por %p11067_p2, %p11066_p1 }
  0x47   : > { %p11062_p12 = pneg %p11061_p9 }
  0x49   : > { %p11069_p8 = pnand %p11068_p3, %p11062_p12 }
  0x4b   : > { %11072 = shalt.err (!%p11069_p8)
}
  0x4c   : > { %s11253_s22 = smov 192   ;;  %s11254_s14 = smov 12  }
  0x4d   : > { %10371 = dma.hbm_to_vmem [thread:$0]  (!%p11378_p13), %s14105_s1, 1344, %s271_s23, [#allocation3], %s11253_s22, %s11253_s22, %s11254_s14  }
  0x4e   : > { %s11255_s12 = smov [#allocation7]  }
  0x4f   : > { %s294_s24 = sshll.u32 %s11255_s12, 4  ;;  %s295_s24 = int_to_ptr.vmem [resolvable:$true] %s294_s24 }
  0x50   : > { %s11084_s21 = scalar_lea.vmem %s295_s24, 3584  ;;  %p11092_p10 = scmp.lt.s32.totalorder %s295_s24, %s295_s24 }
  0x51   : > { %p11085_p5 = scmp.ne.s32.totalorder %s295_s24, %s11084_s21  ;;  %p11093_p6 = scmp.lt.s32.totalorder %s11084_s21, %s11084_s21 }
  0x53   : > { %p11087_p11 = pnand %p11085_p5, %p11384_p0  ;;  %p11094_p7 = por %p11093_p6, %p11092_p10 }
  0x55   : > { %p11088_p4 = pneg %p11087_p11 }
  0x57   : > { %p11095_p9 = pnand %p11094_p7, %p11088_p4 }
  0x59   : > { %11098 = shalt.err (!%p11095_p9)
}
  0x5a   : > { %s11256_s11 = smov 512   ;;  %s11257_s23 = smov [#allocation10]  }
  0x5b   : > { %10377 = dma.hbm_to_vmem [thread:$0]  (!%p11378_p13), %s14107_s3, 3584, %s295_s24, [#allocation6], %s11256_s11, %s11256_s11, %s11250_s16  }
  0x5c   : > { %s322_s22 = sshll.u32 %s11257_s23, 4  ;;  %s323_s22 = int_to_ptr.vmem [resolvable:$true] %s322_s22 }
  0x5d   : > { %s11110_s14 = scalar_lea.vmem %s323_s22, 36864  ;;  %p11118_p3 = scmp.lt.s32.totalorder %s323_s22, %s323_s22 }
  0x5e   : > { %p11111_p12 = scmp.ne.s32.totalorder %s323_s22, %s11110_s14  ;;  %p11119_p8 = scmp.lt.s32.totalorder %s11110_s14, %s11110_s14 }
  0x60   : > { %p11113_p1 = pnand %p11111_p12, %p11384_p0  ;;  %p11120_p5 = por %p11119_p8, %p11118_p3 }
  0x62   : > { %p11114_p2 = pneg %p11113_p1 }
  0x64   : > { %p11121_p11 = pnand %p11120_p5, %p11114_p2 }
  0x66   : > { %11124 = shalt.err (!%p11121_p11)
}
  0x67   : > { %s11258_s2 = smov 64   ;;  %s11259_s12 = smov 4  }
  0x68   : > { %10383 = dma.hbm_to_vmem [thread:$0]  (!%p11378_p13), %s14109_s5, 36864, %s323_s22, [#allocation9], %s11258_s2, %s11258_s2, %s11259_s12  }
  0x69   : > { %s11260_s24 = smov [#allocation13]  }
  0x6a   : > { %s353_s21 = sshll.u32 %s11260_s24, 4  ;;  %s354_s21 = int_to_ptr.vmem [resolvable:$true] %s353_s21 }
  0x6b   : > { %s11136_s11 = scalar_lea.vmem %s354_s21, 16  ;;  %s11143_s13 = scalar_lea.vmem %s354_s21, 32 }
  0x6c   : > { %p11137_p4 = scmp.ne.s32.totalorder %s354_s21, %s11136_s11  ;;  %p11144_p7 = scmp.lt.s32.totalorder %s354_s21, %s354_s21 }
  0x6d   : > { %p11145_p9 = scmp.lt.s32.totalorder %s11143_s13, %s11136_s11 }
  0x6e   : > { %p11139_p10 = pnand %p11137_p4, %p11384_p0 }
  0x6f   : > { %p11146_p12 = por %p11145_p9, %p11144_p7 }
  0x70   : > { %p11140_p6 = pneg %p11139_p10 }
  0x72   : > { %p11147_p1 = pnand %p11146_p12, %p11140_p6 }
  0x74   : > { %11150 = shalt.err (!%p11147_p1)
}
  0x75   : > { %10389 = dma.hbm_to_vmem [thread:$0]  (!%p11378_p13), %s14111_s7, 16, %s354_s21, [#allocation12]  }
  0x76   : > { %p14248_p2 = scmp.ne.s32.totalorder %s14242_s19, 0 }
  0x78   : > { %374 = sbr.rel (%p14248_p2) target bundleno = 1775 (0x6ef), region = 52 }
  0x7d   : > { %p14249_p3 = scmp.ne.s32.totalorder %s14243_s20, 0 }
  0x7f   : > { %11202 = dma.done.wait (%p14249_p3), [#allocation3], 1344  }
  0x80   : > { %11204 = vsyncadd (%p14249_p3), [#allocation3], 4294965952 }
  0x81   : > { %11206 = dma.done.wait (%p14249_p3), [#allocation6], 3712  }
  0x82   : > { %11208 = vsyncadd (%p14249_p3), [#allocation6], 4294963584 }
  0x83   : > { %11210 = dma.done.wait (%p14249_p3), [#allocation9], 46080  }
  0x84   : > { %11212 = vsyncadd (%p14249_p3), [#allocation9], 4294921216 }
  0x85   : > { %11214 = dma.done.wait (%p14249_p3), [#allocation12], 304  }
  0x86   : > { %11216 = vsyncadd (%p14249_p3), [#allocation12], 4294966992  ;;  %p432_p13 = scmp.lt.s32.totalorder %s11235_s30, 1  ;;  %vm692_vm0 = vcmask 1042432   ;;  %v10498_v17 = vld [vmem:[#allocation2 + $0x4] ss:$12 sps:$4 sm:$0xff]   ;;  %v834_v44 = vlaneseq }
  0x87   : > { %728 = vmatprep.mubr.bf16.mxu0 %v10498_v17  ;;  %vm679_vm1 = vcmask 703488   ;;  %v10509_v27 = vld [vmem:[#allocation2 + $0x38] ss:$12 sps:$4 sm:$0xff]   ;;  %v10496_v30 = vld [vmem:[#allocation2] ss:$12 sps:$4 sm:$0xff]   ;;  %vm860_vm2 = vcmask 1041408  }
  0x88   : > { %s433_s19 = scalar_select %p432_p13, %s11235_s30, 1  ;;  %9966 = vmatprep.mubr.msk.bf16.mxu1 %vm679_vm1, %v10509_v27  ;;  %v10501_v32 = vld [vmem:[#allocation2 + $0x1c] ss:$12 sps:$4 sm:$0xff]   ;;  %v10510_v33 = vld [vmem:[#allocation2 + $0x50] ss:$0 sps:$4 sm:$0xff]   ;;  %v835_v46 = vshrl.u32 %v834_v44, 7 }
  0x89   : > { %v10503_v34 = vld [vmem:[#allocation2 + $0x18] ss:$12 sps:$4 sm:$0xff]   ;;  %v10506_v35 = vld [vmem:[#allocation2 + $0x34] ss:$12 sps:$4 sm:$0xff]   ;;  %v493_v36 = vld [vmem:[#allocation2 + $0x48] sm:$0xff]  ;;  %v14118_v56 = vmov 0  }
  0x8a   : > { %s10336_s25 = smul.u32 172, %s433_s19  ;;  %v10508_v37 = vld [vmem:[#allocation2 + $0x30] ss:$12 sps:$4 sm:$0xff]   ;;  %v8424_v38 = vcombine.high %v493_v36, %v493_v36  ;;  %v10513_v39 = vld [vmem:[#allocation2 + $0x8] ss:$12 sps:$4 sm:$0xff]   ;;  %v8423_v40 = vcombine.low %v493_v36, %v493_v36  ;;  %vm847_vm3 = vcmask 31744  }
  0x8b   : > { %v10514_v41 = vld [vmem:[#allocation2 + $0x20] ss:$12 sps:$4 sm:$0xff]   ;;  %v11261_v42 = vmov 1983009808   ;;  %v828_v47 = vld [vmem:[#allocation5] sm:$0xff]  ;;  %vm5232_vm4 = vcmask 982016  }
  0x8c   : > { %s11463_s2 = scalar_lea.vmem %s14104_s0, %s10336_s25  ;;  %v832_v43 = vunpack.c.l.s4 %v11261_v42  ;;  %v830_v49 = vcombine.high %v828_v47, %v828_v47  ;;  %v10516_v57 = vld [vmem:[#allocation10 + $0x78] sm:$0xff]   ;;  %v10520_v27 = vld [vmem:[#allocation10 + $0x70] sm:$0xff]   ;;  %v10528_v42 = vld [vmem:[#allocation10 + $0x60] sm:$0xff]   ;;  %vm5287_vm5 = vcmask 1043456   ;;  %vm5648_vm6 = vsmask.f32 7424 }
  0x8d   : > { %v10477_v0 = vld [vmem:[%s11463_s2 + $0x78] sm:$0xff]   ;;  %v10479_v2 = vld [vmem:[%s11463_s2 + $0x70] sm:$0xff]   ;;  %v10481_v4 = vld [vmem:[%s11463_s2 + $0x68] sm:$0xff]   ;;  %vm6051_vm7 = vcmask 1046528   ;;  %vm6948_vm8 = vcmask 1045504   ;;  %vm7845_vm11 = vcmask 1044480  }
  0x8e   : > { %v10478_v1 = vld [vmem:[%s11463_s2 + $0x38] sm:$0xff]   ;;  %9009 = vmatprep.subr.bf16.mxu0 %v10477_v0  ;;  %v10480_v3 = vld [vmem:[%s11463_s2 + $0x30] sm:$0xff]   ;;  %v10482_v5 = vld [vmem:[%s11463_s2 + $0x28] sm:$0xff]   ;;  %v833_v45 = vunpack.c.0.s8 %v832_v43  ;;  %vm7487_vm9 = vsmask.f32 5376  ;;  %s429_s20 = sand.u32 1, %s11227_s28  }
  0x8f   : > { %9010 = vmatpush3.bf16.msra.mxu0 %v10478_v1  ;;  %v10483_v6 = vld [vmem:[%s11463_s2 + $0x60] sm:$0xff]   ;;  %v10485_v8 = vld [vmem:[%s11463_s2 + $0x58] sm:$0xff]   ;;  %v10491_v10 = vld [vmem:[%s11463_s2 + $0xa8] ss:$0 sps:$4 sm:$0x77]   ;;  %s10335_s12 = smul.u32 288, %s429_s20 }
  0x90   : > { %9011 = vmatprep.subr.bf16.mxu0 %v10479_v2  ;;  %v10484_v7 = vld [vmem:[%s11463_s2 + $0x20] sm:$0xff]   ;;  %v10486_v9 = vld [vmem:[%s11463_s2 + $0x18] sm:$0xff]   ;;  %v10487_v11 = vld [vmem:[%s11463_s2 + $0x50] sm:$0xff]   ;;  %10325 = vmatprep.subr.msk.bf16.mxu1 %vm692_vm0, %v10491_v10  ;;  %v694_v12 = vsel %vm692_vm0, %v10491_v10, 0  ;;  %v836_v48 = vsub.s32 %v833_v45, %v835_v46  ;;  %vm6590_vm10 = vsmask.f32 6400 }
  0x91   : > { %v478_v13 = vld [vmem:[%s11463_s2 + $0xa0] sm:$0xf]  ;;  %10318 = vmatpush3.bf16.msra.mxu1 %v694_v12  ;;  %v479_v14 = vld [vmem:[%s11463_s2 + $0xa4] sm:$0xf]  ;;  %v10488_v15 = vld [vmem:[%s11463_s2 + $0x10] sm:$0xff]   ;;  %s13912_s4 = scalar_lea.vmem [#allocation14], %s10335_s12 }
  0x92   : > { %v8446_v16 = vcombine.low %v478_v13, %v479_v14  ;;  %v476_v18 = vld [vmem:[%s11463_s2 + $0x98] sm:$0xf]  ;;  %v477_v19 = vld [vmem:[%s11463_s2 + $0x9c] sm:$0xf]  ;;  %v474_v20 = vld [vmem:[%s11463_s2 + $0x90] sm:$0xf]  ;;  %v837_v50 = vrot.slane %v828_v47, %v836_v48  ;;  %v844_v51 = vrot.slane %v830_v49, %v836_v48 }
  0x93   : > { %9012 = vmatpush3.bf16.msra.mxu0 %v10480_v3  ;;  %v475_v21 = vld [vmem:[%s11463_s2 + $0x94] sm:$0xf]  ;;  %v10489_v22 = vld [vmem:[%s11463_s2 + $0x48] sm:$0xff]   ;;  %v11487_v23 = vcombine.low %v476_v18, %v477_v19  ;;  %v10492_v26 = vld [vmem:[%s11463_s2 + $0x40] sm:$0xff]   ;;  %s10337_s16 = smul.u32 4608, %s11235_s30  ;;  %s8247_s24 = sshll.u32 %s13912_s4, 4  ;;  %s14052_s24 = int_to_ptr.vmem [resolvable:$true] %s8247_s24 }
  0x94   : > { %9013 = vmatprep.subr.bf16.mxu0 %v10481_v4  ;;  %10313 = vmatprep.subr.bf16.mxu1 %v8446_v16  ;;  %v11490_v24 = vcombine.low %v474_v20, %v475_v21  ;;  %v10490_v25 = vld [vmem:[%s11463_s2 + $0x8] sm:$0xff]   ;;  %v10493_v29 = vld [vmem:[%s11463_s2] sm:$0xff]   ;;  %v845_v52 = vcombine.high %v837_v50, %v837_v50  ;;  %v846_v53 = vcombine.high %v844_v51, %v844_v51  ;;  %v862_v54 = vsel %vm860_vm2, %v837_v50, 0  ;;  %v10517_v58 = vld [vmem:[#allocation10 + $0xf8] sm:$0xff]   ;;  %s14059_s30 = scalar_lea.sflag [#allocation4], %s429_s20  ;;  %s11151_s23 = scalar_lea.vmem %s14052_s24, 4608 }
  0x95   : > { %14250 = vst [vmem:[#allocation21_spill] sm:$0xff] %v11487_v23  ;;  %10319 = vmatpush3.bf16.msra.mxu1 %v8446_v16  ;;  %v10504_v28 = vld [vmem:[%s11463_s2 + $0x88] sm:$0xff]   ;;  %v10505_v31 = vld [vmem:[%s11463_s2 + $0x80] sm:$0xff]   ;;  %v868_v55 = vsel %vm860_vm2, %v844_v51, 0  ;;  %v10532_v48 = vld [vmem:[#allocation10 + $0x58] sm:$0xff]   ;;  %s14050_s13 = scalar_lea.hbm %s14112_s8, %s10337_s16  ;;  %p11152_p0 = scmp.ne.s32.totalorder %s14052_s24, %s11151_s23 }
  0x96   : > { %10314 = vmatprep.subr.bf16.mxu1 %v11487_v23  ;;  %14251 = vst [vmem:[#allocation22_spill] sm:$0xff] %v11490_v24  ;;  %v10529_v43 = vld [vmem:[#allocation10 + $0xe0] sm:$0xff]   ;;  %v10533_v49 = vld [vmem:[#allocation10 + $0xd8] sm:$0xff]   ;;  %p14657_p8 = scmp.ne.s32.totalorder %s14240_s15, 0  ;;  %s11263_s14 = smov [#allocation14]  }
  0x97   : > { %9014 = vmatpush3.bf16.msra.mxu0 %v10482_v5  ;;  %v10530_v46 = vld [vmem:[#allocation10 + $0x20] sm:$0xff]   ;;  %s11155_s19 = sshll.u32 %s11263_s14, 4  ;;  %s11156_s19 = int_to_ptr.vmem [resolvable:$false] %s11155_s19 }
  0x98   : > { %9015 = vmatprep.subr.bf16.mxu0 %v10483_v6  ;;  %v10531_v47 = vld [vmem:[#allocation10 + $0xa0] sm:$0xff]   ;;  %p11153_p5 = pnand %p11152_p0, %p14657_p8  ;;  %s11157_s25 = scalar_lea.vmem %s11156_s19, 9216 }
  0x99   : > { %10320 = vmatpush3.bf16.msra.mxu1 %v11487_v23  ;;  %p11158_p4 = scmp.lt.s32.totalorder %s14052_s24, %s11156_s19  ;;  %p11159_p10 = scmp.lt.s32.totalorder %s11157_s25, %s11151_s23 }
  0x9a   : > { %10315 = vmatprep.subr.bf16.mxu1 %v11490_v24  ;;  %p11154_p11 = pneg %p11153_p5 }
  0x9b   : > { %9016 = vmatpush3.bf16.msra.mxu0 %v10484_v7  ;;  %p11160_p6 = por %p11159_p10, %p11158_p4 }
  0x9c   : > { %9017 = vmatprep.subr.bf16.mxu0 %v10485_v8 }
  0x9d   : > { %10321 = vmatpush3.bf16.msra.mxu1 %v11490_v24  ;;  %p11161_p7 = pnand %p11160_p6, %p11154_p11 }
  0x9e   : > { %10316 = vmatprep.subr.bf16.mxu1 %v10504_v28 }
  0x9f   : > { %9018 = vmatpush3.bf16.msra.mxu0 %v10486_v9 }
  0xa0   : > { %9019 = vmatprep.subr.bf16.mxu0 %v10487_v11 }
  0xa1   : > { %10322 = vmatpush3.bf16.msra.mxu1 %v10504_v28 }
  0xa2   : > { %10317 = vmatprep.subr.bf16.mxu1 %v10505_v31 }
  0xa3   : > { %9020 = vmatpush3.bf16.msra.mxu0 %v10488_v15 }
  0xa4   : > { %9021 = vmatprep.subr.bf16.mxu0 %v10489_v22 }
  0xa5   : > { %10323 = vmatpush3.bf16.msra.mxu1 %v10505_v31 }
  0xa6   : > { %8452 = vmatprep.subr.msk.bf16.mxu1 %vm860_vm2, %v845_v52 }
  0xa7   : > { %9022 = vmatpush3.bf16.msra.mxu0 %v10490_v25  ;;  %v10518_v25 = vld [vmem:[#allocation10 + $0x38] sm:$0xff]  }
  0xa8   : > { %9023 = vmatprep.subr.bf16.mxu0 %v10492_v26  ;;  %9967 = vmatmul.mubr.msk.bf16.vlgmr.msra.gmra.mxu1 %vm679_vm1, %v10510_v33  ;;  %v10519_v26 = vld [vmem:[#allocation10 + $0xb8] sm:$0xff]   ;;  %v10523_v33 = vld [vmem:[#allocation10 + $0xb0] sm:$0xff]  }
  0xa9   : > { %888 = vmatpush1.bf16.msra.mxu1 %v862_v54  ;;  %905 = vmatprep.mubr.bf16.mxu1 %v14118_v56  ;;  %v10535_v54 = vld [vmem:[#allocation10 + $0x98] sm:$0xff]  }
  0xaa   : > { %9059 = vmatprep.subr.bf16.mxu1 %v10516_v57 }
  0xab   : > { %9024 = vmatpush3.bf16.msra.mxu0 %v10493_v29 }
  0xac   : > { %10324 = vmatprep.subr.msk.bf16.mxu0 %vm692_vm0, %v10491_v10 }
  0xae   : > { %729 = vmatmul.mubr.bf16.vlgmr.msra.gmra.mxu0 %v10496_v30 }
  0xaf   : > { %9951 = vmatpush3.bf16.msra.mxu0 %v694_v12  ;;  %736 = vmatprep.mubr.bf16.mxu0 %v10501_v32  ;;  %v10522_v32 = vld [vmem:[#allocation10 + $0x30] sm:$0xff]  }
  0xb0   : > { %9952 = vmatprep.subr.bf16.mxu0 %v8446_v16 }
  0xb3   : > { %9953 = vmatpush3.bf16.msra.mxu0 %v8446_v16 }
  0xb4   : > { %9954 = vmatprep.subr.bf16.mxu0 %v11487_v23 }
  0xb6   : > { %737 = vmatmul.mubr.bf16.gmra.mxu0 %v10503_v34  ;;  %v10524_v34 = vld [vmem:[#allocation10 + $0x68] sm:$0xff]  }
  0xb7   : > { %744 = vmatprep.mubr.bf16.mxu0 %v10506_v35  ;;  %9955 = vmatpush3.bf16.msra.mxu0 %v11487_v23  ;;  %v10525_v35 = vld [vmem:[#allocation10 + $0xe8] sm:$0xff]  }
  0xb8   : > { %9956 = vmatprep.subr.bf16.mxu0 %v11490_v24  ;;  %v10798_v23 = vld [vmem:[#allocation10 + $0x808] sm:$0xff]  }
  0xbb   : > { %9957 = vmatpush3.bf16.msra.mxu0 %v11490_v24  ;;  %v10799_v24 = vld [vmem:[#allocation10 + $0x888] sm:$0xff]  }
  0xbc   : > { %9958 = vmatprep.subr.bf16.mxu0 %v10504_v28 }
  0xbe   : > { %745 = vmatmul.mubr.bf16.gmra.mxu0 %v10508_v37 }
  0xbf   : > { %752 = vmatprep.mubr.bf16.mxu0 %v8424_v38  ;;  %9959 = vmatpush3.bf16.msra.mxu0 %v10504_v28  ;;  %v10521_v28 = vld [vmem:[#allocation10 + $0xf0] sm:$0xff]  }
  0xc0   : > { %9960 = vmatprep.subr.bf16.mxu0 %v10505_v31 }
  0xc3   : > { %9961 = vmatpush3.bf16.msra.mxu0 %v10505_v31 }
  0xc4   : > { %8457 = vmatprep.subr.msk.bf16.mxu0 %vm860_vm2, %v846_v53  ;;  %v10534_v53 = vld [vmem:[#allocation10 + $0x18] sm:$0xff]  }
  0xc6   : > { %753 = vmatmul.mubr.bf16.gmra.mxu0 %v8423_v40  ;;  %v10527_v40 = vld [vmem:[#allocation10 + $0xa8] sm:$0xff]  }
  0xc7   : > { %9962 = vmatprep.mubr.msk.bf16.mxu0 %vm679_vm1, %v10513_v39  ;;  %v10526_v39 = vld [vmem:[#allocation10 + $0x28] sm:$0xff]  }
  0xce   : > { %9963 = vmatmul.mubr.msk.bf16.vlgmr.msra.gmra.mxu0 %vm679_vm1, %v10514_v41 }
  0xcf   : > { %959 = vmatpush1.bf16.msra.mxu0 %v868_v55  ;;  %976 = vmatprep.mubr.bf16.mxu0 %v14118_v56 }
  0xd0   : > { %9099 = vmatprep.subr.bf16.mxu0 %v10517_v58  ;;  %v10536_v58 = vld [vmem:[#allocation10 + $0x50] sm:$0xff]  }
 0x168   : > { %v11515_v63 = vpop.f32.mrf.mxu1 }
 0x16a   : > { %v11517_v1 = vpop.f32.mrf.mxu1 }
 0x16c   : > { %v9969_v3 = vpop.f32.mrf.mxu1 }
 0x16d   : > { %v10545_v3 = vld [vmem:[#allocation10 + $0xc0] sm:$0xff]  }
 0x16e   : > { %v9025_v59 = vpop.f32.mrf.mxu0  ;;  %v813_v41 = vpop.f32.mrf.mxu1 }
 0x170   : > { %v9026_v60 = vpop.f32.mrf.mxu0 }
 0x171   : > { %v9027_v17 = vadd.f32 %v9026_v60, %v9025_v59  ;;  %v10537_v59 = vld [vmem:[#allocation10 + $0xd0] sm:$0xff]  }
 0x172   : > { %v9028_v61 = vpop.f32.mrf.mxu0  ;;  %v10538_v60 = vld [vmem:[#allocation10 + $0x10] sm:$0xff]  }
 0x174   : > { %v9029_v62 = vpop.f32.mrf.mxu0 }
 0x175   : > { %v9030_v18 = vadd.f32 %v9029_v62, %v9028_v61  ;;  %v10539_v61 = vld [vmem:[#allocation10 + $0x90] sm:$0xff]   ;;  %v10540_v62 = vld [vmem:[#allocation10 + $0x48] sm:$0xff]  }
 0x176   : > { %v9031_v0 = vpop.f32.mrf.mxu0 }
 0x178   : > { %v9032_v2 = vpop.f32.mrf.mxu0 }
 0x179   : > { %v9033_v30 = vadd.f32 %v9032_v2, %v9031_v0  ;;  %v10541_v0 = vld [vmem:[#allocation10 + $0xc8] sm:$0xff]  }
 0x17a   : > { %v9034_v4 = vpop.f32.mrf.mxu0  ;;  %v10543_v2 = vld [vmem:[#allocation10 + $0x88] sm:$0xff]  }
 0x17c   : > { %v9035_v5 = vpop.f32.mrf.mxu0 }
 0x17d   : > { %v9036_v29 = vadd.f32 %v9035_v5, %v9034_v4  ;;  %v10546_v4 = vld [vmem:[#allocation10] sm:$0xff]  }
 0x17e   : > { %v9037_v6 = vpop.f32.mrf.mxu0  ;;  %v10547_v5 = vld [vmem:[#allocation10 + $0x80] sm:$0xff]  }
 0x180   : > { %v9038_v7 = vpop.f32.mrf.mxu0 }
 0x181   : > { %v9039_v44 = vadd.f32 %v9038_v7, %v9037_v6  ;;  %v10548_v6 = vld [vmem:[#allocation10 + $0x178] sm:$0xff]  }
 0x182   : > { %v9040_v8 = vpop.f32.mrf.mxu0  ;;  %v10549_v7 = vld [vmem:[#allocation10 + $0x1f8] sm:$0xff]  }
 0x183   : > { %v811_v50 = vadd.f32 %v9039_v44, %v11517_v1  ;;  %v10542_v1 = vld [vmem:[#allocation10 + $0x8] sm:$0xff]   ;;  %v10552_v44 = vld [vmem:[#allocation10 + $0x170] sm:$0xff]  }
 0x184   : > { %v9041_v9 = vpop.f32.mrf.mxu0 }
 0x185   : > { %v9042_v37 = vadd.f32 %v9041_v9, %v9040_v8 }
 0x186   : > { %v9043_v10 = vpop.f32.mrf.mxu0 }
 0x187   : > { %v814_v45 = vadd.f32 %v9042_v37, %v813_v41 }
 0x188   : > { %v9044_v11 = vpop.f32.mrf.mxu0 }
 0x189   : > { %v826_v51 = vpack.c.bf16 %v814_v45, %v811_v50  ;;  %v9045_v52 = vadd.f32 %v9044_v11, %v9043_v10  ;;  %v10553_v45 = vld [vmem:[#allocation10 + $0x1f0] sm:$0xff]  }
 0x18a   : > { %v9046_v12 = vpop.f32.mrf.mxu0 }
 0x18b   : > { %v819_v55 = vadd.f32 %v11515_v63, %v9045_v52  ;;  %v10544_v63 = vld [vmem:[#allocation10 + $0x40] sm:$0xff]   ;;  %v1016_v12 = vld [vmem:[#allocation7 + $0x8] sm:$0xff] }
 0x18c   : > { %v9047_v13 = vpop.f32.mrf.mxu0  ;;  %v1028_v52 = vld [vmem:[#allocation7 + $0x68] sm:$0xff] }
 0x18d   : > { %v827_v57 = vpack.c.bf16 %v819_v55, %v819_v55  ;;  %v1019_v13 = vld [vmem:[#allocation7 + $0x20] sm:$0xff]  ;;  %v1025_v55 = vld [vmem:[#allocation7 + $0x50] sm:$0xff] }
 0x18e   : > { %v9964_v14 = vpop.f32.mrf.mxu0 }
 0x18f   : > { %v803_v36 = vadd.f32 %v9964_v14, %v9033_v30  ;;  %v1021_v14 = vld [vmem:[#allocation7 + $0x30] sm:$0xff] }
 0x190   : > { %v794_v15 = vpop.f32.mrf.mxu0 }
 0x191   : > { %v795_v20 = vadd.f32 %v9027_v17, %v794_v15  ;;  %v1018_v15 = vld [vmem:[#allocation7 + $0x18] sm:$0xff] }
 0x192   : > { %v9965_v16 = vpop.f32.mrf.mxu0 }
 0x193   : > { %v806_v31 = vadd.f32 %v9965_v16, %v9036_v29 }
 0x194   : > { %v797_v19 = vpop.f32.mrf.mxu0 }
 0x195   : > { %v798_v21 = vadd.f32 %v9030_v18, %v797_v19  ;;  %v825_v38 = vpack.c.bf16 %v806_v31, %v803_v36  ;;  %v1020_v18 = vld [vmem:[#allocation7 + $0x28] sm:$0xff]  ;;  %v1022_v19 = vld [vmem:[#allocation7 + $0x38] sm:$0xff] }
 0x197   : > { %v824_v22 = vpack.c.bf16 %v798_v21, %v795_v20  ;;  %v1015_v20 = vld [vmem:[#allocation7] sm:$0xff]  ;;  %v1017_v21 = vld [vmem:[#allocation7 + $0x10] sm:$0xff] }
 0x199   : > { %8453 = vmatmul.mubr.msk.bf16.vlgmr.msra.gmra.mxu1 %vm847_vm3, %v824_v22  ;;  %8458 = vmatmul.mubr.msk.bf16.vlgmr.msra.gmra.mxu0 %vm847_vm3, %v824_v22 }
 0x19a   : > { %915 = vmatprep.mubr.bf16.mxu1 %v14118_v56  ;;  %986 = vmatprep.mubr.bf16.mxu0 %v14118_v56 }
 0x19b   : > { %9060 = vmatpush3.bf16.msra.mxu1 %v10518_v25  ;;  %9100 = vmatpush3.bf16.msra.mxu0 %v10519_v26 }
 0x19c   : > { %9061 = vmatprep.subr.bf16.mxu1 %v10520_v27  ;;  %9101 = vmatprep.subr.bf16.mxu0 %v10521_v28 }
 0x19f   : > { %9062 = vmatpush3.bf16.msra.mxu1 %v10522_v32  ;;  %9102 = vmatpush3.bf16.msra.mxu0 %v10523_v33 }
 0x1a0   : > { %9063 = vmatprep.subr.bf16.mxu1 %v10524_v34  ;;  %9103 = vmatprep.subr.bf16.mxu0 %v10525_v35 }
 0x1a1   : > { %8454 = vmatmul.mubr.msk.bf16.gmra.mxu1 %vm847_vm3, %v825_v38  ;;  %8459 = vmatmul.mubr.msk.bf16.gmra.mxu0 %vm847_vm3, %v825_v38  ;;  %v10550_v38 = vld [vmem:[#allocation10 + $0x138] sm:$0xff]  }
 0x1a2   : > { %925 = vmatprep.mubr.bf16.mxu1 %v14118_v56  ;;  %996 = vmatprep.mubr.bf16.mxu0 %v14118_v56 }
 0x1a3   : > { %9064 = vmatpush3.bf16.msra.mxu1 %v10526_v39  ;;  %9104 = vmatpush3.bf16.msra.mxu0 %v10527_v40  ;;  %v10551_v39 = vld [vmem:[#allocation10 + $0x1b8] sm:$0xff]  }
 0x1a4   : > { %9065 = vmatprep.subr.bf16.mxu1 %v10528_v42  ;;  %9105 = vmatprep.subr.bf16.mxu0 %v10529_v43 }
 0x1a7   : > { %9066 = vmatpush3.bf16.msra.mxu1 %v10530_v46  ;;  %9106 = vmatpush3.bf16.msra.mxu0 %v10531_v47  ;;  %v1024_v46 = vld [vmem:[#allocation7 + $0x48] sm:$0xff]  ;;  %v1027_v47 = vld [vmem:[#allocation7 + $0x60] sm:$0xff] }
 0x1a8   : > { %9067 = vmatprep.subr.bf16.mxu1 %v10532_v48  ;;  %9107 = vmatprep.subr.bf16.mxu0 %v10533_v49  ;;  %v1029_v48 = vld [vmem:[#allocation7 + $0x70] sm:$0xff]  ;;  %v1026_v49 = vld [vmem:[#allocation7 + $0x58] sm:$0xff] }
 0x1a9   : > { %8455 = vmatmul.mubr.msk.bf16.gmra.mxu1 %vm847_vm3, %v826_v51  ;;  %8460 = vmatmul.mubr.msk.bf16.gmra.mxu0 %vm847_vm3, %v826_v51 }
 0x1aa   : > { %935 = vmatprep.mubr.bf16.mxu1 %v14118_v56  ;;  %1006 = vmatprep.mubr.bf16.mxu0 %v14118_v56 }
 0x1ab   : > { %9068 = vmatpush3.bf16.msra.mxu1 %v10534_v53  ;;  %9108 = vmatpush3.bf16.msra.mxu0 %v10535_v54  ;;  %v1030_v53 = vld [vmem:[#allocation7 + $0x78] sm:$0xff]  ;;  %v1023_v54 = vld [vmem:[#allocation7 + $0x40] sm:$0xff] }
 0x1ac   : > { %9069 = vmatprep.subr.bf16.mxu1 %v10536_v58  ;;  %9109 = vmatprep.subr.bf16.mxu0 %v10537_v59 }
 0x1af   : > { %9070 = vmatpush3.bf16.msra.mxu1 %v10538_v60  ;;  %9110 = vmatpush3.bf16.msra.mxu0 %v10539_v61 }
 0x1b0   : > { %9071 = vmatprep.subr.bf16.mxu1 %v10540_v62  ;;  %9111 = vmatprep.subr.bf16.mxu0 %v10541_v0  ;;  %v10555_v62 = vld [vmem:[#allocation10 + $0x1b0] sm:$0xff]   ;;  %v10556_v0 = vld [vmem:[#allocation10 + $0x168] sm:$0xff]  }
 0x1b1   : > { %8456 = vmatmul.mubr.msk.bf16.gmra.mxu1 %vm847_vm3, %v827_v57  ;;  %8461 = vmatmul.mubr.msk.bf16.gmra.mxu0 %vm847_vm3, %v827_v57  ;;  %v10554_v57 = vld [vmem:[#allocation10 + $0x130] sm:$0xff]  }
 0x1b3   : > { %9072 = vmatpush3.bf16.msra.mxu1 %v10542_v1  ;;  %9112 = vmatpush3.bf16.msra.mxu0 %v10543_v2 }
 0x1b4   : > { %9073 = vmatprep.subr.bf16.mxu1 %v10544_v63  ;;  %9113 = vmatprep.subr.bf16.mxu0 %v10545_v3 }
 0x1b7   : > { %9074 = vmatpush3.bf16.msra.mxu1 %v10546_v4  ;;  %9114 = vmatpush3.bf16.msra.mxu0 %v10547_v5 }
 0x1b8   : > { %9139 = vmatprep.subr.bf16.mxu1 %v10548_v6  ;;  %9179 = vmatprep.subr.bf16.mxu0 %v10549_v7 }
 0x259   : > { %v907_v8 = vpop.f32.mrf.mxu1  ;;  %v978_v9 = vpop.f32.mrf.mxu0 }
 0x25a   : > { %v1043_v32 = vmul.f32 %v1015_v20, %v907_v8  ;;  %v1045_v33 = vmul.f32 %v1017_v21, %v978_v9  ;;  %v1035_v20 = vld [vmem:[#allocation7 + $0xa0] sm:$0xff] }
 0x25b   : > { %v909_v10 = vpop.f32.mrf.mxu1  ;;  %v980_v11 = vpop.f32.mrf.mxu0  ;;  %v10561_v21 = vld [vmem:[#allocation10 + $0x1e0] sm:$0xff]  }
 0x25c   : > { %v1044_v28 = vmul.f32 %v1016_v12, %v909_v10  ;;  %v1046_v29 = vmul.f32 %v1018_v15, %v980_v11  ;;  %v10557_v10 = vld [vmem:[#allocation10 + $0x1e8] sm:$0xff]  }
 0x25d   : > { %v911_v16 = vpop.f32.mrf.mxu1  ;;  %v982_v17 = vpop.f32.mrf.mxu0  ;;  %v10558_v11 = vld [vmem:[#allocation10 + $0x128] sm:$0xff]  }
 0x25e   : > { %v1047_v22 = vmul.f32 %v1019_v13, %v911_v16  ;;  %v1049_v25 = vmul.f32 %v1021_v14, %v982_v17  ;;  %v1032_v15 = vld [vmem:[#allocation7 + $0x88] sm:$0xff] }
 0x25f   : > { %v913_v26 = vpop.f32.mrf.mxu1  ;;  %v984_v27 = vpop.f32.mrf.mxu0  ;;  %v10559_v17 = vld [vmem:[#allocation10 + $0x1a8] sm:$0xff]  }
 0x260   : > { %v1048_v30 = vmul.f32 %v1020_v18, %v913_v26  ;;  %v1050_v31 = vmul.f32 %v1022_v19, %v984_v27  ;;  %v11539_v40 = vpack.c.bf16 %v1047_v22, %v1043_v32  ;;  %v11541_v41 = vpack.c.bf16 %v1049_v25, %v1045_v33  ;;  %v10560_v18 = vld [vmem:[#allocation10 + $0x160] sm:$0xff]   ;;  %v1034_v19 = vld [vmem:[#allocation7 + $0x98] sm:$0xff]  ;;  %v1037_v26 = vld [vmem:[#allocation7 + $0xb0] sm:$0xff] }
 0x261   : > { %v917_v34 = vpop.f32.mrf.mxu1  ;;  %v988_v35 = vpop.f32.mrf.mxu0  ;;  %v1036_v27 = vld [vmem:[#allocation7 + $0xa8] sm:$0xff] }
 0x262   : > { %v11535_v36 = vpack.c.bf16 %v1048_v30, %v1044_v28  ;;  %v11537_v37 = vpack.c.bf16 %v1050_v31, %v1046_v29  ;;  %v1051_v4 = vmul.f32 %v1023_v54, %v917_v34  ;;  %v1053_v5 = vmul.f32 %v1025_v55, %v988_v35  ;;  %v1038_v28 = vld [vmem:[#allocation7 + $0xb8] sm:$0xff]  ;;  %v1031_v29 = vld [vmem:[#allocation7 + $0x80] sm:$0xff]  ;;  %v1033_v31 = vld [vmem:[#allocation7 + $0x90] sm:$0xff] }
 0x263   : > { %v919_v42 = vpop.f32.mrf.mxu1  ;;  %v990_v43 = vpop.f32.mrf.mxu0  ;;  %v10562_v30 = vld [vmem:[#allocation10 + $0x120] sm:$0xff]   ;;  %v10565_v54 = vld [vmem:[#allocation10 + $0x1d8] sm:$0xff]  }
 0x264   : > { %1375 = vmatprep.mubr.bf16.mxu1 %v11535_v36  ;;  %1439 = vmatprep.mubr.bf16.mxu0 %v11537_v37  ;;  %v1052_v1 = vmul.f32 %v1024_v46, %v919_v42  ;;  %v1054_v2 = vmul.f32 %v1026_v49, %v990_v43  ;;  %v1040_v49 = vld [vmem:[#allocation7 + $0xc8] sm:$0xff] }
 0x265   : > { %v921_v50 = vpop.f32.mrf.mxu1  ;;  %v992_v51 = vpop.f32.mrf.mxu0  ;;  %1376 = vmatmul.mubr.bf16.vlgmr.msra.gmra.mxu1 %v11539_v40  ;;  %1440 = vmatmul.mubr.bf16.vlgmr.msra.gmra.mxu0 %v11541_v41 }
 0x266   : > { %9140 = vmatpush3.bf16.msra.mxu1 %v10550_v38  ;;  %9180 = vmatpush3.bf16.msra.mxu0 %v10551_v39  ;;  %v1055_v58 = vmul.f32 %v1027_v47, %v921_v50  ;;  %v1057_v59 = vmul.f32 %v1029_v48, %v992_v51  ;;  %v10563_v38 = vld [vmem:[#allocation10 + $0x1a0] sm:$0xff]   ;;  %v10564_v39 = vld [vmem:[#allocation10 + $0x158] sm:$0xff]  }
 0x267   : > { %v923_v60 = vpop.f32.mrf.mxu1  ;;  %v994_v61 = vpop.f32.mrf.mxu0  ;;  %9141 = vmatprep.subr.bf16.mxu1 %v10552_v44  ;;  %9181 = vmatprep.subr.bf16.mxu0 %v10553_v45  ;;  %v1042_v50 = vld [vmem:[#allocation7 + $0xd8] sm:$0xff] }
 0x268   : > { %v1056_v63 = vmul.f32 %v1028_v52, %v923_v60  ;;  %v1058_v3 = vmul.f32 %v1030_v53, %v994_v61  ;;  %v11551_v12 = vpack.c.bf16 %v1055_v58, %v1051_v4  ;;  %v11553_v13 = vpack.c.bf16 %v1057_v59, %v1053_v5  ;;  %v10566_v59 = vld [vmem:[#allocation10 + $0x118] sm:$0xff]   ;;  %v10568_v4 = vld [vmem:[#allocation10 + $0x150] sm:$0xff]  }
 0x269   : > { %v927_v6 = vpop.f32.mrf.mxu1  ;;  %v998_v7 = vpop.f32.mrf.mxu0  ;;  %v10567_v60 = vld [vmem:[#allocation10 + $0x198] sm:$0xff]   ;;  %v10569_v5 = vld [vmem:[#allocation10 + $0x1d0] sm:$0xff]  }
 0x26a   : > { %v11547_v8 = vpack.c.bf16 %v1056_v63, %v1052_v1  ;;  %v11549_v9 = vpack.c.bf16 %v1058_v3, %v1054_v2  ;;  %9142 = vmatpush3.bf16.msra.mxu1 %v10554_v57  ;;  %9182 = vmatpush3.bf16.msra.mxu0 %v10555_v62  ;;  %v1059_v46 = vmul.f32 %v1031_v29, %v927_v6  ;;  %v1039_v62 = vld [vmem:[#allocation7 + $0xc0] sm:$0xff]  ;;  %v1041_v2 = vld [vmem:[#allocation7 + $0xd0] sm:$0xff] }
 0x26b   : > { %v929_v14 = vpop.f32.mrf.mxu1  ;;  %v1000_v16 = vpop.f32.mrf.mxu0  ;;  %9143 = vmatprep.subr.bf16.mxu1 %v10556_v0  ;;  %9183 = vmatprep.subr.bf16.mxu0 %v10557_v10  ;;  %v1061_v51 = vmul.f32 %v1033_v31, %v998_v7  ;;  %v10579_v29 = vld [vmem:[#allocation10 + $0x180] sm:$0xff]   ;;  %v10581_v31 = vld [vmem:[#allocation10 + $0x2f8] sm:$0xff]  }
 0x26c   : > { %1383 = vmatprep.mubr.bf16.mxu1 %v11547_v8  ;;  %1447 = vmatprep.mubr.bf16.mxu0 %v11549_v9  ;;  %v1060_v32 = vmul.f32 %v1032_v15, %v929_v14  ;;  %v1062_v42 = vmul.f32 %v1034_v19, %v1000_v16  ;;  %v10570_v15 = vld [vmem:[#allocation10 + $0x110] sm:$0xff]   ;;  %v10573_v19 = vld [vmem:[#allocation10 + $0x1c8] sm:$0xff]  }
 0x26d   : > { %v931_v22 = vpop.f32.mrf.mxu1  ;;  %v1002_v25 = vpop.f32.mrf.mxu0  ;;  %1384 = vmatmul.mubr.bf16.gmra.mxu1 %v11551_v12  ;;  %1448 = vmatmul.mubr.bf16.gmra.mxu0 %v11553_v13  ;;  %v10571_v16 = vld [vmem:[#allocation10 + $0x190] sm:$0xff]  }
 0x26e   : > { %9144 = vmatpush3.bf16.msra.mxu1 %v10558_v11  ;;  %v1063_v33 = vmul.f32 %v1035_v20, %v931_v22  ;;  %9184 = vmatpush3.bf16.msra.mxu0 %v10559_v17  ;;  %v1065_v43 = vmul.f32 %v1037_v26, %v1002_v25  ;;  %v10575_v22 = vld [vmem:[#allocation10 + $0x188] sm:$0xff]   ;;  %v10576_v26 = vld [vmem:[#allocation10 + $0x140] sm:$0xff]  }
 0x26f   : > { %v933_v34 = vpop.f32.mrf.mxu1  ;;  %v1004_v35 = vpop.f32.mrf.mxu0  ;;  %9145 = vmatprep.subr.bf16.mxu1 %v10560_v18  ;;  %9185 = vmatprep.subr.bf16.mxu0 %v10561_v21  ;;  %v10572_v18 = vld [vmem:[#allocation10 + $0x148] sm:$0xff]  }
 0x270   : > { %v1064_v44 = vmul.f32 %v1036_v27, %v933_v34  ;;  %v1066_v45 = vmul.f32 %v1038_v28, %v1004_v35  ;;  %v11563_v55 = vpack.c.bf16 %v1063_v33, %v1059_v46  ;;  %v11565_v61 = vpack.c.bf16 %v1065_v43, %v1061_v51  ;;  %v10574_v21 = vld [vmem:[#allocation10 + $0x108] sm:$0xff]   ;;  %v10577_v27 = vld [vmem:[#allocation10 + $0x1c0] sm:$0xff]   ;;  %v10583_v33 = vld [vmem:[#allocation10 + $0x2b8] sm:$0xff]  }
 0x271   : > { %v937_v47 = vpop.f32.mrf.mxu1  ;;  %v1008_v48 = vpop.f32.mrf.mxu0  ;;  %v10578_v28 = vld [vmem:[#allocation10 + $0x100] sm:$0xff]   ;;  %v10584_v34 = vld [vmem:[#allocation10 + $0x270] sm:$0xff]   ;;  %v10589_v43 = vld [vmem:[#allocation10 + $0x2e8] sm:$0xff]  }
 0x272   : > { %v11559_v52 = vpack.c.bf16 %v1064_v44, %v1060_v32  ;;  %v11561_v53 = vpack.c.bf16 %v1066_v45, %v1062_v42  ;;  %9146 = vmatpush3.bf16.msra.mxu1 %v10562_v30  ;;  %9186 = vmatpush3.bf16.msra.mxu0 %v10563_v38  ;;  %v1067_v10 = vmul.f32 %v1039_v62, %v937_v47  ;;  %v10580_v30 = vld [vmem:[#allocation10 + $0x278] sm:$0xff]   ;;  %v10585_v35 = vld [vmem:[#allocation10 + $0x2f0] sm:$0xff]   ;;  %v10588_v42 = vld [vmem:[#allocation10 + $0x268] sm:$0xff]  }
 0x273   : > { %v939_v57 = vpop.f32.mrf.mxu1  ;;  %v1010_v58 = vpop.f32.mrf.mxu0  ;;  %9147 = vmatprep.subr.bf16.mxu1 %v10564_v39  ;;  %9187 = vmatprep.subr.bf16.mxu0 %v10565_v54  ;;  %v1069_v17 = vmul.f32 %v1041_v2, %v1008_v48  ;;  %v10582_v32 = vld [vmem:[#allocation10 + $0x238] sm:$0xff]   ;;  %v10586_v38 = vld [vmem:[#allocation10 + $0x230] sm:$0xff]   ;;  %v10590_v44 = vld [vmem:[#allocation10 + $0x228] sm:$0xff]  }
 0x274   : > { %v1068_v0 = vmul.f32 %v1040_v49, %v939_v57  ;;  %v1070_v1 = vmul.f32 %v1042_v50, %v1010_v58  ;;  %1391 = vmatprep.mubr.bf16.mxu1 %v11559_v52  ;;  %1455 = vmatprep.mubr.bf16.mxu0 %v11561_v53  ;;  %v11577_v20 = vpack.c.bf16 %v1067_v10, %v1067_v10  ;;  %v10587_v39 = vld [vmem:[#allocation10 + $0x2b0] sm:$0xff]   ;;  %v10591_v45 = vld [vmem:[#allocation10 + $0x2a8] sm:$0xff]   ;;  %v10592_v46 = vld [vmem:[#allocation10 + $0x260] sm:$0xff]  }
 0x275   : > { %v941_v63 = vpop.f32.mrf.mxu1  ;;  %v1012_v3 = vpop.f32.mrf.mxu0  ;;  %1392 = vmatmul.mubr.bf16.gmra.mxu1 %v11563_v55  ;;  %1456 = vmatmul.mubr.bf16.gmra.mxu0 %v11565_v61  ;;  %v11579_v25 = vpack.c.bf16 %v1069_v17, %v1069_v17  ;;  %v10593_v47 = vld [vmem:[#allocation10 + $0x2e0] sm:$0xff]   ;;  %v10596_v50 = vld [vmem:[#allocation10 + $0x258] sm:$0xff]   ;;  %v10600_v58 = vld [vmem:[#allocation10 + $0x250] sm:$0xff]  }
 0x276   : > { %v11570_v6 = vpack.c.bf16 %v1068_v0, %v1068_v0  ;;  %v11572_v7 = vpack.c.bf16 %v1070_v1, %v1070_v1  ;;  %9148 = vmatpush3.bf16.msra.mxu1 %v10566_v59  ;;  %9188 = vmatpush3.bf16.msra.mxu0 %v10567_v60  ;;  %v10594_v48 = vld [vmem:[#allocation10 + $0x220] sm:$0xff]   ;;  %v10597_v51 = vld [vmem:[#allocation10 + $0x2d8] sm:$0xff]   ;;  %v10601_v59 = vld [vmem:[#allocation10 + $0x2d0] sm:$0xff]  }
 0x277   : > { %v942_v11 = vpop.f32.mrf.mxu1  ;;  %v1013_v14 = vpop.f32.mrf.mxu0  ;;  %9149 = vmatprep.subr.bf16.mxu1 %v10568_v4  ;;  %9189 = vmatprep.subr.bf16.mxu0 %v10569_v5  ;;  %v10595_v49 = vld [vmem:[#allocation10 + $0x2a0] sm:$0xff]   ;;  %v10598_v54 = vld [vmem:[#allocation10 + $0x218] sm:$0xff]   ;;  %v10602_v60 = vld [vmem:[#allocation10 + $0x210] sm:$0xff]  }
 0x278   : > { %1399 = vmatprep.mubr.bf16.mxu1 %v11570_v6  ;;  %1463 = vmatprep.mubr.bf16.mxu0 %v11572_v7  ;;  %v10599_v57 = vld [vmem:[#allocation10 + $0x298] sm:$0xff]   ;;  %v10603_v62 = vld [vmem:[#allocation10 + $0x290] sm:$0xff]   ;;  %v10604_v0 = vld [vmem:[#allocation10 + $0x248] sm:$0xff]  }
 0x279   : > { %v10605_v1 = vld [vmem:[#allocation10 + $0x2c8] sm:$0xff]   ;;  %v10608_v3 = vld [vmem:[#allocation10 + $0x240] sm:$0xff]   ;;  %v10612_v11 = vld [vmem:[#allocation10 + $0x378] sm:$0xff]  }
 0x27a   : > { %9150 = vmatpush3.bf16.msra.mxu1 %v10570_v15  ;;  %9190 = vmatpush3.bf16.msra.mxu0 %v10571_v16  ;;  %v10606_v2 = vld [vmem:[#allocation10 + $0x208] sm:$0xff]   ;;  %v10609_v4 = vld [vmem:[#allocation10 + $0x2c0] sm:$0xff]   ;;  %v10613_v14 = vld [vmem:[#allocation10 + $0x3f8] sm:$0xff]  }
 0x27b   : > { %9151 = vmatprep.subr.bf16.mxu1 %v10572_v18  ;;  %9191 = vmatprep.subr.bf16.mxu0 %v10573_v19  ;;  %v10607_v63 = vld [vmem:[#allocation10 + $0x288] sm:$0xff]   ;;  %v10610_v5 = vld [vmem:[#allocation10 + $0x200] sm:$0xff]   ;;  %v10614_v15 = vld [vmem:[#allocation10 + $0x338] sm:$0xff]  }
 0x27c   : > { %v10611_v10 = vld [vmem:[#allocation10 + $0x280] sm:$0xff]   ;;  %v10615_v16 = vld [vmem:[#allocation10 + $0x3b8] sm:$0xff]   ;;  %v10616_v17 = vld [vmem:[#allocation10 + $0x370] sm:$0xff]  }
 0x27d   : > { %1400 = vmatmul.mubr.bf16.gmra.mxu1 %v11577_v20  ;;  %1464 = vmatmul.mubr.bf16.gmra.mxu0 %v11579_v25  ;;  %v10617_v18 = vld [vmem:[#allocation10 + $0x3f0] sm:$0xff]  }
 0x27e   : > { %1760 = vmatprep.mubr.bf16.mxu1 %v11535_v36  ;;  %9152 = vmatpush3.bf16.msra.mxu1 %v10574_v21  ;;  %v10618_v19 = vld [vmem:[#allocation10 + $0x330] sm:$0xff]  }
 0x27f   : > { %9192 = vmatpush3.bf16.msra.mxu0 %v10575_v22  ;;  %1824 = vmatprep.mubr.bf16.mxu0 %v11537_v37  ;;  %v10619_v21 = vld [vmem:[#allocation10 + $0x3b0] sm:$0xff]   ;;  %v10620_v22 = vld [vmem:[#allocation10 + $0x368] sm:$0xff]  }
 0x280   : > { %9153 = vmatprep.subr.bf16.mxu1 %v10576_v26  ;;  %9193 = vmatprep.subr.bf16.mxu0 %v10577_v27  ;;  %v10621_v26 = vld [vmem:[#allocation10 + $0x3e8] sm:$0xff]  }
 0x281   : > { %v10622_v27 = vld [vmem:[#allocation10 + $0x328] sm:$0xff]  }
 0x282   : > { %9154 = vmatpush3.bf16.msra.mxu1 %v10578_v28  ;;  %v10623_v28 = vld [vmem:[#allocation10 + $0x3a8] sm:$0xff]  }
 0x283   : > { %9194 = vmatpush3.bf16.msra.mxu0 %v10579_v29  ;;  %9219 = vmatprep.subr.bf16.mxu1 %v10580_v30  ;;  %v10624_v29 = vld [vmem:[#allocation10 + $0x360] sm:$0xff]  }
 0x284   : > { %9259 = vmatprep.subr.bf16.mxu0 %v10581_v31  ;;  %v10625_v30 = vld [vmem:[#allocation10 + $0x3e0] sm:$0xff]  }
 0x285   : > { %1761 = vmatmul.mubr.bf16.vlgmr.msra.gmra.mxu1 %v11539_v40  ;;  %v10626_v31 = vld [vmem:[#allocation10 + $0x320] sm:$0xff]  }
 0x286   : > { %1825 = vmatmul.mubr.bf16.vlgmr.msra.gmra.mxu0 %v11541_v41  ;;  %1768 = vmatprep.mubr.bf16.mxu1 %v11547_v8 }
 0x287   : > { %1832 = vmatprep.mubr.bf16.mxu0 %v11549_v9  ;;  %9220 = vmatpush3.bf16.msra.mxu1 %v10582_v32  ;;  %v10627_v32 = vld [vmem:[#allocation10 + $0x3a0] sm:$0xff]  }
 0x288   : > { %9260 = vmatpush3.bf16.msra.mxu0 %v10583_v33  ;;  %9221 = vmatprep.subr.bf16.mxu1 %v10584_v34  ;;  %v10628_v33 = vld [vmem:[#allocation10 + $0x358] sm:$0xff]  }
 0x289   : > { %9261 = vmatprep.subr.bf16.mxu0 %v10585_v35  ;;  %v10629_v34 = vld [vmem:[#allocation10 + $0x3d8] sm:$0xff]  }
 0x28a   : > { %v10630_v35 = vld [vmem:[#allocation10 + $0x318] sm:$0xff]  }
 0x28b   : > { %9222 = vmatpush3.bf16.msra.mxu1 %v10586_v38  ;;  %v10631_v38 = vld [vmem:[#allocation10 + $0x398] sm:$0xff]  }
 0x28c   : > { %9262 = vmatpush3.bf16.msra.mxu0 %v10587_v39  ;;  %9223 = vmatprep.subr.bf16.mxu1 %v10588_v42  ;;  %v10632_v39 = vld [vmem:[#allocation10 + $0x350] sm:$0xff]  }
 0x28d   : > { %9263 = vmatprep.subr.bf16.mxu0 %v10589_v43  ;;  %1769 = vmatmul.mubr.bf16.gmra.mxu1 %v11551_v12  ;;  %v10633_v42 = vld [vmem:[#allocation10 + $0x3d0] sm:$0xff]  }
 0x28e   : > { %1833 = vmatmul.mubr.bf16.gmra.mxu0 %v11553_v13  ;;  %1776 = vmatprep.mubr.bf16.mxu1 %v11559_v52  ;;  %v10634_v43 = vld [vmem:[#allocation10 + $0x310] sm:$0xff]  }
 0x28f   : > { %1840 = vmatprep.mubr.bf16.mxu0 %v11561_v53  ;;  %9224 = vmatpush3.bf16.msra.mxu1 %v10590_v44  ;;  %v10635_v44 = vld [vmem:[#allocation10 + $0x390] sm:$0xff]  }
 0x290   : > { %9264 = vmatpush3.bf16.msra.mxu0 %v10591_v45  ;;  %9225 = vmatprep.subr.bf16.mxu1 %v10592_v46  ;;  %v10636_v45 = vld [vmem:[#allocation10 + $0x348] sm:$0xff]  }
 0x291   : > { %9265 = vmatprep.subr.bf16.mxu0 %v10593_v47  ;;  %v10637_v46 = vld [vmem:[#allocation10 + $0x3c8] sm:$0xff]  }
 0x292   : > { %v10638_v47 = vld [vmem:[#allocation10 + $0x308] sm:$0xff]  }
 0x293   : > { %9226 = vmatpush3.bf16.msra.mxu1 %v10594_v48  ;;  %v10639_v48 = vld [vmem:[#allocation10 + $0x388] sm:$0xff]  }
 0x294   : > { %9266 = vmatpush3.bf16.msra.mxu0 %v10595_v49  ;;  %9227 = vmatprep.subr.bf16.mxu1 %v10596_v50  ;;  %v10640_v49 = vld [vmem:[#allocation10 + $0x340] sm:$0xff]  }
 0x295   : > { %9267 = vmatprep.subr.bf16.mxu0 %v10597_v51  ;;  %1777 = vmatmul.mubr.bf16.gmra.mxu1 %v11563_v55  ;;  %v10641_v50 = vld [vmem:[#allocation10 + $0x3c0] sm:$0xff]  }
 0x296   : > { %1841 = vmatmul.mubr.bf16.gmra.mxu0 %v11565_v61  ;;  %1784 = vmatprep.mubr.bf16.mxu1 %v11570_v6  ;;  %v10642_v51 = vld [vmem:[#allocation10 + $0x300] sm:$0xff]  }
 0x297   : > { %1848 = vmatprep.mubr.bf16.mxu0 %v11572_v7  ;;  %9228 = vmatpush3.bf16.msra.mxu1 %v10598_v54  ;;  %v10643_v54 = vld [vmem:[#allocation10 + $0x380] sm:$0xff]  }
 0x298   : > { %9268 = vmatpush3.bf16.msra.mxu0 %v10599_v57  ;;  %9229 = vmatprep.subr.bf16.mxu1 %v10600_v58  ;;  %v10644_v57 = vld [vmem:[#allocation10 + $0x478] sm:$0xff]  }
 0x299   : > { %9269 = vmatprep.subr.bf16.mxu0 %v10601_v59  ;;  %v10645_v58 = vld [vmem:[#allocation10 + $0x4f8] sm:$0xff]  }
 0x29a   : > { %v10646_v59 = vld [vmem:[#allocation10 + $0x438] sm:$0xff]  }
 0x29b   : > { %9230 = vmatpush3.bf16.msra.mxu1 %v10602_v60  ;;  %v10647_v60 = vld [vmem:[#allocation10 + $0x4b8] sm:$0xff]  }
 0x29c   : > { %9270 = vmatpush3.bf16.msra.mxu0 %v10603_v62  ;;  %9231 = vmatprep.subr.bf16.mxu1 %v10604_v0  ;;  %v10648_v62 = vld [vmem:[#allocation10 + $0x470] sm:$0xff]  }
 0x29d   : > { %9271 = vmatprep.subr.bf16.mxu0 %v10605_v1  ;;  %1785 = vmatmul.mubr.bf16.gmra.mxu1 %v11577_v20  ;;  %v10649_v0 = vld [vmem:[#allocation10 + $0x4f0] sm:$0xff]  }
 0x29e   : > { %1849 = vmatmul.mubr.bf16.gmra.mxu0 %v11579_v25  ;;  %2145 = vmatprep.mubr.bf16.mxu1 %v11535_v36  ;;  %v10650_v1 = vld [vmem:[#allocation10 + $0x430] sm:$0xff]  }
 0x29f   : > { %2209 = vmatprep.mubr.bf16.mxu0 %v11537_v37  ;;  %9232 = vmatpush3.bf16.msra.mxu1 %v10606_v2  ;;  %v10651_v2 = vld [vmem:[#allocation10 + $0x4b0] sm:$0xff]  }
 0x2a0   : > { %9272 = vmatpush3.bf16.msra.mxu0 %v10607_v63  ;;  %9233 = vmatprep.subr.bf16.mxu1 %v10608_v3  ;;  %v10652_v63 = vld [vmem:[#allocation10 + $0x468] sm:$0xff]  }
 0x2a1   : > { %9273 = vmatprep.subr.bf16.mxu0 %v10609_v4  ;;  %v10653_v3 = vld [vmem:[#allocation10 + $0x4e8] sm:$0xff]  }
 0x2a2   : > { %v10654_v4 = vld [vmem:[#allocation10 + $0x428] sm:$0xff]  }
 0x2a3   : > { %9234 = vmatpush3.bf16.msra.mxu1 %v10610_v5  ;;  %v10655_v5 = vld [vmem:[#allocation10 + $0x4a8] sm:$0xff]  }
 0x2a4   : > { %9274 = vmatpush3.bf16.msra.mxu0 %v10611_v10  ;;  %9299 = vmatprep.subr.bf16.mxu1 %v10612_v11  ;;  %v10656_v10 = vld [vmem:[#allocation10 + $0x460] sm:$0xff]  }
 0x2a5   : > { %9339 = vmatprep.subr.bf16.mxu0 %v10613_v14  ;;  %v10657_v11 = vld [vmem:[#allocation10 + $0x4e0] sm:$0xff]  }
 0x2a6   : > { %2146 = vmatmul.mubr.bf16.vlgmr.msra.gmra.mxu1 %v11539_v40  ;;  %v10658_v14 = vld [vmem:[#allocation10 + $0x420] sm:$0xff]  }
 0x2a7   : > { %2210 = vmatmul.mubr.bf16.vlgmr.msra.gmra.mxu0 %v11541_v41  ;;  %2153 = vmatprep.mubr.bf16.mxu1 %v11547_v8 }
 0x2a8   : > { %2217 = vmatprep.mubr.bf16.mxu0 %v11549_v9  ;;  %9300 = vmatpush3.bf16.msra.mxu1 %v10614_v15  ;;  %v10659_v15 = vld [vmem:[#allocation10 + $0x4a0] sm:$0xff]  }
 0x2a9   : > { %9340 = vmatpush3.bf16.msra.mxu0 %v10615_v16  ;;  %9301 = vmatprep.subr.bf16.mxu1 %v10616_v17  ;;  %v10660_v16 = vld [vmem:[#allocation10 + $0x458] sm:$0xff]  }
 0x2aa   : > { %9341 = vmatprep.subr.bf16.mxu0 %v10617_v18  ;;  %v10661_v17 = vld [vmem:[#allocation10 + $0x4d8] sm:$0xff]  }
 0x2ab   : > { %v10662_v18 = vld [vmem:[#allocation10 + $0x418] sm:$0xff]  }
 0x2ac   : > { %9302 = vmatpush3.bf16.msra.mxu1 %v10618_v19  ;;  %v10663_v19 = vld [vmem:[#allocation10 + $0x498] sm:$0xff]  }
 0x2ad   : > { %9342 = vmatpush3.bf16.msra.mxu0 %v10619_v21  ;;  %9303 = vmatprep.subr.bf16.mxu1 %v10620_v22  ;;  %v10664_v21 = vld [vmem:[#allocation10 + $0x450] sm:$0xff]  }
 0x2ae   : > { %9343 = vmatprep.subr.bf16.mxu0 %v10621_v26  ;;  %2154 = vmatmul.mubr.bf16.gmra.mxu1 %v11551_v12  ;;  %v10665_v22 = vld [vmem:[#allocation10 + $0x4d0] sm:$0xff]  }
 0x2af   : > { %2218 = vmatmul.mubr.bf16.gmra.mxu0 %v11553_v13  ;;  %2161 = vmatprep.mubr.bf16.mxu1 %v11559_v52  ;;  %v10666_v26 = vld [vmem:[#allocation10 + $0x410] sm:$0xff]  }
 0x2b0   : > { %2225 = vmatprep.mubr.bf16.mxu0 %v11561_v53  ;;  %9304 = vmatpush3.bf16.msra.mxu1 %v10622_v27  ;;  %v10667_v27 = vld [vmem:[#allocation10 + $0x490] sm:$0xff]  }
 0x2b1   : > { %9344 = vmatpush3.bf16.msra.mxu0 %v10623_v28  ;;  %9305 = vmatprep.subr.bf16.mxu1 %v10624_v29  ;;  %v10668_v28 = vld [vmem:[#allocation10 + $0x448] sm:$0xff]  }
 0x2b2   : > { %9345 = vmatprep.subr.bf16.mxu0 %v10625_v30  ;;  %v10669_v29 = vld [vmem:[#allocation10 + $0x4c8] sm:$0xff]  }
 0x2b3   : > { %v10670_v30 = vld [vmem:[#allocation10 + $0x408] sm:$0xff]  }
 0x2b4   : > { %9306 = vmatpush3.bf16.msra.mxu1 %v10626_v31  ;;  %v10671_v31 = vld [vmem:[#allocation10 + $0x488] sm:$0xff]  }
 0x2b5   : > { %9346 = vmatpush3.bf16.msra.mxu0 %v10627_v32  ;;  %9307 = vmatprep.subr.bf16.mxu1 %v10628_v33  ;;  %v10672_v32 = vld [vmem:[#allocation10 + $0x440] sm:$0xff]  }
 0x2b6   : > { %9347 = vmatprep.subr.bf16.mxu0 %v10629_v34  ;;  %2162 = vmatmul.mubr.bf16.gmra.mxu1 %v11563_v55  ;;  %v10673_v33 = vld [vmem:[#allocation10 + $0x4c0] sm:$0xff]  }
 0x2b7   : > { %2226 = vmatmul.mubr.bf16.gmra.mxu0 %v11565_v61  ;;  %2169 = vmatprep.mubr.bf16.mxu1 %v11570_v6  ;;  %v10674_v34 = vld [vmem:[#allocation10 + $0x400] sm:$0xff]  }
 0x2b8   : > { %2233 = vmatprep.mubr.bf16.mxu0 %v11572_v7  ;;  %9308 = vmatpush3.bf16.msra.mxu1 %v10630_v35  ;;  %v10675_v35 = vld [vmem:[#allocation10 + $0x480] sm:$0xff]  }
 0x2b9   : > { %9348 = vmatpush3.bf16.msra.mxu0 %v10631_v38  ;;  %9309 = vmatprep.subr.bf16.mxu1 %v10632_v39  ;;  %v10676_v38 = vld [vmem:[#allocation10 + $0x578] sm:$0xff]  }
 0x2ba   : > { %9349 = vmatprep.subr.bf16.mxu0 %v10633_v42  ;;  %v10677_v39 = vld [vmem:[#allocation10 + $0x5f8] sm:$0xff]  }
 0x2bb   : > { %v10678_v42 = vld [vmem:[#allocation10 + $0x538] sm:$0xff]  }
 0x2bc   : > { %9310 = vmatpush3.bf16.msra.mxu1 %v10634_v43  ;;  %v10679_v43 = vld [vmem:[#allocation10 + $0x5b8] sm:$0xff]  }
 0x2bd   : > { %9350 = vmatpush3.bf16.msra.mxu0 %v10635_v44  ;;  %9311 = vmatprep.subr.bf16.mxu1 %v10636_v45  ;;  %v10680_v44 = vld [vmem:[#allocation10 + $0x570] sm:$0xff]  }
 0x2be   : > { %9351 = vmatprep.subr.bf16.mxu0 %v10637_v46  ;;  %2170 = vmatmul.mubr.bf16.gmra.mxu1 %v11577_v20  ;;  %v10681_v45 = vld [vmem:[#allocation10 + $0x5f0] sm:$0xff]  }
 0x2bf   : > { %2234 = vmatmul.mubr.bf16.gmra.mxu0 %v11579_v25  ;;  %2530 = vmatprep.mubr.bf16.mxu1 %v11535_v36  ;;  %v10682_v46 = vld [vmem:[#allocation10 + $0x530] sm:$0xff]  }
 0x2c0   : > { %2594 = vmatprep.mubr.bf16.mxu0 %v11537_v37  ;;  %9312 = vmatpush3.bf16.msra.mxu1 %v10638_v47  ;;  %v10683_v47 = vld [vmem:[#allocation10 + $0x5b0] sm:$0xff]  }
 0x2c1   : > { %9352 = vmatpush3.bf16.msra.mxu0 %v10639_v48  ;;  %9313 = vmatprep.subr.bf16.mxu1 %v10640_v49  ;;  %v10684_v48 = vld [vmem:[#allocation10 + $0x568] sm:$0xff]  }
 0x2c2   : > { %9353 = vmatprep.subr.bf16.mxu0 %v10641_v50  ;;  %v10685_v49 = vld [vmem:[#allocation10 + $0x5e8] sm:$0xff]  }
 0x2c3   : > { %v10686_v50 = vld [vmem:[#allocation10 + $0x528] sm:$0xff]  }
 0x2c4   : > { %9314 = vmatpush3.bf16.msra.mxu1 %v10642_v51  ;;  %v10687_v51 = vld [vmem:[#allocation10 + $0x5a8] sm:$0xff]  }
 0x2c5   : > { %9354 = vmatpush3.bf16.msra.mxu0 %v10643_v54  ;;  %9379 = vmatprep.subr.bf16.mxu1 %v10644_v57  ;;  %v10688_v54 = vld [vmem:[#allocation10 + $0x560] sm:$0xff]  }
 0x2c6   : > { %9419 = vmatprep.subr.bf16.mxu0 %v10645_v58  ;;  %v10689_v57 = vld [vmem:[#allocation10 + $0x5e0] sm:$0xff]  }
 0x2c7   : > { %2531 = vmatmul.mubr.bf16.vlgmr.msra.gmra.mxu1 %v11539_v40  ;;  %v10690_v58 = vld [vmem:[#allocation10 + $0x520] sm:$0xff]  }
 0x2c8   : > { %2595 = vmatmul.mubr.bf16.vlgmr.msra.gmra.mxu0 %v11541_v41  ;;  %2538 = vmatprep.mubr.bf16.mxu1 %v11547_v8 }
 0x2c9   : > { %2602 = vmatprep.mubr.bf16.mxu0 %v11549_v9  ;;  %9380 = vmatpush3.bf16.msra.mxu1 %v10646_v59  ;;  %v10691_v59 = vld [vmem:[#allocation10 + $0x5a0] sm:$0xff]  }
 0x2ca   : > { %9420 = vmatpush3.bf16.msra.mxu0 %v10647_v60  ;;  %9381 = vmatprep.subr.bf16.mxu1 %v10648_v62  ;;  %v10692_v60 = vld [vmem:[#allocation10 + $0x558] sm:$0xff]  }
 0x2cb   : > { %9421 = vmatprep.subr.bf16.mxu0 %v10649_v0  ;;  %v10693_v62 = vld [vmem:[#allocation10 + $0x5d8] sm:$0xff]  }
 0x2cc   : > { %v10694_v0 = vld [vmem:[#allocation10 + $0x518] sm:$0xff]  }
 0x2cd   : > { %9382 = vmatpush3.bf16.msra.mxu1 %v10650_v1  ;;  %v10695_v1 = vld [vmem:[#allocation10 + $0x598] sm:$0xff]  }
 0x2ce   : > { %9422 = vmatpush3.bf16.msra.mxu0 %v10651_v2  ;;  %9383 = vmatprep.subr.bf16.mxu1 %v10652_v63  ;;  %v10696_v2 = vld [vmem:[#allocation10 + $0x550] sm:$0xff]  }
 0x2cf   : > { %9423 = vmatprep.subr.bf16.mxu0 %v10653_v3  ;;  %2539 = vmatmul.mubr.bf16.gmra.mxu1 %v11551_v12  ;;  %v10697_v63 = vld [vmem:[#allocation10 + $0x5d0] sm:$0xff]  }
 0x2d0   : > { %2603 = vmatmul.mubr.bf16.gmra.mxu0 %v11553_v13  ;;  %2546 = vmatprep.mubr.bf16.mxu1 %v11559_v52  ;;  %v10698_v3 = vld [vmem:[#allocation10 + $0x510] sm:$0xff]  }
 0x2d1   : > { %2610 = vmatprep.mubr.bf16.mxu0 %v11561_v53  ;;  %9384 = vmatpush3.bf16.msra.mxu1 %v10654_v4  ;;  %v10699_v4 = vld [vmem:[#allocation10 + $0x590] sm:$0xff]  }
 0x2d2   : > { %9424 = vmatpush3.bf16.msra.mxu0 %v10655_v5  ;;  %9385 = vmatprep.subr.bf16.mxu1 %v10656_v10  ;;  %v10700_v5 = vld [vmem:[#allocation10 + $0x548] sm:$0xff]  }
 0x2d3   : > { %9425 = vmatprep.subr.bf16.mxu0 %v10657_v11  ;;  %v10701_v10 = vld [vmem:[#allocation10 + $0x5c8] sm:$0xff]  }
 0x2d4   : > { %v10702_v11 = vld [vmem:[#allocation10 + $0x508] sm:$0xff]  }
 0x2d5   : > { %9386 = vmatpush3.bf16.msra.mxu1 %v10658_v14  ;;  %v10703_v14 = vld [vmem:[#allocation10 + $0x588] sm:$0xff]  }
 0x2d6   : > { %9426 = vmatpush3.bf16.msra.mxu0 %v10659_v15  ;;  %9387 = vmatprep.subr.bf16.mxu1 %v10660_v16  ;;  %v10704_v15 = vld [vmem:[#allocation10 + $0x540] sm:$0xff]  }
 0x2d7   : > { %9427 = vmatprep.subr.bf16.mxu0 %v10661_v17  ;;  %2547 = vmatmul.mubr.bf16.gmra.mxu1 %v11563_v55  ;;  %v10705_v16 = vld [vmem:[#allocation10 + $0x5c0] sm:$0xff]  }
 0x2d8   : > { %2611 = vmatmul.mubr.bf16.gmra.mxu0 %v11565_v61  ;;  %2554 = vmatprep.mubr.bf16.mxu1 %v11570_v6  ;;  %v10706_v17 = vld [vmem:[#allocation10 + $0x500] sm:$0xff]  }
 0x2d9   : > { %2618 = vmatprep.mubr.bf16.mxu0 %v11572_v7  ;;  %9388 = vmatpush3.bf16.msra.mxu1 %v10662_v18  ;;  %v10707_v18 = vld [vmem:[#allocation10 + $0x580] sm:$0xff]  }
 0x2da   : > { %9428 = vmatpush3.bf16.msra.mxu0 %v10663_v19  ;;  %9389 = vmatprep.subr.bf16.mxu1 %v10664_v21  ;;  %v10708_v19 = vld [vmem:[#allocation10 + $0x678] sm:$0xff]  }
 0x2db   : > { %9429 = vmatprep.subr.bf16.mxu0 %v10665_v22  ;;  %v10709_v21 = vld [vmem:[#allocation10 + $0x6f8] sm:$0xff]  }
 0x2dc   : > { %v10710_v22 = vld [vmem:[#allocation10 + $0x638] sm:$0xff]  }
 0x2dd   : > { %9390 = vmatpush3.bf16.msra.mxu1 %v10666_v26  ;;  %v10711_v26 = vld [vmem:[#allocation10 + $0x6b8] sm:$0xff]  }
 0x2de   : > { %9430 = vmatpush3.bf16.msra.mxu0 %v10667_v27  ;;  %9391 = vmatprep.subr.bf16.mxu1 %v10668_v28  ;;  %v10712_v27 = vld [vmem:[#allocation10 + $0x670] sm:$0xff]  }
 0x2df   : > { %9431 = vmatprep.subr.bf16.mxu0 %v10669_v29  ;;  %2555 = vmatmul.mubr.bf16.gmra.mxu1 %v11577_v20  ;;  %v10713_v28 = vld [vmem:[#allocation10 + $0x6f0] sm:$0xff]  }
 0x2e0   : > { %2619 = vmatmul.mubr.bf16.gmra.mxu0 %v11579_v25  ;;  %2915 = vmatprep.mubr.bf16.mxu1 %v11535_v36  ;;  %v10714_v29 = vld [vmem:[#allocation10 + $0x630] sm:$0xff]  }
 0x2e1   : > { %2979 = vmatprep.mubr.bf16.mxu0 %v11537_v37  ;;  %9392 = vmatpush3.bf16.msra.mxu1 %v10670_v30  ;;  %v10715_v30 = vld [vmem:[#allocation10 + $0x6b0] sm:$0xff]  }
 0x2e2   : > { %9432 = vmatpush3.bf16.msra.mxu0 %v10671_v31  ;;  %9393 = vmatprep.subr.bf16.mxu1 %v10672_v32  ;;  %v10716_v31 = vld [vmem:[#allocation10 + $0x668] sm:$0xff]  }
 0x2e3   : > { %9433 = vmatprep.subr.bf16.mxu0 %v10673_v33  ;;  %v10717_v32 = vld [vmem:[#allocation10 + $0x6e8] sm:$0xff]  }
 0x2e4   : > { %v10718_v33 = vld [vmem:[#allocation10 + $0x628] sm:$0xff]  }
 0x2e5   : > { %9394 = vmatpush3.bf16.msra.mxu1 %v10674_v34  ;;  %v10719_v34 = vld [vmem:[#allocation10 + $0x6a8] sm:$0xff]  }
 0x2e6   : > { %9434 = vmatpush3.bf16.msra.mxu0 %v10675_v35  ;;  %9459 = vmatprep.subr.bf16.mxu1 %v10676_v38  ;;  %v10720_v35 = vld [vmem:[#allocation10 + $0x660] sm:$0xff]  }
 0x2e7   : > { %9499 = vmatprep.subr.bf16.mxu0 %v10677_v39  ;;  %v10721_v38 = vld [vmem:[#allocation10 + $0x6e0] sm:$0xff]  }
 0x2e8   : > { %2916 = vmatmul.mubr.bf16.vlgmr.msra.gmra.mxu1 %v11539_v40  ;;  %v10722_v39 = vld [vmem:[#allocation10 + $0x620] sm:$0xff]  }
 0x2e9   : > { %2980 = vmatmul.mubr.bf16.vlgmr.msra.gmra.mxu0 %v11541_v41  ;;  %2923 = vmatprep.mubr.bf16.mxu1 %v11547_v8 }
 0x2ea   : > { %2987 = vmatprep.mubr.bf16.mxu0 %v11549_v9  ;;  %9460 = vmatpush3.bf16.msra.mxu1 %v10678_v42  ;;  %v10723_v42 = vld [vmem:[#allocation10 + $0x6a0] sm:$0xff]  }
 0x2eb   : > { %9500 = vmatpush3.bf16.msra.mxu0 %v10679_v43  ;;  %9461 = vmatprep.subr.bf16.mxu1 %v10680_v44  ;;  %v10724_v43 = vld [vmem:[#allocation10 + $0x658] sm:$0xff]  }
 0x2ec   : > { %9501 = vmatprep.subr.bf16.mxu0 %v10681_v45  ;;  %v10725_v44 = vld [vmem:[#allocation10 + $0x6d8] sm:$0xff]  }
 0x2ed   : > { %v10726_v45 = vld [vmem:[#allocation10 + $0x618] sm:$0xff]  }
 0x2ee   : > { %9462 = vmatpush3.bf16.msra.mxu1 %v10682_v46  ;;  %v10727_v46 = vld [vmem:[#allocation10 + $0x698] sm:$0xff]  }
 0x2ef   : > { %9502 = vmatpush3.bf16.msra.mxu0 %v10683_v47  ;;  %9463 = vmatprep.subr.bf16.mxu1 %v10684_v48  ;;  %v10728_v47 = vld [vmem:[#allocation10 + $0x650] sm:$0xff]  }
 0x2f0   : > { %9503 = vmatprep.subr.bf16.mxu0 %v10685_v49  ;;  %2924 = vmatmul.mubr.bf16.gmra.mxu1 %v11551_v12  ;;  %v10729_v48 = vld [vmem:[#allocation10 + $0x6d0] sm:$0xff]  }
 0x2f1   : > { %2988 = vmatmul.mubr.bf16.gmra.mxu0 %v11553_v13  ;;  %2931 = vmatprep.mubr.bf16.mxu1 %v11559_v52  ;;  %v10730_v49 = vld [vmem:[#allocation10 + $0x610] sm:$0xff]  }
 0x2f2   : > { %2995 = vmatprep.mubr.bf16.mxu0 %v11561_v53  ;;  %9464 = vmatpush3.bf16.msra.mxu1 %v10686_v50  ;;  %v10731_v50 = vld [vmem:[#allocation10 + $0x690] sm:$0xff]  }
 0x2f3   : > { %9504 = vmatpush3.bf16.msra.mxu0 %v10687_v51  ;;  %9465 = vmatprep.subr.bf16.mxu1 %v10688_v54  ;;  %v10732_v51 = vld [vmem:[#allocation10 + $0x648] sm:$0xff]  }
 0x2f4   : > { %9505 = vmatprep.subr.bf16.mxu0 %v10689_v57  ;;  %v10733_v54 = vld [vmem:[#allocation10 + $0x6c8] sm:$0xff]  }
 0x2f5   : > { %v10734_v57 = vld [vmem:[#allocation10 + $0x608] sm:$0xff]  }
 0x2f6   : > { %9466 = vmatpush3.bf16.msra.mxu1 %v10690_v58  ;;  %v10735_v58 = vld [vmem:[#allocation10 + $0x688] sm:$0xff]  }
 0x2f7   : > { %9506 = vmatpush3.bf16.msra.mxu0 %v10691_v59  ;;  %9467 = vmatprep.subr.bf16.mxu1 %v10692_v60  ;;  %v10736_v59 = vld [vmem:[#allocation10 + $0x640] sm:$0xff]  }
 0x2f8   : > { %9507 = vmatprep.subr.bf16.mxu0 %v10693_v62  ;;  %2932 = vmatmul.mubr.bf16.gmra.mxu1 %v11563_v55  ;;  %v10737_v60 = vld [vmem:[#allocation10 + $0x6c0] sm:$0xff]  }
 0x2f9   : > { %2996 = vmatmul.mubr.bf16.gmra.mxu0 %v11565_v61  ;;  %2939 = vmatprep.mubr.bf16.mxu1 %v11570_v6  ;;  %v10738_v62 = vld [vmem:[#allocation10 + $0x600] sm:$0xff]  }
 0x2fa   : > { %3003 = vmatprep.mubr.bf16.mxu0 %v11572_v7  ;;  %9468 = vmatpush3.bf16.msra.mxu1 %v10694_v0  ;;  %v10739_v0 = vld [vmem:[#allocation10 + $0x680] sm:$0xff]  }
 0x2fb   : > { %9508 = vmatpush3.bf16.msra.mxu0 %v10695_v1  ;;  %9469 = vmatprep.subr.bf16.mxu1 %v10696_v2 }
 0x2fc   : > { %9509 = vmatprep.subr.bf16.mxu0 %v10697_v63  ;;  %v10740_v63 = vld [vmem:[#allocation10 + $0x778] sm:$0xff]  }
 0x2fe   : > { %9470 = vmatpush3.bf16.msra.mxu1 %v10698_v3  ;;  %v10741_v3 = vld [vmem:[#allocation10 + $0x7f8] sm:$0xff]  }
 0x2ff   : > { %9510 = vmatpush3.bf16.msra.mxu0 %v10699_v4  ;;  %9471 = vmatprep.subr.bf16.mxu1 %v10700_v5 }
 0x300   : > { %9511 = vmatprep.subr.bf16.mxu0 %v10701_v10  ;;  %2940 = vmatmul.mubr.bf16.gmra.mxu1 %v11577_v20 }
 0x301   : > { %3004 = vmatmul.mubr.bf16.gmra.mxu0 %v11579_v25  ;;  %3300 = vmatprep.mubr.bf16.mxu1 %v11535_v36 }
 0x302   : > { %3364 = vmatprep.mubr.bf16.mxu0 %v11537_v37  ;;  %9472 = vmatpush3.bf16.msra.mxu1 %v10702_v11 }
 0x303   : > { %9512 = vmatpush3.bf16.msra.mxu0 %v10703_v14  ;;  %9473 = vmatprep.subr.bf16.mxu1 %v10704_v15  ;;  %v10742_v14 = vld [vmem:[#allocation10 + $0x738] sm:$0xff]  }
 0x304   : > { %9513 = vmatprep.subr.bf16.mxu0 %v10705_v16  ;;  %v10743_v15 = vld [vmem:[#allocation10 + $0x7b8] sm:$0xff]  }
 0x306   : > { %9474 = vmatpush3.bf16.msra.mxu1 %v10706_v17 }
 0x307   : > { %9514 = vmatpush3.bf16.msra.mxu0 %v10707_v18  ;;  %9539 = vmatprep.subr.bf16.mxu1 %v10708_v19  ;;  %v10744_v19 = vld [vmem:[#allocation10 + $0x770] sm:$0xff]  }
 0x308   : > { %9579 = vmatprep.subr.bf16.mxu0 %v10709_v21  ;;  %v10745_v21 = vld [vmem:[#allocation10 + $0x7f0] sm:$0xff]  }
 0x309   : > { %3301 = vmatmul.mubr.bf16.vlgmr.msra.gmra.mxu1 %v11539_v40 }
 0x30a   : > { %3365 = vmatmul.mubr.bf16.vlgmr.msra.gmra.mxu0 %v11541_v41  ;;  %3308 = vmatprep.mubr.bf16.mxu1 %v11547_v8 }
 0x30b   : > { %3372 = vmatprep.mubr.bf16.mxu0 %v11549_v9  ;;  %9540 = vmatpush3.bf16.msra.mxu1 %v10710_v22 }
 0x30c   : > { %9580 = vmatpush3.bf16.msra.mxu0 %v10711_v26  ;;  %9541 = vmatprep.subr.bf16.mxu1 %v10712_v27 }
 0x30d   : > { %9581 = vmatprep.subr.bf16.mxu0 %v10713_v28 }
 0x30f   : > { %9542 = vmatpush3.bf16.msra.mxu1 %v10714_v29  ;;  %v10746_v29 = vld [vmem:[#allocation10 + $0x730] sm:$0xff]  }
 0x310   : > { %9582 = vmatpush3.bf16.msra.mxu0 %v10715_v30  ;;  %9543 = vmatprep.subr.bf16.mxu1 %v10716_v31  ;;  %v10747_v30 = vld [vmem:[#allocation10 + $0x7b0] sm:$0xff]  }
 0x311   : > { %9583 = vmatprep.subr.bf16.mxu0 %v10717_v32  ;;  %3309 = vmatmul.mubr.bf16.gmra.mxu1 %v11551_v12 }
 0x312   : > { %3373 = vmatmul.mubr.bf16.gmra.mxu0 %v11553_v13  ;;  %3316 = vmatprep.mubr.bf16.mxu1 %v11559_v52 }
 0x313   : > { %3380 = vmatprep.mubr.bf16.mxu0 %v11561_v53  ;;  %9544 = vmatpush3.bf16.msra.mxu1 %v10718_v33 }
 0x314   : > { %9584 = vmatpush3.bf16.msra.mxu0 %v10719_v34  ;;  %9545 = vmatprep.subr.bf16.mxu1 %v10720_v35  ;;  %v10748_v34 = vld [vmem:[#allocation10 + $0x768] sm:$0xff]  }
 0x315   : > { %9585 = vmatprep.subr.bf16.mxu0 %v10721_v38  ;;  %v10749_v35 = vld [vmem:[#allocation10 + $0x7e8] sm:$0xff]  }
 0x317   : > { %9546 = vmatpush3.bf16.msra.mxu1 %v10722_v39 }
 0x318   : > { %9586 = vmatpush3.bf16.msra.mxu0 %v10723_v42  ;;  %9547 = vmatprep.subr.bf16.mxu1 %v10724_v43 }
 0x319   : > { %9587 = vmatprep.subr.bf16.mxu0 %v10725_v44  ;;  %3317 = vmatmul.mubr.bf16.gmra.mxu1 %v11563_v55 }
 0x31a   : > { %3381 = vmatmul.mubr.bf16.gmra.mxu0 %v11565_v61  ;;  %3324 = vmatprep.mubr.bf16.mxu1 %v11570_v6 }
 0x31b   : > { %3388 = vmatprep.mubr.bf16.mxu0 %v11572_v7  ;;  %9548 = vmatpush3.bf16.msra.mxu1 %v10726_v45  ;;  %v10750_v45 = vld [vmem:[#allocation10 + $0x728] sm:$0xff]  }
 0x31c   : > { %9588 = vmatpush3.bf16.msra.mxu0 %v10727_v46  ;;  %9549 = vmatprep.subr.bf16.mxu1 %v10728_v47  ;;  %v10751_v46 = vld [vmem:[#allocation10 + $0x7a8] sm:$0xff]  }
 0x31d   : > { %9589 = vmatprep.subr.bf16.mxu0 %v10729_v48 }
 0x31f   : > { %9550 = vmatpush3.bf16.msra.mxu1 %v10730_v49 }
 0x320   : > { %9590 = vmatpush3.bf16.msra.mxu0 %v10731_v50  ;;  %9551 = vmatprep.subr.bf16.mxu1 %v10732_v51  ;;  %v10752_v50 = vld [vmem:[#allocation10 + $0x760] sm:$0xff]  }
 0x321   : > { %9591 = vmatprep.subr.bf16.mxu0 %v10733_v54  ;;  %3325 = vmatmul.mubr.bf16.gmra.mxu1 %v11577_v20  ;;  %v10753_v51 = vld [vmem:[#allocation10 + $0x7e0] sm:$0xff]  }
 0x322   : > { %3389 = vmatmul.mubr.bf16.gmra.mxu0 %v11579_v25  ;;  %3685 = vmatprep.mubr.bf16.mxu1 %v11535_v36 }
 0x323   : > { %3749 = vmatprep.mubr.bf16.mxu0 %v11537_v37  ;;  %9552 = vmatpush3.bf16.msra.mxu1 %v10734_v57 }
 0x324   : > { %9592 = vmatpush3.bf16.msra.mxu0 %v10735_v58  ;;  %9553 = vmatprep.subr.bf16.mxu1 %v10736_v59 }
 0x325   : > { %9593 = vmatprep.subr.bf16.mxu0 %v10737_v60  ;;  %v9075_v1 = vpop.f32.mrf.mxu1  ;;  %v9115_v2 = vpop.f32.mrf.mxu0  ;;  %v10754_v60 = vld [vmem:[#allocation10 + $0x720] sm:$0xff]  }
 0x327   : > { %v9076_v4 = vpop.f32.mrf.mxu1  ;;  %v9116_v5 = vpop.f32.mrf.mxu0  ;;  %9554 = vmatpush3.bf16.msra.mxu1 %v10738_v62  ;;  %v10755_v62 = vld [vmem:[#allocation10 + $0x7a0] sm:$0xff]  }
 0x328   : > { %9594 = vmatpush3.bf16.msra.mxu0 %v10739_v0  ;;  %v9077_v10 = vadd.f32 %v9076_v4, %v9075_v1  ;;  %v9117_v11 = vadd.f32 %v9116_v5, %v9115_v2  ;;  %9619 = vmatprep.subr.bf16.mxu1 %v10740_v63  ;;  %v10756_v63 = vld [vmem:[#allocation10 + $0x758] sm:$0xff]  }
 0x329   : > { %9659 = vmatprep.subr.bf16.mxu0 %v10741_v3  ;;  %v9078_v16 = vpop.f32.mrf.mxu1  ;;  %v9118_v17 = vpop.f32.mrf.mxu0  ;;  %v10757_v3 = vld [vmem:[#allocation10 + $0x7d8] sm:$0xff]  }
 0x32a   : > { %v11665_v18 = vadd.f32 %v9117_v11, %v9077_v10  ;;  %3686 = vmatmul.mubr.bf16.vlgmr.msra.gmra.mxu1 %v11539_v40 }
 0x32b   : > { %3750 = vmatmul.mubr.bf16.vlgmr.msra.gmra.mxu0 %v11541_v41  ;;  %v9079_v22 = vpop.f32.mrf.mxu1  ;;  %v9119_v26 = vpop.f32.mrf.mxu0  ;;  %3693 = vmatprep.mubr.bf16.mxu1 %v11547_v8 }
 0x32c   : > { %14252 = vst [vmem:[#allocation23_spill] sm:$0xff] %v11665_v18  ;;  %3757 = vmatprep.mubr.bf16.mxu0 %v11549_v9  ;;  %v9080_v27 = vadd.f32 %v9079_v22, %v9078_v16  ;;  %v9120_v28 = vadd.f32 %v9119_v26, %v9118_v17  ;;  %9620 = vmatpush3.bf16.msra.mxu1 %v10742_v14  ;;  %v10758_v14 = vld [vmem:[#allocation10 + $0x718] sm:$0xff]   ;;  %v10761_v22 = vld [vmem:[#allocation10 + $0x7d0] sm:$0xff]  }
 0x32d   : > { %9660 = vmatpush3.bf16.msra.mxu0 %v10743_v15  ;;  %v9081_v31 = vpop.f32.mrf.mxu1  ;;  %v9121_v32 = vpop.f32.mrf.mxu0  ;;  %9621 = vmatprep.subr.bf16.mxu1 %v10744_v19  ;;  %v10759_v15 = vld [vmem:[#allocation10 + $0x798] sm:$0xff]  }
 0x32e   : > { %9661 = vmatprep.subr.bf16.mxu0 %v10745_v21  ;;  %v11671_v33 = vadd.f32 %v9120_v28, %v9080_v27  ;;  %v10760_v21 = vld [vmem:[#allocation10 + $0x750] sm:$0xff]  }
 0x32f   : > { %v9082_v38 = vpop.f32.mrf.mxu1  ;;  %v9122_v39 = vpop.f32.mrf.mxu0 }
 0x330   : > { %14253 = vst [vmem:[#allocation24_spill] sm:$0xff] %v11671_v33  ;;  %v9083_v43 = vadd.f32 %v9082_v38, %v9081_v31  ;;  %v9123_v44 = vadd.f32 %v9122_v39, %v9121_v32  ;;  %9622 = vmatpush3.bf16.msra.mxu1 %v10746_v29  ;;  %v10763_v31 = vld [vmem:[#allocation10 + $0x790] sm:$0xff]   ;;  %v10764_v38 = vld [vmem:[#allocation10 + $0x748] sm:$0xff]  }
 0x331   : > { %9662 = vmatpush3.bf16.msra.mxu0 %v10747_v30  ;;  %v9084_v47 = vpop.f32.mrf.mxu1  ;;  %v9124_v48 = vpop.f32.mrf.mxu0  ;;  %9623 = vmatprep.subr.bf16.mxu1 %v10748_v34  ;;  %v10762_v30 = vld [vmem:[#allocation10 + $0x710] sm:$0xff]   ;;  %v10765_v39 = vld [vmem:[#allocation10 + $0x7c8] sm:$0xff]  }
 0x332   : > { %9663 = vmatprep.subr.bf16.mxu0 %v10749_v35  ;;  %v11675_v49 = vadd.f32 %v9123_v44, %v9083_v43  ;;  %3694 = vmatmul.mubr.bf16.gmra.mxu1 %v11551_v12 }
 0x333   : > { %3758 = vmatmul.mubr.bf16.gmra.mxu0 %v11553_v13  ;;  %v9085_v54 = vpop.f32.mrf.mxu1  ;;  %v9125_v57 = vpop.f32.mrf.mxu0  ;;  %3701 = vmatprep.mubr.bf16.mxu1 %v11559_v52 }
 0x334   : > { %14254 = vst [vmem:[#allocation25_spill] sm:$0xff] %v11675_v49  ;;  %3765 = vmatprep.mubr.bf16.mxu0 %v11561_v53  ;;  %v9086_v58 = vadd.f32 %v9085_v54, %v9084_v47  ;;  %v9126_v59 = vadd.f32 %v9125_v57, %v9124_v48  ;;  %9624 = vmatpush3.bf16.msra.mxu1 %v10750_v45  ;;  %v10766_v47 = vld [vmem:[#allocation10 + $0x708] sm:$0xff]   ;;  %v10768_v54 = vld [vmem:[#allocation10 + $0x740] sm:$0xff]  }
 0x335   : > { %9664 = vmatpush3.bf16.msra.mxu0 %v10751_v46  ;;  %v9087_v0 = vpop.f32.mrf.mxu1  ;;  %9625 = vmatprep.subr.bf16.mxu1 %v10752_v50  ;;  %v9127_v2 = vpop.f32.mrf.mxu0  ;;  %v10767_v48 = vld [vmem:[#allocation10 + $0x788] sm:$0xff]   ;;  %v10769_v57 = vld [vmem:[#allocation10 + $0x7c0] sm:$0xff]  }
 0x336   : > { %9665 = vmatprep.subr.bf16.mxu0 %v10753_v51  ;;  %v11681_v1 = vadd.f32 %v9126_v59, %v9086_v58 }
 0x337   : > { %v9088_v4 = vpop.f32.mrf.mxu1  ;;  %v9128_v11 = vpop.f32.mrf.mxu0 }
 0x338   : > { %14255 = vst [vmem:[#allocation26_spill] sm:$0xff] %v11681_v1  ;;  %v9089_v10 = vadd.f32 %v9088_v4, %v9087_v0  ;;  %9626 = vmatpush3.bf16.msra.mxu1 %v10754_v60  ;;  %v9129_v16 = vadd.f32 %v9128_v11, %v9127_v2  ;;  %v10770_v60 = vld [vmem:[#allocation10 + $0x700] sm:$0xff]   ;;  %v10774_v11 = vld [vmem:[#allocation10 + $0x838] sm:$0xff]  }
 0x339   : > { %9666 = vmatpush3.bf16.msra.mxu0 %v10755_v62  ;;  %v9090_v17 = vpop.f32.mrf.mxu1  ;;  %9627 = vmatprep.subr.bf16.mxu1 %v10756_v63  ;;  %v9130_v19 = vpop.f32.mrf.mxu0  ;;  %v10771_v62 = vld [vmem:[#allocation10 + $0x780] sm:$0xff]   ;;  %v10772_v63 = vld [vmem:[#allocation10 + $0x878] sm:$0xff]  }
 0x33a   : > { %9667 = vmatprep.subr.bf16.mxu0 %v10757_v3  ;;  %3702 = vmatmul.mubr.bf16.gmra.mxu1 %v11563_v55  ;;  %v11687_v26 = vadd.f32 %v9129_v16, %v9089_v10  ;;  %v10773_v3 = vld [vmem:[#allocation10 + $0x8f8] sm:$0xff]  }
 0x33b   : > { %3766 = vmatmul.mubr.bf16.gmra.mxu0 %v11565_v61  ;;  %v9091_v27 = vpop.f32.mrf.mxu1  ;;  %3709 = vmatprep.mubr.bf16.mxu1 %v11570_v6  ;;  %v9131_v29 = vpop.f32.mrf.mxu0 }
 0x33c   : > { %14256 = vst [vmem:[#allocation27_spill] sm:$0xff] %v11687_v26  ;;  %3773 = vmatprep.mubr.bf16.mxu0 %v11572_v7  ;;  %v9092_v28 = vadd.f32 %v9091_v27, %v9090_v17  ;;  %9628 = vmatpush3.bf16.msra.mxu1 %v10758_v14  ;;  %v9132_v32 = vadd.f32 %v9131_v29, %v9130_v19  ;;  %v10775_v14 = vld [vmem:[#allocation10 + $0x8b8] sm:$0xff]   ;;  %v10776_v17 = vld [vmem:[#allocation10 + $0x870] sm:$0xff]  }
 0x33d   : > { %9668 = vmatpush3.bf16.msra.mxu0 %v10759_v15  ;;  %v11691_v34 = vpop.f32.mrf.mxu1  ;;  %9629 = vmatprep.subr.bf16.mxu1 %v10760_v21  ;;  %v11693_v35 = vpop.f32.mrf.mxu0  ;;  %v10777_v19 = vld [vmem:[#allocation10 + $0x8f0] sm:$0xff]  }
 0x33e   : > { %9669 = vmatprep.subr.bf16.mxu0 %v10761_v22  ;;  %v11695_v43 = vadd.f32 %v9132_v32, %v9092_v28  ;;  %v10778_v27 = vld [vmem:[#allocation10 + $0x830] sm:$0xff]   ;;  %v10781_v32 = vld [vmem:[#allocation10 + $0x8e8] sm:$0xff]  }
 0x33f   : > { %v11697_v44 = vpop.f32.mrf.mxu1  ;;  %v11699_v45 = vpop.f32.mrf.mxu0  ;;  %v10779_v28 = vld [vmem:[#allocation10 + $0x8b0] sm:$0xff]  }
 0x340   : > { %14257 = vst [vmem:[#allocation28_spill] sm:$0xff] %v11695_v43  ;;  %9630 = vmatpush3.bf16.msra.mxu1 %v10762_v30 }
 0x341   : > { %9670 = vmatpush3.bf16.msra.mxu0 %v10763_v31  ;;  %v9096_v50 = vpop.f32.mrf.mxu1  ;;  %9631 = vmatprep.subr.bf16.mxu1 %v10764_v38  ;;  %v9136_v51 = vpop.f32.mrf.mxu0  ;;  %v10780_v31 = vld [vmem:[#allocation10 + $0x868] sm:$0xff]  }
 0x342   : > { %9671 = vmatprep.subr.bf16.mxu0 %v10765_v39  ;;  %3710 = vmatmul.mubr.bf16.gmra.mxu1 %v11577_v20 }
 0x343   : > { %3774 = vmatmul.mubr.bf16.gmra.mxu0 %v11579_v25  ;;  %v9097_v58 = vpop.f32.mrf.mxu1  ;;  %4070 = vmatprep.mubr.bf16.mxu1 %v11535_v36  ;;  %v9137_v59 = vpop.f32.mrf.mxu0 }
 0x344   : > { %4134 = vmatprep.mubr.bf16.mxu0 %v11537_v37  ;;  %9632 = vmatpush3.bf16.msra.mxu1 %v10766_v47  ;;  %v10782_v47 = vld [vmem:[#allocation10 + $0x828] sm:$0xff]  }
 0x345   : > { %9672 = vmatpush3.bf16.msra.mxu0 %v10767_v48  ;;  %9633 = vmatprep.subr.bf16.mxu1 %v10768_v54  ;;  %v11707_v0 = vpop.f32.mrf.mxu1  ;;  %v10783_v48 = vld [vmem:[#allocation10 + $0x8a8] sm:$0xff]   ;;  %v10784_v54 = vld [vmem:[#allocation10 + $0x860] sm:$0xff]  }
 0x346   : > { %9673 = vmatprep.subr.bf16.mxu0 %v10769_v57  ;;  %v11709_v2 = vpop.f32.mrf.mxu0  ;;  %v10785_v57 = vld [vmem:[#allocation10 + $0x8e0] sm:$0xff]  }
 0x347   : > { %v11711_v4 = vpop.f32.mrf.mxu1 }
 0x348   : > { %v11713_v10 = vpop.f32.mrf.mxu0  ;;  %9634 = vmatpush3.bf16.msra.mxu1 %v10770_v60  ;;  %v10786_v60 = vld [vmem:[#allocation10 + $0x820] sm:$0xff]  }
 0x349   : > { %9674 = vmatpush3.bf16.msra.mxu0 %v10771_v62  ;;  %9699 = vmatprep.subr.bf16.mxu1 %v10772_v63  ;;  %v11715_v15 = vpop.f32.mrf.mxu1  ;;  %v10787_v62 = vld [vmem:[#allocation10 + $0x8a0] sm:$0xff]  }
 0x34a   : > { %9739 = vmatprep.subr.bf16.mxu0 %v10773_v3  ;;  %v11717_v16 = vpop.f32.mrf.mxu0 }
 0x34b   : > { %4071 = vmatmul.mubr.bf16.vlgmr.msra.gmra.mxu1 %v11539_v40  ;;  %v11721_v21 = vpop.f32.mrf.mxu1 }
 0x34c   : > { %4135 = vmatmul.mubr.bf16.vlgmr.msra.gmra.mxu0 %v11541_v41  ;;  %v11723_v22 = vpop.f32.mrf.mxu0  ;;  %4078 = vmatprep.mubr.bf16.mxu1 %v11547_v8 }
 0x34d   : > { %4142 = vmatprep.mubr.bf16.mxu0 %v11549_v9  ;;  %9700 = vmatpush3.bf16.msra.mxu1 %v10774_v11  ;;  %v11727_v29 = vpop.f32.mrf.mxu1  ;;  %v10788_v11 = vld [vmem:[#allocation10 + $0x858] sm:$0xff]  }
 0x34e   : > { %9740 = vmatpush3.bf16.msra.mxu0 %v10775_v14  ;;  %v11729_v30 = vpop.f32.mrf.mxu0  ;;  %9701 = vmatprep.subr.bf16.mxu1 %v10776_v17  ;;  %v10789_v14 = vld [vmem:[#allocation10 + $0x8d8] sm:$0xff]  }
 0x34f   : > { %9741 = vmatprep.subr.bf16.mxu0 %v10777_v19  ;;  %v11731_v38 = vpop.f32.mrf.mxu1 }
 0x350   : > { %v11733_v39 = vpop.f32.mrf.mxu0 }
 0x351   : > { %9702 = vmatpush3.bf16.msra.mxu1 %v10778_v27  ;;  %v11735_v50 = vpop.f32.mrf.mxu1  ;;  %v10790_v27 = vld [vmem:[#allocation10 + $0x818] sm:$0xff]  }
 0x352   : > { %9742 = vmatpush3.bf16.msra.mxu0 %v10779_v28  ;;  %v11737_v51 = vpop.f32.mrf.mxu0  ;;  %9703 = vmatprep.subr.bf16.mxu1 %v10780_v31  ;;  %v10791_v28 = vld [vmem:[#allocation10 + $0x898] sm:$0xff]  }
 0x353   : > { %9743 = vmatprep.subr.bf16.mxu0 %v10781_v32  ;;  %4079 = vmatmul.mubr.bf16.gmra.mxu1 %v11551_v12  ;;  %v11741_v58 = vpop.f32.mrf.mxu1 }
 0x354   : > { %4143 = vmatmul.mubr.bf16.gmra.mxu0 %v11553_v13  ;;  %v11743_v59 = vpop.f32.mrf.mxu0  ;;  %4086 = vmatprep.mubr.bf16.mxu1 %v11559_v52 }
 0x355   : > { %4150 = vmatprep.mubr.bf16.mxu0 %v11561_v53  ;;  %9704 = vmatpush3.bf16.msra.mxu1 %v10782_v47  ;;  %v11747_v63 = vpop.f32.mrf.mxu1  ;;  %v10792_v47 = vld [vmem:[#allocation10 + $0x850] sm:$0xff]  }
 0x356   : > { %9744 = vmatpush3.bf16.msra.mxu0 %v10783_v48  ;;  %v11749_v3 = vpop.f32.mrf.mxu0  ;;  %9705 = vmatprep.subr.bf16.mxu1 %v10784_v54  ;;  %v10793_v48 = vld [vmem:[#allocation10 + $0x8d0] sm:$0xff]  }
 0x357   : > { %9745 = vmatprep.subr.bf16.mxu0 %v10785_v57  ;;  %v11751_v17 = vpop.f32.mrf.mxu1 }
 0x358   : > { %v11753_v19 = vpop.f32.mrf.mxu0 }
 0x359   : > { %9706 = vmatpush3.bf16.msra.mxu1 %v10786_v60  ;;  %v11755_v31 = vpop.f32.mrf.mxu1  ;;  %v10794_v60 = vld [vmem:[#allocation10 + $0x810] sm:$0xff]  }
 0x35a   : > { %9746 = vmatpush3.bf16.msra.mxu0 %v10787_v62  ;;  %v11757_v32 = vpop.f32.mrf.mxu0  ;;  %9707 = vmatprep.subr.bf16.mxu1 %v10788_v11  ;;  %v10795_v62 = vld [vmem:[#allocation10 + $0x890] sm:$0xff]   ;;  %v10796_v11 = vld [vmem:[#allocation10 + $0x848] sm:$0xff]  }
 0x35b   : > { %9747 = vmatprep.subr.bf16.mxu0 %v10789_v14  ;;  %4087 = vmatmul.mubr.bf16.gmra.mxu1 %v11563_v55  ;;  %v9171_v54 = vpop.f32.mrf.mxu1  ;;  %v10797_v14 = vld [vmem:[#allocation10 + $0x8c8] sm:$0xff]  }
 0x35c   : > { %4151 = vmatmul.mubr.bf16.gmra.mxu0 %v11565_v61  ;;  %v9211_v57 = vpop.f32.mrf.mxu0  ;;  %4094 = vmatprep.mubr.bf16.mxu1 %v11570_v6  ;;  %v9172_v43 = vadd.f32 %v9171_v54, %v11755_v31  ;;  %v9166_v31 = vadd.f32 %v11741_v58, %v11735_v50 }
 0x35d   : > { %4158 = vmatprep.mubr.bf16.mxu0 %v11572_v7  ;;  %9708 = vmatpush3.bf16.msra.mxu1 %v10790_v27  ;;  %v9173_v42 = vpop.f32.mrf.mxu1  ;;  %v10800_v27 = vld [vmem:[#allocation10 + $0x840] sm:$0xff]  }
 0x35e   : > { %9748 = vmatpush3.bf16.msra.mxu0 %v10791_v28  ;;  %v9213_v5 = vpop.f32.mrf.mxu0  ;;  %9709 = vmatprep.subr.bf16.mxu1 %v10792_v47  ;;  %v10801_v28 = vld [vmem:[#allocation10 + $0x8c0] sm:$0xff]  }
 0x35f   : > { %9749 = vmatprep.subr.bf16.mxu0 %v10793_v48  ;;  %v9174_v46 = vpop.f32.mrf.mxu1 }
 0x360   : > { %v9214_v56 = vpop.f32.mrf.mxu0  ;;  %v9175_v26 = vadd.f32 %v9174_v46, %v9173_v42 }
 0x361   : > { %9710 = vmatpush3.bf16.msra.mxu1 %v10794_v60  ;;  %v9176_v18 = vpop.f32.mrf.mxu1  ;;  %v10802_v60 = vld [vmem:[#allocation10 + $0x800] sm:$0xff]  }
 0x362   : > { %9750 = vmatpush3.bf16.msra.mxu0 %v10795_v62  ;;  %v9216_v33 = vpop.f32.mrf.mxu0  ;;  %9711 = vmatprep.subr.bf16.mxu1 %v10796_v11  ;;  %v10803_v62 = vld [vmem:[#allocation10 + $0x880] sm:$0xff]  }
 0x363   : > { %9751 = vmatprep.subr.bf16.mxu0 %v10797_v14  ;;  %4095 = vmatmul.mubr.bf16.gmra.mxu1 %v11577_v20  ;;  %v9177_v47 = vpop.f32.mrf.mxu1 }
 0x364   : > { %4159 = vmatmul.mubr.bf16.gmra.mxu0 %v11579_v25  ;;  %v9217_v48 = vpop.f32.mrf.mxu0  ;;  %4455 = vmatprep.mubr.bf16.mxu1 %v11535_v36  ;;  %v14258_v47 = vmov 0  }
 0x365   : > { %4519 = vmatprep.mubr.bf16.mxu0 %v11537_v37  ;;  %9712 = vmatpush3.bf16.msra.mxu1 %v10798_v23  ;;  %v9215_v37 = vadd.f32 %v9214_v56, %v9213_v5  ;;  %v9209_v56 = vadd.f32 %v11753_v19, %v11749_v3 }
 0x366   : > { %9752 = vmatpush3.bf16.msra.mxu0 %v10799_v24  ;;  %9713 = vmatprep.subr.bf16.mxu1 %v10800_v27  ;;  %v9235_v18 = vpop.f32.mrf.mxu1 }
 0x367   : > { %9753 = vmatprep.subr.bf16.mxu0 %v10801_v28  ;;  %v9275_v33 = vpop.f32.mrf.mxu0  ;;  %v1851_v5 = vadd.f32 %v9215_v37, %v9175_v26  ;;  %v9203_v26 = vadd.f32 %v11733_v39, %v11729_v30 }
 0x368   : > { %v9236_v11 = vpop.f32.mrf.mxu1 }
 0x369   : > { %v9276_v14 = vpop.f32.mrf.mxu0  ;;  %9714 = vmatpush3.bf16.msra.mxu1 %v10802_v60  ;;  %v9237_v48 = vadd.f32 %v9236_v11, %v9235_v18  ;;  %v9212_v18 = vadd.f32 %v9211_v57, %v11757_v32  ;;  %v9206_v32 = vadd.f32 %v11743_v59, %v11737_v51 }
 0x36a   : > { %9754 = vmatpush3.bf16.msra.mxu0 %v10803_v62  ;;  %v9238_v49 = vpop.f32.mrf.mxu1  ;;  %v9277_v36 = vadd.f32 %v9276_v14, %v9275_v33 }
 0x36b   : > { %v9278_v1 = vpop.f32.mrf.mxu0  ;;  %5291 = vmatprep.subr.bf16.mxu0 %v14258_v47  ;;  %v1846_v54 = vadd.f32 %v9212_v18, %v9172_v43 }
 0x36c   : > { %4456 = vmatmul.mubr.bf16.vlgmr.msra.gmra.mxu1 %v11539_v40  ;;  %v9239_v23 = vpop.f32.mrf.mxu1  ;;  %v2212_v42 = vadd.f32 %v9277_v36, %v9237_v48  ;;  %v9169_v40 = vadd.f32 %v11751_v17, %v11747_v63  ;;  %v9163_v63 = vadd.f32 %v11731_v38, %v11727_v29  ;;  %v9160_v29 = vadd.f32 %v11721_v21, %v11715_v15 }
 0x36d   : > { %4520 = vmatmul.mubr.bf16.vlgmr.msra.gmra.mxu0 %v11541_v41  ;;  %v9279_v24 = vpop.f32.mrf.mxu0  ;;  %4463 = vmatprep.mubr.bf16.mxu1 %v11547_v8  ;;  %v9240_v27 = vadd.f32 %v9239_v23, %v9238_v49  ;;  %v4557_v58 = vpack.c.bf16 %v1851_v5, %v1846_v54  ;;  %v9095_v23 = vadd.f32 %v11697_v44, %v11691_v34 }
 0x36e   : > { %4527 = vmatprep.mubr.bf16.mxu0 %v11549_v9  ;;  %v9280_v28 = vadd.f32 %v9279_v24, %v9278_v1  ;;  %v9241_v60 = vpop.f32.mrf.mxu1  ;;  %v1843_v3 = vadd.f32 %v9209_v56, %v9169_v40  ;;  %v1835_v38 = vadd.f32 %v9203_v26, %v9163_v63 }
 0x36f   : > { %v9281_v62 = vpop.f32.mrf.mxu0 }
 0x370   : > { %v2215_v46 = vadd.f32 %v9280_v28, %v9240_v27  ;;  %v9242_v41 = vpop.f32.mrf.mxu1 }
 0x371   : > { %v9282_v8 = vpop.f32.mrf.mxu0  ;;  %v9243_v49 = vadd.f32 %v9242_v41, %v9241_v60  ;;  %v4655_v41 = vld [vmem:[#allocation11] sm:$0x3] }
 0x372   : > { %v4558_v9 = vpack.c.bf16 %v2215_v46, %v2212_v42  ;;  %v9283_v1 = vadd.f32 %v9282_v8, %v9281_v62  ;;  %v9244_v33 = vpop.f32.mrf.mxu1  ;;  %v10806_v42 = vld [vmem:[#allocation8 + $0x4] ss:$16 sps:$4 sm:$0xff]   ;;  %10326 = vmatprep.subr.msk.bf16.mxu1 %vm860_vm2, %v4655_v41 }
 0x373   : > { %v9284_v11 = vpop.f32.mrf.mxu0 }
 0x374   : > { %v11782_v57 = vadd.f32 %v9283_v1, %v9243_v49  ;;  %5292 = vmatpush1.bf16.msra.mxu0 %v4558_v9  ;;  %4464 = vmatmul.mubr.bf16.gmra.mxu1 %v11551_v12  ;;  %v9245_v17 = vpop.f32.mrf.mxu1  ;;  %v9200_v12 = vadd.f32 %v11723_v22, %v11717_v16  ;;  %v4711_v9 = vsel %vm860_vm2, %v4655_v41, 0  ;;  %v11830_v49 = vld [vmem:[%s11463_s2] sm:$0xff]  }
 0x375   : > { %4528 = vmatmul.mubr.bf16.gmra.mxu0 %v11553_v13  ;;  %v9285_v50 = vpop.f32.mrf.mxu0  ;;  %4471 = vmatprep.mubr.bf16.mxu1 %v11559_v52  ;;  %v9246_v43 = vadd.f32 %v9245_v17, %v9244_v33  ;;  %v1838_v13 = vadd.f32 %v9206_v32, %v9166_v31  ;;  %v9157_v52 = vadd.f32 %v11711_v4, %v11707_v0  ;;  %v14263_v17 = vld [vmem:[#allocation26_spill] sm:$0xff] }
 0x376   : > { %4535 = vmatprep.mubr.bf16.mxu0 %v11561_v53  ;;  %v9286_v51 = vadd.f32 %v9285_v50, %v9284_v11  ;;  %v9247_v59 = vpop.f32.mrf.mxu1  ;;  %5293 = vmatprep.subr.bf16.mxu0 %v14258_v47  ;;  %v9197_v53 = vadd.f32 %v11713_v10, %v11709_v2  ;;  %v9135_v0 = vadd.f32 %v11699_v45, %v11693_v35  ;;  %v14261_v11 = vld [vmem:[#allocation27_spill] sm:$0xff]  ;;  %v14264_v50 = vld [vmem:[#allocation25_spill] sm:$0xff] }
 0x377   : > { %v9287_v19 = vpop.f32.mrf.mxu0  ;;  %v4556_v48 = vpack.c.bf16 %v1843_v3, %v1838_v13  ;;  %v1830_v2 = vadd.f32 %v9200_v12, %v9160_v29  ;;  %14259 = vst [vmem:[#allocation29_spill] sm:$0xff] %v11830_v49  ;;  %9971 = vmatpush3.bf16.msra.mxu1 %v4711_v9  ;;  %v11859_v29 = vld [vmem:[%s11463_s2 + $0x10] sm:$0xff]  }
 0x378   : > { %v11797_v30 = vadd.f32 %v9286_v51, %v9246_v43  ;;  %5294 = vmatpush1.bf16.msra.mxu0 %v4557_v58  ;;  %v9248_v39 = vpop.f32.mrf.mxu1  ;;  %v1827_v10 = vadd.f32 %v9197_v53, %v9157_v52  ;;  %v1466_v45 = vadd.f32 %v9135_v0, %v9095_v23  ;;  %5468 = vmatprep.subr.bf16.mxu1 %v14258_v47  ;;  %v11850_v51 = vld [vmem:[%s11463_s2 + $0x8] sm:$0xff]   ;;  %v11891_v0 = vld [vmem:[%s11463_s2 + $0x20] sm:$0xff]  }
 0x379   : > { %v9288_v14 = vpop.f32.mrf.mxu0  ;;  %5295 = vmatprep.subr.bf16.mxu0 %v14258_v47  ;;  %v9249_v16 = vadd.f32 %v9248_v39, %v9247_v59  ;;  %v4555_v27 = vpack.c.bf16 %v1835_v38, %v1830_v2  ;;  %v14265_v58 = vpack.c.bf16 %v14263_v17, %v14264_v50  ;;  %14267 = vst [vmem:[#allocation27_spill] sm:$0xff] %v11859_v29  ;;  %v14268_v53 = vld [vmem:[#allocation24_spill] sm:$0xff]  ;;  %v14269_v38 = vld [vmem:[#allocation23_spill] sm:$0xff]  ;;  %14272 = vst [vmem:[#allocation25_spill] sm:$0xff] %v11891_v0 }
 0x37a   : > { %v9289_v21 = vadd.f32 %v9288_v14, %v9287_v19  ;;  %v9250_v22 = vpop.f32.mrf.mxu1  ;;  %v14270_v39 = vpack.c.bf16 %v14268_v53, %v14269_v38 }
 0x37b   : > { %v9290_v36 = vpop.f32.mrf.mxu0 }
 0x37c   : > { %v11810_v4 = vadd.f32 %v9289_v21, %v9249_v16  ;;  %5296 = vmatpush1.bf16.msra.mxu0 %v4556_v48  ;;  %4472 = vmatmul.mubr.bf16.gmra.mxu1 %v11563_v55  ;;  %v9251_v24 = vpop.f32.mrf.mxu1 }
 0x37d   : > { %4536 = vmatmul.mubr.bf16.gmra.mxu0 %v11565_v61  ;;  %v9291_v37 = vpop.f32.mrf.mxu0  ;;  %4479 = vmatprep.mubr.bf16.mxu1 %v11570_v6  ;;  %v9252_v34 = vadd.f32 %v9251_v24, %v9250_v22  ;;  %v4554_v61 = vpack.c.bf16 %v1827_v10, %v1466_v45  ;;  %v11882_v22 = vld [vmem:[%s11463_s2 + $0x18] sm:$0xff]   ;;  %v11915_v45 = vld [vmem:[%s11463_s2 + $0x30] sm:$0xff]  }
 0x37e   : > { %4543 = vmatprep.mubr.bf16.mxu0 %v11572_v7  ;;  %v9292_v44 = vadd.f32 %v9291_v37, %v9290_v36  ;;  %v9253_v28 = vpop.f32.mrf.mxu1  ;;  %5297 = vmatprep.subr.bf16.mxu0 %v14258_v47  ;;  %14271 = vst [vmem:[#allocation26_spill] sm:$0xff] %v11882_v22  ;;  %14274 = vst [vmem:[#allocation23_spill] sm:$0xff] %v11915_v45 }
 0x37f   : > { %v9293_v35 = vpop.f32.mrf.mxu0 }
 0x380   : > { %v11817_v60 = vadd.f32 %v9292_v44, %v9252_v34  ;;  %5298 = vmatpush1.bf16.msra.mxu0 %v4555_v27  ;;  %v9254_v55 = vpop.f32.mrf.mxu1  ;;  %v11908_v44 = vld [vmem:[%s11463_s2 + $0x28] sm:$0xff]  }
 0x381   : > { %v9294_v62 = vpop.f32.mrf.mxu0  ;;  %5299 = vmatprep.subr.bf16.mxu0 %v14258_v47  ;;  %v9255_v18 = vadd.f32 %v9254_v55, %v9253_v28  ;;  %14273 = vst [vmem:[#allocation24_spill] sm:$0xff] %v11908_v44 }
 0x382   : > { %v9295_v7 = vadd.f32 %v9294_v62, %v9293_v35  ;;  %v9256_v46 = vpop.f32.mrf.mxu1 }
 0x383   : > { %v9296_v40 = vpop.f32.mrf.mxu0  ;;  %v11920_v46 = vld [vmem:[%s11463_s2 + $0x38] sm:$0xff]  }
 0x384   : > { %v11822_v56 = vadd.f32 %v9295_v7, %v9255_v18  ;;  %5300 = vmatpush1.bf16.msra.mxu0 %v4554_v61  ;;  %4480 = vmatmul.mubr.bf16.gmra.mxu1 %v11577_v20  ;;  %v9257_v8 = vpop.f32.mrf.mxu1  ;;  %v14260_v20 = vld [vmem:[#allocation28_spill] sm:$0xff]  ;;  %14275 = vst [vmem:[#allocation30_spill] sm:$0xff] %v11920_v46 }
 0x385   : > { %4544 = vmatmul.mubr.bf16.gmra.mxu0 %v11579_v25  ;;  %v9297_v5 = vpop.f32.mrf.mxu0  ;;  %5301 = vmatprep.subr.bf16.mxu0 %v14258_v47  ;;  %v14262_v25 = vpack.c.bf16 %v14260_v20, %v14261_v11  ;;  %14266 = vst [vmem:[#allocation28_spill] sm:$0xff] %v11850_v51  ;;  %v11925_v8 = vld [vmem:[%s11463_s2 + $0x40] sm:$0xff]  }
 0x386   : > { %5323 = vmatprep.mubr.bf16.mxu0 %v10806_v42  ;;  %9972 = vmatprep.mubr.msk.bf16.mxu1 %vm847_vm3, %v11830_v49  ;;  %14276 = vst [vmem:[#allocation31_spill] sm:$0xff] %v11925_v8 }
 0x387   : > { %v9315_v1 = vpop.f32.mrf.mxu1 }
 0x388   : > { %v9355_v33 = vpop.f32.mrf.mxu0  ;;  %5302 = vmatpush1.bf16.msra.mxu0 %v14262_v25  ;;  %v11930_v25 = vld [vmem:[%s11463_s2 + $0x48] sm:$0xff]  }
 0x389   : > { %5303 = vmatprep.subr.bf16.mxu0 %v14258_v47  ;;  %v9316_v31 = vpop.f32.mrf.mxu1  ;;  %14277 = vst [vmem:[#allocation32_spill] sm:$0xff] %v11930_v25 }
 0x38a   : > { %v9356_v32 = vpop.f32.mrf.mxu0  ;;  %v9317_v54 = vadd.f32 %v9316_v31, %v9315_v1  ;;  %v11935_v31 = vld [vmem:[%s11463_s2 + $0x50] sm:$0xff]  }
 0x38b   : > { %v9357_v63 = vadd.f32 %v9356_v32, %v9355_v33  ;;  %v11839_v26 = vpop.f32.mrf.mxu1  ;;  %14278 = vst [vmem:[#allocation33_spill] sm:$0xff] %v11935_v31 }
 0x38c   : > { %v11841_v3 = vpop.f32.mrf.mxu0  ;;  %5304 = vmatpush1.bf16.msra.mxu0 %v14265_v58  ;;  %9973 = vmatmul.mubr.msk.bf16.vlgmr.msra.gmra.mxu1 %vm847_vm3, %v11850_v51 }
 0x38d   : > { %v11846_v43 = vadd.f32 %v9357_v63, %v9317_v54  ;;  %5305 = vmatprep.subr.bf16.mxu0 %v14258_v47  ;;  %v11854_v59 = vpop.f32.mrf.mxu1  ;;  %9976 = vmatprep.mubr.msk.bf16.mxu1 %vm847_vm3, %v11859_v29 }
 0x38e   : > { %v11856_v19 = vpop.f32.mrf.mxu0 }
 0x38f   : > { %v11865_v13 = vpop.f32.mrf.mxu1 }
 0x390   : > { %v11867_v52 = vpop.f32.mrf.mxu0  ;;  %5306 = vmatpush1.bf16.msra.mxu0 %v14270_v39  ;;  %v11940_v39 = vld [vmem:[%s11463_s2 + $0x58] sm:$0xff]  }
 0x391   : > { %5307 = vmatprep.subr.bf16.mxu0 %v14258_v47  ;;  %v11873_v14 = vpop.f32.mrf.mxu1  ;;  %14279 = vst [vmem:[#allocation34_spill] sm:$0xff] %v11940_v39 }
 0x392   : > { %v11875_v48 = vpop.f32.mrf.mxu0 }
 0x393   : > { %v11877_v16 = vpop.f32.mrf.mxu1 }
 0x394   : > { %v11879_v21 = vpop.f32.mrf.mxu0  ;;  %9977 = vmatmul.mubr.msk.bf16.gmra.mxu1 %vm847_vm3, %v11882_v22 }
 0x395   : > { %v11886_v36 = vpop.f32.mrf.mxu1  ;;  %9980 = vmatprep.mubr.msk.bf16.mxu1 %vm847_vm3, %v11891_v0 }
 0x396   : > { %v11888_v23 = vpop.f32.mrf.mxu0 }
 0x397   : > { %v11895_v2 = vpop.f32.mrf.mxu1 }
 0x398   : > { %v11897_v10 = vpop.f32.mrf.mxu0 }
 0x399   : > { %v11899_v24 = vpop.f32.mrf.mxu1 }
 0x39a   : > { %v11901_v37 = vpop.f32.mrf.mxu0 }
 0x39b   : > { %v11903_v27 = vpop.f32.mrf.mxu1 }
 0x39c   : > { %v11905_v34 = vpop.f32.mrf.mxu0  ;;  %9981 = vmatmul.mubr.msk.bf16.gmra.mxu1 %vm847_vm3, %v11908_v44 }
 0x39d   : > { %v9331_v28 = vpop.f32.mrf.mxu1  ;;  %9984 = vmatprep.mubr.msk.bf16.mxu1 %vm847_vm3, %v11915_v45 }
 0x39e   : > { %v11912_v35 = vpop.f32.mrf.mxu0 }
 0x39f   : > { %v9333_v55 = vpop.f32.mrf.mxu1 }
 0x3a0   : > { %v9373_v62 = vpop.f32.mrf.mxu0 }
 0x3a1   : > { %v9334_v61 = vpop.f32.mrf.mxu1 }
 0x3a2   : > { %v9374_v18 = vpop.f32.mrf.mxu0 }
 0x3a3   : > { %v9336_v7 = vpop.f32.mrf.mxu1 }
 0x3a4   : > { %v9376_v42 = vpop.f32.mrf.mxu0  ;;  %9985 = vmatmul.mubr.msk.bf16.gmra.mxu1 %vm847_vm3, %v11920_v46 }
 0x3a5   : > { %v9337_v40 = vpop.f32.mrf.mxu1  ;;  %9988 = vmatprep.mubr.msk.bf16.mxu1 %vm847_vm3, %v11925_v8 }
 0x3a6   : > { %v9377_v41 = vpop.f32.mrf.mxu0  ;;  %v11945_v40 = vld [vmem:[%s11463_s2 + $0x60] sm:$0xff]  }
 0x3a7   : > { %14280 = vst [vmem:[#allocation35_spill] sm:$0xff] %v11945_v40 }
 0x3a8   : > { %v9395_v5 = vpop.f32.mrf.mxu1 }
 0x3a9   : > { %v9435_v9 = vpop.f32.mrf.mxu0 }
 0x3aa   : > { %v9396_v1 = vpop.f32.mrf.mxu1 }
 0x3ab   : > { %v9436_v33 = vpop.f32.mrf.mxu0  ;;  %v9397_v45 = vadd.f32 %v9396_v1, %v9395_v5 }
 0x3ac   : > { %v9398_v20 = vpop.f32.mrf.mxu1  ;;  %9989 = vmatmul.mubr.msk.bf16.gmra.mxu1 %vm847_vm3, %v11930_v25  ;;  %v9437_v44 = vadd.f32 %v9436_v33, %v9435_v9  ;;  %v9320_v9 = vadd.f32 %v11854_v59, %v11839_v26 }
 0x3ad   : > { %v9438_v11 = vpop.f32.mrf.mxu0  ;;  %9992 = vmatprep.mubr.msk.bf16.mxu1 %vm847_vm3, %v11935_v31 }
 0x3ae   : > { %v9399_v32 = vpop.f32.mrf.mxu1 }
 0x3af   : > { %v9439_v54 = vpop.f32.mrf.mxu0  ;;  %v9400_v6 = vadd.f32 %v9399_v32, %v9398_v20  ;;  %v9332_v20 = vadd.f32 %v9331_v28, %v11903_v27  ;;  %v11951_v32 = vld [vmem:[%s11463_s2 + $0x68] sm:$0xff]  }
 0x3b0   : > { %v9401_v63 = vpop.f32.mrf.mxu1  ;;  %v9440_v12 = vadd.f32 %v9439_v54, %v9438_v11  ;;  %14281 = vst [vmem:[#allocation36_spill] sm:$0xff] %v11951_v32 }
 0x3b1   : > { %v9441_v17 = vpop.f32.mrf.mxu0 }
 0x3b2   : > { %v9402_v50 = vpop.f32.mrf.mxu1  ;;  %v2985_v22 = vadd.f32 %v9440_v12, %v9400_v6  ;;  %v11960_v6 = vld [vmem:[%s11463_s2 + $0x70] sm:$0xff]   ;;  %v9329_v12 = vadd.f32 %v11899_v24, %v11895_v2 }
 0x3b3   : > { %v9442_v58 = vpop.f32.mrf.mxu0  ;;  %v9403_v7 = vadd.f32 %v9402_v50, %v9401_v63  ;;  %v9335_v63 = vadd.f32 %v9334_v61, %v9333_v55  ;;  %v9372_v55 = vadd.f32 %v11912_v35, %v11905_v34  ;;  %14283 = vst [vmem:[#allocation38_spill] sm:$0xff] %v11960_v6 }
 0x3b4   : > { %v9404_v53 = vpop.f32.mrf.mxu1  ;;  %9993 = vmatmul.mubr.msk.bf16.gmra.mxu1 %vm847_vm3, %v11940_v39  ;;  %v9443_v42 = vadd.f32 %v9442_v58, %v9441_v17  ;;  %v9375_v17 = vadd.f32 %v9374_v18, %v9373_v62  ;;  %v2982_v62 = vadd.f32 %v9437_v44, %v9397_v45  ;;  %v9326_v18 = vadd.f32 %v11886_v36, %v11877_v16 }
 0x3b5   : > { %v9444_v38 = vpop.f32.mrf.mxu0  ;;  %9996 = vmatprep.mubr.msk.bf16.mxu1 %vm847_vm3, %v11945_v40  ;;  %v2616_v2 = vadd.f32 %v9372_v55, %v9332_v20 }
 0x3b6   : > { %v9405_v41 = vpop.f32.mrf.mxu1  ;;  %v2990_v0 = vadd.f32 %v9443_v42, %v9403_v7  ;;  %v2621_v34 = vadd.f32 %v9375_v17, %v9335_v63  ;;  %v4565_v44 = vpack.c.bf16 %v2985_v22, %v2982_v62  ;;  %v9363_v22 = vadd.f32 %v11875_v48, %v11867_v52 }
 0x3b7   : > { %v9445_v15 = vpop.f32.mrf.mxu0  ;;  %v9406_v31 = vadd.f32 %v9405_v41, %v9404_v53  ;;  %v9360_v52 = vadd.f32 %v11856_v19, %v11841_v3  ;;  %v12001_v41 = vld [vmem:[%s11463_s2 + $0x88] sm:$0xff]  }
 0x3b8   : > { %v9446_v25 = vadd.f32 %v9445_v15, %v9444_v38  ;;  %v9407_v8 = vpop.f32.mrf.mxu1  ;;  %v4564_v16 = vpack.c.bf16 %v2621_v34, %v2616_v2  ;;  %14286 = vst [vmem:[#allocation41_spill] sm:$0xff] %v12001_v41  ;;  %v10804_v2 = vld [vmem:[#allocation8] ss:$16 sps:$4 sm:$0xff]  }
 0x3b9   : > { %v9447_v46 = vpop.f32.mrf.mxu0  ;;  %v2600_v53 = vadd.f32 %v9360_v52, %v9320_v9  ;;  %v10807_v9 = vld [vmem:[#allocation8 + $0x20] ss:$16 sps:$4 sm:$0xff]  }
 0x3ba   : > { %v2993_v39 = vadd.f32 %v9446_v25, %v9406_v31  ;;  %v9408_v50 = vpop.f32.mrf.mxu1  ;;  %v11994_v25 = vld [vmem:[%s11463_s2 + $0x80] sm:$0xff]  }
 0x3bb   : > { %v9448_v58 = vpop.f32.mrf.mxu0  ;;  %v9409_v29 = vadd.f32 %v9408_v50, %v9407_v8  ;;  %14285 = vst [vmem:[#allocation40_spill] sm:$0xff] %v11994_v25 }
 0x3bc   : > { %v4566_v40 = vpack.c.bf16 %v2993_v39, %v2990_v0  ;;  %v9449_v51 = vadd.f32 %v9448_v58, %v9447_v46  ;;  %v9410_v11 = vpop.f32.mrf.mxu1  ;;  %9997 = vmatmul.mubr.msk.bf16.gmra.mxu1 %vm847_vm3, %v11951_v32  ;;  %v9369_v0 = vadd.f32 %v11901_v37, %v11897_v10  ;;  %v9366_v46 = vadd.f32 %v11888_v23, %v11879_v21 }
 0x3bd   : > { %v9450_v15 = vpop.f32.mrf.mxu0  ;;  %10000 = vmatprep.mubr.msk.bf16.mxu1 %vm847_vm3, %v11960_v6  ;;  %v9323_v10 = vadd.f32 %v11873_v14, %v11865_v13  ;;  %v11985_v14 = vld [vmem:[%s11463_s2 + $0x78] sm:$0xff]  }
 0x3be   : > { %v11957_v61 = vadd.f32 %v9449_v51, %v9409_v29  ;;  %5308 = vmatpush2.bf16.msra.mxu0 %v4566_v40  ;;  %v9411_v27 = vpop.f32.mrf.mxu1  ;;  %v2613_v37 = vadd.f32 %v9369_v0, %v9329_v12  ;;  %14284 = vst [vmem:[#allocation39_spill] sm:$0xff] %v11985_v14  ;;  %v2608_v48 = vadd.f32 %v9366_v46, %v9326_v18 }
 0x3bf   : > { %v9451_v28 = vpop.f32.mrf.mxu0  ;;  %5309 = vmatprep.subr.bf16.mxu0 %v14258_v47  ;;  %v9412_v51 = vadd.f32 %v9411_v27, %v9410_v11  ;;  %v2605_v31 = vadd.f32 %v9363_v22, %v9323_v10  ;;  %v14287_v0 = vpack.c.bf16 %v11846_v43, %v11822_v56  ;;  %v10824_v11 = vld [vmem:[#allocation8 + $0xc4] ss:$16 sps:$4 sm:$0xff]  }
 0x3c0   : > { %14282 = vst [vmem:[#allocation37_spill] sm:$0xff] %v11957_v61  ;;  %v9452_v29 = vadd.f32 %v9451_v28, %v9450_v15  ;;  %v9413_v35 = vpop.f32.mrf.mxu1  ;;  %v4563_v54 = vpack.c.bf16 %v2613_v37, %v2608_v48 }
 0x3c1   : > { %v9453_v45 = vpop.f32.mrf.mxu0  ;;  %v4562_v3 = vpack.c.bf16 %v2605_v31, %v2600_v53  ;;  %v10815_v53 = vld [vmem:[#allocation8 + $0x64] ss:$16 sps:$4 sm:$0xff]  }
 0x3c2   : > { %v11973_v24 = vadd.f32 %v9452_v29, %v9412_v51  ;;  %5310 = vmatpush2.bf16.msra.mxu0 %v4565_v44  ;;  %v9414_v8 = vpop.f32.mrf.mxu1 }
 0x3c3   : > { %v9454_v5 = vpop.f32.mrf.mxu0  ;;  %5311 = vmatprep.subr.bf16.mxu0 %v14258_v47  ;;  %v9415_v36 = vadd.f32 %v9414_v8, %v9413_v35 }
 0x3c4   : > { %v9455_v23 = vadd.f32 %v9454_v5, %v9453_v45  ;;  %v9416_v1 = vpop.f32.mrf.mxu1  ;;  %10001 = vmatmul.mubr.msk.bf16.gmra.mxu1 %vm847_vm3, %v11985_v14  ;;  %v14288_v45 = vpack.c.bf16 %v11817_v60, %v11810_v4  ;;  %v14289_v4 = vpack.c.bf16 %v11797_v30, %v11782_v57  ;;  %v10809_v60 = vld [vmem:[#allocation8 + $0x24] ss:$16 sps:$4 sm:$0xff]  }
 0x3c5   : > { %v9456_v13 = vpop.f32.mrf.mxu0  ;;  %10004 = vmatprep.mubr.msk.bf16.mxu1 %vm847_vm3, %v11994_v25  ;;  %v10812_v30 = vld [vmem:[#allocation8 + $0x44] ss:$16 sps:$4 sm:$0xff]  }
 0x3c6   : > { %v11991_v33 = vadd.f32 %v9455_v23, %v9415_v36  ;;  %5312 = vmatpush2.bf16.msra.mxu0 %v4564_v16  ;;  %v9417_v26 = vpop.f32.mrf.mxu1 }
 0x3c7   : > { %v9457_v59 = vpop.f32.mrf.mxu0  ;;  %5313 = vmatprep.subr.bf16.mxu0 %v14258_v47 }
 0x3c9   : > { %v9475_v38 = vpop.f32.mrf.mxu1 }
 0x3ca   : > { %v9515_v39 = vpop.f32.mrf.mxu0  ;;  %5314 = vmatpush2.bf16.msra.mxu0 %v4563_v54  ;;  %v10810_v54 = vld [vmem:[#allocation8 + $0x40] ss:$16 sps:$4 sm:$0xff]  }
 0x3cb   : > { %5315 = vmatprep.subr.bf16.mxu0 %v14258_v47  ;;  %v9476_v19 = vpop.f32.mrf.mxu1 }
 0x3cc   : > { %v9516_v7 = vpop.f32.mrf.mxu0  ;;  %v9477_v42 = vadd.f32 %v9476_v19, %v9475_v38  ;;  %10005 = vmatmul.mubr.msk.bf16.gmra.mxu1 %vm847_vm3, %v12001_v41  ;;  %v5646_v19 = vld [vmem:[#allocation11 + $0x2] sm:$0x3] }
 0x3cd   : > { %v9517_v40 = vadd.f32 %v9516_v7, %v9515_v39  ;;  %v9478_v63 = vpop.f32.mrf.mxu1 }
 0x3ce   : > { %v9518_v17 = vpop.f32.mrf.mxu0  ;;  %5316 = vmatpush2.bf16.msra.mxu0 %v4562_v3  ;;  %v10860_v3 = vld [vmem:[#allocation8 + $0xc] ss:$16 sps:$4 sm:$0xff]  }
 0x3cf   : > { %v12005_v50 = vadd.f32 %v9517_v40, %v9477_v42  ;;  %5317 = vmatprep.subr.bf16.mxu0 %v14258_v47  ;;  %v9479_v58 = vpop.f32.mrf.mxu1  ;;  %8840 = vmatprep.mubr.msk.bf16.mxu1 %vm5232_vm4, %v10860_v3  ;;  %v5834_v40 = vsel %vm860_vm2, %v5646_v19, 0 }
 0x3d0   : > { %v9519_v20 = vpop.f32.mrf.mxu0  ;;  %v9480_v15 = vadd.f32 %v9479_v58, %v9478_v63 }
 0x3d1   : > { %v9520_v55 = vadd.f32 %v9519_v20, %v9518_v17  ;;  %v9481_v62 = vpop.f32.mrf.mxu1 }
 0x3d2   : > { %v9521_v12 = vpop.f32.mrf.mxu0  ;;  %5318 = vmatpush2.bf16.msra.mxu0 %v14287_v0 }
 0x3d3   : > { %v12013_v27 = vadd.f32 %v9520_v55, %v9480_v15  ;;  %5319 = vmatprep.subr.bf16.mxu0 %v14258_v47  ;;  %v9482_v28 = vpop.f32.mrf.mxu1  ;;  %v10813_v15 = vld [vmem:[#allocation8 + $0x60] ss:$16 sps:$4 sm:$0xff]   ;;  %v10818_v55 = vld [vmem:[#allocation8 + $0x84] ss:$16 sps:$4 sm:$0xff]  }
 0x3d4   : > { %v9522_v34 = vpop.f32.mrf.mxu0  ;;  %v9483_v44 = vadd.f32 %v9482_v28, %v9481_v62 }
 0x3d5   : > { %v9523_v51 = vadd.f32 %v9522_v34, %v9521_v12  ;;  %v12016_v29 = vpop.f32.mrf.mxu1 }
 0x3d6   : > { %v12018_v35 = vpop.f32.mrf.mxu0  ;;  %5320 = vmatpush2.bf16.msra.mxu0 %v14288_v45 }
 0x3d7   : > { %v12023_v18 = vadd.f32 %v9523_v51, %v9483_v44  ;;  %5321 = vmatprep.subr.bf16.mxu0 %v14258_v47  ;;  %v12026_v56 = vpop.f32.mrf.mxu1 }
 0x3d8   : > { %v12028_v43 = vpop.f32.mrf.mxu0 }
 0x3d9   : > { %v12032_v10 = vpop.f32.mrf.mxu1 }
 0x3da   : > { %v12034_v22 = vpop.f32.mrf.mxu0  ;;  %5322 = vmatpush2.bf16.msra.mxu0 %v14289_v4  ;;  %v10821_v4 = vld [vmem:[#allocation8 + $0xa4] ss:$16 sps:$4 sm:$0xff]  }
 0x3db   : > { %v12039_v37 = vpop.f32.mrf.mxu1  ;;  %10327 = vmatprep.subr.msk.bf16.mxu0 %vm860_vm2, %v5646_v19  ;;  %v10819_v19 = vld [vmem:[#allocation8 + $0xa0] ss:$16 sps:$4 sm:$0xff]  }
 0x3dc   : > { %v12041_v8 = vpop.f32.mrf.mxu0 }
 0x3dd   : > { %5324 = vmatmul.mubr.bf16.vlgmr.msra.gmra.mxu0 %v10804_v2  ;;  %v12043_v5 = vpop.f32.mrf.mxu1  ;;  %v10816_v2 = vld [vmem:[#allocation8 + $0x80] ss:$16 sps:$4 sm:$0xff]  }
 0x3de   : > { %v12045_v16 = vpop.f32.mrf.mxu0  ;;  %5331 = vmatprep.mubr.bf16.mxu0 %v10809_v60  ;;  %10009 = vmatpush3.bf16.msra.mxu0 %v5834_v40 }
 0x3df   : > { %v12047_v36 = vpop.f32.mrf.mxu1 }
 0x3e0   : > { %v12049_v23 = vpop.f32.mrf.mxu0 }
 0x3e1   : > { %v12051_v1 = vpop.f32.mrf.mxu1 }
 0x3e2   : > { %v12053_v57 = vpop.f32.mrf.mxu0 }
 0x3e3   : > { %v12055_v13 = vpop.f32.mrf.mxu1 }
 0x3e4   : > { %v12057_v52 = vpop.f32.mrf.mxu0 }
 0x3e5   : > { %5332 = vmatmul.mubr.bf16.gmra.mxu0 %v10807_v9  ;;  %v9496_v48 = vpop.f32.mrf.mxu1 }
 0x3e6   : > { %v9536_v26 = vpop.f32.mrf.mxu0  ;;  %5339 = vmatprep.mubr.bf16.mxu0 %v10812_v30 }
 0x3e7   : > { %v9497_v59 = vpop.f32.mrf.mxu1 }
 0x3e8   : > { %v9537_v31 = vpop.f32.mrf.mxu0 }
 0x3ea   : > { %v12059_v38 = vpop.f32.mrf.mxu1 }
 0x3eb   : > { %v12061_v39 = vpop.f32.mrf.mxu0 }
 0x3ec   : > { %v9556_v7 = vpop.f32.mrf.mxu1 }
 0x3ed   : > { %v9596_v42 = vpop.f32.mrf.mxu0  ;;  %5340 = vmatmul.mubr.bf16.gmra.mxu0 %v10810_v54 }
 0x3ee   : > { %5347 = vmatprep.mubr.bf16.mxu0 %v10815_v53  ;;  %v9558_v63 = vpop.f32.mrf.mxu1 }
 0x3ef   : > { %v9598_v17 = vpop.f32.mrf.mxu0 }
 0x3f0   : > { %v9559_v58 = vpop.f32.mrf.mxu1 }
 0x3f1   : > { %v9599_v20 = vpop.f32.mrf.mxu0 }
 0x3f2   : > { %v9561_v62 = vpop.f32.mrf.mxu1 }
 0x3f3   : > { %v9601_v12 = vpop.f32.mrf.mxu0 }
 0x3f4   : > { %v9562_v0 = vpop.f32.mrf.mxu1 }
 0x3f5   : > { %v9602_v28 = vpop.f32.mrf.mxu0  ;;  %5348 = vmatmul.mubr.bf16.gmra.mxu0 %v10813_v15  ;;  %v9563_v25 = vadd.f32 %v9562_v0, %v9561_v62 }
 0x3f6   : > { %5355 = vmatprep.mubr.bf16.mxu0 %v10818_v55  ;;  %v9564_v34 = vpop.f32.mrf.mxu1  ;;  %v9603_v14 = vadd.f32 %v9602_v28, %v9601_v12 }
 0x3f7   : > { %v9604_v44 = vpop.f32.mrf.mxu0 }
 0x3f8   : > { %v9565_v51 = vpop.f32.mrf.mxu1  ;;  %v3760_v62 = vadd.f32 %v9603_v14, %v9563_v25  ;;  %v9492_v14 = vadd.f32 %v12047_v36, %v12043_v5  ;;  %v9532_v25 = vadd.f32 %v12049_v23, %v12045_v16  ;;  %v9486_v23 = vadd.f32 %v12026_v56, %v12016_v29 }
 0x3f9   : > { %v9605_v45 = vpop.f32.mrf.mxu0  ;;  %v9566_v40 = vadd.f32 %v9565_v51, %v9564_v34  ;;  %v9557_v51 = vadd.f32 %v9556_v7, %v12059_v38  ;;  %v9526_v7 = vadd.f32 %v12028_v43, %v12018_v35 }
 0x3fa   : > { %v9567_v60 = vpop.f32.mrf.mxu1  ;;  %v9606_v15 = vadd.f32 %v9605_v45, %v9604_v44  ;;  %v9597_v45 = vadd.f32 %v9596_v42, %v12061_v39  ;;  %v3386_v42 = vadd.f32 %v9532_v25, %v9492_v14  ;;  %v14291_v14 = vpack.c.bf16 %v12005_v50, %v11991_v33  ;;  %v14292_v33 = vld [vmem:[#allocation37_spill] sm:$0xff] }
 0x3fb   : > { %v9607_v9 = vpop.f32.mrf.mxu0  ;;  %v3378_v35 = vadd.f32 %v9526_v7, %v9486_v23  ;;  %v14293_v50 = vpack.c.bf16 %v11973_v24, %v14292_v33  ;;  %v10839_v7 = vld [vmem:[#allocation8 + $0x164] ss:$16 sps:$4 sm:$0xff]  }
 0x3fc   : > { %v9568_v30 = vpop.f32.mrf.mxu1 }
 0x3fd   : > { %v9608_v48 = vpop.f32.mrf.mxu0  ;;  %5356 = vmatmul.mubr.bf16.gmra.mxu0 %v10816_v2  ;;  %v9569_v31 = vadd.f32 %v9568_v30, %v9567_v60  ;;  %v9560_v2 = vadd.f32 %v9559_v58, %v9558_v63  ;;  %v3763_v60 = vadd.f32 %v9606_v15, %v9566_v40 }
 0x3fe   : > { %5363 = vmatprep.mubr.bf16.mxu0 %v10821_v4  ;;  %v9570_v26 = vpop.f32.mrf.mxu1  ;;  %v9609_v54 = vadd.f32 %v9608_v48, %v9607_v9  ;;  %v9600_v4 = vadd.f32 %v9599_v20, %v9598_v17  ;;  %v10822_v17 = vld [vmem:[#allocation8 + $0xc0] ss:$16 sps:$4 sm:$0xff]  }
 0x3ff   : > { %v9610_v59 = vpop.f32.mrf.mxu0 }
 0x400   : > { %v9571_v53 = vpop.f32.mrf.mxu1  ;;  %v3768_v6 = vadd.f32 %v9609_v54, %v9569_v31 }
 0x401   : > { %v9611_v3 = vpop.f32.mrf.mxu0  ;;  %v9572_v55 = vadd.f32 %v9571_v53, %v9570_v26  ;;  %v10830_v26 = vld [vmem:[#allocation8 + $0x104] ss:$16 sps:$4 sm:$0xff]  }
 0x402   : > { %v9612_v21 = vadd.f32 %v9611_v3, %v9610_v59  ;;  %v9573_v46 = vpop.f32.mrf.mxu1 }
 0x403   : > { %v9613_v41 = vpop.f32.mrf.mxu0 }
 0x404   : > { %v3771_v32 = vadd.f32 %v9612_v21, %v9572_v55  ;;  %v9574_v49 = vpop.f32.mrf.mxu1 }
 0x405   : > { %v9614_v61 = vpop.f32.mrf.mxu0  ;;  %5364 = vmatmul.mubr.bf16.gmra.mxu0 %v10819_v19  ;;  %v9575_v30 = vadd.f32 %v9574_v49, %v9573_v46  ;;  %v9495_v49 = vadd.f32 %v12055_v13, %v12051_v1  ;;  %v9489_v1 = vadd.f32 %v12039_v37, %v12032_v10 }
 0x406   : > { %v4574_v9 = vpack.c.bf16 %v3771_v32, %v3768_v6  ;;  %v9615_v48 = vadd.f32 %v9614_v61, %v9613_v41  ;;  %5371 = vmatprep.mubr.bf16.mxu0 %v10824_v11  ;;  %v9576_v34 = vpop.f32.mrf.mxu1  ;;  %v9535_v32 = vadd.f32 %v12057_v52, %v12053_v57  ;;  %v3755_v61 = vadd.f32 %v9600_v4, %v9560_v2  ;;  %v10827_v41 = vld [vmem:[#allocation8 + $0xe4] ss:$16 sps:$4 sm:$0xff]  }
 0x407   : > { %v9616_v44 = vpop.f32.mrf.mxu0  ;;  %v4573_v6 = vpack.c.bf16 %v3763_v60, %v3760_v62  ;;  %v3752_v11 = vadd.f32 %v9597_v45, %v9557_v51  ;;  %v9529_v57 = vadd.f32 %v12041_v8, %v12034_v22  ;;  %v10825_v22 = vld [vmem:[#allocation8 + $0xe0] ss:$16 sps:$4 sm:$0xff]  }
 0x408   : > { %v12068_v12 = vadd.f32 %v9615_v48, %v9575_v30  ;;  %5469 = vmatpush1.bf16.msra.mxu1 %v4574_v9  ;;  %v9577_v21 = vpop.f32.mrf.mxu1  ;;  %v3391_v13 = vadd.f32 %v9535_v32, %v9495_v49  ;;  %v10828_v60 = vld [vmem:[#allocation8 + $0x100] ss:$16 sps:$4 sm:$0xff]   ;;  %v10833_v48 = vld [vmem:[#allocation8 + $0x124] ss:$16 sps:$4 sm:$0xff]  }
 0x409   : > { %v9617_v63 = vpop.f32.mrf.mxu0  ;;  %5470 = vmatprep.subr.bf16.mxu1 %v14258_v47  ;;  %v4572_v52 = vpack.c.bf16 %v3755_v61, %v3752_v11  ;;  %v3383_v37 = vadd.f32 %v9529_v57, %v9489_v1  ;;  %v14290_v21 = vpack.c.bf16 %v12023_v18, %v12013_v27  ;;  %v10831_v18 = vld [vmem:[#allocation8 + $0x120] ss:$16 sps:$4 sm:$0xff]  }
 0x40a   : > { %v4571_v8 = vpack.c.bf16 %v3391_v13, %v3386_v42 }
 0x40b   : > { %v9635_v46 = vpop.f32.mrf.mxu1  ;;  %v4570_v53 = vpack.c.bf16 %v3383_v37, %v3378_v35 }
 0x40c   : > { %v9675_v38 = vpop.f32.mrf.mxu0  ;;  %5471 = vmatpush1.bf16.msra.mxu1 %v4573_v6 }
 0x40d   : > { %5372 = vmatmul.mubr.bf16.gmra.mxu0 %v10822_v17  ;;  %5472 = vmatprep.subr.bf16.mxu1 %v14258_v47  ;;  %v9636_v39 = vpop.f32.mrf.mxu1 }
 0x40e   : > { %v9676_v5 = vpop.f32.mrf.mxu0  ;;  %5379 = vmatprep.mubr.bf16.mxu0 %v10827_v41  ;;  %v9637_v36 = vadd.f32 %v9636_v39, %v9635_v46  ;;  %v10836_v46 = vld [vmem:[#allocation8 + $0x144] ss:$16 sps:$4 sm:$0xff]  }
 0x40f   : > { %v9677_v16 = vadd.f32 %v9676_v5, %v9675_v38  ;;  %v9638_v58 = vpop.f32.mrf.mxu1 }
 0x410   : > { %v9678_v20 = vpop.f32.mrf.mxu0  ;;  %5473 = vmatpush1.bf16.msra.mxu1 %v4572_v52 }
 0x411   : > { %v12088_v10 = vadd.f32 %v9677_v16, %v9637_v36  ;;  %5474 = vmatprep.subr.bf16.mxu1 %v14258_v47  ;;  %v9639_v0 = vpop.f32.mrf.mxu1  ;;  %v10834_v36 = vld [vmem:[#allocation8 + $0x140] ss:$16 sps:$4 sm:$0xff]  }
 0x412   : > { %v9679_v28 = vpop.f32.mrf.mxu0  ;;  %v9640_v56 = vadd.f32 %v9639_v0, %v9638_v58  ;;  %v10842_v0 = vld [vmem:[#allocation8 + $0x184] ss:$16 sps:$4 sm:$0xff]  }
 0x413   : > { %v4575_v29 = vpack.c.bf16 %v12088_v10, %v12068_v12  ;;  %v9680_v59 = vadd.f32 %v9679_v28, %v9678_v20  ;;  %v9641_v43 = vpop.f32.mrf.mxu1 }
 0x414   : > { %v9681_v31 = vpop.f32.mrf.mxu0  ;;  %5475 = vmatpush1.bf16.msra.mxu1 %v4571_v8  ;;  %v10837_v8 = vld [vmem:[#allocation8 + $0x160] ss:$16 sps:$4 sm:$0xff]  }
 0x415   : > { %v12093_v54 = vadd.f32 %v9680_v59, %v9640_v56  ;;  %5380 = vmatmul.mubr.bf16.gmra.mxu0 %v10825_v22  ;;  %5476 = vmatprep.subr.bf16.mxu1 %v14258_v47  ;;  %v9642_v3 = vpop.f32.mrf.mxu1 }
 0x416   : > { %v9682_v19 = vpop.f32.mrf.mxu0  ;;  %5387 = vmatprep.mubr.bf16.mxu0 %v10830_v26  ;;  %v9643_v40 = vadd.f32 %v9642_v3, %v9641_v43  ;;  %v10840_v3 = vld [vmem:[#allocation8 + $0x180] ss:$16 sps:$4 sm:$0xff]  }
 0x417   : > { %v9683_v15 = vadd.f32 %v9682_v19, %v9681_v31  ;;  %v9644_v55 = vpop.f32.mrf.mxu1  ;;  %v10845_v19 = vld [vmem:[#allocation8 + $0x1a4] ss:$16 sps:$4 sm:$0xff]  }
 0x418   : > { %v9684_v2 = vpop.f32.mrf.mxu0  ;;  %5477 = vmatpush1.bf16.msra.mxu1 %v4570_v53 }
 0x419   : > { %v12096_v4 = vadd.f32 %v9683_v15, %v9643_v40  ;;  %5478 = vmatprep.subr.bf16.mxu1 %v14258_v47  ;;  %v9645_v9 = vpop.f32.mrf.mxu1 }
 0x41a   : > { %v9685_v30 = vpop.f32.mrf.mxu0  ;;  %v9646_v44 = vadd.f32 %v9645_v9, %v9644_v55 }
 0x41b   : > { %v4576_v34 = vpack.c.bf16 %v12096_v4, %v12093_v54  ;;  %v9686_v51 = vadd.f32 %v9685_v30, %v9684_v2  ;;  %v9647_v45 = vpop.f32.mrf.mxu1  ;;  %v10861_v54 = vld [vmem:[#allocation8 + $0x2c] ss:$16 sps:$4 sm:$0xff]  }
 0x41c   : > { %v9687_v62 = vpop.f32.mrf.mxu0  ;;  %5479 = vmatpush1.bf16.msra.mxu1 %v14290_v21 }
 0x41d   : > { %v12104_v63 = vadd.f32 %v9686_v51, %v9646_v44  ;;  %5388 = vmatmul.mubr.bf16.gmra.mxu0 %v10828_v60  ;;  %5480 = vmatprep.subr.bf16.mxu1 %v14258_v47  ;;  %v9648_v17 = vpop.f32.mrf.mxu1  ;;  %v10843_v44 = vld [vmem:[#allocation8 + $0x1a0] ss:$16 sps:$4 sm:$0xff]   ;;  %v10848_v51 = vld [vmem:[#allocation8 + $0x1c4] ss:$16 sps:$4 sm:$0xff]  }
 0x41e   : > { %v9688_v49 = vpop.f32.mrf.mxu0  ;;  %5395 = vmatprep.mubr.bf16.mxu0 %v10833_v48  ;;  %v9649_v32 = vadd.f32 %v9648_v17, %v9647_v45 }
 0x41f   : > { %v9689_v61 = vadd.f32 %v9688_v49, %v9687_v62  ;;  %v12107_v6 = vpop.f32.mrf.mxu1 }
 0x420   : > { %v12109_v41 = vpop.f32.mrf.mxu0  ;;  %5481 = vmatpush1.bf16.msra.mxu1 %v14291_v14 }
 0x421   : > { %v12114_v27 = vadd.f32 %v9689_v61, %v9649_v32  ;;  %5482 = vmatprep.subr.bf16.mxu1 %v14258_v47  ;;  %v12117_v25 = vpop.f32.mrf.mxu1 }
 0x422   : > { %v12119_v11 = vpop.f32.mrf.mxu0 }
 0x423   : > { %v4577_v38 = vpack.c.bf16 %v12114_v27, %v12104_v63  ;;  %v12123_v1 = vpop.f32.mrf.mxu1 }
 0x424   : > { %v12125_v57 = vpop.f32.mrf.mxu0  ;;  %5483 = vmatpush1.bf16.msra.mxu1 %v14293_v50 }
 0x425   : > { %5396 = vmatmul.mubr.bf16.gmra.mxu0 %v10831_v18  ;;  %5484 = vmatprep.subr.bf16.mxu1 %v14258_v47  ;;  %v12131_v13 = vpop.f32.mrf.mxu1 }
 0x426   : > { %v12133_v52 = vpop.f32.mrf.mxu0  ;;  %5403 = vmatprep.mubr.bf16.mxu0 %v10836_v46 }
 0x427   : > { %v9656_v39 = vpop.f32.mrf.mxu1 }
 0x428   : > { %v9696_v5 = vpop.f32.mrf.mxu0  ;;  %v10846_v39 = vld [vmem:[#allocation8 + $0x1c0] ss:$16 sps:$4 sm:$0xff]  }
 0x429   : > { %v9657_v16 = vpop.f32.mrf.mxu1 }
 0x42a   : > { %v9697_v23 = vpop.f32.mrf.mxu0 }
 0x42c   : > { %v12135_v42 = vpop.f32.mrf.mxu1 }
 0x42d   : > { %v12137_v58 = vpop.f32.mrf.mxu0  ;;  %5404 = vmatmul.mubr.bf16.gmra.mxu0 %v10834_v36  ;;  %v10851_v36 = vld [vmem:[#allocation8 + $0x1e4] ss:$16 sps:$4 sm:$0xff]  }
 0x42e   : > { %5411 = vmatprep.mubr.bf16.mxu0 %v10839_v7  ;;  %v12139_v24 = vpop.f32.mrf.mxu1 }
 0x42f   : > { %v12141_v20 = vpop.f32.mrf.mxu0 }
 0x430   : > { %v9718_v22 = vpop.f32.mrf.mxu1 }
 0x431   : > { %v9758_v37 = vpop.f32.mrf.mxu0 }
 0x432   : > { %v9719_v28 = vpop.f32.mrf.mxu1 }
 0x433   : > { %v9759_v26 = vpop.f32.mrf.mxu0 }
 0x434   : > { %v9721_v56 = vpop.f32.mrf.mxu1 }
 0x435   : > { %v9761_v59 = vpop.f32.mrf.mxu0  ;;  %5412 = vmatmul.mubr.bf16.gmra.mxu0 %v10837_v8 }
 0x436   : > { %5419 = vmatprep.mubr.bf16.mxu0 %v10842_v0  ;;  %v9722_v35 = vpop.f32.mrf.mxu1 }
 0x437   : > { %v9762_v43 = vpop.f32.mrf.mxu0 }
 0x438   : > { %v9724_v31 = vpop.f32.mrf.mxu1 }
 0x439   : > { %v9764_v53 = vpop.f32.mrf.mxu0 }
 0x43a   : > { %v9725_v40 = vpop.f32.mrf.mxu1 }
 0x43b   : > { %v9765_v15 = vpop.f32.mrf.mxu0 }
 0x43c   : > { %v9727_v55 = vpop.f32.mrf.mxu1 }
 0x43d   : > { %v9767_v2 = vpop.f32.mrf.mxu0  ;;  %5420 = vmatmul.mubr.bf16.gmra.mxu0 %v10840_v3  ;;  %v9726_v3 = vadd.f32 %v9725_v40, %v9724_v31  ;;  %v9717_v31 = vadd.f32 %v12139_v24, %v12135_v42  ;;  %v9652_v42 = vadd.f32 %v12117_v25, %v12107_v6 }
 0x43e   : > { %5427 = vmatprep.mubr.bf16.mxu0 %v10845_v19  ;;  %v9728_v60 = vpop.f32.mrf.mxu1  ;;  %v9766_v19 = vadd.f32 %v9765_v15, %v9764_v53  ;;  %v9757_v53 = vadd.f32 %v12141_v20, %v12137_v58  ;;  %v9692_v58 = vadd.f32 %v12119_v11, %v12109_v41  ;;  %v14294_v20 = vld [vmem:[#allocation29_spill] sm:$0xff]  ;;  %v14295_v15 = vld [vmem:[#allocation28_spill] sm:$0xff] }
 0x43f   : > { %v9768_v9 = vpop.f32.mrf.mxu0  ;;  %v9729_v16 = vadd.f32 %v9728_v60, %v9727_v55  ;;  %v10849_v60 = vld [vmem:[#allocation8 + $0x1e0] ss:$16 sps:$4 sm:$0xff]   ;;  %v14164_v6 = vshll.u32 %v14295_v15, 16 }
 0x440   : > { %v9730_v30 = vpop.f32.mrf.mxu1  ;;  %v9769_v23 = vadd.f32 %v9768_v9, %v9767_v2  ;;  %v4533_v55 = vadd.f32 %v9766_v19, %v9726_v3  ;;  %v10854_v9 = vld [vmem:[#allocation8 + $0x204] ss:$16 sps:$4 sm:$0xff]   ;;  %v4522_v24 = vadd.f32 %v9757_v53, %v9717_v31 }
 0x441   : > { %v9770_v48 = vpop.f32.mrf.mxu0  ;;  %v5657_v11 = vrot.slane %v14164_v6, 1  ;;  %v14303_v19 = vld [vmem:[#allocation23_spill] sm:$0xff] }
 0x442   : > { %v9731_v45 = vpop.f32.mrf.mxu1 }
 0x443   : > { %v9771_v62 = vpop.f32.mrf.mxu0  ;;  %v9732_v18 = vadd.f32 %v9731_v45, %v9730_v30  ;;  %v9763_v30 = vadd.f32 %v9762_v43, %v9761_v59  ;;  %v9720_v45 = vadd.f32 %v9719_v28, %v9718_v22  ;;  %v9695_v22 = vadd.f32 %v12133_v52, %v12125_v57  ;;  %v10852_v59 = vld [vmem:[#allocation8 + $0x200] ss:$16 sps:$4 sm:$0xff]   ;;  %v10857_v57 = vld [vmem:[#allocation8 + $0x224] ss:$16 sps:$4 sm:$0xff]  }
 0x444   : > { %v9733_v21 = vpop.f32.mrf.mxu1  ;;  %v9772_v46 = vadd.f32 %v9771_v62, %v9770_v48  ;;  %v4538_v48 = vadd.f32 %v9769_v23, %v9729_v16  ;;  %v9760_v62 = vadd.f32 %v9759_v26, %v9758_v37  ;;  %v5651_v26 = vshll.u32 %v14294_v20, 16  ;;  %v10858_v16 = vld [vmem:[#allocation8 + $0x8] ss:$16 sps:$4 sm:$0xff]  }
 0x445   : > { %v9773_v17 = vpop.f32.mrf.mxu0  ;;  %5428 = vmatmul.mubr.bf16.gmra.mxu0 %v10843_v44  ;;  %v4156_v52 = vadd.f32 %v9692_v58, %v9652_v42 }
 0x446   : > { %5435 = vmatprep.mubr.bf16.mxu0 %v10848_v51  ;;  %v9734_v49 = vpop.f32.mrf.mxu1  ;;  %v4541_v44 = vadd.f32 %v9772_v46, %v9732_v18  ;;  %v4525_v37 = vadd.f32 %v9760_v62, %v9720_v45  ;;  %v5653_v43 = vrot.slane %v5651_v26, 1  ;;  %v14297_v46 = vld [vmem:[#allocation26_spill] sm:$0xff]  ;;  %v12225_v62 = vshrl.u32 %v14303_v19, 16 }
 0x447   : > { %v9774_v32 = vpop.f32.mrf.mxu0  ;;  %v9735_v61 = vadd.f32 %v9734_v49, %v9733_v21  ;;  %v9723_v21 = vadd.f32 %v9722_v35, %v9721_v56  ;;  %v9655_v56 = vadd.f32 %v12131_v13, %v12123_v1  ;;  %v5649_v35 = vshrl.u32 %v14294_v20, 16  ;;  %v14296_v49 = vld [vmem:[#allocation27_spill] sm:$0xff] }
 0x448   : > { %v9775_v14 = vadd.f32 %v9774_v32, %v9773_v17  ;;  %v9736_v33 = vpop.f32.mrf.mxu1  ;;  %v4581_v2 = vpack.c.bf16 %v4541_v44, %v4538_v48  ;;  %v4579_v13 = vpack.c.bf16 %v4525_v37, %v4522_v24  ;;  %v10855_v17 = vld [vmem:[#allocation8 + $0x220] ss:$16 sps:$4 sm:$0xff]   ;;  %v12166_v32 = vshll.u32 %v14296_v49, 16  ;;  %v10864_v48 = vld [vmem:[#allocation8 + $0x4c] ss:$16 sps:$4 sm:$0xff]  }
 0x449   : > { %v9776_v50 = vpop.f32.mrf.mxu0  ;;  %v4530_v40 = vadd.f32 %v9763_v30, %v9723_v21  ;;  %v4161_v1 = vadd.f32 %v9695_v22, %v9655_v56  ;;  %v5654_v25 = vor.u32 %v5653_v43, %v5649_v35  ;;  %v12174_v18 = vshrl.u32 %v14296_v49, 16  ;;  %v14309_v56 = vld [vmem:[#allocation31_spill] sm:$0xff]  ;;  %v10867_v24 = vld [vmem:[#allocation8 + $0x6c] ss:$16 sps:$4 sm:$0xff]  }
 0x44a   : > { %v4546_v5 = vadd.f32 %v9775_v14, %v9735_v61  ;;  %v9737_v7 = vpop.f32.mrf.mxu1  ;;  %v14165_v61 = vshrl.u32 %v14295_v15, 16  ;;  %v12177_v33 = vshll.u32 %v14297_v46, 16  ;;  %v5664_v50 = vrot.slane %v12166_v32, 1 }
 0x44b   : > { %v9777_v8 = vpop.f32.mrf.mxu0  ;;  %v4580_v28 = vpack.c.bf16 %v4533_v55, %v4530_v40  ;;  %v4578_v41 = vpack.c.bf16 %v4161_v1, %v4156_v52  ;;  %v5658_v14 = vsel %vm5648_vm6, %v5654_v25, %v5657_v11  ;;  %v12195_v7 = vshrl.u32 %v14297_v46, 16  ;;  %v14307_v55 = vld [vmem:[#allocation30_spill] sm:$0xff]  ;;  %v6360_v40 = vld [vmem:[#allocation11 + $0x6] sm:$0x3]  ;;  %v14313_v1 = vld [vmem:[#allocation32_spill] sm:$0xff] }
 0x44c   : > { %v4582_v0 = vpack.c.bf16 %v4546_v5, %v4546_v5  ;;  %v5668_v63 = vor.u32 %v12174_v18, %v5664_v50  ;;  %v5671_v27 = vrot.slane %v12177_v33, 1  ;;  %v14298_v5 = vld [vmem:[#allocation25_spill] sm:$0xff]  ;;  %v12217_v44 = vshll.u32 %v14303_v19, 16  ;;  %10329 = vmatprep.subr.msk.bf16.mxu0 %vm860_vm2, %v6360_v40  ;;  %v12257_v52 = vld [vmem:[#allocation11 + $0x8] sm:$0x3] }
 0x44d   : > { %5436 = vmatmul.mubr.bf16.gmra.mxu0 %v10846_v39  ;;  %v5661_v39 = vor.u32 %v14165_v61, %v5657_v11  ;;  %14306 = vst [vmem:[#allocation25_spill] sm:$0xff] %v12225_v62  ;;  %v12239_v22 = vshll.u32 %v14309_v56, 16  ;;  %v6373_v37 = vsel %vm860_vm2, %v6360_v40, 0  ;;  %v12244_v58 = vshrl.u32 %v14307_v55, 16  ;;  %v10869_v11 = vld [vmem:[#allocation8 + $0x68] ss:$16 sps:$4 sm:$0xff]  }
 0x44e   : > { %v5289_v51 = vsel %vm5287_vm5, %v4582_v0, 0  ;;  %5443 = vmatprep.mubr.bf16.mxu0 %v10851_v36  ;;  %v12191_v36 = vshll.u32 %v14298_v5, 16  ;;  %v5672_v4 = vsel %vm5648_vm6, %v5668_v63, %v5671_v27  ;;  %v5675_v12 = vor.u32 %v12195_v7, %v5671_v27  ;;  %14304 = vst [vmem:[#allocation27_spill] sm:$0xff] %v12217_v44  ;;  %v14319_v63 = vld [vmem:[#allocation34_spill] sm:$0xff]  ;;  %v12300_v19 = vld [vmem:[%s11463_s2 + $0x60] sm:$0xff]  }
 0x44f   : > { %5485 = vmatpush2.bf16.msra.mxu1 %v5289_v51  ;;  %v5665_v23 = vsel %vm5648_vm6, %v5661_v39, %v5664_v50  ;;  %v10863_v51 = vld [vmem:[#allocation8 + $0x28] ss:$16 sps:$4 sm:$0xff]   ;;  %14310 = vst [vmem:[#allocation23_spill] sm:$0xff] %v12239_v22  ;;  %14311 = vst [vmem:[#allocation30_spill] sm:$0xff] %v12244_v58  ;;  %v12248_v26 = vshrl.u32 %v14309_v56, 16  ;;  %v12269_v49 = vshrl.u32 %v14313_v1, 16 }
 0x450   : > { %5486 = vmatprep.subr.bf16.mxu1 %v14258_v47  ;;  %14299 = vst [vmem:[#allocation37_spill] sm:$0xff] %v12191_v36  ;;  %v5678_v3 = vrot.slane %v12191_v36, 1  ;;  %v12273_v50 = vld [vmem:[%s11463_s2 + $0x50] sm:$0xff]   ;;  %v12279_v27 = vshll.u32 %v14319_v63, 16 }
 0x451   : > { %14312 = vst [vmem:[#allocation31_spill] sm:$0xff] %v12248_v26  ;;  %14317 = vst [vmem:[#allocation42_spill] sm:$0xff] %v12269_v49  ;;  %v12276_v39 = vshrl.u32 %v12273_v50, 16  ;;  %v10875_v40 = vld [vmem:[#allocation8 + $0xa8] ss:$16 sps:$4 sm:$0xff]  }
 0x452   : > { %v5679_v21 = vsel %vm5648_vm6, %v5675_v12, %v5678_v3  ;;  %14320 = vst [vmem:[#allocation34_spill] sm:$0xff] %v12279_v27  ;;  %v10912_v36 = vld [vmem:[#allocation8 + $0x228] ss:$16 sps:$4 sm:$0xff]  }
 0x453   : > { %5487 = vmatpush2.bf16.msra.mxu1 %v4581_v2  ;;  %v12228_v2 = vshll.u32 %v14307_v55, 16  ;;  %14318 = vst [vmem:[#allocation43_spill] sm:$0xff] %v12276_v39 }
 0x454   : > { %5488 = vmatprep.subr.bf16.mxu1 %v14258_v47 }
 0x455   : > { %5444 = vmatmul.mubr.bf16.gmra.mxu0 %v10849_v60  ;;  %v5692_v60 = vrot.slane %v12217_v44, 1  ;;  %v5699_v53 = vrot.slane %v12228_v2, 1 }
 0x456   : > { %5451 = vmatprep.mubr.bf16.mxu0 %v10854_v9 }
 0x457   : > { %5489 = vmatpush2.bf16.msra.mxu1 %v4580_v28  ;;  %v5696_v31 = vor.u32 %v12225_v62, %v5692_v60  ;;  %v10866_v28 = vld [vmem:[#allocation8 + $0x48] ss:$16 sps:$4 sm:$0xff]  }
 0x458   : > { %5490 = vmatprep.subr.bf16.mxu1 %v14258_v47  ;;  %v10908_v62 = vld [vmem:[#allocation8 + $0x208] ss:$16 sps:$4 sm:$0xff]  }
 0x459   : > { %v5700_v20 = vsel %vm5648_vm6, %v5696_v31, %v5699_v53  ;;  %v14327_v31 = vld [vmem:[#allocation38_spill] sm:$0xff] }
 0x45b   : > { %5491 = vmatpush2.bf16.msra.mxu1 %v4579_v13  ;;  %v12251_v13 = vshll.u32 %v14313_v1, 16 }
 0x45c   : > { %5492 = vmatprep.subr.bf16.mxu1 %v14258_v47 }
 0x45d   : > { %5452 = vmatmul.mubr.bf16.gmra.mxu0 %v10852_v59  ;;  %14314 = vst [vmem:[#allocation32_spill] sm:$0xff] %v12251_v13  ;;  %v5706_v59 = vrot.slane %v12239_v22, 1  ;;  %v5713_v43 = vrot.slane %v12251_v13, 1  ;;  %v10897_v13 = vld [vmem:[#allocation8 + $0x1ac] ss:$16 sps:$4 sm:$0xff]  }
 0x45e   : > { %5459 = vmatprep.mubr.bf16.mxu0 %v10857_v57  ;;  %v5703_v57 = vor.u32 %v12244_v58, %v5699_v53  ;;  %v12316_v53 = vshll.u32 %v14327_v31, 16  ;;  %v10906_v58 = vld [vmem:[#allocation8 + $0x20c] ss:$16 sps:$4 sm:$0xff]  }
 0x45f   : > { %5493 = vmatpush2.bf16.msra.mxu1 %v4578_v41  ;;  %v5710_v35 = vor.u32 %v12248_v26, %v5706_v59  ;;  %v14315_v41 = vld [vmem:[#allocation33_spill] sm:$0xff] }
 0x460   : > { %5494 = vmatprep.subr.bf16.mxu1 %v14258_v47  ;;  %v12265_v25 = vshll.u32 %v14315_v41, 16  ;;  %14328 = vst [vmem:[#allocation38_spill] sm:$0xff] %v12316_v53 }
 0x461   : > { %v5714_v46 = vsel %vm5648_vm6, %v5710_v35, %v5713_v43 }
 0x462   : > { %14316 = vst [vmem:[#allocation33_spill] sm:$0xff] %v12265_v25 }
 0x463   : > { %5495 = vmatpush2.bf16.msra.mxu1 %v4577_v38  ;;  %v6050_v38 = vld [vmem:[#allocation11 + $0x4] sm:$0x3] }
 0x464   : > { %5496 = vmatprep.subr.bf16.mxu1 %v14258_v47  ;;  %v6144_v0 = vsel %vm860_vm2, %v6050_v38, 0 }
 0x465   : > { %5460 = vmatmul.mubr.bf16.gmra.mxu0 %v10855_v17  ;;  %v5707_v17 = vsel %vm5648_vm6, %v5703_v57, %v5706_v59  ;;  %v12329_v59 = vpop.f32.mrf.mxu1  ;;  %v5748_v57 = vrot.slane %v12316_v53, 1 }
 0x466   : > { %10010 = vmatprep.mubr.msk.bf16.mxu0 %vm847_vm3, %v5658_v14  ;;  %v10870_v14 = vld [vmem:[#allocation8 + $0x8c] ss:$16 sps:$4 sm:$0xff]  }
 0x467   : > { %5497 = vmatpush2.bf16.msra.mxu1 %v4576_v34  ;;  %v12202_v34 = vshrl.u32 %v14298_v5, 16  ;;  %v5717_v5 = vor.u32 %v12269_v49, %v5713_v43 }
 0x468   : > { %5498 = vmatprep.subr.bf16.mxu1 %v14258_v47  ;;  %v14301_v47 = vld [vmem:[#allocation24_spill] sm:$0xff] }
 0x469   : > { %14300 = vst [vmem:[#allocation29_spill] sm:$0xff] %v12202_v34  ;;  %v12205_v8 = vshll.u32 %v14301_v47, 16  ;;  %v5682_v10 = vor.u32 %v12202_v34, %v5678_v3  ;;  %v12221_v30 = vshrl.u32 %v14301_v47, 16  ;;  %14308 = vst [vmem:[#allocation24_spill] sm:$0xff] %v12228_v2  ;;  %v10872_v47 = vld [vmem:[#allocation8 + $0x88] ss:$16 sps:$4 sm:$0xff]  }
 0x46a   : > { %v12293_v3 = vld [vmem:[%s11463_s2 + $0x58] sm:$0xff]  }
 0x46b   : > { %5499 = vmatpush2.bf16.msra.mxu1 %v4575_v29  ;;  %14302 = vst [vmem:[#allocation28_spill] sm:$0xff] %v12205_v8  ;;  %v5685_v29 = vrot.slane %v12205_v8, 1  ;;  %14305 = vst [vmem:[#allocation26_spill] sm:$0xff] %v12221_v30  ;;  %v12296_v12 = vshrl.u32 %v12293_v3, 16  ;;  %v10951_v8 = vld [vmem:[%s11463_s2] sm:$0xff]  }
 0x46c   : > { %10328 = vmatprep.subr.msk.bf16.mxu1 %vm860_vm2, %v6050_v38  ;;  %v5720_v38 = vrot.slane %v12265_v25, 1  ;;  %v10894_v25 = vld [vmem:[#allocation8 + $0x18c] ss:$16 sps:$4 sm:$0xff]  }
 0x46d   : > { %10011 = vmatmul.mubr.msk.bf16.vlgmr.msra.gmra.mxu0 %vm847_vm3, %v5665_v23  ;;  %v5686_v45 = vsel %vm5648_vm6, %v5682_v10, %v5685_v29  ;;  %v5689_v9 = vor.u32 %v12221_v30, %v5685_v29  ;;  %v5727_v23 = vrot.slane %v12279_v27, 1  ;;  %14323 = vst [vmem:[#allocation44_spill] sm:$0xff] %v12296_v12  ;;  %v10873_v10 = vld [vmem:[#allocation8 + $0xac] ss:$16 sps:$4 sm:$0xff]   ;;  %v6052_v30 = vrot.slane %v10951_v8, 1 }
 0x46e   : > { %5501 = vmatmul.mubr.bf16.vlgmr.msra.gmra.mxu1 %v10858_v16  ;;  %10014 = vmatprep.mubr.msk.bf16.mxu0 %vm847_vm3, %v5672_v4  ;;  %v5724_v16 = vor.u32 %v12276_v39, %v5720_v38 }
 0x46f   : > { %10047 = vmatpush3.bf16.msra.mxu1 %v6144_v0  ;;  %8841 = vmatprep.mubr.msk.bf16.mxu1 %vm5232_vm4, %v10861_v54  ;;  %v5693_v42 = vsel %vm5648_vm6, %v5689_v9, %v5692_v60  ;;  %v14321_v54 = vld [vmem:[#allocation35_spill] sm:$0xff]  ;;  %v5721_v0 = vsel %vm5648_vm6, %v5717_v5, %v5720_v38  ;;  %v5731_v55 = vor.u32 %v12296_v12, %v5727_v23  ;;  %v10879_v5 = vld [vmem:[#allocation8 + $0xec] ss:$16 sps:$4 sm:$0xff]  }
 0x470   : > { %10085 = vmatpush3.bf16.msra.mxu0 %v6373_v37  ;;  %10330 = vmatprep.subr.msk.bf16.mxu1 %vm860_vm2, %v12257_v52  ;;  %v12289_v4 = vshll.u32 %v14321_v54, 16  ;;  %v5728_v29 = vsel %vm5648_vm6, %v5724_v16, %v5727_v23 }
 0x472   : > { %14322 = vst [vmem:[#allocation35_spill] sm:$0xff] %v12289_v4 }
 0x475   : > { %10015 = vmatmul.mubr.msk.bf16.gmra.mxu0 %vm847_vm3, %v5679_v21  ;;  %v14325_v21 = vld [vmem:[#allocation36_spill] sm:$0xff] }
 0x476   : > { %5509 = vmatmul.mubr.bf16.gmra.mxu1 %v10863_v51  ;;  %10018 = vmatprep.mubr.msk.bf16.mxu0 %vm847_vm3, %v5686_v45  ;;  %v12303_v51 = vshrl.u32 %v12300_v19, 16  ;;  %v5734_v45 = vrot.slane %v12289_v4, 1  ;;  %v12320_v37 = vshrl.u32 %v14325_v21, 16  ;;  %v12464_v4 = vld [vmem:[%s11463_s2 + $0x38] sm:$0xff]  }
 0x477   : > { %8842 = vmatprep.mubr.msk.bf16.mxu1 %vm5232_vm4, %v10864_v48  ;;  %v12306_v48 = vshll.u32 %v14325_v21, 16 }
 0x478   : > { %14324 = vst [vmem:[#allocation45_spill] sm:$0xff] %v12303_v51  ;;  %v5738_v60 = vor.u32 %v12303_v51, %v5734_v45  ;;  %v5735_v56 = vsel %vm5648_vm6, %v5731_v55, %v5734_v45  ;;  %14329 = vst [vmem:[#allocation46_spill] sm:$0xff] %v12320_v37  ;;  %v10935_v55 = vld [vmem:[%s11463_s2 + $0x90] sm:$0xf] }
 0x479   : > { %14326 = vst [vmem:[#allocation36_spill] sm:$0xff] %v12306_v48  ;;  %v5741_v9 = vrot.slane %v12306_v48, 1  ;;  %v10891_v48 = vld [vmem:[#allocation8 + $0x16c] ss:$16 sps:$4 sm:$0xff]  }
 0x47b   : > { %v5745_v35 = vor.u32 %v12320_v37, %v5741_v9 }
 0x47d   : > { %10019 = vmatmul.mubr.msk.bf16.gmra.mxu0 %vm847_vm3, %v5693_v42  ;;  %v5742_v42 = vsel %vm5648_vm6, %v5738_v60, %v5741_v9  ;;  %v5749_v63 = vsel %vm5648_vm6, %v5745_v35, %v5748_v57  ;;  %v12361_v60 = vcombine.low %v10935_v55, %v10935_v55 }
 0x47e   : > { %5517 = vmatmul.mubr.bf16.gmra.mxu1 %v10866_v28  ;;  %10022 = vmatprep.mubr.msk.bf16.mxu0 %vm847_vm3, %v5700_v20  ;;  %v10876_v28 = vld [vmem:[#allocation8 + $0xcc] ss:$16 sps:$4 sm:$0xff]   ;;  %v14331_v20 = vld [vmem:[#allocation39_spill] sm:$0xff] }
 0x47f   : > { %8843 = vmatprep.mubr.msk.bf16.mxu1 %vm5232_vm4, %v10867_v24  ;;  %v12324_v24 = vshrl.u32 %v14327_v31, 16  ;;  %v12327_v1 = vshll.u32 %v14331_v20, 16  ;;  %v12343_v38 = vshrl.u32 %v14331_v20, 16  ;;  %v5775_v35 = vshll.u32 %v12361_v60, 16 }
 0x481   : > { %14330 = vst [vmem:[#allocation47_spill] sm:$0xff] %v12324_v24  ;;  %14332 = vst [vmem:[#allocation39_spill] sm:$0xff] %v12327_v1  ;;  %v5752_v43 = vor.u32 %v12324_v24, %v5748_v57  ;;  %v5755_v41 = vrot.slane %v12327_v1, 1 }
 0x482   : > { %14335 = vst [vmem:[#allocation48_spill] sm:$0xff] %v12343_v38 }
 0x483   : > { %v5756_v16 = vsel %vm5648_vm6, %v5752_v43, %v5755_v41  ;;  %v5759_v21 = vor.u32 %v12343_v38, %v5755_v41  ;;  %v10882_v41 = vld [vmem:[#allocation8 + $0x10c] ss:$16 sps:$4 sm:$0xff]  }
 0x485   : > { %10023 = vmatmul.mubr.msk.bf16.gmra.mxu0 %vm847_vm3, %v5707_v17  ;;  %v14333_v17 = vld [vmem:[#allocation40_spill] sm:$0xff] }
 0x486   : > { %5525 = vmatmul.mubr.bf16.gmra.mxu1 %v10869_v11  ;;  %10026 = vmatprep.mubr.msk.bf16.mxu0 %vm847_vm3, %v5714_v46  ;;  %v4747_v11 = vpop.f32.mrf.mxu1  ;;  %v10878_v46 = vld [vmem:[#allocation8 + $0xc8] ss:$16 sps:$4 sm:$0xff]   ;;  %v12349_v54 = vshrl.u32 %v14333_v17, 16 }
 0x487   : > { %8844 = vmatprep.mubr.msk.bf16.mxu1 %vm5232_vm4, %v10870_v14  ;;  %v12339_v14 = vshll.u32 %v14333_v17, 16 }
 0x488   : > { %v12346_v23 = vpop.f32.mrf.mxu1  ;;  %14336 = vst [vmem:[#allocation49_spill] sm:$0xff] %v12349_v54 }
 0x489   : > { %14334 = vst [vmem:[#allocation40_spill] sm:$0xff] %v12339_v14 }
 0x48a   : > { %v12364_v31 = vpop.f32.mrf.mxu1 }
 0x48d   : > { %10027 = vmatmul.mubr.msk.bf16.gmra.mxu0 %vm847_vm3, %v5721_v0 }
 0x48e   : > { %5533 = vmatmul.mubr.bf16.gmra.mxu1 %v10872_v47  ;;  %10030 = vmatprep.mubr.msk.bf16.mxu0 %vm847_vm3, %v5728_v29  ;;  %v14337_v47 = vld [vmem:[#allocation41_spill] sm:$0xff]  ;;  %v5762_v29 = vrot.slane %v12339_v14, 1  ;;  %v12437_v14 = vld [vmem:[%s11463_s2 + $0x28] sm:$0xff]  }
 0x48f   : > { %8845 = vmatprep.mubr.msk.bf16.mxu1 %vm5232_vm4, %v10873_v10  ;;  %v12352_v0 = vshll.u32 %v14337_v47, 16  ;;  %v12372_v57 = vshrl.u32 %v14337_v47, 16 }
 0x490   : > { %v5763_v20 = vsel %vm5648_vm6, %v5759_v21, %v5762_v29  ;;  %v12391_v21 = vld [vmem:[%s11463_s2 + $0x10] sm:$0xff]  }
 0x491   : > { %14338 = vst [vmem:[#allocation41_spill] sm:$0xff] %v12352_v0  ;;  %14339 = vst [vmem:[#allocation50_spill] sm:$0xff] %v12372_v57  ;;  %v6055_v55 = vrot.slane %v12391_v21, 1 }
 0x495   : > { %10031 = vmatmul.mubr.msk.bf16.gmra.mxu0 %vm847_vm3, %v5735_v56  ;;  %v5769_v56 = vrot.slane %v12352_v0, 1  ;;  %v10888_v0 = vld [vmem:[#allocation8 + $0x14c] ss:$16 sps:$4 sm:$0xff]  }
 0x496   : > { %5541 = vmatmul.mubr.bf16.gmra.mxu1 %v10875_v40  ;;  %10034 = vmatprep.mubr.msk.bf16.mxu0 %vm847_vm3, %v5742_v42  ;;  %v5766_v40 = vor.u32 %v12349_v54, %v5762_v29  ;;  %v10881_v42 = vld [vmem:[#allocation8 + $0xe8] ss:$16 sps:$4 sm:$0xff]  }
 0x497   : > { %8846 = vmatprep.mubr.msk.bf16.mxu1 %vm5232_vm4, %v10876_v28 }
 0x498   : > { %v5770_v17 = vsel %vm5648_vm6, %v5766_v40, %v5769_v56  ;;  %v10884_v40 = vld [vmem:[#allocation8 + $0x108] ss:$16 sps:$4 sm:$0xff]  }
 0x49d   : > { %v5325_v10 = vpop.f32.mrf.mxu0  ;;  %10035 = vmatmul.mubr.msk.bf16.gmra.mxu0 %vm847_vm3, %v5749_v63  ;;  %v5773_v63 = vor.u32 %v12372_v57, %v5769_v56 }
 0x49e   : > { %5549 = vmatmul.mubr.bf16.gmra.mxu1 %v10878_v46  ;;  %10038 = vmatprep.mubr.msk.bf16.mxu0 %vm847_vm3, %v5756_v16  ;;  %v12358_v45 = vadd.f32 %v5325_v10, %v4747_v11  ;;  %v12375_v11 = vpop.f32.mrf.mxu1  ;;  %v12387_v10 = vld [vmem:[%s11463_s2 + $0x8] sm:$0xff]  }
 0x49f   : > { %v5327_v9 = vpop.f32.mrf.mxu0  ;;  %8847 = vmatprep.mubr.msk.bf16.mxu1 %vm5232_vm4, %v10879_v5  ;;  %14340 = vst [vmem:[#allocation51_spill] sm:$0xff] %v12375_v11  ;;  %v5777_v5 = vrot.slane %v5775_v35, 1  ;;  %v14166_v29 = vrot.slane %v12387_v10, 1 }
 0x4a0   : > { %v12384_v47 = vpop.f32.mrf.mxu1 }
 0x4a1   : > { %v12368_v28 = vpop.f32.mrf.mxu0  ;;  %14341 = vst [vmem:[#allocation52_spill] sm:$0xff] %v12384_v47  ;;  %v5778_v56 = vsel %vm5648_vm6, %v5773_v63, %v5777_v5  ;;  %v10910_v47 = vld [vmem:[#allocation8 + $0x22c] ss:$16 sps:$4 sm:$0xff]  }
 0x4a2   : > { %v12397_v35 = vpop.f32.mrf.mxu1 }
 0x4a3   : > { %v5330_v43 = vpop.f32.mrf.mxu0  ;;  %14342 = vst [vmem:[#allocation53_spill] sm:$0xff] %v12397_v35 }
 0x4a4   : > { %v12402_v43 = vsel %vm6051_vm7, %v14166_v29, %v6055_v55 }
 0x4a5   : > { %v12378_v46 = vpop.f32.mrf.mxu0  ;;  %10039 = vmatmul.mubr.msk.bf16.gmra.mxu0 %vm847_vm3, %v5763_v20  ;;  %v10885_v20 = vld [vmem:[#allocation8 + $0x12c] ss:$16 sps:$4 sm:$0xff]  }
 0x4a6   : > { %5557 = vmatmul.mubr.bf16.gmra.mxu1 %v10881_v42  ;;  %10042 = vmatprep.mubr.msk.bf16.mxu0 %vm847_vm3, %v5770_v17  ;;  %v12410_v17 = vld [vmem:[%s11463_s2 + $0x18] sm:$0xff]  }
 0x4a7   : > { %v5335_v16 = vpop.f32.mrf.mxu0  ;;  %8848 = vmatprep.mubr.msk.bf16.mxu1 %vm5232_vm4, %v10882_v41  ;;  %v6057_v63 = vrot.slane %v12410_v17, 1  ;;  %v6952_v8 = vrot.slane %v12410_v17, 2  ;;  %v6731_v17 = vsel %vm860_vm2, %v12257_v52, 0 }
 0x4a8   : > { %v12414_v16 = vpop.f32.mrf.mxu1 }
 0x4a9   : > { %v12394_v9 = vpop.f32.mrf.mxu0  ;;  %14344 = vst [vmem:[#allocation55_spill] sm:$0xff] %v12414_v16 }
 0x4aa   : > { %v12425_v57 = vpop.f32.mrf.mxu1 }
 0x4ab   : > { %v5338_v42 = vpop.f32.mrf.mxu0  ;;  %14346 = vst [vmem:[#allocation57_spill] sm:$0xff] %v12425_v57 }
 0x4ac   : > { %v12417_v42 = vld [vmem:[%s11463_s2 + $0x20] sm:$0xff]   ;;  %v12441_v54 = vpop.f32.mrf.mxu1 }
 0x4ad   : > { %v12404_v41 = vpop.f32.mrf.mxu0  ;;  %10043 = vmatmul.mubr.msk.bf16.gmra.mxu0 %vm847_vm3, %v5778_v56  ;;  %v6059_v6 = vrot.slane %v12417_v42, 1  ;;  %v12423_v56 = vsel %vm6051_vm7, %v6055_v55, %v6057_v63  ;;  %v6061_v55 = vrot.slane %v12437_v14, 1  ;;  %14348 = vst [vmem:[#allocation59_spill] sm:$0xff] %v12441_v54 }
 0x4ae   : > { %14343 = vst [vmem:[#allocation54_spill] sm:$0xff] %v12404_v41  ;;  %5565 = vmatmul.mubr.bf16.gmra.mxu1 %v10884_v40  ;;  %10086 = vmatprep.mubr.msk.bf16.mxu0 %vm847_vm3, %v12402_v43  ;;  %v10887_v40 = vld [vmem:[#allocation8 + $0x128] ss:$16 sps:$4 sm:$0xff]   ;;  %v12452_v37 = vpop.f32.mrf.mxu1 }
 0x4af   : > { %v5343_v5 = vpop.f32.mrf.mxu0  ;;  %8849 = vmatprep.mubr.msk.bf16.mxu1 %vm5232_vm4, %v10885_v20  ;;  %v12450_v53 = vsel %vm6051_vm7, %v6059_v6, %v6061_v55  ;;  %14350 = vst [vmem:[#allocation61_spill] sm:$0xff] %v12452_v37 }
 0x4b0   : > { %v12428_v5 = vsel %vm6051_vm7, %v6057_v63, %v6059_v6  ;;  %v12444_v63 = vld [vmem:[%s11463_s2 + $0x30] sm:$0xff]   ;;  %v6065_v6 = vrot.slane %v12464_v4, 1  ;;  %v12468_v51 = vpop.f32.mrf.mxu1 }
 0x4b1   : > { %v12420_v61 = vpop.f32.mrf.mxu0  ;;  %v6063_v1 = vrot.slane %v12444_v63, 1  ;;  %14352 = vst [vmem:[#allocation63_spill] sm:$0xff] %v12468_v51 }
 0x4b2   : > { %14345 = vst [vmem:[#allocation56_spill] sm:$0xff] %v12420_v61  ;;  %v12479_v39 = vpop.f32.mrf.mxu1  ;;  %v10950_v61 = vld [vmem:[%s11463_s2 + $0x98] sm:$0xf] }
 0x4b3   : > { %v5346_v29 = vpop.f32.mrf.mxu0  ;;  %v12477_v27 = vsel %vm6051_vm7, %v6063_v1, %v6065_v6  ;;  %14354 = vst [vmem:[#allocation65_spill] sm:$0xff] %v12479_v39  ;;  %v12608_v16 = vcombine.low %v10950_v61, %v10950_v61 }
 0x4b4   : > { %v12497_v39 = vpop.f32.mrf.mxu1 }
 0x4b5   : > { %v12430_v20 = vpop.f32.mrf.mxu0  ;;  %10087 = vmatmul.mubr.msk.bf16.vlgmr.msra.gmra.mxu0 %vm847_vm3, %v12423_v56  ;;  %14356 = vst [vmem:[#allocation67_spill] sm:$0xff] %v12497_v39  ;;  %v10900_v39 = vld [vmem:[#allocation8 + $0x1cc] ss:$16 sps:$4 sm:$0xff]  }
 0x4b6   : > { %14347 = vst [vmem:[#allocation58_spill] sm:$0xff] %v12430_v20  ;;  %5573 = vmatmul.mubr.bf16.gmra.mxu1 %v10887_v40  ;;  %10090 = vmatprep.mubr.msk.bf16.mxu0 %vm847_vm3, %v12428_v5  ;;  %v10890_v40 = vld [vmem:[#allocation8 + $0x148] ss:$16 sps:$4 sm:$0xff]   ;;  %v12505_v49 = vpop.f32.mrf.mxu1 }
 0x4b7   : > { %v5351_v29 = vpop.f32.mrf.mxu0  ;;  %8850 = vmatprep.mubr.msk.bf16.mxu1 %vm5232_vm4, %v10888_v0  ;;  %14358 = vst [vmem:[#allocation69_spill] sm:$0xff] %v12505_v49  ;;  %v10899_v49 = vld [vmem:[#allocation8 + $0x1a8] ss:$16 sps:$4 sm:$0xff]  }
 0x4b8   : > { %v12455_v29 = vsel %vm6051_vm7, %v6061_v55, %v6063_v1  ;;  %v12471_v55 = vld [vmem:[%s11463_s2 + $0x40] sm:$0xff]  }
 0x4b9   : > { %v12447_v38 = vpop.f32.mrf.mxu0  ;;  %v6067_v37 = vrot.slane %v12471_v55, 1 }
 0x4ba   : > { %14349 = vst [vmem:[#allocation60_spill] sm:$0xff] %v12447_v38  ;;  %v10903_v38 = vld [vmem:[#allocation8 + $0x1ec] ss:$16 sps:$4 sm:$0xff]  }
 0x4bb   : > { %v5354_v24 = vpop.f32.mrf.mxu0 }
 0x4bd   : > { %v12457_v0 = vpop.f32.mrf.mxu0  ;;  %10091 = vmatmul.mubr.msk.bf16.gmra.mxu0 %vm847_vm3, %v12450_v53 }
 0x4be   : > { %14351 = vst [vmem:[#allocation62_spill] sm:$0xff] %v12457_v0  ;;  %5581 = vmatmul.mubr.bf16.gmra.mxu1 %v10890_v40  ;;  %10094 = vmatprep.mubr.msk.bf16.mxu0 %vm847_vm3, %v12455_v29  ;;  %v10893_v40 = vld [vmem:[#allocation8 + $0x168] ss:$16 sps:$4 sm:$0xff]  }
 0x4bf   : > { %v5359_v24 = vpop.f32.mrf.mxu0  ;;  %8851 = vmatprep.mubr.msk.bf16.mxu1 %vm5232_vm4, %v10891_v48  ;;  %v6947_v48 = vld [vmem:[#allocation11 + $0xa] sm:$0x3] }
 0x4c0   : > { %v12482_v24 = vsel %vm6051_vm7, %v6065_v6, %v6067_v37  ;;  %10331 = vmatprep.subr.msk.bf16.mxu0 %vm860_vm2, %v6947_v48  ;;  %v7041_v51 = vsel %vm860_vm2, %v6947_v48, 0  ;;  %v6071_v48 = vrot.slane %v12273_v50, 1 }
 0x4c1   : > { %v12474_v57 = vpop.f32.mrf.mxu0  ;;  %10161 = vmatpush3.bf16.msra.mxu0 %v7041_v51 }
 0x4c2   : > { %14353 = vst [vmem:[#allocation64_spill] sm:$0xff] %v12474_v57  ;;  %v10896_v57 = vld [vmem:[#allocation8 + $0x188] ss:$16 sps:$4 sm:$0xff]  }
 0x4c3   : > { %v5362_v12 = vpop.f32.mrf.mxu0 }
 0x4c4   : > { %v12493_v12 = vld [vmem:[%s11463_s2 + $0x48] sm:$0xff]  }
 0x4c5   : > { %v12486_v0 = vpop.f32.mrf.mxu0  ;;  %10095 = vmatmul.mubr.msk.bf16.gmra.mxu0 %vm847_vm3, %v12477_v27  ;;  %v6069_v1 = vrot.slane %v12493_v12, 1 }
 0x4c6   : > { %14355 = vst [vmem:[#allocation66_spill] sm:$0xff] %v12486_v0  ;;  %5589 = vmatmul.mubr.bf16.gmra.mxu1 %v10893_v40  ;;  %10098 = vmatprep.mubr.msk.bf16.mxu0 %vm847_vm3, %v12482_v24 }
 0x4c7   : > { %v5367_v6 = vpop.f32.mrf.mxu0  ;;  %8852 = vmatprep.mubr.msk.bf16.mxu1 %vm5232_vm4, %v10894_v25  ;;  %v12503_v40 = vsel %vm6051_vm7, %v6067_v37, %v6069_v1  ;;  %v12508_v22 = vsel %vm6051_vm7, %v6069_v1, %v6071_v48  ;;  %v6073_v25 = vrot.slane %v12293_v3, 1  ;;  %v12518_v37 = vpop.f32.mrf.mxu1 }
 0x4c8   : > { %14360 = vst [vmem:[#allocation71_spill] sm:$0xff] %v12518_v37 }
 0x4c9   : > { %v12500_v0 = vpop.f32.mrf.mxu0 }
 0x4ca   : > { %14357 = vst [vmem:[#allocation68_spill] sm:$0xff] %v12500_v0  ;;  %v12526_v0 = vpop.f32.mrf.mxu1 }
 0x4cb   : > { %v5370_v54 = vpop.f32.mrf.mxu0  ;;  %14362 = vst [vmem:[#allocation73_spill] sm:$0xff] %v12526_v0 }
 0x4cc   : > { %v6075_v54 = vrot.slane %v12300_v19, 1  ;;  %v12542_v0 = vpop.f32.mrf.mxu1 }
 0x4cd   : > { %v12510_v6 = vpop.f32.mrf.mxu0  ;;  %10099 = vmatmul.mubr.msk.bf16.gmra.mxu0 %vm847_vm3, %v12503_v40  ;;  %14364 = vst [vmem:[#allocation75_spill] sm:$0xff] %v12542_v0  ;;  %v12565_v0 = vld [vmem:[%s11463_s2 + $0x78] sm:$0xff]  }
 0x4ce   : > { %14359 = vst [vmem:[#allocation70_spill] sm:$0xff] %v12510_v6  ;;  %5597 = vmatmul.mubr.bf16.gmra.mxu1 %v10896_v57  ;;  %10102 = vmatprep.mubr.msk.bf16.mxu0 %vm847_vm3, %v12508_v22  ;;  %v12524_v6 = vsel %vm6051_vm7, %v6071_v48, %v6073_v25  ;;  %v12529_v26 = vsel %vm6051_vm7, %v6073_v25, %v6075_v54  ;;  %v12545_v25 = vld [vmem:[%s11463_s2 + $0x70] sm:$0xff]   ;;  %v12553_v11 = vpop.f32.mrf.mxu1 }
 0x4cf   : > { %v5375_v51 = vpop.f32.mrf.mxu0  ;;  %8853 = vmatprep.mubr.msk.bf16.mxu1 %vm5232_vm4, %v10897_v13  ;;  %v12538_v13 = vld [vmem:[%s11463_s2 + $0x68] sm:$0xff]   ;;  %14366 = vst [vmem:[#allocation77_spill] sm:$0xff] %v12553_v11 }
 0x4d0   : > { %v6077_v48 = vrot.slane %v12538_v13, 1  ;;  %v12569_v11 = vpop.f32.mrf.mxu1 }
 0x4d1   : > { %v12521_v1 = vpop.f32.mrf.mxu0  ;;  %14368 = vst [vmem:[#allocation79_spill] sm:$0xff] %v12569_v11 }
 0x4d2   : > { %14361 = vst [vmem:[#allocation72_spill] sm:$0xff] %v12521_v1  ;;  %v12551_v37 = vsel %vm6051_vm7, %v6075_v54, %v6077_v48  ;;  %v6081_v54 = vrot.slane %v12565_v0, 1  ;;  %v12580_v44 = vpop.f32.mrf.mxu1 }
 0x4d3   : > { %v5378_v57 = vpop.f32.mrf.mxu0  ;;  %14370 = vst [vmem:[#allocation81_spill] sm:$0xff] %v12580_v44 }
 0x4d4   : > { %v12598_v44 = vpop.f32.mrf.mxu1 }
 0x4d5   : > { %v12531_v51 = vpop.f32.mrf.mxu0  ;;  %10103 = vmatmul.mubr.msk.bf16.gmra.mxu0 %vm847_vm3, %v12524_v6  ;;  %14373 = vst [vmem:[#allocation84_spill] sm:$0xff] %v12598_v44 }
 0x4d6   : > { %14363 = vst [vmem:[#allocation74_spill] sm:$0xff] %v12531_v51  ;;  %5605 = vmatmul.mubr.bf16.gmra.mxu1 %v10899_v49  ;;  %10106 = vmatprep.mubr.msk.bf16.mxu0 %vm847_vm3, %v12529_v26  ;;  %v6079_v51 = vrot.slane %v12545_v25, 1  ;;  %v10902_v49 = vld [vmem:[#allocation8 + $0x1c8] ss:$16 sps:$4 sm:$0xff]  }
 0x4d7   : > { %v5383_v57 = vpop.f32.mrf.mxu0  ;;  %8854 = vmatprep.mubr.msk.bf16.mxu1 %vm5232_vm4, %v10900_v39 }
 0x4d8   : > { %v12556_v57 = vsel %vm6051_vm7, %v6077_v48, %v6079_v51  ;;  %v12572_v48 = vld [vmem:[%s11463_s2 + $0x80] sm:$0xff]   ;;  %v12578_v20 = vsel %vm6051_vm7, %v6079_v51, %v6081_v54 }
 0x4d9   : > { %v12548_v1 = vpop.f32.mrf.mxu0 }
 0x4da   : > { %14365 = vst [vmem:[#allocation76_spill] sm:$0xff] %v12548_v1 }
 0x4db   : > { %v5386_v35 = vpop.f32.mrf.mxu0 }
 0x4dd   : > { %v12558_v39 = vpop.f32.mrf.mxu0  ;;  %10107 = vmatmul.mubr.msk.bf16.gmra.mxu0 %vm847_vm3, %v12551_v37 }
 0x4de   : > { %14367 = vst [vmem:[#allocation78_spill] sm:$0xff] %v12558_v39  ;;  %5613 = vmatmul.mubr.bf16.gmra.mxu1 %v10902_v49  ;;  %10110 = vmatprep.mubr.msk.bf16.mxu0 %vm847_vm3, %v12556_v57  ;;  %v6083_v39 = vrot.slane %v12572_v48, 1  ;;  %v10905_v49 = vld [vmem:[#allocation8 + $0x1e8] ss:$16 sps:$4 sm:$0xff]  }
 0x4df   : > { %v5391_v35 = vpop.f32.mrf.mxu0  ;;  %8855 = vmatprep.mubr.msk.bf16.mxu1 %vm5232_vm4, %v10903_v38 }
 0x4e0   : > { %v12583_v35 = vsel %vm6051_vm7, %v6081_v54, %v6083_v39  ;;  %v14374_v54 = vld [vmem:[#allocation22_spill] sm:$0xff] }
 0x4e1   : > { %v12575_v1 = vpop.f32.mrf.mxu0  ;;  %v6362_v11 = vrot.slane %v14374_v54, 1 }
 0x4e2   : > { %14369 = vst [vmem:[#allocation80_spill] sm:$0xff] %v12575_v1  ;;  %v12592_v1 = vld [vmem:[%s11463_s2 + $0x88] sm:$0xff]  }
 0x4e3   : > { %v5394_v2 = vpop.f32.mrf.mxu0 }
 0x4e4   : > { %v12595_v2 = vrot.slane %v12592_v1, 1 }
 0x4e5   : > { %v12585_v38 = vpop.f32.mrf.mxu0  ;;  %10111 = vmatmul.mubr.msk.bf16.gmra.mxu0 %vm847_vm3, %v12578_v20 }
 0x4e6   : > { %14371 = vst [vmem:[#allocation82_spill] sm:$0xff] %v12585_v38  ;;  %5621 = vmatmul.mubr.bf16.gmra.mxu1 %v10905_v49  ;;  %10114 = vmatprep.mubr.msk.bf16.mxu0 %vm847_vm3, %v12583_v35  ;;  %14372 = vst [vmem:[#allocation83_spill] sm:$0xff] %v12595_v2  ;;  %v12605_v49 = vsel %vm6051_vm7, %v6083_v39, %v12595_v2  ;;  %v6364_v39 = vrot.slane %v12608_v16, 1 }
 0x4e7   : > { %v5399_v51 = vpop.f32.mrf.mxu0  ;;  %8856 = vmatprep.mubr.msk.bf16.mxu1 %vm5232_vm4, %v10906_v58  ;;  %v6363_v58 = vsel %vm6051_vm7, %v12595_v2, %v6362_v11 }
 0x4e8   : > { %v12610_v51 = vpop.f32.mrf.mxu1 }
 0x4e9   : > { %v12601_v38 = vpop.f32.mrf.mxu0  ;;  %14376 = vst [vmem:[#allocation86_spill] sm:$0xff] %v12610_v51  ;;  %v6950_v51 = vrot.slane %v12391_v21, 2 }
 0x4ea   : > { %14375 = vst [vmem:[#allocation85_spill] sm:$0xff] %v12601_v38  ;;  %v12621_v61 = vpop.f32.mrf.mxu1 }
 0x4eb   : > { %v5402_v41 = vpop.f32.mrf.mxu0  ;;  %14378 = vst [vmem:[#allocation88_spill] sm:$0xff] %v12621_v61 }
 0x4ec   : > { %v6949_v41 = vrot.slane %v12387_v10, 2  ;;  %v12629_v2 = vpop.f32.mrf.mxu1 }
 0x4ed   : > { %v12614_v44 = vpop.f32.mrf.mxu0  ;;  %10115 = vmatmul.mubr.msk.bf16.gmra.mxu0 %vm847_vm3, %v12605_v49 }
 0x4ee   : > { %14377 = vst [vmem:[#allocation87_spill] sm:$0xff] %v12614_v44  ;;  %5629 = vmatmul.mubr.bf16.gmra.mxu1 %v10908_v62  ;;  %10118 = vmatprep.mubr.msk.bf16.mxu0 %vm847_vm3, %v6363_v58  ;;  %v6365_v62 = vsel %vm6051_vm7, %v6362_v11, %v6364_v39  ;;  %v12641_v11 = vpop.f32.mrf.mxu1  ;;  %v6954_v39 = vrot.slane %v12417_v42, 2  ;;  %v12660_v42 = vld [vmem:[#allocation11 + $0xc] sm:$0x3] }
 0x4ef   : > { %v5407_v38 = vpop.f32.mrf.mxu0  ;;  %8857 = vmatprep.mubr.msk.bf16.mxu1 %vm5232_vm4, %v10910_v47  ;;  %v14379_v47 = vrot.slane %v12387_v10, 1 }
 0x4f0   : > { %v6951_v38 = vsel %vm6948_vm8, %v6949_v41, %v6950_v51 }
 0x4f1   : > { %v12626_v44 = vpop.f32.mrf.mxu0  ;;  %v6054_v61 = vsel %vm6051_vm7, %v6052_v30, %v14379_v47  ;;  %v12647_v30 = vsel %vm6948_vm8, %v6950_v51, %v6952_v8  ;;  %v6956_v51 = vrot.slane %v12437_v14, 2 }
 0x4f3   : > { %v5410_v58 = vpop.f32.mrf.mxu0 }
 0x4f4   : > { %v12649_v58 = vpop.f32.mrf.mxu1 }
 0x4f5   : > { %v12635_v34 = vpop.f32.mrf.mxu0  ;;  %10119 = vmatmul.mubr.msk.bf16.gmra.mxu0 %vm847_vm3, %v6365_v62 }
 0x4f6   : > { %5637 = vmatmul.mubr.bf16.gmra.mxu1 %v10912_v36  ;;  %10162 = vmatprep.mubr.msk.bf16.mxu0 %vm847_vm3, %v6951_v38  ;;  %v12652_v36 = vsel %vm6948_vm8, %v6952_v8, %v6954_v39  ;;  %v12669_v52 = vpop.f32.mrf.mxu1  ;;  %v6958_v38 = vrot.slane %v12444_v63, 2 }
 0x4f7   : > { %v5415_v21 = vpop.f32.mrf.mxu0  ;;  %10048 = vmatprep.mubr.msk.bf16.mxu1 %vm847_vm3, %v6054_v61 }
 0x4f8   : > { %v12679_v21 = vpop.f32.mrf.mxu1  ;;  %v12682_v14 = vsel %vm6948_vm8, %v6956_v51, %v6958_v38 }
 0x4f9   : > { %v12644_v41 = vpop.f32.mrf.mxu0  ;;  %14380 = vst [vmem:[#allocation89_spill] sm:$0xff] %v12679_v21 }
 0x4fb   : > { %v5418_v10 = vpop.f32.mrf.mxu0 }
 0x4fd   : > { %v12656_v62 = vpop.f32.mrf.mxu0  ;;  %10163 = vmatmul.mubr.msk.bf16.vlgmr.msra.gmra.mxu0 %vm847_vm3, %v12647_v30 }
 0x4fe   : > { %10049 = vmatmul.mubr.msk.bf16.vlgmr.msra.gmra.mxu1 %vm847_vm3, %v12402_v43  ;;  %10166 = vmatprep.mubr.msk.bf16.mxu0 %vm847_vm3, %v12652_v36  ;;  %v12677_v43 = vsel %vm6948_vm8, %v6954_v39, %v6956_v51  ;;  %v12695_v39 = vpop.f32.mrf.mxu1 }
 0x4ff   : > { %v5423_v61 = vpop.f32.mrf.mxu0  ;;  %10123 = vmatpush3.bf16.msra.mxu1 %v6731_v17  ;;  %10052 = vmatprep.mubr.msk.bf16.mxu1 %vm847_vm3, %v12423_v56  ;;  %v6960_v56 = vrot.slane %v12464_v4, 2  ;;  %v6962_v17 = vrot.slane %v12471_v55, 2  ;;  %v7486_v4 = vld [vmem:[#allocation11 + $0xe] sm:$0x3]  ;;  %v6964_v55 = vrot.slane %v12493_v12, 2 }
 0x500   : > { %10332 = vmatprep.subr.msk.bf16.mxu1 %vm860_vm2, %v12660_v42  ;;  %10333 = vmatprep.subr.msk.bf16.mxu0 %vm860_vm2, %v7486_v4 }
 0x501   : > { %v12674_v47 = vpop.f32.mrf.mxu0  ;;  %v12701_v61 = vsel %vm6948_vm8, %v6958_v38, %v6960_v56  ;;  %v12706_v21 = vsel %vm6948_vm8, %v6960_v56, %v6962_v17 }
 0x502   : > { %14382 = vst [vmem:[#allocation91_spill] sm:$0xff] %v12706_v21 }
 0x503   : > { %v5426_v8 = vpop.f32.mrf.mxu0 }
 0x505   : > { %v12684_v10 = vpop.f32.mrf.mxu0  ;;  %10167 = vmatmul.mubr.msk.bf16.gmra.mxu0 %vm847_vm3, %v12677_v43 }
 0x506   : > { %10053 = vmatmul.mubr.msk.bf16.gmra.mxu1 %vm847_vm3, %v12428_v5  ;;  %10170 = vmatprep.mubr.msk.bf16.mxu0 %vm847_vm3, %v12682_v14  ;;  %v12703_v5 = vpop.f32.mrf.mxu1 }
 0x507   : > { %v5431_v63 = vpop.f32.mrf.mxu0  ;;  %10056 = vmatprep.mubr.msk.bf16.mxu1 %vm847_vm3, %v12450_v53  ;;  %14381 = vst [vmem:[#allocation90_spill] sm:$0xff] %v12703_v5  ;;  %v7628_v53 = vsel %vm860_vm2, %v7486_v4, 0  ;;  %v12727_v5 = vsel %vm6948_vm8, %v6962_v17, %v6964_v55 }
 0x508   : > { %v12721_v56 = vpop.f32.mrf.mxu1  ;;  %10237 = vmatpush3.bf16.msra.mxu0 %v7628_v53  ;;  %v6970_v53 = vrot.slane %v12300_v19, 2  ;;  %v6972_v19 = vrot.slane %v12538_v13, 2 }
 0x509   : > { %v12698_v51 = vpop.f32.mrf.mxu0  ;;  %14384 = vst [vmem:[#allocation93_spill] sm:$0xff] %v12721_v56 }
 0x50b   : > { %v5434_v8 = vpop.f32.mrf.mxu0 }
 0x50c   : > { %v6966_v8 = vrot.slane %v12273_v50, 2  ;;  %v6968_v50 = vrot.slane %v12293_v3, 2 }
 0x50d   : > { %v12710_v63 = vpop.f32.mrf.mxu0  ;;  %10171 = vmatmul.mubr.msk.bf16.gmra.mxu0 %vm847_vm3, %v12701_v61 }
 0x50e   : > { %14383 = vst [vmem:[#allocation92_spill] sm:$0xff] %v12710_v63  ;;  %10057 = vmatmul.mubr.msk.bf16.gmra.mxu1 %vm847_vm3, %v12455_v29  ;;  %10174 = vmatprep.mubr.msk.bf16.mxu0 %vm847_vm3, %v12706_v21  ;;  %v12729_v63 = vpop.f32.mrf.mxu1  ;;  %v12732_v21 = vsel %vm6948_vm8, %v6964_v55, %v6966_v8 }
 0x50f   : > { %v5439_v38 = vpop.f32.mrf.mxu0  ;;  %10060 = vmatprep.mubr.msk.bf16.mxu1 %vm847_vm3, %v12477_v27  ;;  %14386 = vst [vmem:[#allocation95_spill] sm:$0xff] %v12729_v63  ;;  %14387 = vst [vmem:[#allocation96_spill] sm:$0xff] %v12732_v21  ;;  %v12756_v63 = vsel %vm6948_vm8, %v6968_v50, %v6970_v53 }
 0x510   : > { %v12745_v17 = vpop.f32.mrf.mxu1  ;;  %v12751_v38 = vsel %vm6948_vm8, %v6966_v8, %v6968_v50  ;;  %14393 = vst [vmem:[#allocation102_spill] sm:$0xff] %v12756_v63  ;;  %v6974_v50 = vrot.slane %v12545_v25, 2  ;;  %v6978_v25 = vrot.slane %v12572_v48, 2  ;;  %v12806_v48 = vrot.slane %v14374_v54, 2 }
 0x511   : > { %v12724_v4 = vpop.f32.mrf.mxu0  ;;  %14389 = vst [vmem:[#allocation98_spill] sm:$0xff] %v12745_v17  ;;  %14391 = vst [vmem:[#allocation100_spill] sm:$0xff] %v12751_v38 }
 0x512   : > { %14385 = vst [vmem:[#allocation94_spill] sm:$0xff] %v12724_v4  ;;  %14402 = vst [vmem:[#allocation111_spill] sm:$0xff] %v12806_v48 }
 0x513   : > { %v5442_v29 = vpop.f32.mrf.mxu0 }
 0x515   : > { %v12734_v12 = vpop.f32.mrf.mxu0  ;;  %10175 = vmatmul.mubr.msk.bf16.gmra.mxu0 %vm847_vm3, %v12727_v5 }
 0x516   : > { %14388 = vst [vmem:[#allocation97_spill] sm:$0xff] %v12734_v12  ;;  %10061 = vmatmul.mubr.msk.bf16.gmra.mxu1 %vm847_vm3, %v12482_v24  ;;  %10178 = vmatprep.mubr.msk.bf16.mxu0 %vm847_vm3, %v12732_v21  ;;  %v12753_v24 = vpop.f32.mrf.mxu1 }
 0x517   : > { %v5447_v27 = vpop.f32.mrf.mxu0  ;;  %10064 = vmatprep.mubr.msk.bf16.mxu1 %vm847_vm3, %v12503_v40  ;;  %14392 = vst [vmem:[#allocation101_spill] sm:$0xff] %v12753_v24  ;;  %v12773_v24 = vsel %vm6948_vm8, %v6970_v53, %v6972_v19 }
 0x518   : > { %v4878_v8 = vpop.f32.mrf.mxu1  ;;  %14396 = vst [vmem:[#allocation105_spill] sm:$0xff] %v12773_v24 }
 0x519   : > { %v12748_v55 = vpop.f32.mrf.mxu0 }
 0x51a   : > { %14390 = vst [vmem:[#allocation99_spill] sm:$0xff] %v12748_v55 }
 0x51b   : > { %v5450_v29 = vpop.f32.mrf.mxu0 }
 0x51d   : > { %v12758_v3 = vpop.f32.mrf.mxu0  ;;  %10179 = vmatmul.mubr.msk.bf16.gmra.mxu0 %vm847_vm3, %v12751_v38 }
 0x51e   : > { %14394 = vst [vmem:[#allocation103_spill] sm:$0xff] %v12758_v3  ;;  %10065 = vmatmul.mubr.msk.bf16.gmra.mxu1 %vm847_vm3, %v12508_v22  ;;  %10182 = vmatprep.mubr.msk.bf16.mxu0 %vm847_vm3, %v12756_v63  ;;  %v12776_v22 = vsel %vm6948_vm8, %v6972_v19, %v6974_v50 }
 0x51f   : > { %v5455_v40 = vpop.f32.mrf.mxu0  ;;  %10068 = vmatprep.mubr.msk.bf16.mxu1 %vm847_vm3, %v12524_v6  ;;  %14397 = vst [vmem:[#allocation106_spill] sm:$0xff] %v12776_v22  ;;  %v6976_v6 = vrot.slane %v12565_v0, 2 }
 0x521   : > { %v5456_v27 = vpop.f32.mrf.mxu0  ;;  %v12796_v40 = vsel %vm6948_vm8, %v6976_v6, %v6978_v25 }
 0x522   : > { %v12770_v29 = vadd.f32 %v5456_v27, %v4878_v8  ;;  %14401 = vst [vmem:[#allocation110_spill] sm:$0xff] %v12796_v40 }
 0x523   : > { %v5458_v3 = vpop.f32.mrf.mxu0 }
 0x524   : > { %14395 = vst [vmem:[#allocation104_spill] sm:$0xff] %v12770_v29  ;;  %v12793_v3 = vsel %vm6948_vm8, %v6974_v50, %v6976_v6  ;;  %v5329_v6 = vadd.f32 %v12368_v28, %v12364_v31  ;;  %v7492_v31 = vrot.slane %v12177_v33, 3  ;;  %v12909_v29 = vld [vmem:[#allocation11 + $0x10] sm:$0x3] }
 0x525   : > { %v12778_v63 = vpop.f32.mrf.mxu0  ;;  %10183 = vmatmul.mubr.msk.bf16.gmra.mxu0 %vm847_vm3, %v12773_v24  ;;  %14400 = vst [vmem:[#allocation109_spill] sm:$0xff] %v12793_v3 }
 0x526   : > { %14398 = vst [vmem:[#allocation107_spill] sm:$0xff] %v12778_v63  ;;  %10069 = vmatmul.mubr.msk.bf16.gmra.mxu1 %vm847_vm3, %v12529_v26  ;;  %10186 = vmatprep.mubr.msk.bf16.mxu0 %vm847_vm3, %v12776_v22 }
 0x527   : > { %v5463_v13 = vpop.f32.mrf.mxu0  ;;  %10072 = vmatprep.mubr.msk.bf16.mxu1 %vm847_vm3, %v12551_v37  ;;  %v6980_v37 = vrot.slane %v12592_v1, 2 }
 0x529   : > { %v12790_v53 = vpop.f32.mrf.mxu0  ;;  %v12820_v1 = vsel %vm6948_vm8, %v6980_v37, %v12806_v48 }
 0x52a   : > { %14399 = vst [vmem:[#allocation108_spill] sm:$0xff] %v12790_v53  ;;  %14405 = vst [vmem:[#allocation114_spill] sm:$0xff] %v12820_v1 }
 0x52b   : > { %v5466_v19 = vpop.f32.mrf.mxu0 }
 0x52d   : > { %v10012_v26 = vpop.f32.mrf.mxu0  ;;  %10187 = vmatmul.mubr.msk.bf16.gmra.mxu0 %vm847_vm3, %v12793_v3  ;;  %v6595_v3 = vrot.slane %v12166_v32, 2 }
 0x52e   : > { %v5502_v0 = vpop.f32.mrf.mxu1  ;;  %10073 = vmatmul.mubr.msk.bf16.gmra.mxu1 %vm847_vm3, %v12556_v57  ;;  %10190 = vmatprep.mubr.msk.bf16.mxu0 %vm847_vm3, %v12796_v40  ;;  %v12816_v40 = vsel %vm6948_vm8, %v6978_v25, %v6980_v37  ;;  %v14407_v25 = vshll.u32 %v14295_v15, 16  ;;  %v6594_v37 = vrot.slane %v12174_v18, 1 }
 0x52f   : > { %v5503_v8 = vadd.f32 %v5502_v0, %v12358_v45  ;;  %v5870_v50 = vpop.f32.mrf.mxu0  ;;  %10076 = vmatprep.mubr.msk.bf16.mxu1 %vm847_vm3, %v12578_v20  ;;  %14404 = vst [vmem:[#allocation113_spill] sm:$0xff] %v12816_v40  ;;  %v7488_v45 = vrot.slane %v12174_v18, 2  ;;  %v7489_v20 = vrot.slane %v12166_v32, 3  ;;  %v6984_v32 = vrot.slane %v12608_v16, 2 }
 0x530   : > { %v5504_v27 = vpop.f32.mrf.mxu1 }
 0x531   : > { %v12813_v13 = vadd.f32 %v5870_v50, %v5503_v8  ;;  %v10013_v57 = vpop.f32.mrf.mxu0  ;;  %v7491_v27 = vrot.slane %v12195_v7, 2  ;;  %v14406_v8 = vshrl.u32 %v14295_v15, 16  ;;  %v6087_v15 = vrot.slane %v12361_v60, 1 }
 0x532   : > { %v5505_v19 = vpop.f32.mrf.mxu1  ;;  %v5337_v60 = vadd.f32 %v12346_v23, %v12394_v9 }
 0x533   : > { %14403 = vst [vmem:[#allocation112_spill] sm:$0xff] %v12813_v13  ;;  %v5506_v0 = vadd.f32 %v5505_v19, %v5329_v6  ;;  %v5873_v53 = vpop.f32.mrf.mxu0  ;;  %v6591_v50 = vrot.slane %v14406_v8, 1  ;;  %v6592_v13 = vrot.slane %v14407_v25, 2  ;;  %v5334_v6 = vadd.f32 %v12329_v59, %v12378_v46 }
 0x534   : > { %v5507_v28 = vpop.f32.mrf.mxu1  ;;  %v7490_v46 = vor.u32 %v7489_v20, %v7488_v45  ;;  %v14411_v20 = vld [vmem:[#allocation83_spill] sm:$0xff] }
 0x535   : > { %v12834_v19 = vadd.f32 %v5873_v53, %v5506_v0  ;;  %v12836_v22 = vpop.f32.mrf.mxu0  ;;  %10191 = vmatmul.mubr.msk.bf16.gmra.mxu0 %vm847_vm3, %v12816_v40  ;;  %v7493_v53 = vor.u32 %v7492_v31, %v7491_v27  ;;  %v6599_v0 = vrot.slane %v12177_v33, 2  ;;  %v6593_v25 = vor.u32 %v6592_v13, %v6591_v50  ;;  %v14412_v13 = vld [vmem:[#allocation37_spill] sm:$0xff]  ;;  %v14413_v50 = vld [vmem:[#allocation26_spill] sm:$0xff] }
 0x536   : > { %v5510_v28 = vpop.f32.mrf.mxu1  ;;  %10077 = vmatmul.mubr.msk.bf16.gmra.mxu1 %vm847_vm3, %v12583_v35  ;;  %10194 = vmatprep.mubr.msk.bf16.mxu0 %vm847_vm3, %v12820_v1  ;;  %v6088_v33 = vsel %vm6051_vm7, %v14411_v20, %v6087_v15  ;;  %v7496_v27 = vrot.slane %v14412_v13, 3  ;;  %v6603_v15 = vrot.slane %v14412_v13, 2  ;;  %v14415_v20 = vld [vmem:[#allocation52_spill] sm:$0xff] }
 0x537   : > { %14408 = vst [vmem:[#allocation115_spill] sm:$0xff] %v12834_v19  ;;  %v5511_v18 = vadd.f32 %v5510_v28, %v5334_v6  ;;  %10080 = vmatprep.mubr.msk.bf16.mxu1 %vm847_vm3, %v12605_v49  ;;  %v5886_v59 = vpop.f32.mrf.mxu0  ;;  %v6596_v19 = vor.u32 %v6595_v3, %v6594_v37  ;;  %v6598_v6 = vrot.slane %v12195_v7, 1  ;;  %v14410_v49 = vld [vmem:[#allocation29_spill] sm:$0xff]  ;;  %v6985_v3 = vsel %vm6948_vm8, %v12806_v48, %v6984_v32  ;;  %v14414_v7 = vld [vmem:[#allocation28_spill] sm:$0xff] }
 0x538   : > { %v5512_v8 = vpop.f32.mrf.mxu1  ;;  %v7495_v1 = vrot.slane %v14410_v49, 2  ;;  %v7494_v9 = vsel %vm7487_vm9, %v7490_v46, %v7493_v53  ;;  %v7499_v37 = vrot.slane %v14413_v50, 2  ;;  %v6602_v40 = vrot.slane %v14410_v49, 1 }
 0x539   : > { %v12851_v35 = vpop.f32.mrf.mxu0  ;;  %v12854_v28 = vadd.f32 %v10012_v26, %v5511_v18  ;;  %v7500_v26 = vrot.slane %v14414_v7, 3  ;;  %v6597_v8 = vsel %vm6590_vm10, %v6593_v25, %v6596_v19  ;;  %v6600_v48 = vor.u32 %v6599_v0, %v6598_v6  ;;  %v14418_v6 = vld [vmem:[#allocation55_spill] sm:$0xff] }
 0x53a   : > { %v5513_v45 = vpop.f32.mrf.mxu1  ;;  %v7497_v25 = vor.u32 %v7496_v27, %v7495_v1  ;;  %v6604_v0 = vor.u32 %v6603_v15, %v6602_v40  ;;  %v6607_v27 = vrot.slane %v14414_v7, 2 }
 0x53b   : > { %14409 = vst [vmem:[#allocation116_spill] sm:$0xff] %v12854_v28  ;;  %v5514_v31 = vadd.f32 %v5513_v45, %v5337_v60  ;;  %v5889_v23 = vpop.f32.mrf.mxu0  ;;  %v14416_v28 = vld [vmem:[#allocation54_spill] sm:$0xff]  ;;  %v7501_v13 = vor.u32 %v7500_v26, %v7499_v37  ;;  %v14422_v26 = vld [vmem:[#allocation27_spill] sm:$0xff] }
 0x53c   : > { %v5515_v18 = vpop.f32.mrf.mxu1  ;;  %v5342_v32 = vadd.f32 %v14416_v28, %v14415_v20  ;;  %v7504_v40 = vrot.slane %v14422_v26, 3  ;;  %v6605_v7 = vsel %vm6590_vm10, %v6600_v48, %v6604_v0 }
 0x53d   : > { %v12870_v63 = vpop.f32.mrf.mxu0  ;;  %10195 = vmatmul.mubr.msk.bf16.gmra.mxu0 %vm847_vm3, %v6985_v3  ;;  %v12873_v46 = vadd.f32 %v10013_v57, %v5514_v31  ;;  %v14419_v18 = vld [vmem:[#allocation56_spill] sm:$0xff]  ;;  %v6601_v57 = vsel %vm6590_vm10, %v6596_v19, %v6600_v48 }
 0x53e   : > { %v5518_v60 = vpop.f32.mrf.mxu1  ;;  %10081 = vmatmul.mubr.msk.bf16.gmra.mxu1 %vm847_vm3, %v6088_v33  ;;  %10238 = vmatprep.mubr.msk.bf16.mxu0 %vm847_vm3, %v7494_v9  ;;  %v5345_v20 = vadd.f32 %v14419_v18, %v14418_v6  ;;  %v6606_v33 = vrot.slane %v14413_v50, 1  ;;  %v7498_v9 = vsel %vm7487_vm9, %v7493_v53, %v7497_v25  ;;  %v7270_v6 = vsel %vm860_vm2, %v12660_v42, 0 }
 0x53f   : > { %14417 = vst [vmem:[#allocation29_spill] sm:$0xff] %v12873_v46  ;;  %v5519_v45 = vadd.f32 %v5518_v60, %v5342_v32  ;;  %10124 = vmatprep.mubr.msk.bf16.mxu1 %vm847_vm3, %v6597_v8  ;;  %v12878_v49 = vpop.f32.mrf.mxu0  ;;  %v14421_v8 = vld [vmem:[#allocation25_spill] sm:$0xff]  ;;  %v14423_v60 = vld [vmem:[#allocation30_spill] sm:$0xff]  ;;  %v6611_v18 = vrot.slane %v14422_v26, 2 }
 0x540   : > { %v5520_v28 = vpop.f32.mrf.mxu1  ;;  %v7503_v37 = vrot.slane %v14421_v8, 2  ;;  %v7507_v19 = vrot.slane %v14423_v60, 2  ;;  %v6610_v53 = vrot.slane %v14421_v8, 1  ;;  %v6608_v42 = vor.u32 %v6607_v27, %v6606_v33 }
 0x541   : > { %v12882_v3 = vadd.f32 %v5886_v59, %v5519_v45  ;;  %v12886_v31 = vpop.f32.mrf.mxu0  ;;  %v7502_v59 = vsel %vm7487_vm9, %v7497_v25, %v7501_v13  ;;  %v14424_v45 = vld [vmem:[#allocation24_spill] sm:$0xff] }
 0x542   : > { %v5521_v1 = vpop.f32.mrf.mxu1  ;;  %v7508_v50 = vrot.slane %v14424_v45, 3  ;;  %v7505_v48 = vor.u32 %v7504_v40, %v7503_v37  ;;  %v6615_v33 = vrot.slane %v14424_v45, 2  ;;  %v14433_v45 = vld [vmem:[#allocation42_spill] sm:$0xff] }
 0x543   : > { %14420 = vst [vmem:[#allocation83_spill] sm:$0xff] %v12882_v3  ;;  %v5522_v15 = vadd.f32 %v5521_v1, %v5345_v20  ;;  %v12892_v32 = vpop.f32.mrf.mxu0  ;;  %v14425_v3 = vld [vmem:[#allocation58_spill] sm:$0xff]  ;;  %v14426_v20 = vld [vmem:[#allocation51_spill] sm:$0xff] }
 0x544   : > { %v5523_v28 = vpop.f32.mrf.mxu1  ;;  %v5350_v1 = vadd.f32 %v14426_v20, %v14425_v3  ;;  %v14429_v20 = vld [vmem:[#allocation53_spill] sm:$0xff] }
 0x545   : > { %v12904_v46 = vadd.f32 %v5889_v23, %v5522_v15  ;;  %v12906_v25 = vpop.f32.mrf.mxu0  ;;  %10239 = vmatmul.mubr.msk.bf16.vlgmr.msra.gmra.mxu0 %vm847_vm3, %v7498_v9  ;;  %v7509_v23 = vor.u32 %v7508_v50, %v7507_v19  ;;  %v6612_v15 = vor.u32 %v6611_v18, %v6610_v53  ;;  %v14428_v9 = vld [vmem:[#allocation60_spill] sm:$0xff]  ;;  %v7506_v19 = vsel %vm7487_vm9, %v7501_v13, %v7505_v48  ;;  %v14431_v50 = vld [vmem:[#allocation31_spill] sm:$0xff] }
 0x546   : > { %v5526_v28 = vpop.f32.mrf.mxu1  ;;  %10125 = vmatmul.mubr.msk.bf16.vlgmr.msra.gmra.mxu1 %vm847_vm3, %v6601_v57  ;;  %10242 = vmatprep.mubr.msk.bf16.mxu0 %vm847_vm3, %v7502_v59  ;;  %v6614_v57 = vrot.slane %v14423_v60, 1  ;;  %v6609_v59 = vsel %vm6590_vm10, %v6604_v0, %v6608_v42  ;;  %v6618_v0 = vrot.slane %v14431_v50, 1 }
 0x547   : > { %14427 = vst [vmem:[#allocation37_spill] sm:$0xff] %v12904_v46  ;;  %v5527_v8 = vadd.f32 %v5526_v28, %v5350_v1  ;;  %10199 = vmatpush3.bf16.msra.mxu1 %v7270_v6  ;;  %10128 = vmatprep.mubr.msk.bf16.mxu1 %vm847_vm3, %v6605_v7  ;;  %v12914_v3 = vpop.f32.mrf.mxu0  ;;  %v5353_v46 = vadd.f32 %v14429_v20, %v14428_v9  ;;  %v7511_v6 = vrot.slane %v14431_v50, 2  ;;  %v14432_v7 = vld [vmem:[#allocation23_spill] sm:$0xff]  ;;  %v7515_v28 = vrot.slane %v14433_v45, 2 }
 0x548   : > { %v5528_v26 = vpop.f32.mrf.mxu1  ;;  %10334 = vmatprep.subr.msk.bf16.mxu1 %vm860_vm2, %v12909_v29  ;;  %v7512_v53 = vrot.slane %v14432_v7, 3  ;;  %v7510_v60 = vsel %vm7487_vm9, %v7505_v48, %v7509_v23  ;;  %v6619_v13 = vrot.slane %v14432_v7, 2  ;;  %v14435_v20 = vld [vmem:[#allocation59_spill] sm:$0xff]  ;;  %v6616_v17 = vor.u32 %v6615_v33, %v6614_v57 }
 0x549   : > { %v12922_v27 = vpop.f32.mrf.mxu0  ;;  %v12925_v37 = vadd.f32 %v12836_v22, %v5527_v8  ;;  %v14434_v26 = vld [vmem:[#allocation32_spill] sm:$0xff]  ;;  %v6613_v8 = vsel %vm6590_vm10, %v6608_v42, %v6612_v15 }
 0x54a   : > { %v5529_v40 = vpop.f32.mrf.mxu1  ;;  %v7516_v9 = vrot.slane %v14434_v26, 3  ;;  %v7513_v42 = vor.u32 %v7512_v53, %v7511_v6  ;;  %v6620_v33 = vor.u32 %v6619_v13, %v6618_v0  ;;  %v6623_v6 = vrot.slane %v14434_v26, 2 }
 0x54b   : > { %14430 = vst [vmem:[#allocation26_spill] sm:$0xff] %v12925_v37  ;;  %v5530_v18 = vadd.f32 %v5529_v40, %v5353_v46  ;;  %v12931_v1 = vpop.f32.mrf.mxu0  ;;  %v14436_v37 = vld [vmem:[#allocation62_spill] sm:$0xff] }
 0x54c   : > { %v5531_v22 = vpop.f32.mrf.mxu1  ;;  %v5358_v24 = vadd.f32 %v14436_v37, %v14435_v20  ;;  %v7517_v37 = vor.u32 %v7516_v9, %v7515_v28  ;;  %v14439_v20 = vld [vmem:[#allocation64_spill] sm:$0xff]  ;;  %v7514_v53 = vsel %vm7487_vm9, %v7509_v23, %v7513_v42  ;;  %v14441_v28 = vld [vmem:[#allocation43_spill] sm:$0xff] }
 0x54d   : > { %v12941_v46 = vpop.f32.mrf.mxu0  ;;  %10243 = vmatmul.mubr.msk.bf16.gmra.mxu0 %vm847_vm3, %v7506_v19  ;;  %v12945_v48 = vadd.f32 %v12851_v35, %v5530_v18  ;;  %v14438_v22 = vld [vmem:[#allocation63_spill] sm:$0xff]  ;;  %v6617_v18 = vsel %vm6590_vm10, %v6612_v15, %v6616_v17  ;;  %v7519_v9 = vrot.slane %v14441_v28, 2  ;;  %v6626_v26 = vrot.slane %v14441_v28, 1 }
 0x54e   : > { %v5534_v40 = vpop.f32.mrf.mxu1  ;;  %10129 = vmatmul.mubr.msk.bf16.gmra.mxu1 %vm847_vm3, %v6609_v59  ;;  %10246 = vmatprep.mubr.msk.bf16.mxu0 %vm847_vm3, %v7510_v60  ;;  %v5361_v19 = vadd.f32 %v14439_v20, %v14438_v22  ;;  %v6622_v59 = vrot.slane %v14433_v45, 1  ;;  %v6621_v20 = vsel %vm6590_vm10, %v6616_v17, %v6620_v33 }
 0x54f   : > { %14437 = vst [vmem:[#allocation28_spill] sm:$0xff] %v12945_v48  ;;  %v5535_v50 = vadd.f32 %v5534_v40, %v5358_v24  ;;  %10132 = vmatprep.mubr.msk.bf16.mxu1 %vm847_vm3, %v6613_v8  ;;  %v12950_v7 = vpop.f32.mrf.mxu0  ;;  %v14442_v8 = vld [vmem:[#allocation33_spill] sm:$0xff] }
 0x550   : > { %v5536_v57 = vpop.f32.mrf.mxu1  ;;  %v7520_v0 = vrot.slane %v14442_v8, 3  ;;  %v6627_v23 = vrot.slane %v14442_v8, 2  ;;  %v14446_v48 = vld [vmem:[#allocation57_spill] sm:$0xff] }
 0x551   : > { %v12955_v35 = vadd.f32 %v12878_v49, %v5535_v50  ;;  %v12959_v60 = vpop.f32.mrf.mxu0  ;;  %v7518_v49 = vsel %vm7487_vm9, %v7513_v42, %v7517_v37  ;;  %v14443_v50 = vld [vmem:[#allocation44_spill] sm:$0xff]  ;;  %v14444_v57 = vld [vmem:[#allocation34_spill] sm:$0xff] }
 0x552   : > { %v5537_v24 = vpop.f32.mrf.mxu1  ;;  %v7523_v15 = vrot.slane %v14443_v50, 2  ;;  %v7524_v45 = vrot.slane %v14444_v57, 3  ;;  %v7521_v17 = vor.u32 %v7520_v0, %v7519_v9  ;;  %v6631_v21 = vrot.slane %v14444_v57, 2  ;;  %v14451_v0 = vld [vmem:[#allocation45_spill] sm:$0xff]  ;;  %v14453_v57 = vld [vmem:[#allocation46_spill] sm:$0xff] }
 0x553   : > { %14440 = vst [vmem:[#allocation52_spill] sm:$0xff] %v12955_v35  ;;  %v5538_v13 = vadd.f32 %v5537_v24, %v5361_v19  ;;  %v12965_v40 = vpop.f32.mrf.mxu0  ;;  %v14445_v35 = vld [vmem:[#allocation66_spill] sm:$0xff] }
 0x554   : > { %v5539_v22 = vpop.f32.mrf.mxu1  ;;  %v5366_v55 = vadd.f32 %v14446_v48, %v14445_v35  ;;  %v7525_v48 = vor.u32 %v7524_v45, %v7523_v15  ;;  %v7522_v9 = vsel %vm7487_vm9, %v7517_v37, %v7521_v17  ;;  %v14452_v15 = vld [vmem:[#allocation35_spill] sm:$0xff] }
 0x555   : > { %v12976_v19 = vadd.f32 %v12892_v32, %v5538_v13  ;;  %v12978_v24 = vpop.f32.mrf.mxu0  ;;  %10247 = vmatmul.mubr.msk.bf16.gmra.mxu0 %vm847_vm3, %v7514_v53  ;;  %v6624_v22 = vor.u32 %v6623_v6, %v6622_v59  ;;  %v6628_v32 = vor.u32 %v6627_v23, %v6626_v26  ;;  %v14448_v13 = vld [vmem:[#allocation68_spill] sm:$0xff]  ;;  %v6630_v53 = vrot.slane %v14443_v50, 1 }
 0x556   : > { %v5542_v42 = vpop.f32.mrf.mxu1  ;;  %10133 = vmatmul.mubr.msk.bf16.gmra.mxu1 %vm847_vm3, %v6617_v18  ;;  %10250 = vmatprep.mubr.msk.bf16.mxu0 %vm847_vm3, %v7518_v49  ;;  %v7527_v49 = vrot.slane %v14451_v0, 2  ;;  %v7528_v45 = vrot.slane %v14452_v15, 3  ;;  %v7526_v50 = vsel %vm7487_vm9, %v7521_v17, %v7525_v48  ;;  %v7531_v23 = vrot.slane %v14453_v57, 2 }
 0x557   : > { %14447 = vst [vmem:[#allocation54_spill] sm:$0xff] %v12976_v19  ;;  %v5543_v28 = vadd.f32 %v5542_v42, %v5366_v55  ;;  %10136 = vmatprep.mubr.msk.bf16.mxu1 %vm847_vm3, %v6621_v20  ;;  %v12984_v8 = vpop.f32.mrf.mxu0  ;;  %v14449_v19 = vld [vmem:[#allocation61_spill] sm:$0xff]  ;;  %v6625_v6 = vsel %vm6590_vm10, %v6620_v33, %v6624_v22  ;;  %v6634_v33 = vrot.slane %v14451_v0, 1  ;;  %v6635_v37 = vrot.slane %v14452_v15, 2 }
 0x558   : > { %v5544_v35 = vpop.f32.mrf.mxu1  ;;  %v5369_v38 = vadd.f32 %v14449_v19, %v14448_v13  ;;  %v14454_v19 = vld [vmem:[#allocation36_spill] sm:$0xff]  ;;  %v14456_v13 = vld [vmem:[#allocation70_spill] sm:$0xff]  ;;  %v6632_v12 = vor.u32 %v6631_v21, %v6630_v53 }
 0x559   : > { %v12990_v18 = vpop.f32.mrf.mxu0  ;;  %v12993_v59 = vadd.f32 %v12870_v63, %v5543_v28  ;;  %v7532_v42 = vrot.slane %v14454_v19, 3  ;;  %v6629_v28 = vsel %vm6590_vm10, %v6624_v22, %v6628_v32  ;;  %v14455_v35 = vld [vmem:[#allocation67_spill] sm:$0xff]  ;;  %v7529_v22 = vor.u32 %v7528_v45, %v7527_v49 }
 0x55a   : > { %v5545_v55 = vpop.f32.mrf.mxu1  ;;  %v6636_v53 = vor.u32 %v6635_v37, %v6634_v33  ;;  %v6639_v49 = vrot.slane %v14454_v19, 2 }
 0x55b   : > { %14450 = vst [vmem:[#allocation55_spill] sm:$0xff] %v12993_v59  ;;  %v5546_v20 = vadd.f32 %v5545_v55, %v5369_v38  ;;  %v12999_v26 = vpop.f32.mrf.mxu0  ;;  %v5374_v59 = vadd.f32 %v14456_v13, %v14455_v35  ;;  %v14458_v35 = vld [vmem:[#allocation71_spill] sm:$0xff]  ;;  %v14459_v13 = vld [vmem:[#allocation72_spill] sm:$0xff]  ;;  %v7530_v45 = vsel %vm7487_vm9, %v7525_v48, %v7529_v22 }
 0x55c   : > { %v5547_v63 = vpop.f32.mrf.mxu1 }
 0x55d   : > { %v13009_v38 = vpop.f32.mrf.mxu0  ;;  %10251 = vmatmul.mubr.msk.bf16.gmra.mxu0 %vm847_vm3, %v7522_v9  ;;  %v13013_v17 = vadd.f32 %v12886_v31, %v5546_v20  ;;  %v7533_v63 = vor.u32 %v7532_v42, %v7531_v23  ;;  %v5377_v9 = vadd.f32 %v14459_v13, %v14458_v35  ;;  %v6633_v20 = vsel %vm6590_vm10, %v6628_v32, %v6632_v12  ;;  %v14461_v23 = vld [vmem:[#allocation47_spill] sm:$0xff] }
 0x55e   : > { %v5550_v55 = vpop.f32.mrf.mxu1  ;;  %10137 = vmatmul.mubr.msk.bf16.gmra.mxu1 %vm847_vm3, %v6625_v6  ;;  %10254 = vmatprep.mubr.msk.bf16.mxu0 %vm847_vm3, %v7526_v50  ;;  %v6638_v6 = vrot.slane %v14453_v57, 1  ;;  %v7535_v42 = vrot.slane %v14461_v23, 2  ;;  %v6637_v13 = vsel %vm6590_vm10, %v6632_v12, %v6636_v53  ;;  %v6642_v19 = vrot.slane %v14461_v23, 1 }
 0x55f   : > { %14457 = vst [vmem:[#allocation56_spill] sm:$0xff] %v13013_v17  ;;  %v5551_v0 = vadd.f32 %v5550_v55, %v5374_v59  ;;  %10140 = vmatprep.mubr.msk.bf16.mxu1 %vm847_vm3, %v6629_v28  ;;  %v13018_v15 = vpop.f32.mrf.mxu0  ;;  %v14462_v28 = vld [vmem:[#allocation38_spill] sm:$0xff]  ;;  %v14466_v17 = vld [vmem:[#allocation65_spill] sm:$0xff] }
 0x560   : > { %v5552_v21 = vpop.f32.mrf.mxu1  ;;  %v7536_v33 = vrot.slane %v14462_v28, 3  ;;  %v6643_v48 = vrot.slane %v14462_v28, 2 }
 0x561   : > { %v13023_v31 = vadd.f32 %v12914_v3, %v5551_v0  ;;  %v13027_v50 = vpop.f32.mrf.mxu0  ;;  %v7534_v3 = vsel %vm7487_vm9, %v7529_v22, %v7533_v63  ;;  %v14463_v0 = vld [vmem:[#allocation48_spill] sm:$0xff]  ;;  %v14464_v21 = vld [vmem:[#allocation39_spill] sm:$0xff] }
 0x562   : > { %v5553_v59 = vpop.f32.mrf.mxu1  ;;  %v7539_v32 = vrot.slane %v14463_v0, 2  ;;  %v7540_v57 = vrot.slane %v14464_v21, 3  ;;  %v7537_v12 = vor.u32 %v7536_v33, %v7535_v42  ;;  %v6647_v56 = vrot.slane %v14464_v21, 2  ;;  %v14473_v33 = vld [vmem:[#allocation49_spill] sm:$0xff]  ;;  %v14475_v21 = vld [vmem:[#allocation50_spill] sm:$0xff] }
 0x563   : > { %14460 = vst [vmem:[#allocation25_spill] sm:$0xff] %v13023_v31  ;;  %v5554_v37 = vadd.f32 %v5553_v59, %v5377_v9  ;;  %v13033_v55 = vpop.f32.mrf.mxu0  ;;  %v14465_v31 = vld [vmem:[#allocation74_spill] sm:$0xff] }
 0x564   : > { %v5555_v35 = vpop.f32.mrf.mxu1  ;;  %v5382_v4 = vadd.f32 %v14466_v17, %v14465_v31  ;;  %v7541_v17 = vor.u32 %v7540_v57, %v7539_v32  ;;  %v7538_v42 = vsel %vm7487_vm9, %v7533_v63, %v7537_v12  ;;  %v14474_v32 = vld [vmem:[#allocation40_spill] sm:$0xff] }
 0x565   : > { %v13044_v9 = vadd.f32 %v12931_v1, %v5554_v37  ;;  %v13046_v59 = vpop.f32.mrf.mxu0  ;;  %10255 = vmatmul.mubr.msk.bf16.gmra.mxu0 %vm847_vm3, %v7530_v45  ;;  %v6640_v35 = vor.u32 %v6639_v49, %v6638_v6  ;;  %v6644_v1 = vor.u32 %v6643_v48, %v6642_v19  ;;  %v14469_v37 = vld [vmem:[#allocation76_spill] sm:$0xff]  ;;  %v6646_v45 = vrot.slane %v14463_v0, 1 }
 0x566   : > { %14468 = vst [vmem:[#allocation30_spill] sm:$0xff] %v13046_v59  ;;  %v5558_v22 = vpop.f32.mrf.mxu1  ;;  %10141 = vmatmul.mubr.msk.bf16.gmra.mxu1 %vm847_vm3, %v6633_v20  ;;  %10258 = vmatprep.mubr.msk.bf16.mxu0 %vm847_vm3, %v7534_v3  ;;  %v7543_v3 = vrot.slane %v14473_v33, 2  ;;  %v7544_v57 = vrot.slane %v14474_v32, 3  ;;  %v7542_v0 = vsel %vm7487_vm9, %v7537_v12, %v7541_v17  ;;  %v7547_v48 = vrot.slane %v14475_v21, 2 }
 0x567   : > { %14467 = vst [vmem:[#allocation27_spill] sm:$0xff] %v13044_v9  ;;  %v5559_v23 = vadd.f32 %v5558_v22, %v5382_v4  ;;  %10144 = vmatprep.mubr.msk.bf16.mxu1 %vm847_vm3, %v6637_v13  ;;  %v13052_v28 = vpop.f32.mrf.mxu0  ;;  %v14470_v9 = vld [vmem:[#allocation69_spill] sm:$0xff]  ;;  %v6641_v49 = vsel %vm6590_vm10, %v6636_v53, %v6640_v35  ;;  %v6650_v53 = vrot.slane %v14473_v33, 1  ;;  %v6651_v63 = vrot.slane %v14474_v32, 2 }
 0x568   : > { %v5560_v31 = vpop.f32.mrf.mxu1  ;;  %v5385_v59 = vadd.f32 %v14470_v9, %v14469_v37  ;;  %v14476_v9 = vld [vmem:[#allocation41_spill] sm:$0xff]  ;;  %v14478_v37 = vld [vmem:[#allocation78_spill] sm:$0xff] }
 0x569   : > { %v13058_v20 = vpop.f32.mrf.mxu0  ;;  %v13061_v6 = vadd.f32 %v12906_v25, %v5559_v23  ;;  %v7548_v22 = vrot.slane %v14476_v9, 3  ;;  %v6645_v23 = vsel %vm6590_vm10, %v6640_v35, %v6644_v1  ;;  %v14477_v31 = vld [vmem:[#allocation75_spill] sm:$0xff]  ;;  %v7545_v35 = vor.u32 %v7544_v57, %v7543_v3 }
 0x56a   : > { %14471 = vst [vmem:[#allocation24_spill] sm:$0xff] %v13058_v20  ;;  %v5561_v4 = vpop.f32.mrf.mxu1  ;;  %v5390_v20 = vadd.f32 %v14478_v37, %v14477_v31  ;;  %v14483_v3 = vld [vmem:[#allocation79_spill] sm:$0xff] }
 0x56b   : > { %14472 = vst [vmem:[#allocation58_spill] sm:$0xff] %v13061_v6  ;;  %v5562_v13 = vadd.f32 %v5561_v4, %v5385_v59  ;;  %v13067_v19 = vpop.f32.mrf.mxu0  ;;  %v6648_v59 = vor.u32 %v6647_v56, %v6646_v45  ;;  %v14482_v56 = vld [vmem:[#allocation21_spill] sm:$0xff] }
 0x56c   : > { %v5563_v25 = vpop.f32.mrf.mxu1  ;;  %v7556_v45 = vshrl.u32 %v14482_v56, 16  ;;  %v7559_v31 = vshll.u32 %v14482_v56, 16  ;;  %v14488_v56 = vld [vmem:[#allocation73_spill] sm:$0xff] }
 0x56d   : > { %v13077_v4 = vpop.f32.mrf.mxu0  ;;  %10259 = vmatmul.mubr.msk.bf16.gmra.mxu0 %vm847_vm3, %v7538_v42  ;;  %v13081_v12 = vadd.f32 %v12922_v27, %v5562_v13  ;;  %v7549_v25 = vor.u32 %v7548_v22, %v7547_v48  ;;  %v10952_v42 = vld [vmem:[%s11463_s2 + $0xa0] sm:$0xf]  ;;  %v6652_v13 = vor.u32 %v6651_v63, %v6650_v53  ;;  %v6649_v48 = vsel %vm6590_vm10, %v6644_v1, %v6648_v59 }
 0x56e   : > { %14479 = vst [vmem:[#allocation51_spill] sm:$0xff] %v13077_v4  ;;  %v5566_v6 = vpop.f32.mrf.mxu1  ;;  %10145 = vmatmul.mubr.msk.bf16.gmra.mxu1 %vm847_vm3, %v6641_v49  ;;  %10262 = vmatprep.mubr.msk.bf16.mxu0 %vm847_vm3, %v7542_v0  ;;  %v13091_v37 = vcombine.low %v10952_v42, %v10952_v42  ;;  %v6659_v49 = vshrl.u32 %v14374_v54, 16  ;;  %v6662_v0 = vshll.u32 %v14374_v54, 16  ;;  %v6654_v22 = vrot.slane %v14475_v21, 1 }
 0x56f   : > { %14480 = vst [vmem:[#allocation60_spill] sm:$0xff] %v13081_v12  ;;  %v5567_v33 = vadd.f32 %v5566_v6, %v5390_v20  ;;  %10148 = vmatprep.mubr.msk.bf16.mxu1 %vm847_vm3, %v6645_v23  ;;  %v13086_v32 = vpop.f32.mrf.mxu0  ;;  %v14484_v20 = vld [vmem:[#allocation80_spill] sm:$0xff]  ;;  %v7546_v53 = vsel %vm7487_vm9, %v7541_v17, %v7545_v35  ;;  %v6653_v1 = vsel %vm6590_vm10, %v6648_v59, %v6652_v13 }
 0x570   : > { %14481 = vst [vmem:[#allocation53_spill] sm:$0xff] %v13086_v32  ;;  %v5568_v27 = vpop.f32.mrf.mxu1  ;;  %v5393_v6 = vadd.f32 %v14484_v20, %v14483_v3  ;;  %v7551_v63 = vrot.slane %v6659_v49, 2  ;;  %v7552_v4 = vrot.slane %v6662_v0, 3  ;;  %v7550_v3 = vsel %vm7487_vm9, %v7545_v35, %v7549_v25 }
 0x571   : > { %v13098_v57 = vadd.f32 %v12950_v7, %v5567_v33  ;;  %v13102_v23 = vpop.f32.mrf.mxu0  ;;  %v6655_v27 = vrot.slane %v14476_v9, 2  ;;  %v7558_v7 = vrot.slane %v7556_v45, 2  ;;  %v7561_v33 = vrot.slane %v7559_v31, 3 }
 0x572   : > { %14486 = vst [vmem:[#allocation23_spill] sm:$0xff] %v13102_v23  ;;  %v5569_v42 = vpop.f32.mrf.mxu1  ;;  %v6661_v21 = vrot.slane %v6659_v49, 1  ;;  %v14487_v23 = vld [vmem:[#allocation82_spill] sm:$0xff]  ;;  %v7553_v45 = vor.u32 %v7552_v4, %v7551_v63  ;;  %v7565_v59 = vshrl.u32 %v13091_v37, 16  ;;  %v7568_v31 = vshll.u32 %v13091_v37, 16 }
 0x573   : > { %14485 = vst [vmem:[#allocation31_spill] sm:$0xff] %v13098_v57  ;;  %v5570_v54 = vadd.f32 %v5569_v42, %v5393_v6  ;;  %v13106_v12 = vpop.f32.mrf.mxu0  ;;  %v6664_v57 = vrot.slane %v6662_v0, 2  ;;  %v5398_v32 = vadd.f32 %v14488_v56, %v14487_v23  ;;  %v6656_v35 = vor.u32 %v6655_v27, %v6654_v22  ;;  %v14489_v22 = vld [vmem:[#allocation85_spill] sm:$0xff] }
 0x574   : > { %v5571_v20 = vpop.f32.mrf.mxu1  ;;  %v7562_v0 = vor.u32 %v7561_v33, %v7558_v7  ;;  %v14490_v42 = vld [vmem:[#allocation77_spill] sm:$0xff] }
 0x575   : > { %v13113_v9 = vadd.f32 %v12965_v40, %v5570_v54  ;;  %v13115_v17 = vpop.f32.mrf.mxu0  ;;  %10263 = vmatmul.mubr.msk.bf16.gmra.mxu0 %vm847_vm3, %v7546_v53  ;;  %v6668_v54 = vshrl.u32 %v12608_v16, 16  ;;  %v6671_v40 = vshll.u32 %v12608_v16, 16  ;;  %v5401_v27 = vadd.f32 %v14490_v42, %v14489_v22  ;;  %v14491_v22 = vld [vmem:[#allocation84_spill] sm:$0xff] }
 0x576   : > { %v5574_v6 = vpop.f32.mrf.mxu1  ;;  %10149 = vmatmul.mubr.msk.bf16.gmra.mxu1 %vm847_vm3, %v6649_v48  ;;  %10266 = vmatprep.mubr.msk.bf16.mxu0 %vm847_vm3, %v7550_v3  ;;  %v6665_v48 = vor.u32 %v6664_v57, %v6661_v21  ;;  %v6657_v63 = vsel %vm6590_vm10, %v6652_v13, %v6656_v35  ;;  %v7554_v3 = vsel %vm7487_vm9, %v7549_v25, %v7553_v45  ;;  %v7567_v20 = vrot.slane %v7565_v59, 2 }
 0x577   : > { %v5575_v49 = vadd.f32 %v5574_v6, %v5398_v32  ;;  %10152 = vmatprep.mubr.msk.bf16.mxu1 %vm847_vm3, %v6653_v1  ;;  %v13125_v56 = vpop.f32.mrf.mxu0  ;;  %v7570_v16 = vrot.slane %v7568_v31, 3  ;;  %v6670_v6 = vrot.slane %v6668_v54, 1  ;;  %v6673_v7 = vrot.slane %v6671_v40, 2  ;;  %v14493_v40 = vld [vmem:[#allocation88_spill] sm:$0xff] }
 0x578   : > { %v5576_v23 = vpop.f32.mrf.mxu1  ;;  %v7563_v57 = vsel %vm7487_vm9, %v7553_v45, %v7562_v0 }
 0x579   : > { %v13129_v4 = vpop.f32.mrf.mxu0  ;;  %v13132_v53 = vadd.f32 %v12941_v46, %v5575_v49  ;;  %v6666_v23 = vsel %vm6590_vm10, %v6656_v35, %v6665_v48  ;;  %v14492_v46 = vld [vmem:[#allocation87_spill] sm:$0xff]  ;;  %v7571_v59 = vor.u32 %v7570_v16, %v7567_v20  ;;  %v6674_v35 = vor.u32 %v6673_v7, %v6670_v6  ;;  %v14494_v7 = vld [vmem:[#allocation81_spill] sm:$0xff] }
 0x57a   : > { %v5577_v32 = vpop.f32.mrf.mxu1  ;;  %v5406_v49 = vadd.f32 %v14492_v46, %v14491_v22  ;;  %v14495_v22 = vld [vmem:[#allocation86_spill] sm:$0xff] }
 0x57b   : > { %v5578_v1 = vadd.f32 %v5577_v32, %v5401_v27  ;;  %v13136_v33 = vpop.f32.mrf.mxu0  ;;  %v5409_v27 = vadd.f32 %v12626_v44, %v14493_v40  ;;  %v6675_v20 = vsel %vm6590_vm10, %v6665_v48, %v6674_v35  ;;  %v7938_v35 = vsel %vm860_vm2, %v12909_v29, 0 }
 0x57c   : > { %v5579_v21 = vpop.f32.mrf.mxu1 }
 0x57d   : > { %v13142_v42 = vpop.f32.mrf.mxu0  ;;  %10267 = vmatmul.mubr.msk.bf16.gmra.mxu0 %vm847_vm3, %v7554_v3  ;;  %v13146_v25 = vadd.f32 %v12959_v60, %v5578_v1 }
 0x57e   : > { %v5582_v13 = vpop.f32.mrf.mxu1  ;;  %10153 = vmatmul.mubr.msk.bf16.gmra.mxu1 %vm847_vm3, %v6657_v63  ;;  %10270 = vmatprep.mubr.msk.bf16.mxu0 %vm847_vm3, %v7563_v57  ;;  %v7572_v63 = vsel %vm7487_vm9, %v7562_v0, %v7571_v59  ;;  %v5414_v57 = vadd.f32 %v14494_v7, %v12635_v34  ;;  %v5417_v34 = vadd.f32 %v14495_v22, %v12644_v41 }
 0x57f   : > { %v5583_v45 = vadd.f32 %v5582_v13, %v5406_v49  ;;  %10156 = vmatprep.mubr.msk.bf16.mxu1 %vm847_vm3, %v6666_v23  ;;  %v13151_v31 = vpop.f32.mrf.mxu0 }
 0x580   : > { %v5584_v54 = vpop.f32.mrf.mxu1 }
 0x581   : > { %v13156_v32 = vadd.f32 %v12984_v8, %v5583_v45  ;;  %v13158_v60 = vpop.f32.mrf.mxu0 }
 0x582   : > { %v5585_v3 = vpop.f32.mrf.mxu1 }
 0x583   : > { %v5586_v1 = vadd.f32 %v5585_v3, %v5409_v27  ;;  %v13162_v16 = vpop.f32.mrf.mxu0 }
 0x584   : > { %v5587_v6 = vpop.f32.mrf.mxu1 }
 0x585   : > { %v13167_v21 = vadd.f32 %v12999_v26, %v5586_v1  ;;  %v13169_v44 = vpop.f32.mrf.mxu0  ;;  %10271 = vmatmul.mubr.msk.bf16.gmra.mxu0 %vm847_vm3, %v7572_v63 }
 0x586   : > { %v5590_v8 = vpop.f32.mrf.mxu1  ;;  %10157 = vmatmul.mubr.msk.bf16.gmra.mxu1 %vm847_vm3, %v6675_v20  ;;  %v5430_v20 = vadd.f32 %v12629_v2, %v12684_v10 }
 0x587   : > { %v5591_v0 = vadd.f32 %v5590_v8, %v5414_v57  ;;  %10200 = vmatprep.mubr.msk.bf16.mxu1 %vm847_vm3, %v12647_v30  ;;  %v13175_v48 = vpop.f32.mrf.mxu0  ;;  %v5422_v30 = vadd.f32 %v12656_v62, %v12641_v11  ;;  %v5425_v11 = vadd.f32 %v12674_v47, %v12669_v52  ;;  %v5433_v57 = vadd.f32 %v12649_v58, %v12698_v51  ;;  %v14505_v58 = vld [vmem:[#allocation91_spill] sm:$0xff] }
 0x588   : > { %v5592_v23 = vpop.f32.mrf.mxu1 }
 0x589   : > { %v13179_v46 = vpop.f32.mrf.mxu0  ;;  %v13182_v26 = vadd.f32 %v12978_v24, %v5591_v0  ;;  %v14503_v23 = vld [vmem:[#allocation92_spill] sm:$0xff] }
 0x58a   : > { %v5593_v49 = vpop.f32.mrf.mxu1  ;;  %v5438_v22 = vadd.f32 %v14503_v23, %v12695_v39 }
 0x58b   : > { %v5594_v13 = vadd.f32 %v5593_v49, %v5417_v34  ;;  %v13184_v59 = vpop.f32.mrf.mxu0 }
 0x58c   : > { %v5595_v45 = vpop.f32.mrf.mxu1 }
 0x58d   : > { %v13190_v54 = vpop.f32.mrf.mxu0  ;;  %v13193_v41 = vadd.f32 %v12990_v18, %v5594_v13  ;;  %v14507_v45 = vld [vmem:[#allocation93_spill] sm:$0xff] }
 0x58e   : > { %v5598_v40 = vpop.f32.mrf.mxu1  ;;  %10201 = vmatmul.mubr.msk.bf16.vlgmr.msra.gmra.mxu1 %vm847_vm3, %v12652_v36 }
 0x58f   : > { %v5599_v24 = vadd.f32 %v5598_v40, %v5422_v30  ;;  %10275 = vmatpush3.bf16.msra.mxu1 %v7938_v35  ;;  %10204 = vmatprep.mubr.msk.bf16.mxu1 %vm847_vm3, %v12677_v43  ;;  %v13199_v27 = vpop.f32.mrf.mxu0  ;;  %v14508_v35 = vld [vmem:[#allocation94_spill] sm:$0xff] }
 0x590   : > { %14496 = vst [vmem:[#allocation42_spill] sm:$0xff] %v13199_v27  ;;  %v5600_v29 = vpop.f32.mrf.mxu1  ;;  %v5441_v30 = vadd.f32 %v14508_v35, %v14507_v45  ;;  %v14522_v45 = vld [vmem:[#allocation103_spill] sm:$0xff] }
 0x591   : > { %v13204_v62 = vadd.f32 %v13018_v15, %v5599_v24  ;;  %v13206_v18 = vpop.f32.mrf.mxu0 }
 0x592   : > { %14497 = vst [vmem:[#allocation32_spill] sm:$0xff] %v13206_v18  ;;  %v5601_v3 = vpop.f32.mrf.mxu1  ;;  %v14570_v18 = vld [vmem:[#allocation27_spill] sm:$0xff] }
 0x593   : > { %v5602_v63 = vadd.f32 %v5601_v3, %v5425_v11  ;;  %v13208_v1 = vpop.f32.mrf.mxu0  ;;  %v14511_v3 = vld [vmem:[#allocation97_spill] sm:$0xff] }
 0x594   : > { %14498 = vst [vmem:[#allocation59_spill] sm:$0xff] %v13208_v1  ;;  %v5603_v36 = vpop.f32.mrf.mxu1  ;;  %v14568_v1 = vld [vmem:[#allocation60_spill] sm:$0xff] }
 0x595   : > { %v13213_v43 = vadd.f32 %v13033_v55, %v5602_v63  ;;  %v13215_v6 = vpop.f32.mrf.mxu0  ;;  %v14512_v63 = vld [vmem:[#allocation89_spill] sm:$0xff] }
 0x596   : > { %14499 = vst [vmem:[#allocation62_spill] sm:$0xff] %v13215_v6  ;;  %v5606_v7 = vpop.f32.mrf.mxu1  ;;  %10205 = vmatmul.mubr.msk.bf16.gmra.mxu1 %vm847_vm3, %v12682_v14  ;;  %v5446_v36 = vadd.f32 %v14512_v63, %v14511_v3  ;;  %v14525_v3 = vld [vmem:[#allocation105_spill] sm:$0xff] }
 0x597   : > { %v5607_v52 = vadd.f32 %v5606_v7, %v5430_v20  ;;  %10208 = vmatprep.mubr.msk.bf16.mxu1 %vm847_vm3, %v12701_v61  ;;  %v13221_v47 = vpop.f32.mrf.mxu0 }
 0x598   : > { %14500 = vst [vmem:[#allocation63_spill] sm:$0xff] %v13221_v47  ;;  %v5608_v15 = vpop.f32.mrf.mxu1 }
 0x599   : > { %v13225_v2 = vpop.f32.mrf.mxu0  ;;  %v13228_v10 = vadd.f32 %v13009_v38, %v5607_v52  ;;  %v14514_v52 = vld [vmem:[#allocation96_spill] sm:$0xff] }
 0x59a   : > { %14501 = vst [vmem:[#allocation64_spill] sm:$0xff] %v13225_v2  ;;  %v5609_v55 = vpop.f32.mrf.mxu1  ;;  %v14515_v15 = vld [vmem:[#allocation100_spill] sm:$0xff]  ;;  %v14564_v2 = vld [vmem:[#allocation54_spill] sm:$0xff] }
 0x59b   : > { %v5610_v8 = vadd.f32 %v5609_v55, %v5433_v57  ;;  %v13230_v0 = vpop.f32.mrf.mxu0 }
 0x59c   : > { %14502 = vst [vmem:[#allocation43_spill] sm:$0xff] %v13230_v0  ;;  %v5611_v14 = vpop.f32.mrf.mxu1  ;;  %v14562_v0 = vld [vmem:[#allocation56_spill] sm:$0xff] }
 0x59d   : > { %v13234_v61 = vpop.f32.mrf.mxu0  ;;  %v13237_v34 = vadd.f32 %v13027_v50, %v5610_v8  ;;  %v14517_v8 = vld [vmem:[#allocation99_spill] sm:$0xff]  ;;  %v14518_v14 = vld [vmem:[#allocation90_spill] sm:$0xff] }
 0x59e   : > { %14504 = vst [vmem:[#allocation33_spill] sm:$0xff] %v13234_v61  ;;  %v5614_v49 = vpop.f32.mrf.mxu1  ;;  %10209 = vmatmul.mubr.msk.bf16.gmra.mxu1 %vm847_vm3, %v14505_v58  ;;  %v5449_v23 = vadd.f32 %v14518_v14, %v14517_v8  ;;  %v14529_v8 = vld [vmem:[#allocation104_spill] sm:$0xff] }
 0x59f   : > { %v5615_v51 = vadd.f32 %v5614_v49, %v5438_v22  ;;  %10212 = vmatprep.mubr.msk.bf16.mxu1 %vm847_vm3, %v12727_v5  ;;  %v13243_v38 = vpop.f32.mrf.mxu0 }
 0x5a0   : > { %14506 = vst [vmem:[#allocation44_spill] sm:$0xff] %v13243_v38  ;;  %v5616_v13 = vpop.f32.mrf.mxu1  ;;  %v14558_v38 = vld [vmem:[#allocation37_spill] sm:$0xff] }
 0x5a1   : > { %v13248_v39 = vadd.f32 %v13052_v28, %v5615_v51  ;;  %v13250_v40 = vpop.f32.mrf.mxu0  ;;  %v14521_v13 = vld [vmem:[#allocation98_spill] sm:$0xff] }
 0x5a2   : > { %14509 = vst [vmem:[#allocation34_spill] sm:$0xff] %v13250_v40  ;;  %v5617_v50 = vpop.f32.mrf.mxu1  ;;  %v5454_v35 = vadd.f32 %v14522_v45, %v14521_v13  ;;  %v14532_v13 = vld [vmem:[#allocation95_spill] sm:$0xff] }
 0x5a3   : > { %v5618_v24 = vadd.f32 %v5617_v50, %v5441_v30  ;;  %v13252_v29 = vpop.f32.mrf.mxu0 }
 0x5a4   : > { %14510 = vst [vmem:[#allocation66_spill] sm:$0xff] %v13252_v29  ;;  %v5619_v11 = vpop.f32.mrf.mxu1 }
 0x5a5   : > { %v13257_v5 = vadd.f32 %v13067_v19, %v5618_v24  ;;  %v13259_v20 = vpop.f32.mrf.mxu0  ;;  %v14524_v24 = vld [vmem:[#allocation102_spill] sm:$0xff] }
 0x5a6   : > { %14513 = vst [vmem:[#allocation57_spill] sm:$0xff] %v13259_v20  ;;  %v5622_v7 = vpop.f32.mrf.mxu1  ;;  %10213 = vmatmul.mubr.msk.bf16.gmra.mxu1 %vm847_vm3, %v14514_v52 }
 0x5a7   : > { %v13263_v28 = vadd.f32 %v5622_v7, %v5446_v36  ;;  %10216 = vmatprep.mubr.msk.bf16.mxu1 %vm847_vm3, %v14515_v15  ;;  %v13267_v57 = vpop.f32.mrf.mxu0  ;;  %v14527_v7 = vld [vmem:[#allocation53_spill] sm:$0xff] }
 0x5a8   : > { %14516 = vst [vmem:[#allocation68_spill] sm:$0xff] %v13267_v57  ;;  %v5624_v55 = vpop.f32.mrf.mxu1 }
 0x5a9   : > { %v13271_v22 = vpop.f32.mrf.mxu0 }
 0x5aa   : > { %14519 = vst [vmem:[#allocation61_spill] sm:$0xff] %v13271_v22  ;;  %v5625_v19 = vpop.f32.mrf.mxu1  ;;  %v14552_v22 = vld [vmem:[#allocation114_spill] sm:$0xff] }
 0x5ab   : > { %v13273_v49 = vadd.f32 %v5625_v19, %v5449_v23  ;;  %v13275_v58 = vpop.f32.mrf.mxu0 }
 0x5ac   : > { %14520 = vst [vmem:[#allocation45_spill] sm:$0xff] %v13275_v58  ;;  %v5627_v51 = vpop.f32.mrf.mxu1 }
 0x5ad   : > { %v13279_v30 = vpop.f32.mrf.mxu0  ;;  %v14531_v51 = vld [vmem:[#allocation107_spill] sm:$0xff] }
 0x5ae   : > { %14523 = vst [vmem:[#allocation35_spill] sm:$0xff] %v13279_v30  ;;  %v5630_v50 = vpop.f32.mrf.mxu1  ;;  %10217 = vmatmul.mubr.msk.bf16.gmra.mxu1 %vm847_vm3, %v14524_v24  ;;  %v5462_v45 = vadd.f32 %v14532_v13, %v14531_v51 }
 0x5af   : > { %v5631_v11 = vadd.f32 %v5630_v50, %v5454_v35  ;;  %10220 = vmatprep.mubr.msk.bf16.mxu1 %vm847_vm3, %v14525_v3  ;;  %v13285_v63 = vpop.f32.mrf.mxu0  ;;  %v14534_v3 = vld [vmem:[#allocation106_spill] sm:$0xff] }
 0x5b0   : > { %14526 = vst [vmem:[#allocation46_spill] sm:$0xff] %v13285_v63  ;;  %v5632_v36 = vpop.f32.mrf.mxu1 }
 0x5b1   : > { %v13288_v52 = vadd.f32 %v14527_v7, %v5631_v11  ;;  %v13290_v15 = vpop.f32.mrf.mxu0  ;;  %v14535_v36 = vld [vmem:[#allocation109_spill] sm:$0xff] }
 0x5b2   : > { %14528 = vst [vmem:[#allocation36_spill] sm:$0xff] %v13290_v15  ;;  %v5633_v55 = vpop.f32.mrf.mxu1 }
 0x5b3   : > { %v5634_v14 = vadd.f32 %v5633_v55, %v14529_v8  ;;  %v13293_v23 = vpop.f32.mrf.mxu0  ;;  %v14537_v8 = vld [vmem:[#allocation108_spill] sm:$0xff] }
 0x5b4   : > { %14530 = vst [vmem:[#allocation67_spill] sm:$0xff] %v13293_v23  ;;  %v5635_v19 = vpop.f32.mrf.mxu1 }
 0x5b5   : > { %v13298_v35 = vadd.f32 %v13106_v12, %v5634_v14  ;;  %v13300_v50 = vpop.f32.mrf.mxu0  ;;  %v14538_v19 = vld [vmem:[#allocation101_spill] sm:$0xff] }
 0x5b6   : > { %14533 = vst [vmem:[#allocation70_spill] sm:$0xff] %v13300_v50  ;;  %v5638_v24 = vpop.f32.mrf.mxu1  ;;  %10221 = vmatmul.mubr.msk.bf16.gmra.mxu1 %vm847_vm3, %v14534_v3  ;;  %v5465_v51 = vadd.f32 %v14538_v19, %v14537_v8  ;;  %v14545_v19 = vld [vmem:[#allocation21_spill] sm:$0xff] }
 0x5b7   : > { %v13304_v11 = vadd.f32 %v5638_v24, %v5462_v45  ;;  %10224 = vmatprep.mubr.msk.bf16.mxu1 %vm847_vm3, %v14535_v36  ;;  %v13308_v7 = vpop.f32.mrf.mxu0  ;;  %v14542_v24 = vld [vmem:[#allocation110_spill] sm:$0xff]  ;;  %v14543_v36 = vld [vmem:[#allocation116_spill] sm:$0xff] }
 0x5b8   : > { %14536 = vst [vmem:[#allocation71_spill] sm:$0xff] %v13308_v7  ;;  %v5640_v55 = vpop.f32.mrf.mxu1 }
 0x5b9   : > { %v13312_v13 = vpop.f32.mrf.mxu0  ;;  %v14544_v55 = vld [vmem:[#allocation113_spill] sm:$0xff] }
 0x5ba   : > { %14539 = vst [vmem:[#allocation72_spill] sm:$0xff] %v13312_v13  ;;  %v5641_v12 = vpop.f32.mrf.mxu1  ;;  %v14548_v13 = vld [vmem:[#allocation29_spill] sm:$0xff] }
 0x5bb   : > { %v13314_v14 = vadd.f32 %v5641_v12, %v5465_v51  ;;  %v13316_v50 = vpop.f32.mrf.mxu0  ;;  %v7259_v51 = vrot.slane %v14545_v19, 2 }
 0x5bc   : > { %14540 = vst [vmem:[#allocation47_spill] sm:$0xff] %v13316_v50  ;;  %v5643_v23 = vpop.f32.mrf.mxu1  ;;  %v14547_v50 = vld [vmem:[#allocation112_spill] sm:$0xff] }
 0x5bd   : > { %v13318_v3 = vpop.f32.mrf.mxu0 }
 0x5be   : > { %14541 = vst [vmem:[#allocation38_spill] sm:$0xff] %v13318_v3  ;;  %v10050_v45 = vpop.f32.mrf.mxu1  ;;  %10225 = vmatmul.mubr.msk.bf16.gmra.mxu1 %vm847_vm3, %v14542_v24 }
 0x5bf   : > { %v13323_v7 = vadd.f32 %v10050_v45, %v14543_v36  ;;  %10228 = vmatprep.mubr.msk.bf16.mxu1 %vm847_vm3, %v14544_v55  ;;  %v13328_v12 = vpop.f32.mrf.mxu0  ;;  %v14549_v45 = vld [vmem:[#allocation111_spill] sm:$0xff] }
 0x5c0   : > { %v6180_v8 = vpop.f32.mrf.mxu1  ;;  %14546 = vst [vmem:[#allocation48_spill] sm:$0xff] %v13328_v12  ;;  %v7260_v36 = vsel %vm6948_vm8, %v14549_v45, %v7259_v51  ;;  %v14551_v55 = vld [vmem:[#allocation115_spill] sm:$0xff]  ;;  %v14553_v12 = vld [vmem:[#allocation26_spill] sm:$0xff] }
 0x5c1   : > { %v13331_v23 = vadd.f32 %v6180_v8, %v14547_v50  ;;  %v13338_v63 = vpop.f32.mrf.mxu0  ;;  %v10953_v8 = vld [vmem:[%s11463_s2 + $0x10] sm:$0xff]   ;;  %v10954_v45 = vld [vmem:[%s11463_s2 + $0x18] sm:$0xff]  }
 0x5c2   : > { %v10051_v3 = vpop.f32.mrf.mxu1  ;;  %14550 = vst [vmem:[#allocation39_spill] sm:$0xff] %v13338_v63  ;;  %v7846_v57 = vrot.slane %v10953_v8, 3  ;;  %v7847_v63 = vrot.slane %v10954_v45, 3 }
 0x5c3   : > { %v13334_v15 = vadd.f32 %v10051_v3, %v14548_v13  ;;  %v7261_v13 = vrot.slane %v13091_v37, 2  ;;  %v13352_v20 = vpop.f32.mrf.mxu0 }
 0x5c4   : > { %v6183_v24 = vpop.f32.mrf.mxu1  ;;  %14554 = vst [vmem:[#allocation74_spill] sm:$0xff] %v13352_v20  ;;  %v7848_v40 = vsel %vm7845_vm11, %v7846_v57, %v7847_v63 }
 0x5c5   : > { %v13341_v30 = vadd.f32 %v6183_v24, %v14551_v55  ;;  %v14555_v24 = vld [vmem:[#allocation83_spill] sm:$0xff]  ;;  %v13362_v8 = vpop.f32.mrf.mxu0 }
 0x5c6   : > { %v10054_v58 = vpop.f32.mrf.mxu1  ;;  %10229 = vmatmul.mubr.msk.bf16.gmra.mxu1 %vm847_vm3, %v14552_v22  ;;  %14557 = vst [vmem:[#allocation65_spill] sm:$0xff] %v13362_v8  ;;  %v14561_v8 = vld [vmem:[#allocation52_spill] sm:$0xff] }
 0x5c7   : > { %v13346_v50 = vadd.f32 %v10054_v58, %v14553_v12  ;;  %10232 = vmatprep.mubr.msk.bf16.mxu1 %vm847_vm3, %v7260_v36  ;;  %v14556_v58 = vld [vmem:[#allocation28_spill] sm:$0xff]  ;;  %v7262_v36 = vsel %vm6948_vm8, %v7259_v51, %v7261_v13  ;;  %v13374_v57 = vpop.f32.mrf.mxu0 }
 0x5c8   : > { %v6196_v3 = vpop.f32.mrf.mxu1  ;;  %v10956_v51 = vld [vmem:[%s11463_s2 + $0x28] sm:$0xff]   ;;  %14560 = vst [vmem:[#allocation76_spill] sm:$0xff] %v13374_v57  ;;  %v14565_v57 = vld [vmem:[#allocation58_spill] sm:$0xff] }
 0x5c9   : > { %v13355_v55 = vadd.f32 %v6196_v3, %v14555_v24  ;;  %v14559_v3 = vld [vmem:[#allocation55_spill] sm:$0xff]  ;;  %v7851_v13 = vrot.slane %v10956_v51, 3 }
 0x5ca   : > { %v10055_v22 = vpop.f32.mrf.mxu1 }
 0x5cb   : > { %v13358_v12 = vadd.f32 %v10055_v22, %v14556_v58  ;;  %v10955_v22 = vld [vmem:[%s11463_s2 + $0x20] sm:$0xff]  }
 0x5cc   : > { %v6199_v29 = vpop.f32.mrf.mxu1  ;;  %v7849_v58 = vrot.slane %v10955_v22, 3  ;;  %v13384_v22 = vpop.f32.mrf.mxu0 }
 0x5cd   : > { %v13365_v45 = vadd.f32 %v6199_v29, %v14558_v38  ;;  %14563 = vst [vmem:[#allocation69_spill] sm:$0xff] %v13384_v22  ;;  %v14567_v22 = vld [vmem:[#allocation25_spill] sm:$0xff] }
 0x5ce   : > { %v10058_v20 = vpop.f32.mrf.mxu1  ;;  %10233 = vmatmul.mubr.msk.bf16.gmra.mxu1 %vm847_vm3, %v7262_v36 }
 0x5cf   : > { %v13369_v24 = vadd.f32 %v10058_v20, %v14559_v3  ;;  %10276 = vmatprep.mubr.msk.bf16.mxu1 %vm847_vm3, %v7848_v40  ;;  %v7850_v20 = vsel %vm7845_vm11, %v7847_v63, %v7849_v58  ;;  %v7852_v40 = vsel %vm7845_vm11, %v7849_v58, %v7851_v13  ;;  %v10958_v63 = vld [vmem:[%s11463_s2 + $0x38] sm:$0xff]   ;;  %v13396_v58 = vpop.f32.mrf.mxu0 }
 0x5d0   : > { %v6212_v61 = vpop.f32.mrf.mxu1  ;;  %v7855_v6 = vrot.slane %v10958_v63, 3  ;;  %14566 = vst [vmem:[#allocation49_spill] sm:$0xff] %v13396_v58 }
 0x5d1   : > { %v13377_v38 = vadd.f32 %v6212_v61, %v14561_v8 }
 0x5d2   : > { %v10059_v29 = vpop.f32.mrf.mxu1 }
 0x5d3   : > { %v13380_v36 = vadd.f32 %v10059_v29, %v14562_v0  ;;  %v10957_v0 = vld [vmem:[%s11463_s2 + $0x30] sm:$0xff]  }
 0x5d4   : > { %v6215_v3 = vpop.f32.mrf.mxu1  ;;  %v7853_v8 = vrot.slane %v10957_v0, 3  ;;  %v13406_v0 = vpop.f32.mrf.mxu0 }
 0x5d5   : > { %v13387_v47 = vadd.f32 %v6215_v3, %v14564_v2  ;;  %14569 = vst [vmem:[#allocation40_spill] sm:$0xff] %v13406_v0  ;;  %v14573_v0 = vld [vmem:[#allocation31_spill] sm:$0xff] }
 0x5d6   : > { %v10062_v51 = vpop.f32.mrf.mxu1  ;;  %10277 = vmatmul.mubr.msk.bf16.vlgmr.msra.gmra.mxu1 %vm847_vm3, %v7850_v20 }
 0x5d7   : > { %v13391_v61 = vadd.f32 %v10062_v51, %v14565_v57  ;;  %10280 = vmatprep.mubr.msk.bf16.mxu1 %vm847_vm3, %v7852_v40  ;;  %v7854_v57 = vsel %vm7845_vm11, %v7851_v13, %v7853_v8  ;;  %v7856_v40 = vsel %vm7845_vm11, %v7853_v8, %v7855_v6  ;;  %v10960_v13 = vld [vmem:[%s11463_s2 + $0x48] sm:$0xff]   ;;  %v13418_v8 = vpop.f32.mrf.mxu0 }
 0x5d8   : > { %v6228_v29 = vpop.f32.mrf.mxu1  ;;  %v7859_v58 = vrot.slane %v10960_v13, 3  ;;  %14572 = vst [vmem:[#allocation41_spill] sm:$0xff] %v13418_v8 }
 0x5d9   : > { %v13399_v2 = vadd.f32 %v6228_v29, %v14567_v22 }
 0x5da   : > { %v10063_v3 = vpop.f32.mrf.mxu1 }
 0x5db   : > { %v13402_v20 = vadd.f32 %v10063_v3, %v14568_v1  ;;  %v10959_v1 = vld [vmem:[%s11463_s2 + $0x40] sm:$0xff]  }
 0x5dc   : > { %v6231_v51 = vpop.f32.mrf.mxu1  ;;  %v7857_v29 = vrot.slane %v10959_v1, 3  ;;  %v13428_v1 = vpop.f32.mrf.mxu0 }
 0x5dd   : > { %v13409_v27 = vadd.f32 %v6231_v51, %v14570_v18  ;;  %14574 = vst [vmem:[#allocation75_spill] sm:$0xff] %v13428_v1 }
 0x5de   : > { %v10066_v63 = vpop.f32.mrf.mxu1  ;;  %10281 = vmatmul.mubr.msk.bf16.gmra.mxu1 %vm847_vm3, %v7854_v57 }
 0x5df   : > { %v13413_v22 = vadd.f32 %v10066_v63, %v13132_v53  ;;  %10284 = vmatprep.mubr.msk.bf16.mxu1 %vm847_vm3, %v7856_v40  ;;  %v7858_v53 = vsel %vm7845_vm11, %v7855_v6, %v7857_v29  ;;  %v7860_v40 = vsel %vm7845_vm11, %v7857_v29, %v7859_v58  ;;  %v10962_v6 = vld [vmem:[%s11463_s2 + $0x58] sm:$0xff]   ;;  %v13440_v29 = vpop.f32.mrf.mxu0 }
 0x5e0   : > { %v6244_v3 = vpop.f32.mrf.mxu1  ;;  %v7863_v8 = vrot.slane %v10962_v6, 3  ;;  %14575 = vst [vmem:[#allocation78_spill] sm:$0xff] %v13440_v29 }
 0x5e1   : > { %14571 = vst [vmem:[#allocation50_spill] sm:$0xff] %v13413_v22  ;;  %v13421_v18 = vadd.f32 %v6244_v3, %v14573_v0 }
 0x5e2   : > { %v10067_v51 = vpop.f32.mrf.mxu1 }
 0x5e3   : > { %v13424_v57 = vadd.f32 %v10067_v51, %v13146_v25  ;;  %v10961_v25 = vld [vmem:[%s11463_s2 + $0x50] sm:$0xff]  }
 0x5e4   : > { %v6247_v63 = vpop.f32.mrf.mxu1  ;;  %v7861_v3 = vrot.slane %v10961_v25, 3  ;;  %v13450_v25 = vpop.f32.mrf.mxu0 }
 0x5e5   : > { %v13431_v22 = vadd.f32 %v6247_v63, %v13113_v9  ;;  %14576 = vst [vmem:[#allocation79_spill] sm:$0xff] %v13450_v25 }
 0x5e6   : > { %v10070_v13 = vpop.f32.mrf.mxu1  ;;  %10285 = vmatmul.mubr.msk.bf16.gmra.mxu1 %vm847_vm3, %v7858_v53 }
 0x5e7   : > { %v13435_v0 = vadd.f32 %v10070_v13, %v13182_v26  ;;  %10288 = vmatprep.mubr.msk.bf16.mxu1 %vm847_vm3, %v7860_v40  ;;  %v7862_v26 = vsel %vm7845_vm11, %v7859_v58, %v7861_v3  ;;  %v7864_v40 = vsel %vm7845_vm11, %v7861_v3, %v7863_v8  ;;  %v10964_v58 = vld [vmem:[%s11463_s2 + $0x68] sm:$0xff]   ;;  %v13462_v3 = vpop.f32.mrf.mxu0 }
 0x5e8   : > { %v6260_v51 = vpop.f32.mrf.mxu1  ;;  %v7867_v29 = vrot.slane %v10964_v58, 3  ;;  %14577 = vst [vmem:[#allocation80_spill] sm:$0xff] %v13462_v3  ;;  %v14580_v58 = vld [vmem:[#allocation30_spill] sm:$0xff] }
 0x5e9   : > { %v13443_v9 = vadd.f32 %v6260_v51, %v13156_v32  ;;  %v6043_v3 = vadd.f32 %v14580_v58, %v13263_v28  ;;  %v14582_v28 = vld [vmem:[#allocation24_spill] sm:$0xff] }
 0x5ea   : > { %v10071_v63 = vpop.f32.mrf.mxu1 }
 0x5eb   : > { %v13446_v53 = vadd.f32 %v10071_v63, %v13193_v41  ;;  %v10963_v41 = vld [vmem:[%s11463_s2 + $0x60] sm:$0xff]  }
 0x5ec   : > { %v6263_v13 = vpop.f32.mrf.mxu1  ;;  %v7865_v51 = vrot.slane %v10963_v41, 3 }
 0x5ed   : > { %v13453_v1 = vadd.f32 %v6263_v13, %v13167_v21 }
 0x5ee   : > { %v10074_v6 = vpop.f32.mrf.mxu1  ;;  %10289 = vmatmul.mubr.msk.bf16.gmra.mxu1 %vm847_vm3, %v7862_v26 }
 0x5ef   : > { %v13457_v32 = vadd.f32 %v10074_v6, %v13228_v10  ;;  %10292 = vmatprep.mubr.msk.bf16.mxu1 %vm847_vm3, %v7864_v40  ;;  %v7866_v10 = vsel %vm7845_vm11, %v7863_v8, %v7865_v51  ;;  %v7868_v40 = vsel %vm7845_vm11, %v7865_v51, %v7867_v29  ;;  %v13472_v6 = vpop.f32.mrf.mxu0 }
 0x5f0   : > { %v6276_v63 = vpop.f32.mrf.mxu1  ;;  %14579 = vst [vmem:[#allocation73_spill] sm:$0xff] %v13472_v6 }
 0x5f1   : > { %v13465_v25 = vadd.f32 %v6276_v63, %v13204_v62  ;;  %v13485_v6 = vpop.f32.mrf.mxu0 }
 0x5f2   : > { %v10075_v21 = vpop.f32.mrf.mxu1  ;;  %14581 = vst [vmem:[#allocation85_spill] sm:$0xff] %v13485_v6 }
 0x5f3   : > { %v13468_v26 = vadd.f32 %v10075_v21, %v13237_v34  ;;  %v10965_v34 = vld [vmem:[%s11463_s2 + $0x70] sm:$0xff]  }
 0x5f4   : > { %v6279_v13 = vpop.f32.mrf.mxu1  ;;  %v7869_v8 = vrot.slane %v10965_v34, 3  ;;  %v13496_v34 = vpop.f32.mrf.mxu0 }
 0x5f5   : > { %14578 = vst [vmem:[#allocation82_spill] sm:$0xff] %v13468_v26  ;;  %v13475_v41 = vadd.f32 %v6279_v13, %v13213_v43  ;;  %v10966_v26 = vld [vmem:[%s11463_s2 + $0x78] sm:$0xff]   ;;  %v6044_v13 = vadd.f32 %v14582_v28, %v13273_v49  ;;  %14584 = vst [vmem:[#allocation84_spill] sm:$0xff] %v13496_v34  ;;  %v10967_v28 = vld [vmem:[%s11463_s2 + $0x80] sm:$0xff]  }
 0x5f6   : > { %v10078_v62 = vpop.f32.mrf.mxu1  ;;  %10293 = vmatmul.mubr.msk.bf16.gmra.mxu1 %vm847_vm3, %v7866_v10  ;;  %v7871_v51 = vrot.slane %v10966_v26, 3 }
 0x5f7   : > { %v13480_v63 = vadd.f32 %v10078_v62, %v6043_v3  ;;  %10296 = vmatprep.mubr.msk.bf16.mxu1 %vm847_vm3, %v7868_v40  ;;  %v7870_v40 = vsel %vm7845_vm11, %v7867_v29, %v7869_v8  ;;  %v7873_v29 = vrot.slane %v10967_v28, 3  ;;  %v6554_v28 = vadd.f32 %v13115_v17, %v13323_v7 }
 0x5f8   : > { %v6292_v21 = vpop.f32.mrf.mxu1  ;;  %v7872_v62 = vsel %vm7845_vm11, %v7869_v8, %v7871_v51  ;;  %v6555_v17 = vadd.f32 %v13129_v4, %v13334_v15  ;;  %v7881_v15 = vrot.slane %v13091_v37, 3  ;;  %v6562_v37 = vadd.f32 %v13169_v44, %v13369_v24 }
 0x5f9   : > { %v13488_v43 = vadd.f32 %v6292_v21, %v13248_v39  ;;  %v14585_v39 = vld [vmem:[#allocation51_spill] sm:$0xff]  ;;  %v6561_v44 = vadd.f32 %v13184_v59, %v13387_v47  ;;  %v14589_v59 = vld [vmem:[#allocation32_spill] sm:$0xff] }
 0x5fa   : > { %v10079_v10 = vpop.f32.mrf.mxu1  ;;  %v6047_v21 = vadd.f32 %v14585_v39, %v13304_v11  ;;  %v6567_v47 = vadd.f32 %v14589_v59, %v13402_v20 }
 0x5fb   : > { %v13492_v3 = vadd.f32 %v10079_v10, %v6044_v13  ;;  %v10968_v10 = vld [vmem:[%s11463_s2 + $0x88] sm:$0xff]  }
 0x5fc   : > { %v6295_v58 = vpop.f32.mrf.mxu1  ;;  %v7875_v8 = vrot.slane %v10968_v10, 3 }
 0x5fd   : > { %14583 = vst [vmem:[#allocation77_spill] sm:$0xff] %v13492_v3  ;;  %v13499_v26 = vadd.f32 %v6295_v58, %v13257_v5  ;;  %v13509_v3 = vpop.f32.mrf.mxu0  ;;  %v14586_v58 = vld [vmem:[#allocation23_spill] sm:$0xff] }
 0x5fe   : > { %v10082_v6 = vpop.f32.mrf.mxu1  ;;  %10297 = vmatmul.mubr.msk.bf16.gmra.mxu1 %vm847_vm3, %v7870_v40  ;;  %v6048_v11 = vadd.f32 %v14586_v58, %v13314_v14  ;;  %v6552_v14 = vadd.f32 %v13125_v56, %v13331_v23  ;;  %v6553_v56 = vadd.f32 %v13136_v33, %v13341_v30  ;;  %v6556_v33 = vadd.f32 %v13151_v31, %v13355_v55 }
 0x5ff   : > { %v13504_v49 = vadd.f32 %v10082_v6, %v6047_v21  ;;  %10300 = vmatprep.mubr.msk.bf16.mxu1 %vm847_vm3, %v7872_v62  ;;  %v7874_v6 = vsel %vm7845_vm11, %v7871_v51, %v7873_v29  ;;  %v7876_v62 = vsel %vm7845_vm11, %v7873_v29, %v7875_v8  ;;  %v13520_v21 = vpop.f32.mrf.mxu0  ;;  %v14587_v51 = vld [vmem:[#allocation22_spill] sm:$0xff] }
 0x600   : > { %v6308_v13 = vpop.f32.mrf.mxu1  ;;  %v7877_v29 = vrot.slane %v14587_v51, 3 }
 0x601   : > { %v13512_v5 = vadd.f32 %v6308_v13, %v13288_v52 }
 0x602   : > { %v10083_v39 = vpop.f32.mrf.mxu1 }
 0x603   : > { %v13516_v34 = vadd.f32 %v10083_v39, %v6048_v11  ;;  %v7879_v11 = vrot.slane %v14545_v19, 3  ;;  %v13535_v39 = vpop.f32.mrf.mxu0  ;;  %v6558_v19 = vadd.f32 %v13142_v42, %v13346_v50  ;;  %v6559_v42 = vadd.f32 %v13158_v60, %v13358_v12 }
 0x604   : > { %v6311_v40 = vpop.f32.mrf.mxu1  ;;  %v6560_v60 = vadd.f32 %v13175_v48, %v13377_v38  ;;  %v6566_v48 = vadd.f32 %v13190_v54, %v13391_v61 }
 0x605   : > { %v13525_v10 = vadd.f32 %v6311_v40, %v13298_v35  ;;  %v7882_v31 = vsel %vm7845_vm11, %v7879_v11, %v7881_v15 }
 0x606   : > { %v10126_v52 = vpop.f32.mrf.mxu1  ;;  %10301 = vmatmul.mubr.msk.bf16.gmra.mxu1 %vm847_vm3, %v7874_v6  ;;  %v7878_v6 = vsel %vm7845_vm11, %v7875_v8, %v7877_v29 }
 0x607   : > { %v13530_v13 = vadd.f32 %v10126_v52, %v6554_v28  ;;  %10304 = vmatprep.mubr.msk.bf16.mxu1 %vm847_vm3, %v7876_v62  ;;  %v7880_v62 = vsel %vm7845_vm11, %v7877_v29, %v7879_v11  ;;  %v13547_v28 = vpop.f32.mrf.mxu0  ;;  %v6557_v29 = vadd.f32 %v13162_v16, %v13365_v45  ;;  %v6563_v11 = vadd.f32 %v13179_v46, %v13380_v36 }
 0x608   : > { %v6767_v58 = vpop.f32.mrf.mxu1 }
 0x609   : > { %v13539_v35 = vadd.f32 %v6767_v58, %v6552_v14  ;;  %v13560_v14 = vpop.f32.mrf.mxu0 }
 0x60a   : > { %v10127_v7 = vpop.f32.mrf.mxu1 }
 0x60b   : > { %v13543_v23 = vadd.f32 %v10127_v7, %v6555_v17  ;;  %v13571_v17 = vpop.f32.mrf.mxu0 }
 0x60c   : > { %v6770_v40 = vpop.f32.mrf.mxu1 }
 0x60d   : > { %v13551_v52 = vadd.f32 %v6770_v40, %v6553_v56  ;;  %v13582_v45 = vpop.f32.mrf.mxu0 }
 0x60e   : > { %v10130_v4 = vpop.f32.mrf.mxu1  ;;  %10305 = vmatmul.mubr.msk.bf16.gmra.mxu1 %vm847_vm3, %v7878_v6 }
 0x60f   : > { %v13556_v30 = vadd.f32 %v10130_v4, %v6558_v19  ;;  %10308 = vmatprep.mubr.msk.bf16.mxu1 %vm847_vm3, %v7880_v62  ;;  %v13592_v19 = vpop.f32.mrf.mxu0 }
 0x610   : > { %v6783_v8 = vpop.f32.mrf.mxu1 }
 0x611   : > { %v13564_v50 = vadd.f32 %v6783_v8, %v6556_v33  ;;  %v14588_v33 = vld [vmem:[#allocation42_spill] sm:$0xff]  ;;  %v13602_v8 = vpop.f32.mrf.mxu0 }
 0x612   : > { %v10131_v51 = vpop.f32.mrf.mxu1  ;;  %v6564_v46 = vadd.f32 %v14588_v33, %v13399_v2  ;;  %v14591_v2 = vld [vmem:[#allocation50_spill] sm:$0xff] }
 0x613   : > { %v13568_v58 = vadd.f32 %v10131_v51, %v6559_v42 }
 0x614   : > { %v6786_v55 = vpop.f32.mrf.mxu1 }
 0x615   : > { %v13575_v7 = vadd.f32 %v6786_v55, %v6557_v29  ;;  %v14590_v29 = vld [vmem:[#allocation59_spill] sm:$0xff]  ;;  %v13612_v55 = vpop.f32.mrf.mxu0 }
 0x616   : > { %v10134_v56 = vpop.f32.mrf.mxu1  ;;  %10309 = vmatmul.mubr.msk.bf16.gmra.mxu1 %vm847_vm3, %v7882_v31  ;;  %v6565_v54 = vadd.f32 %v14590_v29, %v13409_v27  ;;  %v14594_v27 = vld [vmem:[#allocation64_spill] sm:$0xff] }
 0x617   : > { %v13580_v12 = vadd.f32 %v10134_v56, %v6562_v37  ;;  %v14592_v37 = vld [vmem:[#allocation62_spill] sm:$0xff] }
 0x618   : > { %v6799_v16 = vpop.f32.mrf.mxu1  ;;  %v6570_v56 = vadd.f32 %v14592_v37, %v14591_v2  ;;  %v14597_v2 = vld [vmem:[#allocation44_spill] sm:$0xff] }
 0x619   : > { %v13586_v6 = vadd.f32 %v6799_v16, %v6560_v60 }
 0x61a   : > { %v10135_v40 = vpop.f32.mrf.mxu1 }
 0x61b   : > { %v13590_v24 = vadd.f32 %v10135_v40, %v6563_v11  ;;  %v14593_v11 = vld [vmem:[#allocation63_spill] sm:$0xff] }
 0x61c   : > { %v6802_v62 = vpop.f32.mrf.mxu1  ;;  %v6568_v20 = vadd.f32 %v14593_v11, %v13421_v18  ;;  %v14596_v18 = vld [vmem:[#allocation33_spill] sm:$0xff] }
 0x61d   : > { %v13596_v38 = vadd.f32 %v6802_v62, %v6561_v44  ;;  %v13622_v62 = vpop.f32.mrf.mxu0  ;;  %v6574_v29 = vadd.f32 %v14596_v18, %v13435_v0 }
 0x61e   : > { %v10138_v4 = vpop.f32.mrf.mxu1 }
 0x61f   : > { %v13600_v36 = vadd.f32 %v10138_v4, %v6566_v48  ;;  %v6571_v48 = vadd.f32 %v14594_v27, %v13424_v57  ;;  %v6572_v57 = vadd.f32 %v14597_v2, %v13443_v9  ;;  %v14599_v27 = vld [vmem:[#allocation66_spill] sm:$0xff]  ;;  %v14601_v9 = vld [vmem:[#allocation57_spill] sm:$0xff] }
 0x620   : > { %v6815_v15 = vpop.f32.mrf.mxu1  ;;  %v6573_v0 = vadd.f32 %v14599_v27, %v13453_v1  ;;  %v14604_v1 = vld [vmem:[#allocation82_spill] sm:$0xff]  ;;  %v14606_v27 = vld [vmem:[#allocation45_spill] sm:$0xff] }
 0x621   : > { %v13606_v42 = vadd.f32 %v6815_v15, %v6564_v46  ;;  %v14595_v46 = vld [vmem:[#allocation43_spill] sm:$0xff] }
 0x622   : > { %v10139_v51 = vpop.f32.mrf.mxu1  ;;  %v6569_v15 = vadd.f32 %v14595_v46, %v13431_v22  ;;  %v14598_v22 = vld [vmem:[#allocation34_spill] sm:$0xff] }
 0x623   : > { %v13610_v61 = vadd.f32 %v10139_v51, %v6567_v47  ;;  %v13632_v51 = vpop.f32.mrf.mxu0  ;;  %v6575_v11 = vadd.f32 %v14598_v22, %v13446_v53 }
 0x624   : > { %v6818_v31 = vpop.f32.mrf.mxu1 }
 0x625   : > { %v13616_v60 = vadd.f32 %v6818_v31, %v6565_v54 }
 0x626   : > { %v10142_v16 = vpop.f32.mrf.mxu1 }
 0x627   : > { %v13620_v40 = vadd.f32 %v10142_v16, %v6570_v56  ;;  %v13642_v16 = vpop.f32.mrf.mxu0 }
 0x628   : > { %v6831_v44 = vpop.f32.mrf.mxu1 }
 0x629   : > { %v13626_v4 = vadd.f32 %v6831_v44, %v6568_v20  ;;  %v13652_v46 = vpop.f32.mrf.mxu0 }
 0x62a   : > { %v10143_v33 = vpop.f32.mrf.mxu1  ;;  %14600 = vst [vmem:[#allocation87_spill] sm:$0xff] %v13652_v46  ;;  %v14613_v46 = vld [vmem:[#allocation67_spill] sm:$0xff] }
 0x62b   : > { %v13630_v59 = vadd.f32 %v10143_v33, %v6571_v48 }
 0x62c   : > { %v6834_v47 = vpop.f32.mrf.mxu1 }
 0x62d   : > { %v13636_v54 = vadd.f32 %v6834_v47, %v6569_v15  ;;  %v6578_v15 = vadd.f32 %v14601_v9, %v13457_v32  ;;  %v6577_v32 = vadd.f32 %v14606_v27, %v13475_v41  ;;  %v14611_v41 = vld [vmem:[#allocation77_spill] sm:$0xff] }
 0x62e   : > { %v10146_v31 = vpop.f32.mrf.mxu1 }
 0x62f   : > { %v13640_v37 = vadd.f32 %v10146_v31, %v6574_v29  ;;  %v14602_v29 = vld [vmem:[#allocation68_spill] sm:$0xff] }
 0x630   : > { %v6847_v56 = vpop.f32.mrf.mxu1  ;;  %v6576_v53 = vadd.f32 %v14602_v29, %v13465_v25  ;;  %v14608_v25 = vld [vmem:[#allocation35_spill] sm:$0xff] }
 0x631   : > { %v13646_v20 = vadd.f32 %v6847_v56, %v6572_v57  ;;  %v13662_v57 = vpop.f32.mrf.mxu0  ;;  %v14605_v56 = vld [vmem:[#allocation61_spill] sm:$0xff] }
 0x632   : > { %v10147_v44 = vpop.f32.mrf.mxu1  ;;  %14603 = vst [vmem:[#allocation88_spill] sm:$0xff] %v13662_v57  ;;  %v6579_v22 = vadd.f32 %v14605_v56, %v14604_v1  ;;  %v14609_v57 = vld [vmem:[#allocation46_spill] sm:$0xff] }
 0x633   : > { %v13650_v48 = vadd.f32 %v10147_v44, %v6575_v11  ;;  %v13672_v9 = vpop.f32.mrf.mxu0  ;;  %v6580_v1 = vadd.f32 %v14609_v57, %v13488_v43  ;;  %v14615_v43 = vld [vmem:[#allocation70_spill] sm:$0xff] }
 0x634   : > { %v6850_v33 = vpop.f32.mrf.mxu1  ;;  %14607 = vst [vmem:[#allocation81_spill] sm:$0xff] %v13672_v9  ;;  %v6586_v57 = vadd.f32 %v14615_v43, %v13504_v49 }
 0x635   : > { %v13656_v47 = vadd.f32 %v6850_v33, %v6573_v0  ;;  %v13682_v56 = vpop.f32.mrf.mxu0 }
 0x636   : > { %v10150_v18 = vpop.f32.mrf.mxu1  ;;  %14610 = vst [vmem:[#allocation86_spill] sm:$0xff] %v13682_v56  ;;  %v14616_v56 = vld [vmem:[#allocation71_spill] sm:$0xff] }
 0x637   : > { %v13660_v31 = vadd.f32 %v10150_v18, %v6578_v15  ;;  %v6582_v15 = vadd.f32 %v14608_v25, %v13480_v63  ;;  %v6581_v63 = vadd.f32 %v14613_v46, %v13499_v26  ;;  %v13692_v25 = vpop.f32.mrf.mxu0  ;;  %v14618_v26 = vld [vmem:[#allocation72_spill] sm:$0xff] }
 0x638   : > { %v6863_v2 = vpop.f32.mrf.mxu1  ;;  %14614 = vst [vmem:[#allocation92_spill] sm:$0xff] %v13692_v25  ;;  %v6587_v46 = vadd.f32 %v14618_v26, %v13516_v34  ;;  %v14619_v25 = vld [vmem:[#allocation47_spill] sm:$0xff] }
 0x639   : > { %v13666_v11 = vadd.f32 %v6863_v2, %v6576_v53  ;;  %v6585_v49 = vadd.f32 %v14619_v25, %v13525_v10  ;;  %v14624_v10 = vld [vmem:[#allocation39_spill] sm:$0xff] }
 0x63a   : > { %v10151_v44 = vpop.f32.mrf.mxu1  ;;  %v7223_v25 = vadd.f32 %v14624_v10, %v13543_v23 }
 0x63b   : > { %v13670_v0 = vadd.f32 %v10151_v44, %v6579_v22  ;;  %v14612_v22 = vld [vmem:[#allocation36_spill] sm:$0xff] }
 0x63c   : > { %v6866_v33 = vpop.f32.mrf.mxu1  ;;  %v6583_v44 = vadd.f32 %v14612_v22, %v14611_v41  ;;  %v6584_v41 = vadd.f32 %v14616_v56, %v13512_v5  ;;  %v13702_v22 = vpop.f32.mrf.mxu0  ;;  %v14621_v5 = vld [vmem:[#allocation38_spill] sm:$0xff] }
 0x63d   : > { %v13676_v18 = vadd.f32 %v6866_v33, %v6577_v32  ;;  %14617 = vst [vmem:[#allocation91_spill] sm:$0xff] %v13702_v22  ;;  %v7222_v56 = vadd.f32 %v14621_v5, %v13530_v13  ;;  %v14622_v22 = vld [vmem:[#allocation48_spill] sm:$0xff] }
 0x63e   : > { %v10154_v29 = vpop.f32.mrf.mxu1  ;;  %v13712_v43 = vpop.f32.mrf.mxu0  ;;  %v7220_v34 = vadd.f32 %v14622_v22, %v13539_v35  ;;  %v14627_v35 = vld [vmem:[#allocation65_spill] sm:$0xff] }
 0x63f   : > { %v13680_v53 = vadd.f32 %v10154_v29, %v6582_v15  ;;  %14620 = vst [vmem:[#allocation93_spill] sm:$0xff] %v13712_v43  ;;  %v14625_v43 = vld [vmem:[#allocation74_spill] sm:$0xff]  ;;  %v7226_v22 = vadd.f32 %v14627_v35, %v13556_v30 }
 0x640   : > { %v6879_v2 = vpop.f32.mrf.mxu1  ;;  %v13722_v26 = vpop.f32.mrf.mxu0  ;;  %v7221_v13 = vadd.f32 %v14625_v43, %v13551_v52  ;;  %v14630_v52 = vld [vmem:[#allocation69_spill] sm:$0xff] }
 0x641   : > { %v13686_v27 = vadd.f32 %v6879_v2, %v6580_v1  ;;  %14623 = vst [vmem:[#allocation94_spill] sm:$0xff] %v13722_v26  ;;  %v14628_v26 = vld [vmem:[#allocation76_spill] sm:$0xff]  ;;  %v7227_v43 = vadd.f32 %v14630_v52, %v13568_v58 }
 0x642   : > { %v10155_v9 = vpop.f32.mrf.mxu1  ;;  %v13732_v5 = vpop.f32.mrf.mxu0  ;;  %v7224_v23 = vadd.f32 %v14628_v26, %v13564_v50  ;;  %v14633_v50 = vld [vmem:[#allocation40_spill] sm:$0xff] }
 0x643   : > { %v13690_v32 = vadd.f32 %v10155_v9, %v6583_v44  ;;  %14626 = vst [vmem:[#allocation97_spill] sm:$0xff] %v13732_v5  ;;  %v14631_v5 = vld [vmem:[#allocation49_spill] sm:$0xff]  ;;  %v7230_v26 = vadd.f32 %v14633_v50, %v13580_v12 }
 0x644   : > { %v6882_v33 = vpop.f32.mrf.mxu1  ;;  %v7225_v30 = vadd.f32 %v14631_v5, %v13575_v7  ;;  %v14636_v7 = vld [vmem:[#allocation75_spill] sm:$0xff] }
 0x645   : > { %v13696_v15 = vadd.f32 %v6882_v33, %v6581_v63  ;;  %v7231_v5 = vadd.f32 %v14636_v7, %v13590_v24 }
 0x646   : > { %v10158_v29 = vpop.f32.mrf.mxu1 }
 0x647   : > { %v13700_v1 = vadd.f32 %v10158_v29, %v6586_v57 }
 0x648   : > { %v6895_v2 = vpop.f32.mrf.mxu1 }
 0x649   : > { %v13706_v9 = vadd.f32 %v6895_v2, %v6584_v41 }
 0x64a   : > { %v10159_v44 = vpop.f32.mrf.mxu1 }
 0x64b   : > { %v13710_v63 = vadd.f32 %v10159_v44, %v6587_v46 }
 0x64c   : > { %v6898_v33 = vpop.f32.mrf.mxu1 }
 0x64d   : > { %v13716_v57 = vadd.f32 %v6898_v33, %v6585_v49 }
 0x64e   : > { %v10202_v29 = vpop.f32.mrf.mxu1 }
 0x64f   : > { %v13720_v41 = vadd.f32 %v10202_v29, %v7222_v56 }
 0x650   : > { %v7306_v2 = vpop.f32.mrf.mxu1 }
 0x651   : > { %v13726_v46 = vadd.f32 %v7306_v2, %v7220_v34  ;;  %v13742_v2 = vpop.f32.mrf.mxu0 }
 0x652   : > { %v10203_v44 = vpop.f32.mrf.mxu1 }
 0x653   : > { %v13730_v49 = vadd.f32 %v10203_v44, %v7223_v25 }
 0x654   : > { %v7309_v33 = vpop.f32.mrf.mxu1 }
 0x655   : > { %v13736_v56 = vadd.f32 %v7309_v33, %v7221_v13  ;;  %v13752_v33 = vpop.f32.mrf.mxu0 }
 0x656   : > { %v10206_v29 = vpop.f32.mrf.mxu1 }
 0x657   : > { %v13740_v34 = vadd.f32 %v10206_v29, %v7226_v22 }
 0x658   : > { %v7322_v10 = vpop.f32.mrf.mxu1 }
 0x659   : > { %14629 = vst [vmem:[#allocation89_spill] sm:$0xff] %v13740_v34  ;;  %v13746_v25 = vadd.f32 %v7322_v10, %v7224_v23  ;;  %v14634_v34 = vld [vmem:[#allocation41_spill] sm:$0xff]  ;;  %v13762_v10 = vpop.f32.mrf.mxu0 }
 0x65a   : > { %v10207_v44 = vpop.f32.mrf.mxu1  ;;  %v7228_v58 = vadd.f32 %v14634_v34, %v13586_v6  ;;  %v14639_v6 = vld [vmem:[#allocation79_spill] sm:$0xff] }
 0x65b   : > { %v13750_v13 = vadd.f32 %v10207_v44, %v7227_v43  ;;  %v7234_v34 = vadd.f32 %v14639_v6, %v13600_v36 }
 0x65c   : > { %v7325_v35 = vpop.f32.mrf.mxu1 }
 0x65d   : > { %14632 = vst [vmem:[#allocation96_spill] sm:$0xff] %v13750_v13  ;;  %v13756_v22 = vadd.f32 %v7325_v35, %v7225_v30  ;;  %v14637_v13 = vld [vmem:[#allocation78_spill] sm:$0xff]  ;;  %v13772_v35 = vpop.f32.mrf.mxu0 }
 0x65e   : > { %v10210_v29 = vpop.f32.mrf.mxu1  ;;  %v7229_v12 = vadd.f32 %v14637_v13, %v13596_v38  ;;  %v14641_v38 = vld [vmem:[#allocation73_spill] sm:$0xff] }
 0x65f   : > { %v13760_v23 = vadd.f32 %v10210_v29, %v7230_v26  ;;  %v7235_v13 = vadd.f32 %v14641_v38, %v13610_v61  ;;  %v7236_v61 = vadd.f32 %v13509_v3, %v13626_v4  ;;  %v7242_v3 = vadd.f32 %v13547_v28, %v13640_v37 }
 0x660   : > { %v7338_v52 = vpop.f32.mrf.mxu1  ;;  %v7241_v28 = vadd.f32 %v13582_v45, %v13656_v47  ;;  %v7247_v45 = vadd.f32 %v13612_v55, %v13670_v0  ;;  %v7248_v55 = vadd.f32 %v13642_v16, %v13686_v27  ;;  %v14646_v27 = vld [vmem:[#allocation81_spill] sm:$0xff] }
 0x661   : > { %14635 = vst [vmem:[#allocation100_spill] sm:$0xff] %v13760_v23  ;;  %v13766_v43 = vadd.f32 %v7338_v52, %v7228_v58  ;;  %v14640_v23 = vld [vmem:[#allocation80_spill] sm:$0xff]  ;;  %v13782_v52 = vpop.f32.mrf.mxu0 }
 0x662   : > { %v10211_v44 = vpop.f32.mrf.mxu1  ;;  %v7232_v24 = vadd.f32 %v14640_v23, %v13606_v42  ;;  %v14643_v42 = vld [vmem:[#allocation84_spill] sm:$0xff] }
 0x663   : > { %v13770_v30 = vadd.f32 %v10211_v44, %v7231_v5  ;;  %v7238_v23 = vadd.f32 %v14643_v42, %v13620_v40  ;;  %v7237_v40 = vadd.f32 %v13535_v39, %v13636_v54  ;;  %v7243_v39 = vadd.f32 %v13571_v17, %v13650_v48 }
 0x664   : > { %v7341_v50 = vpop.f32.mrf.mxu1  ;;  %v7244_v17 = vadd.f32 %v13602_v8, %v13666_v11  ;;  %v7250_v8 = vadd.f32 %v13632_v51, %v13680_v53  ;;  %v14645_v51 = vld [vmem:[#allocation88_spill] sm:$0xff] }
 0x665   : > { %14638 = vst [vmem:[#allocation99_spill] sm:$0xff] %v13770_v30  ;;  %v13776_v26 = vadd.f32 %v7341_v50, %v7229_v12  ;;  %v14642_v30 = vld [vmem:[#allocation85_spill] sm:$0xff]  ;;  %v13792_v50 = vpop.f32.mrf.mxu0  ;;  %v7249_v53 = vadd.f32 %v14645_v51, %v13696_v15 }
 0x666   : > { %v10214_v29 = vpop.f32.mrf.mxu1  ;;  %v7233_v36 = vadd.f32 %v14642_v30, %v13616_v60  ;;  %v7239_v60 = vadd.f32 %v13520_v21, %v13630_v59  ;;  %v7240_v21 = vadd.f32 %v13560_v14, %v13646_v20  ;;  %v7246_v14 = vadd.f32 %v13592_v19, %v13660_v31  ;;  %v14650_v51 = vld [vmem:[#allocation93_spill] sm:$0xff] }
 0x667   : > { %v13780_v58 = vadd.f32 %v10214_v29, %v7234_v34  ;;  %v7245_v19 = vadd.f32 %v13622_v62, %v13676_v18  ;;  %v14644_v62 = vld [vmem:[#allocation87_spill] sm:$0xff] }
 0x668   : > { %v7354_v7 = vpop.f32.mrf.mxu1  ;;  %v7251_v18 = vadd.f32 %v14644_v62, %v13690_v32  ;;  %v14647_v32 = vld [vmem:[#allocation86_spill] sm:$0xff] }
 0x669   : > { %v13786_v5 = vadd.f32 %v7354_v7, %v7232_v24  ;;  %v13802_v7 = vpop.f32.mrf.mxu0 }
 0x66a   : > { %v10215_v44 = vpop.f32.mrf.mxu1 }
 0x66b   : > { %v13790_v12 = vadd.f32 %v10215_v44, %v7235_v13 }
 0x66c   : > { %v7357_v6 = vpop.f32.mrf.mxu1 }
 0x66d   : > { %v13796_v34 = vadd.f32 %v7357_v6, %v7233_v36  ;;  %v13812_v36 = vpop.f32.mrf.mxu0 }
 0x66e   : > { %v10218_v29 = vpop.f32.mrf.mxu1 }
 0x66f   : > { %v13800_v24 = vadd.f32 %v10218_v29, %v7238_v23  ;;  %v13822_v23 = vpop.f32.mrf.mxu0 }
 0x670   : > { %v7370_v38 = vpop.f32.mrf.mxu1 }
 0x671   : > { %v13806_v30 = vadd.f32 %v7370_v38, %v7236_v61  ;;  %v13832_v38 = vpop.f32.mrf.mxu0 }
 0x672   : > { %v10219_v13 = vpop.f32.mrf.mxu1 }
 0x673   : > { %v13810_v44 = vadd.f32 %v10219_v13, %v7239_v60 }
 0x674   : > { %v7373_v6 = vpop.f32.mrf.mxu1 }
 0x675   : > { %v13816_v4 = vadd.f32 %v7373_v6, %v7237_v40  ;;  %v13842_v40 = vpop.f32.mrf.mxu0 }
 0x676   : > { %v10222_v42 = vpop.f32.mrf.mxu1 }
 0x677   : > { %v13820_v59 = vadd.f32 %v10222_v42, %v7242_v3  ;;  %v13852_v42 = vpop.f32.mrf.mxu0 }
 0x678   : > { %v7386_v29 = vpop.f32.mrf.mxu1 }
 0x679   : > { %v13826_v54 = vadd.f32 %v7386_v29, %v7240_v21 }
 0x67a   : > { %v10223_v61 = vpop.f32.mrf.mxu1 }
 0x67b   : > { %v13830_v37 = vadd.f32 %v10223_v61, %v7243_v39  ;;  %v13862_v39 = vpop.f32.mrf.mxu0 }
 0x67c   : > { %v7389_v60 = vpop.f32.mrf.mxu1 }
 0x67d   : > { %v13836_v20 = vadd.f32 %v7389_v60, %v7241_v28 }
 0x67e   : > { %v10226_v13 = vpop.f32.mrf.mxu1 }
 0x67f   : > { %v13840_v48 = vadd.f32 %v10226_v13, %v7246_v14  ;;  %v13872_v13 = vpop.f32.mrf.mxu0 }
 0x680   : > { %v7402_v6 = vpop.f32.mrf.mxu1 }
 0x681   : > { %v13846_v47 = vadd.f32 %v7402_v6, %v7244_v17  ;;  %v7254_v17 = vadd.f32 %v14646_v27, %v13700_v1  ;;  %v14649_v1 = vld [vmem:[#allocation91_spill] sm:$0xff]  ;;  %v13901_v27 = vld [vmem:[#allocation13] ss:$0 sm:$0xff] }
 0x682   : > { %v10227_v3 = vpop.f32.mrf.mxu1  ;;  %v7253_v62 = vadd.f32 %v14649_v1, %v13716_v57 }
 0x683   : > { %v13850_v31 = vadd.f32 %v10227_v3, %v7247_v45  ;;  %v7252_v3 = vadd.f32 %v14647_v32, %v13706_v9 }
 0x684   : > { %v7405_v21 = vpop.f32.mrf.mxu1 }
 0x685   : > { %v13856_v11 = vadd.f32 %v7405_v21, %v7245_v19  ;;  %v13882_v21 = vpop.f32.mrf.mxu0 }
 0x686   : > { %v10230_v29 = vpop.f32.mrf.mxu1 }
 0x687   : > { %v13860_v0 = vadd.f32 %v10230_v29, %v7250_v8  ;;  %v14648_v8 = vld [vmem:[#allocation92_spill] sm:$0xff] }
 0x688   : > { %v7418_v61 = vpop.f32.mrf.mxu1  ;;  %v7255_v29 = vadd.f32 %v14648_v8, %v13710_v63 }
 0x689   : > { %v13866_v28 = vadd.f32 %v7418_v61, %v7248_v55 }
 0x68a   : > { %v10231_v60 = vpop.f32.mrf.mxu1 }
 0x68b   : > { %v13870_v14 = vadd.f32 %v10231_v60, %v7251_v18  ;;  %v13893_v60 = vpop.f32.mrf.mxu0 }
 0x68c   : > { %v7421_v16 = vpop.f32.mrf.mxu1 }
 0x68d   : > { %v13876_v6 = vadd.f32 %v7421_v16, %v7249_v53  ;;  %v7809_v53 = vadd.f32 %v14650_v51, %v13720_v41  ;;  %v13905_v57 = vpop.f32.mrf.mxu0  ;;  %v7808_v41 = vadd.f32 %v13742_v2, %v13736_v56  ;;  %v14653_v51 = vld [vmem:[#allocation89_spill] sm:$0xff] }
 0x68e   : > { %v10234_v45 = vpop.f32.mrf.mxu1 }
 0x68f   : > { %v13880_v19 = vadd.f32 %v10234_v45, %v7254_v17  ;;  %v14651_v17 = vld [vmem:[#allocation94_spill] sm:$0xff] }
 0x690   : > { %v7434_v15 = vpop.f32.mrf.mxu1  ;;  %v7807_v45 = vadd.f32 %v14651_v17, %v13726_v46  ;;  %v7811_v17 = vadd.f32 %v13762_v10, %v13746_v25  ;;  %v7812_v25 = vadd.f32 %v13782_v52, %v13756_v22  ;;  %v7815_v22 = vadd.f32 %v13802_v7, %v13766_v43 }
 0x691   : > { %v13886_v55 = vadd.f32 %v7434_v15, %v7252_v3  ;;  %v14652_v15 = vld [vmem:[#allocation97_spill] sm:$0xff]  ;;  %v7816_v43 = vadd.f32 %v13822_v23, %v13776_v26  ;;  %v7819_v26 = vadd.f32 %v13842_v40, %v13786_v5 }
 0x692   : > { %v10235_v61 = vpop.f32.mrf.mxu1  ;;  %v7810_v8 = vadd.f32 %v14652_v15, %v13730_v49 }
 0x693   : > { %v13891_v18 = vadd.f32 %v10235_v61, %v7255_v29 }
 0x694   : > { %v7437_v9 = vpop.f32.mrf.mxu1 }
 0x695   : > { %v13899_v16 = vadd.f32 %v7437_v9, %v7253_v62  ;;  %v13916_v9 = vpop.f32.mrf.mxu0 }
 0x696   : > { %v10278_v63 = vpop.f32.mrf.mxu1 }
 0x697   : > { %v8119_v32 = vadd.f32 %v10278_v63, %v7809_v53  ;;  %v7813_v53 = vadd.f32 %v13752_v33, %v14653_v51 }
 0x698   : > { %v7974_v3 = vpop.f32.mrf.mxu1 }
 0x699   : > { %v8162_v29 = vadd.f32 %v13901_v27, %v8119_v32  ;;  %v8117_v61 = vadd.f32 %v7974_v3, %v7807_v45  ;;  %v13926_v3 = vpop.f32.mrf.mxu0 }
 0x69a   : > { %v10279_v1 = vpop.f32.mrf.mxu1 }
 0x69b   : > { %8198 = vst [vmem:[%s13912_s4 + $0x10] sm:$0xff] %v8162_v29  ;;  %v8160_v46 = vadd.f32 %v13901_v27, %v8117_v61  ;;  %v8120_v62 = vadd.f32 %v10279_v1, %v7810_v8  ;;  %v14654_v8 = vld [vmem:[#allocation96_spill] sm:$0xff] }
 0x69c   : > { %v7977_v49 = vpop.f32.mrf.mxu1  ;;  %v7814_v33 = vadd.f32 %v13772_v35, %v14654_v8 }
 0x69d   : > { %8196 = vst [vmem:[%s13912_s4] sm:$0xff] %v8160_v46  ;;  %v8163_v56 = vadd.f32 %v13901_v27, %v8120_v62  ;;  %v8118_v2 = vadd.f32 %v7977_v49, %v7808_v41  ;;  %v13936_v46 = vpop.f32.mrf.mxu0  ;;  %v14655_v49 = vld [vmem:[#allocation100_spill] sm:$0xff] }
 0x69e   : > { %v10282_v63 = vpop.f32.mrf.mxu1  ;;  %v7817_v35 = vadd.f32 %v13792_v50, %v14655_v49 }
 0x69f   : > { %8199 = vst [vmem:[%s13912_s4 + $0x18] sm:$0xff] %v8163_v56  ;;  %v8161_v45 = vadd.f32 %v13901_v27, %v8118_v2  ;;  %v8123_v32 = vadd.f32 %v10282_v63, %v7813_v53  ;;  %v13946_v63 = vpop.f32.mrf.mxu0 }
 0x6a0   : > { %v7990_v15 = vpop.f32.mrf.mxu1 }
 0x6a1   : > { %8197 = vst [vmem:[%s13912_s4 + $0x8] sm:$0xff] %v8161_v45  ;;  %v8166_v29 = vadd.f32 %v13901_v27, %v8123_v32  ;;  %v8121_v61 = vadd.f32 %v7990_v15, %v7811_v17  ;;  %v14656_v45 = vld [vmem:[#allocation99_spill] sm:$0xff] }
 0x6a2   : > { %v10283_v1 = vpop.f32.mrf.mxu1  ;;  %v7818_v50 = vadd.f32 %v13812_v36, %v14656_v45  ;;  %v7821_v36 = vadd.f32 %v13832_v38, %v13780_v58 }
 0x6a3   : > { %8202 = vst [vmem:[%s13912_s4 + $0x30] sm:$0xff] %v8166_v29  ;;  %v8164_v10 = vadd.f32 %v13901_v27, %v8121_v61  ;;  %v8124_v41 = vadd.f32 %v10283_v1, %v7814_v33  ;;  %v13956_v29 = vpop.f32.mrf.mxu0 }
 0x6a4   : > { %v7993_v62 = vpop.f32.mrf.mxu1 }
 0x6a5   : > { %8200 = vst [vmem:[%s13912_s4 + $0x20] sm:$0xff] %v8164_v10  ;;  %v8167_v51 = vadd.f32 %v13901_v27, %v8124_v41  ;;  %v8122_v53 = vadd.f32 %v7993_v62, %v7812_v25  ;;  %v7760_v62 = vpop.f32.mrf.mxu0 }
 0x6a6   : > { %v10286_v56 = vpop.f32.mrf.mxu1 }
 0x6a7   : > { %8203 = vst [vmem:[%s13912_s4 + $0x38] sm:$0xff] %v8167_v51  ;;  %v8165_v52 = vadd.f32 %v13901_v27, %v8122_v53  ;;  %v8127_v2 = vadd.f32 %v10286_v56, %v7817_v35  ;;  %v7822_v35 = vadd.f32 %v13852_v42, %v13790_v12  ;;  %v7820_v53 = vadd.f32 %v13862_v39, %v13796_v34  ;;  %v10265_v56 = vpop.f32.mrf.mxu0 }
 0x6a8   : > { %v8006_v17 = vpop.f32.mrf.mxu1 }
 0x6a9   : > { %8201 = vst [vmem:[%s13912_s4 + $0x28] sm:$0xff] %v8165_v52  ;;  %v8170_v32 = vadd.f32 %v13901_v27, %v8127_v2  ;;  %v8125_v15 = vadd.f32 %v8006_v17, %v7815_v22  ;;  %v7825_v52 = vadd.f32 %v13872_v13, %v13800_v24  ;;  %v7823_v17 = vadd.f32 %v13882_v21, %v13806_v30  ;;  %v7763_v45 = vpop.f32.mrf.mxu0 }
 0x6aa   : > { %v10287_v8 = vpop.f32.mrf.mxu1 }
 0x6ab   : > { %8206 = vst [vmem:[%s13912_s4 + $0x50] sm:$0xff] %v8170_v32  ;;  %v8168_v7 = vadd.f32 %v13901_v27, %v8125_v15  ;;  %v8128_v33 = vadd.f32 %v10287_v8, %v7818_v50  ;;  %v7826_v32 = vadd.f32 %v13893_v60, %v13810_v44  ;;  %v7824_v8 = vadd.f32 %v13905_v57, %v13816_v4 }
 0x6ac   : > { %v8009_v61 = vpop.f32.mrf.mxu1 }
 0x6ad   : > { %8204 = vst [vmem:[%s13912_s4 + $0x40] sm:$0xff] %v8168_v7  ;;  %v8171_v1 = vadd.f32 %v13901_v27, %v8128_v33  ;;  %v8126_v25 = vadd.f32 %v8009_v61, %v7816_v43  ;;  %v10268_v43 = vpop.f32.mrf.mxu0  ;;  %v7829_v33 = vadd.f32 %v13916_v9, %v13820_v59 }
 0x6ae   : > { %v10290_v10 = vpop.f32.mrf.mxu1 }
 0x6af   : > { %8207 = vst [vmem:[%s13912_s4 + $0x58] sm:$0xff] %v8171_v1  ;;  %v8169_v23 = vadd.f32 %v13901_v27, %v8126_v25  ;;  %v8131_v41 = vadd.f32 %v10290_v10, %v7821_v36  ;;  %v7827_v36 = vadd.f32 %v13926_v3, %v13826_v54  ;;  %v7776_v1 = vpop.f32.mrf.mxu0  ;;  %v7830_v10 = vadd.f32 %v13936_v46, %v13830_v37 }
 0x6b0   : > { %v8022_v49 = vpop.f32.mrf.mxu1 }
 0x6b1   : > { %8205 = vst [vmem:[%s13912_s4 + $0x48] sm:$0xff] %v8169_v23  ;;  %v8174_v58 = vadd.f32 %v13901_v27, %v8131_v41  ;;  %v8129_v38 = vadd.f32 %v8022_v49, %v7819_v26  ;;  %v7828_v23 = vadd.f32 %v13946_v63, %v13836_v20  ;;  %v10269_v41 = vpop.f32.mrf.mxu0 }
 0x6b2   : > { %v10291_v51 = vpop.f32.mrf.mxu1 }
 0x6b3   : > { %8210 = vst [vmem:[%s13912_s4 + $0x70] sm:$0xff] %v8174_v58  ;;  %v8172_v5 = vadd.f32 %v13901_v27, %v8129_v38  ;;  %v8132_v40 = vadd.f32 %v10291_v51, %v7822_v35  ;;  %v7833_v35 = vadd.f32 %v13956_v29, %v13840_v48  ;;  %v7831_v38 = vadd.f32 %v7760_v62, %v13846_v47  ;;  %v7779_v51 = vpop.f32.mrf.mxu0 }
 0x6b4   : > { %v8025_v22 = vpop.f32.mrf.mxu1 }
 0x6b5   : > { %8208 = vst [vmem:[%s13912_s4 + $0x60] sm:$0xff] %v8172_v5  ;;  %v8175_v12 = vadd.f32 %v13901_v27, %v8132_v40  ;;  %v8130_v42 = vadd.f32 %v8025_v22, %v7820_v53  ;;  %v7834_v5 = vadd.f32 %v10265_v56, %v13850_v31  ;;  %v7832_v22 = vadd.f32 %v7763_v45, %v13856_v11 }
 0x6b6   : > { %v10294_v2 = vpop.f32.mrf.mxu1 }
 0x6b7   : > { %8211 = vst [vmem:[%s13912_s4 + $0x78] sm:$0xff] %v8175_v12  ;;  %v8173_v34 = vadd.f32 %v13901_v27, %v8130_v42  ;;  %v8135_v39 = vadd.f32 %v10294_v2, %v7825_v52  ;;  %v10272_v52 = vpop.f32.mrf.mxu0  ;;  %v7837_v42 = vadd.f32 %v10268_v43, %v13860_v0 }
 0x6b8   : > { %v8038_v50 = vpop.f32.mrf.mxu1 }
 0x6b9   : > { %8209 = vst [vmem:[%s13912_s4 + $0x68] sm:$0xff] %v8173_v34  ;;  %v8178_v24 = vadd.f32 %v13901_v27, %v8135_v39  ;;  %v8133_v13 = vadd.f32 %v8038_v50, %v7823_v17  ;;  %v7835_v17 = vadd.f32 %v7776_v1, %v13866_v28  ;;  %v7792_v39 = vpop.f32.mrf.mxu0  ;;  %v7838_v50 = vadd.f32 %v10269_v41, %v13870_v14 }
 0x6ba   : > { %v10295_v15 = vpop.f32.mrf.mxu1 }
 0x6bb   : > { %8214 = vst [vmem:[%s13912_s4 + $0x90] sm:$0xff] %v8178_v24  ;;  %v8176_v30 = vadd.f32 %v13901_v27, %v8133_v13  ;;  %v8136_v21 = vadd.f32 %v10295_v15, %v7826_v32  ;;  %v7836_v13 = vadd.f32 %v7779_v51, %v13876_v6 }
 0x6bc   : > { %v8041_v7 = vpop.f32.mrf.mxu1 }
 0x6bd   : > { %8212 = vst [vmem:[%s13912_s4 + $0x80] sm:$0xff] %v8176_v30  ;;  %v8179_v44 = vadd.f32 %v13901_v27, %v8136_v21  ;;  %v8134_v60 = vadd.f32 %v8041_v7, %v7824_v8  ;;  %v10273_v8 = vpop.f32.mrf.mxu0  ;;  %v7841_v21 = vadd.f32 %v10272_v52, %v13880_v19 }
 0x6be   : > { %v10298_v61 = vpop.f32.mrf.mxu1 }
 0x6bf   : > { %8215 = vst [vmem:[%s13912_s4 + $0x98] sm:$0xff] %v8179_v44  ;;  %v8177_v4 = vadd.f32 %v13901_v27, %v8134_v60  ;;  %v8139_v57 = vadd.f32 %v10298_v61, %v7829_v33  ;;  %v7839_v33 = vadd.f32 %v7792_v39, %v13886_v55  ;;  %v7795_v60 = vpop.f32.mrf.mxu0 }
 0x6c0   : > { %v8054_v25 = vpop.f32.mrf.mxu1  ;;  %v7840_v55 = vadd.f32 %v7795_v60, %v13899_v16 }
 0x6c1   : > { %8213 = vst [vmem:[%s13912_s4 + $0x88] sm:$0xff] %v8177_v4  ;;  %v8182_v59 = vadd.f32 %v13901_v27, %v8139_v57  ;;  %v8137_v9 = vadd.f32 %v8054_v25, %v7827_v36  ;;  %v7842_v36 = vadd.f32 %v10273_v8, %v13891_v18 }
 0x6c2   : > { %v10299_v26 = vpop.f32.mrf.mxu1 }
 0x6c3   : > { %8218 = vst [vmem:[%s13912_s4 + $0xb0] sm:$0xff] %v8182_v59  ;;  %v8180_v54 = vadd.f32 %v13901_v27, %v8137_v9  ;;  %v8140_v3 = vadd.f32 %v10299_v26, %v7830_v10 }
 0x6c4   : > { %v8057_v49 = vpop.f32.mrf.mxu1 }
 0x6c5   : > { %8216 = vst [vmem:[%s13912_s4 + $0xa0] sm:$0xff] %v8180_v54  ;;  %v8183_v37 = vadd.f32 %v13901_v27, %v8140_v3  ;;  %v8138_v46 = vadd.f32 %v8057_v49, %v7828_v23 }
 0x6c6   : > { %v10302_v58 = vpop.f32.mrf.mxu1 }
 0x6c7   : > { %8219 = vst [vmem:[%s13912_s4 + $0xb8] sm:$0xff] %v8183_v37  ;;  %v8181_v20 = vadd.f32 %v13901_v27, %v8138_v46  ;;  %v8143_v63 = vadd.f32 %v10302_v58, %v7833_v35 }
 0x6c8   : > { %v8070_v53 = vpop.f32.mrf.mxu1 }
 0x6c9   : > { %8217 = vst [vmem:[%s13912_s4 + $0xa8] sm:$0xff] %v8181_v20  ;;  %v8186_v48 = vadd.f32 %v13901_v27, %v8143_v63  ;;  %v8141_v29 = vadd.f32 %v8070_v53, %v7831_v38 }
 0x6ca   : > { %v10303_v40 = vpop.f32.mrf.mxu1 }
 0x6cb   : > { %8222 = vst [vmem:[%s13912_s4 + $0xd0] sm:$0xff] %v8186_v48  ;;  %v8184_v47 = vadd.f32 %v13901_v27, %v8141_v29  ;;  %v8144_v62 = vadd.f32 %v10303_v40, %v7834_v5 }
 0x6cc   : > { %v8073_v12 = vpop.f32.mrf.mxu1 }
 0x6cd   : > { %8220 = vst [vmem:[%s13912_s4 + $0xc0] sm:$0xff] %v8184_v47  ;;  %v8187_v31 = vadd.f32 %v13901_v27, %v8144_v62  ;;  %v8142_v56 = vadd.f32 %v8073_v12, %v7832_v22 }
 0x6ce   : > { %v10306_v2 = vpop.f32.mrf.mxu1 }
 0x6cf   : > { %8223 = vst [vmem:[%s13912_s4 + $0xd8] sm:$0xff] %v8187_v31  ;;  %v8185_v11 = vadd.f32 %v13901_v27, %v8142_v56  ;;  %v8147_v34 = vadd.f32 %v10306_v2, %v7837_v42 }
 0x6d0   : > { %v8086_v45 = vpop.f32.mrf.mxu1 }
 0x6d1   : > { %8221 = vst [vmem:[%s13912_s4 + $0xc8] sm:$0xff] %v8185_v11  ;;  %v8190_v0 = vadd.f32 %v13901_v27, %v8147_v34  ;;  %v8145_v32 = vadd.f32 %v8086_v45, %v7835_v17 }
 0x6d2   : > { %v10307_v24 = vpop.f32.mrf.mxu1 }
 0x6d3   : > { %8226 = vst [vmem:[%s13912_s4 + $0xf0] sm:$0xff] %v8190_v0  ;;  %v8188_v28 = vadd.f32 %v13901_v27, %v8145_v32  ;;  %v8148_v15 = vadd.f32 %v10307_v24, %v7838_v50 }
 0x6d4   : > { %v8089_v30 = vpop.f32.mrf.mxu1 }
 0x6d5   : > { %8224 = vst [vmem:[%s13912_s4 + $0xe0] sm:$0xff] %v8188_v28  ;;  %v8191_v14 = vadd.f32 %v13901_v27, %v8148_v15  ;;  %v8146_v43 = vadd.f32 %v8089_v30, %v7836_v13 }
 0x6d6   : > { %v10310_v7 = vpop.f32.mrf.mxu1 }
 0x6d7   : > { %8227 = vst [vmem:[%s13912_s4 + $0xf8] sm:$0xff] %v8191_v14  ;;  %v8189_v6 = vadd.f32 %v13901_v27, %v8146_v43  ;;  %v8151_v44 = vadd.f32 %v10310_v7, %v7841_v21 }
 0x6d8   : > { %v8102_v61 = vpop.f32.mrf.mxu1 }
 0x6d9   : > { %8225 = vst [vmem:[%s13912_s4 + $0xe8] sm:$0xff] %v8189_v6  ;;  %v8194_v19 = vadd.f32 %v13901_v27, %v8151_v44  ;;  %v8149_v4 = vadd.f32 %v8102_v61, %v7839_v33 }
 0x6da   : > { %v10311_v57 = vpop.f32.mrf.mxu1 }
 0x6db   : > { %8230 = vst [vmem:[%s13912_s4 + $0x110] sm:$0xff] %v8194_v19  ;;  %v8192_v1 = vadd.f32 %v13901_v27, %v8149_v4  ;;  %v8152_v25 = vadd.f32 %v10311_v57, %v7842_v36 }
 0x6dc   : > { %v8105_v10 = vpop.f32.mrf.mxu1 }
 0x6dd   : > { %8228 = vst [vmem:[%s13912_s4 + $0x100] sm:$0xff] %v8192_v1  ;;  %v8195_v18 = vadd.f32 %v13901_v27, %v8152_v25  ;;  %v8150_v59 = vadd.f32 %v8105_v10, %v7840_v55 }
 0x6df   : > { %8231 = vst [vmem:[%s13912_s4 + $0x118] sm:$0xff] %v8195_v18  ;;  %v8193_v16 = vadd.f32 %v13901_v27, %v8150_v59 }
 0x6e1   : > { %8229 = vst [vmem:[%s13912_s4 + $0x108] sm:$0xff] %v8193_v16 }
 0x6e2   : > { %11164 = shalt.err (!%p11161_p7)
}
 0x6e3   : > { %s11165_s26 = scalar_lea.hbm %s14050_s13, 4608  ;;  %s11169_s20 = scalar_lea.hbm %s14112_s8, 9216 }
 0x6e4   : > { %p11166_p9 = scmp.ne.s32.totalorder %s14050_s13, %s11165_s26  ;;  %p11170_p2 = scmp.lt.s32.totalorder %s14050_s13, %s14112_s8 }
 0x6e5   : > { %p11171_p3 = scmp.lt.s32.totalorder %s11169_s20, %s11165_s26 }
 0x6e6   : > { %p11167_p12 = pnand %p11166_p9, %p14657_p8 }
 0x6e7   : > { %p11172_p13 = por %p11171_p3, %p11170_p2 }
 0x6e8   : > { %p11168_p1 = pneg %p11167_p12 }
 0x6ea   : > { %p11173_p0 = pnand %p11172_p13, %p11168_p1 }
 0x6ec   : > { %11176 = shalt.err (!%p11173_p0)
}
 0x6ed   : > { %s11264_s16 = smov 128   ;;  %s11265_s21 = smov 8  }
 0x6ee   : > { %10366 = dma.vmem_to_hbm [thread:$0]  (%p14657_p8), %s14052_s24, 4608, %s14050_s13, %s14059_s30, %s11264_s16, %s11264_s16, %s11265_s21  }
 0x6ef PF: > { %p10408_p5 = scmp.ge.s32.totalorder %s11243_s10, 2  ;;  %s8262_s11 = sand.u32 1, %s11223_s27  }
 0x6f0   : > { %p14658_p11 = scmp.ne.s32.totalorder %s14241_s17, 0  ;;  %s8263_s23 = scalar_lea.sflag [#allocation4], %s8262_s11 }
 0x6f2   : > { %p10391_p4 = pnand %p10408_p5, %p14658_p11 }
 0x6f4   : > { %p10392_p10 = pneg %p10391_p4 }
 0x6f6   : > { %11218 = dma.done.wait (%p10392_p10), %s8263_s23, 4608  }
 0x6f7   : > { %11220 = vsyncadd (%p10392_p10), %s8263_s23, 4294962688  ;;  %s25_s10 = sadd.s32 1, %s11243_s10   ;;  %s14659_s15 = sld [smem:[#allocation20_spill]] }
 0x6f8   : > { %p22_p6 = scmp.ge.s32.totalorder %s25_s10, 4   ;;  %s14660_s27 = smov %s11227_s28 }
 0x6f9   : > { %s14661_s28 = smov %s11231_s29  ;;  %s14662_s29 = smov %s11364_s18 }
 0x6fa   : > { %s14663_s30 = smov %s11239_s9  ;;  %24 = sbr.rel (!%p22_p6) target bundleno = 11 (0xb), region = 135 }
 0x6fd   : > { %s14664_s9 = smov %s14659_s15 }
 0x6ff   :  { %8268 = vsyncpa [#allocation3], 1 }
 0x700   :  { %8270 = vsyncpa [#allocation3 + $0x1], 1 }
 0x701   :  { %8271 = vsyncpa [#allocation6], 1 }
 0x702   :  { %8272 = vsyncpa [#allocation9], 1 }
 0x703   :  { %8273 = vsyncpa [#allocation12], 1 }
 0x704   :  { %8274 = vsyncpa [#allocation4], 1 }
 0x705   :  { %8276 = vsyncpa [#allocation4 + $0x1], 1 }

</bundles_post_ra>
